<compile_context>
chip_gen: v7x
topology: tpu7x:2x2x1
jax: 0.10.0
libtpu: 0.0.40
codegen_flags: <defaults>
</compile_context>

<pallas_src>
import functools

import jax
import jax.numpy as jnp
from jax import lax
from jax.experimental import pallas as pl
from jax.experimental.pallas import tpu as pltpu

_TA = 128      # anchors per grid step == lane width (always lane-dense)
_PC = 8        # positive rows processed per inner-loop iteration (static unroll)
_BIG = 1e30


def _manifold_triplet_kernel(
    qF_ref,    # [n_pad, nc]      f32  q, all points (point index on sublanes)
    qA_ref,    # [nc, TA]         f32  q, anchor tile (anchor index on lanes)
    cF_ref,    # [nc, n_pad, d]   f32  coords, all points
    cA_ref,    # [nc, d, TA]      f32  coords, anchor tile (anchor index on lanes)
    labF_ref,  # [n_pad, 1]       i32  labels, all points
    labA_ref,  # [1, TA]          i32  labels, anchor tile
    relu_ref,  # [1, 1, TA]       f32  out: per-anchor-lane sum of relu(losses)
    ngt_ref,   # [1, 1, TA]       i32  out: per-anchor-lane count of (losses > 0)
    cnt_ref,   # [1, 1, TA]       i32  out: per-anchor-lane number of valid triplets
    dpos_ref,  # [n_pad, TA]      f32  scratch: masked positive distances (+margin)
    *,
    margin,
    n_real,
    num_chunks,
    pc,
):
    i = pl.program_id(0)

    qF = qF_ref[...]
    qA = qA_ref[...]
    cF = cF_ref[...]
    cA = cA_ref[...]
    labF = labF_ref[...]
    labA = labA_ref[...]

    nc, d, ta = cA.shape
    n_pad = qF.shape[0]

    # --- manifold distances, transposed layout: dist[j, a] ---------------------------
    # point index j on sublanes, anchor index a on the 128-lane axis (lane-dense).
    # Direct per-chart squared differences on the VPU; nc*d is tiny and static.
    dist = jnp.zeros((n_pad, ta), jnp.float32)
    for c in range(nc):
        sq = jnp.zeros((n_pad, ta), jnp.float32)
        for k in range(d):
            dk = cF[c, :, k:k + 1] - cA[c, k:k + 1, :]      # [n_pad,1]-[1,ta]
            sq = sq + dk * dk
        w = qF[:, c:c + 1] * qA[c:c + 1, :]                 # q[j,c] * q[a,c]
        dist = dist + w * jnp.sqrt(sq)

    # --- label / validity masks (2-D only, no [n,n,n] mask tensors) ------------------
    pidx = lax.broadcasted_iota(jnp.int32, (n_pad, ta), 0)            # point index j
    aidx = i * ta + lax.broadcasted_iota(jnp.int32, (n_pad, ta), 1)   # global anchor
    valid = jnp.logical_and(pidx < n_real, aidx < n_real)             # drop padding
    eq = labF == labA
    same = jnp.logical_and(jnp.logical_and(eq, pidx != aidx), valid)  # positives
    diff = jnp.logical_and(jnp.logical_not(eq), valid)                # negatives

    big = jnp.float32(_BIG)
    d_pos = jnp.where(same, dist + margin, -big)     # margin folded into d_pos
    d_neg = jnp.where(diff, dist, big)

    dpos_ref[...] = d_pos

    # --- chunked triplet stream: never materializes a [TA, n, n] slab ----------------
    # For each positive row p: t[n, a] = d_pos[p, a] - d_neg[n, a] (a sublane
    # broadcast of one row against the resident [n_pad, ta] matrix).  Relu-sum and
    # the (>0) count are reduced in the SAME pass into [1, ta] lane accumulators
    # (f32 / int32); the cross-lane collapse happens once, in the wrapper.
    def chunk_body(j, carry):
        acc_r, acc_c = carry
        p0 = pl.multiple_of(j * pc, pc)
        for u in range(pc):                               # static unroll (pc rows)
            dp_row = dpos_ref[pl.ds(p0 + u, 1), :]        # [1, ta]
            t = dp_row - d_neg                            # [n_pad, ta]
            acc_r = acc_r + jnp.sum(jnp.maximum(t, 0.0), axis=0, keepdims=True)
            acc_c = acc_c + jnp.sum((t > 0.0).astype(jnp.int32),
                                    axis=0, keepdims=True)
        return acc_r, acc_c

    acc_r, acc_c = lax.fori_loop(
        0, num_chunks, chunk_body,
        (jnp.zeros((1, ta), jnp.float32), jnp.zeros((1, ta), jnp.int32)))

    # valid-triplet count is separable per anchor: pos_count * neg_count (exact int32).
    pos_cnt = jnp.sum(same.astype(jnp.int32), axis=0, keepdims=True)   # [1, ta]
    neg_cnt = jnp.sum(diff.astype(jnp.int32), axis=0, keepdims=True)   # [1, ta]

    relu_ref[...] = acc_r.reshape(1, 1, ta)
    ngt_ref[...] = acc_c.reshape(1, 1, ta)
    cnt_ref[...] = (pos_cnt * neg_cnt).reshape(1, 1, ta)


def _round_up(x, m):
    return ((x + m - 1) // m) * m


def manifold_triplet_loss(q, coords, labels, margin=0.2):
    """q: [n, nc] f32, coords: [n, nc, d] f32, labels: [n] int. Returns (loss, n_eg)."""
    n, nc = q.shape
    d = coords.shape[-1]

    ta = _TA
    n_pad = _round_up(n, ta)     # multiple of 128: lane/sublane dense everywhere
    pad = n_pad - n

    qf = q.astype(jnp.float32)   # all math in f32 (v5e has no bf16 VPU/EUP)
    cf = coords.astype(jnp.float32)
    lab = labels.astype(jnp.int32)
    if pad:
        qf = jnp.pad(qf, ((0, pad), (0, 0)))
        cf = jnp.pad(cf, ((0, pad), (0, 0), (0, 0)))
        lab = jnp.pad(lab, ((0, pad),))

    q_rows = qf                               # [n_pad, nc]     points on sublanes
    q_cm = jnp.transpose(qf, (1, 0))          # [nc, n_pad]     anchors sliced on lanes
    c_rows = jnp.transpose(cf, (1, 0, 2))     # [nc, n_pad, d]  points on sublanes
    c_cm = jnp.transpose(cf, (1, 2, 0))       # [nc, d, n_pad]  anchors sliced on lanes
    lab_col = lab.reshape(n_pad, 1)
    lab_row = lab.reshape(1, n_pad)

    grid_n = n_pad // ta
    pc = _PC
    num_chunks = n_pad // pc

    kernel = functools.partial(
        _manifold_triplet_kernel,
        margin=float(margin), n_real=n, num_chunks=num_chunks, pc=pc)

    # VMEM budget sized from the actual working set and the chip's capacity:
    # dist / d_pos / d_neg / scratch (4 x n_pad*128*4) + streamed per-row transients
    # + small double-buffered invariant inputs.
    try:
        info = pltpu.get_tpu_info()
        vmem_cap = int(getattr(info, "vmem_capacity_bytes", 64 * 1024 * 1024))
    except Exception:  # pragma: no cover - conservative fallback
        vmem_cap = 64 * 1024 * 1024
    work = 8 * n_pad * ta * 4
    inp = 2 * 4 * (2 * n_pad * nc + 2 * n_pad * nc * d + 2 * n_pad)
    vmem_limit = int(min(vmem_cap * 3 // 4,
                         max(32 * 1024 * 1024, 2 * (work + inp) + (8 << 20))))

    cost = pl.CostEstimate(
        flops=int(6 * n * n * n + nc * n * n * (3 * d + 6)),
        transcendentals=int(nc * n * n),            # per-chart sqrt per pair
        bytes_accessed=int(4 * (2 * qf.size + 2 * cf.size + 2 * lab.size)
                           + 3 * grid_n * ta * 4),
    )

    out_relu, out_ngt, out_cnt = pl.pallas_call(
        kernel,
        out_shape=(
            jax.ShapeDtypeStruct((grid_n, 1, ta), jnp.float32),
            jax.ShapeDtypeStruct((grid_n, 1, ta), jnp.int32),
            jax.ShapeDtypeStruct((grid_n, 1, ta), jnp.int32),
        ),
        grid_spec=pltpu.PrefetchScalarGridSpec(
            num_scalar_prefetch=0,
            grid=(grid_n,),
            in_specs=[
                pl.BlockSpec((n_pad, nc), lambda i: (0, 0)),         # q, all points
                pl.BlockSpec((nc, ta), lambda i: (0, i)),            # q, anchor tile
                pl.BlockSpec((nc, n_pad, d), lambda i: (0, 0, 0)),   # coords, all
                pl.BlockSpec((nc, d, ta), lambda i: (0, 0, i)),      # coords, anchors
                pl.BlockSpec((n_pad, 1), lambda i: (0, 0)),          # labels, all
                pl.BlockSpec((1, ta), lambda i: (0, i)),             # labels, anchors
            ],
            out_specs=(
                pl.BlockSpec((1, 1, ta), lambda i: (i, 0, 0)),
                pl.BlockSpec((1, 1, ta), lambda i: (i, 0, 0)),
                pl.BlockSpec((1, 1, ta), lambda i: (i, 0, 0)),
            ),
            scratch_shapes=[pltpu.VMEM((n_pad, ta), jnp.float32)],   # masked d_pos
        ),
        compiler_params=pltpu.CompilerParams(
            # Per-tile partial outputs -> no cross-step state -> both TCs on v7x.
            dimension_semantics=("parallel",),
            vmem_limit_bytes=vmem_limit,
        ),
        cost_estimate=cost,
    )(q_rows, q_cm, c_rows, c_cm, lab_col, lab_row)

    relu_sum = jnp.sum(out_relu)
    n_trip = jnp.sum(out_cnt)                 # exact int32 triplet count
    n_eg = jnp.sum(out_ngt)                   # exact int32 count of (losses > 0)
    # NaN when no valid triplet exists (matches torch mean over an empty tensor).
    loss = relu_sum / n_trip.astype(jnp.float32)
    return loss, n_eg


if __name__ == "__main__":
    key = jax.random.PRNGKey(0)
    n, nc, d = 200, 4, 3
    k1, k2, k3 = jax.random.split(key, 3)

    # deterministic synthetic inputs consistent with the module's forward signature
    q = jax.nn.softmax(jax.random.normal(k1, (n, nc), jnp.float32), axis=-1)   # [n, nc]
    coords = jax.nn.sigmoid(jax.random.normal(k2, (n, nc, d), jnp.float32))    # [n, nc, d]
    labels = jax.random.randint(k3, (n,), 0, 8)                                # [n]

    # n = 200 -> n_pad = 256: exercises two grid tiles (parallel axis), anchor padding,
    # and the chunked inner fori_loop.
    loss, n_eg = manifold_triplet_loss(q, coords, labels, margin=0.2)
    jax.block_until_ready((loss, n_eg))
    print("KERNEL_OK")
</pallas_src>

<mosaic_0001>
module attributes {stable_mosaic.version = 11 : i64} {
  func.func @_manifold_triplet_kernel(%arg0: i32, %arg1: memref<256x4xf32, #tpu.memory_space<vmem>>, %arg2: memref<4x128xf32, #tpu.memory_space<vmem>>, %arg3: memref<4x256x3xf32, #tpu.memory_space<vmem>>, %arg4: memref<4x3x128xf32, #tpu.memory_space<vmem>>, %arg5: memref<256x1xi32, #tpu.memory_space<vmem>>, %arg6: memref<1x128xi32, #tpu.memory_space<vmem>>, %arg7: memref<1x1x128xf32, #tpu.memory_space<vmem>>, %arg8: memref<1x1x128xi32, #tpu.memory_space<vmem>>, %arg9: memref<1x1x128xi32, #tpu.memory_space<vmem>>, %arg10: memref<256x128xf32, #tpu.memory_space<vmem>>) attributes {dimension_semantics = [#tpu.dimension_semantics<parallel>], iteration_bounds = array<i64: 2>, scalar_prefetch = 0 : i64, scratch_operands = 1 : i64, tpu.core_type = #tpu.core_type<tc>, window_params = [{pipeline_mode = #tpu.pipeline_mode<synchronous>, transform_indices = @transform_0, window_bounds = array<i64: 256, 4>}, {transform_indices = @transform_1, window_bounds = array<i64: 4, 128>}, {pipeline_mode = #tpu.pipeline_mode<synchronous>, transform_indices = @transform_2, window_bounds = array<i64: 4, 256, 3>}, {transform_indices = @transform_3, window_bounds = array<i64: 4, 3, 128>}, {pipeline_mode = #tpu.pipeline_mode<synchronous>, transform_indices = @transform_4, window_bounds = array<i64: 256, 1>}, {transform_indices = @transform_5, window_bounds = array<i64: 1, 128>}, {transform_indices = @transform_6, window_bounds = array<i64: 1, 1, 128>}, {transform_indices = @transform_7, window_bounds = array<i64: 1, 1, 128>}, {transform_indices = @transform_8, window_bounds = array<i64: 1, 1, 128>}]} {
    %c0 = arith.constant 0 : index
    %c0_0 = arith.constant 0 : index
    %0 = vector.load %arg1[%c0, %c0_0] : memref<256x4xf32, #tpu.memory_space<vmem>>, vector<256x4xf32>
    %c0_1 = arith.constant 0 : index
    %c0_2 = arith.constant 0 : index
    %1 = vector.load %arg2[%c0_1, %c0_2] : memref<4x128xf32, #tpu.memory_space<vmem>>, vector<4x128xf32>
    %c0_3 = arith.constant 0 : index
    %c0_4 = arith.constant 0 : index
    %c0_5 = arith.constant 0 : index
    %2 = vector.load %arg3[%c0_3, %c0_4, %c0_5] : memref<4x256x3xf32, #tpu.memory_space<vmem>>, vector<4x256x3xf32>
    %c0_6 = arith.constant 0 : index
    %c0_7 = arith.constant 0 : index
    %c0_8 = arith.constant 0 : index
    %3 = vector.load %arg4[%c0_6, %c0_7, %c0_8] : memref<4x3x128xf32, #tpu.memory_space<vmem>>, vector<4x3x128xf32>
    %c0_9 = arith.constant 0 : index
    %c0_10 = arith.constant 0 : index
    %4 = vector.load %arg5[%c0_9, %c0_10] : memref<256x1xi32, #tpu.memory_space<vmem>>, vector<256x1xi32>
    %c0_11 = arith.constant 0 : index
    %c0_12 = arith.constant 0 : index
    %5 = vector.load %arg6[%c0_11, %c0_12] : memref<1x128xi32, #tpu.memory_space<vmem>>, vector<1x128xi32>
    %cst = arith.constant 0.000000e+00 : f32
    %6 = vector.broadcast %cst : f32 to vector<256x128xf32>
    %cst_13 = arith.constant 0.000000e+00 : f32
    %7 = vector.broadcast %cst_13 : f32 to vector<256x128xf32>
    %8 = vector.extract_strided_slice %2 {offsets = [0, 0, 0], sizes = [1, 256, 1], strides = [1, 1, 1]} : vector<4x256x3xf32> to vector<1x256x1xf32>
    %9 = vector.shape_cast %8 : vector<1x256x1xf32> to vector<256x1xf32>
    %10 = vector.extract_strided_slice %3 {offsets = [0, 0, 0], sizes = [1, 1, 128], strides = [1, 1, 1]} : vector<4x3x128xf32> to vector<1x1x128xf32>
    %11 = vector.shape_cast %10 : vector<1x1x128xf32> to vector<1x128xf32>
    %12 = vector.broadcast %9 : vector<256x1xf32> to vector<256x128xf32>
    %13 = vector.broadcast %11 : vector<1x128xf32> to vector<256x128xf32>
    %14 = arith.subf %12, %13 : vector<256x128xf32>
    %15 = arith.mulf %14, %14 : vector<256x128xf32>
    %16 = arith.addf %7, %15 : vector<256x128xf32>
    %17 = vector.extract_strided_slice %2 {offsets = [0, 0, 1], sizes = [1, 256, 1], strides = [1, 1, 1]} : vector<4x256x3xf32> to vector<1x256x1xf32>
    %18 = vector.shape_cast %17 : vector<1x256x1xf32> to vector<256x1xf32>
    %19 = vector.extract_strided_slice %3 {offsets = [0, 1, 0], sizes = [1, 1, 128], strides = [1, 1, 1]} : vector<4x3x128xf32> to vector<1x1x128xf32>
    %20 = vector.shape_cast %19 : vector<1x1x128xf32> to vector<1x128xf32>
    %21 = vector.broadcast %18 : vector<256x1xf32> to vector<256x128xf32>
    %22 = vector.broadcast %20 : vector<1x128xf32> to vector<256x128xf32>
    %23 = arith.subf %21, %22 : vector<256x128xf32>
    %24 = arith.mulf %23, %23 : vector<256x128xf32>
    %25 = arith.addf %16, %24 : vector<256x128xf32>
    %26 = vector.extract_strided_slice %2 {offsets = [0, 0, 2], sizes = [1, 256, 1], strides = [1, 1, 1]} : vector<4x256x3xf32> to vector<1x256x1xf32>
    %27 = vector.shape_cast %26 : vector<1x256x1xf32> to vector<256x1xf32>
    %28 = vector.extract_strided_slice %3 {offsets = [0, 2, 0], sizes = [1, 1, 128], strides = [1, 1, 1]} : vector<4x3x128xf32> to vector<1x1x128xf32>
    %29 = vector.shape_cast %28 : vector<1x1x128xf32> to vector<1x128xf32>
    %30 = vector.broadcast %27 : vector<256x1xf32> to vector<256x128xf32>
    %31 = vector.broadcast %29 : vector<1x128xf32> to vector<256x128xf32>
    %32 = arith.subf %30, %31 : vector<256x128xf32>
    %33 = arith.mulf %32, %32 : vector<256x128xf32>
    %34 = arith.addf %25, %33 : vector<256x128xf32>
    %35 = vector.extract_strided_slice %0 {offsets = [0, 0], sizes = [256, 1], strides = [1, 1]} : vector<256x4xf32> to vector<256x1xf32>
    %36 = vector.extract_strided_slice %1 {offsets = [0, 0], sizes = [1, 128], strides = [1, 1]} : vector<4x128xf32> to vector<1x128xf32>
    %37 = vector.broadcast %35 : vector<256x1xf32> to vector<256x128xf32>
    %38 = vector.broadcast %36 : vector<1x128xf32> to vector<256x128xf32>
    %39 = arith.mulf %37, %38 : vector<256x128xf32>
    %40 = math.sqrt %34 : vector<256x128xf32>
    %41 = arith.mulf %39, %40 : vector<256x128xf32>
    %42 = arith.addf %6, %41 : vector<256x128xf32>
    %cst_14 = arith.constant 0.000000e+00 : f32
    %43 = vector.broadcast %cst_14 : f32 to vector<256x128xf32>
    %44 = vector.extract_strided_slice %2 {offsets = [1, 0, 0], sizes = [1, 256, 1], strides = [1, 1, 1]} : vector<4x256x3xf32> to vector<1x256x1xf32>
    %45 = vector.shape_cast %44 : vector<1x256x1xf32> to vector<256x1xf32>
    %46 = vector.extract_strided_slice %3 {offsets = [1, 0, 0], sizes = [1, 1, 128], strides = [1, 1, 1]} : vector<4x3x128xf32> to vector<1x1x128xf32>
    %47 = vector.shape_cast %46 : vector<1x1x128xf32> to vector<1x128xf32>
    %48 = vector.broadcast %45 : vector<256x1xf32> to vector<256x128xf32>
    %49 = vector.broadcast %47 : vector<1x128xf32> to vector<256x128xf32>
    %50 = arith.subf %48, %49 : vector<256x128xf32>
    %51 = arith.mulf %50, %50 : vector<256x128xf32>
    %52 = arith.addf %43, %51 : vector<256x128xf32>
    %53 = vector.extract_strided_slice %2 {offsets = [1, 0, 1], sizes = [1, 256, 1], strides = [1, 1, 1]} : vector<4x256x3xf32> to vector<1x256x1xf32>
    %54 = vector.shape_cast %53 : vector<1x256x1xf32> to vector<256x1xf32>
    %55 = vector.extract_strided_slice %3 {offsets = [1, 1, 0], sizes = [1, 1, 128], strides = [1, 1, 1]} : vector<4x3x128xf32> to vector<1x1x128xf32>
    %56 = vector.shape_cast %55 : vector<1x1x128xf32> to vector<1x128xf32>
    %57 = vector.broadcast %54 : vector<256x1xf32> to vector<256x128xf32>
    %58 = vector.broadcast %56 : vector<1x128xf32> to vector<256x128xf32>
    %59 = arith.subf %57, %58 : vector<256x128xf32>
    %60 = arith.mulf %59, %59 : vector<256x128xf32>
    %61 = arith.addf %52, %60 : vector<256x128xf32>
    %62 = vector.extract_strided_slice %2 {offsets = [1, 0, 2], sizes = [1, 256, 1], strides = [1, 1, 1]} : vector<4x256x3xf32> to vector<1x256x1xf32>
    %63 = vector.shape_cast %62 : vector<1x256x1xf32> to vector<256x1xf32>
    %64 = vector.extract_strided_slice %3 {offsets = [1, 2, 0], sizes = [1, 1, 128], strides = [1, 1, 1]} : vector<4x3x128xf32> to vector<1x1x128xf32>
    %65 = vector.shape_cast %64 : vector<1x1x128xf32> to vector<1x128xf32>
    %66 = vector.broadcast %63 : vector<256x1xf32> to vector<256x128xf32>
    %67 = vector.broadcast %65 : vector<1x128xf32> to vector<256x128xf32>
    %68 = arith.subf %66, %67 : vector<256x128xf32>
    %69 = arith.mulf %68, %68 : vector<256x128xf32>
    %70 = arith.addf %61, %69 : vector<256x128xf32>
    %71 = vector.extract_strided_slice %0 {offsets = [0, 1], sizes = [256, 1], strides = [1, 1]} : vector<256x4xf32> to vector<256x1xf32>
    %72 = vector.extract_strided_slice %1 {offsets = [1, 0], sizes = [1, 128], strides = [1, 1]} : vector<4x128xf32> to vector<1x128xf32>
    %73 = vector.broadcast %71 : vector<256x1xf32> to vector<256x128xf32>
    %74 = vector.broadcast %72 : vector<1x128xf32> to vector<256x128xf32>
    %75 = arith.mulf %73, %74 : vector<256x128xf32>
    %76 = math.sqrt %70 : vector<256x128xf32>
    %77 = arith.mulf %75, %76 : vector<256x128xf32>
    %78 = arith.addf %42, %77 : vector<256x128xf32>
    %cst_15 = arith.constant 0.000000e+00 : f32
    %79 = vector.broadcast %cst_15 : f32 to vector<256x128xf32>
    %80 = vector.extract_strided_slice %2 {offsets = [2, 0, 0], sizes = [1, 256, 1], strides = [1, 1, 1]} : vector<4x256x3xf32> to vector<1x256x1xf32>
    %81 = vector.shape_cast %80 : vector<1x256x1xf32> to vector<256x1xf32>
    %82 = vector.extract_strided_slice %3 {offsets = [2, 0, 0], sizes = [1, 1, 128], strides = [1, 1, 1]} : vector<4x3x128xf32> to vector<1x1x128xf32>
    %83 = vector.shape_cast %82 : vector<1x1x128xf32> to vector<1x128xf32>
    %84 = vector.broadcast %81 : vector<256x1xf32> to vector<256x128xf32>
    %85 = vector.broadcast %83 : vector<1x128xf32> to vector<256x128xf32>
    %86 = arith.subf %84, %85 : vector<256x128xf32>
    %87 = arith.mulf %86, %86 : vector<256x128xf32>
    %88 = arith.addf %79, %87 : vector<256x128xf32>
    %89 = vector.extract_strided_slice %2 {offsets = [2, 0, 1], sizes = [1, 256, 1], strides = [1, 1, 1]} : vector<4x256x3xf32> to vector<1x256x1xf32>
    %90 = vector.shape_cast %89 : vector<1x256x1xf32> to vector<256x1xf32>
    %91 = vector.extract_strided_slice %3 {offsets = [2, 1, 0], sizes = [1, 1, 128], strides = [1, 1, 1]} : vector<4x3x128xf32> to vector<1x1x128xf32>
    %92 = vector.shape_cast %91 : vector<1x1x128xf32> to vector<1x128xf32>
    %93 = vector.broadcast %90 : vector<256x1xf32> to vector<256x128xf32>
    %94 = vector.broadcast %92 : vector<1x128xf32> to vector<256x128xf32>
    %95 = arith.subf %93, %94 : vector<256x128xf32>
    %96 = arith.mulf %95, %95 : vector<256x128xf32>
    %97 = arith.addf %88, %96 : vector<256x128xf32>
    %98 = vector.extract_strided_slice %2 {offsets = [2, 0, 2], sizes = [1, 256, 1], strides = [1, 1, 1]} : vector<4x256x3xf32> to vector<1x256x1xf32>
    %99 = vector.shape_cast %98 : vector<1x256x1xf32> to vector<256x1xf32>
    %100 = vector.extract_strided_slice %3 {offsets = [2, 2, 0], sizes = [1, 1, 128], strides = [1, 1, 1]} : vector<4x3x128xf32> to vector<1x1x128xf32>
    %101 = vector.shape_cast %100 : vector<1x1x128xf32> to vector<1x128xf32>
    %102 = vector.broadcast %99 : vector<256x1xf32> to vector<256x128xf32>
    %103 = vector.broadcast %101 : vector<1x128xf32> to vector<256x128xf32>
    %104 = arith.subf %102, %103 : vector<256x128xf32>
    %105 = arith.mulf %104, %104 : vector<256x128xf32>
    %106 = arith.addf %97, %105 : vector<256x128xf32>
    %107 = vector.extract_strided_slice %0 {offsets = [0, 2], sizes = [256, 1], strides = [1, 1]} : vector<256x4xf32> to vector<256x1xf32>
    %108 = vector.extract_strided_slice %1 {offsets = [2, 0], sizes = [1, 128], strides = [1, 1]} : vector<4x128xf32> to vector<1x128xf32>
    %109 = vector.broadcast %107 : vector<256x1xf32> to vector<256x128xf32>
    %110 = vector.broadcast %108 : vector<1x128xf32> to vector<256x128xf32>
    %111 = arith.mulf %109, %110 : vector<256x128xf32>
    %112 = math.sqrt %106 : vector<256x128xf32>
    %113 = arith.mulf %111, %112 : vector<256x128xf32>
    %114 = arith.addf %78, %113 : vector<256x128xf32>
    %cst_16 = arith.constant 0.000000e+00 : f32
    %115 = vector.broadcast %cst_16 : f32 to vector<256x128xf32>
    %116 = vector.extract_strided_slice %2 {offsets = [3, 0, 0], sizes = [1, 256, 1], strides = [1, 1, 1]} : vector<4x256x3xf32> to vector<1x256x1xf32>
    %117 = vector.shape_cast %116 : vector<1x256x1xf32> to vector<256x1xf32>
    %118 = vector.extract_strided_slice %3 {offsets = [3, 0, 0], sizes = [1, 1, 128], strides = [1, 1, 1]} : vector<4x3x128xf32> to vector<1x1x128xf32>
    %119 = vector.shape_cast %118 : vector<1x1x128xf32> to vector<1x128xf32>
    %120 = vector.broadcast %117 : vector<256x1xf32> to vector<256x128xf32>
    %121 = vector.broadcast %119 : vector<1x128xf32> to vector<256x128xf32>
    %122 = arith.subf %120, %121 : vector<256x128xf32>
    %123 = arith.mulf %122, %122 : vector<256x128xf32>
    %124 = arith.addf %115, %123 : vector<256x128xf32>
    %125 = vector.extract_strided_slice %2 {offsets = [3, 0, 1], sizes = [1, 256, 1], strides = [1, 1, 1]} : vector<4x256x3xf32> to vector<1x256x1xf32>
    %126 = vector.shape_cast %125 : vector<1x256x1xf32> to vector<256x1xf32>
    %127 = vector.extract_strided_slice %3 {offsets = [3, 1, 0], sizes = [1, 1, 128], strides = [1, 1, 1]} : vector<4x3x128xf32> to vector<1x1x128xf32>
    %128 = vector.shape_cast %127 : vector<1x1x128xf32> to vector<1x128xf32>
    %129 = vector.broadcast %126 : vector<256x1xf32> to vector<256x128xf32>
    %130 = vector.broadcast %128 : vector<1x128xf32> to vector<256x128xf32>
    %131 = arith.subf %129, %130 : vector<256x128xf32>
    %132 = arith.mulf %131, %131 : vector<256x128xf32>
    %133 = arith.addf %124, %132 : vector<256x128xf32>
    %134 = vector.extract_strided_slice %2 {offsets = [3, 0, 2], sizes = [1, 256, 1], strides = [1, 1, 1]} : vector<4x256x3xf32> to vector<1x256x1xf32>
    %135 = vector.shape_cast %134 : vector<1x256x1xf32> to vector<256x1xf32>
    %136 = vector.extract_strided_slice %3 {offsets = [3, 2, 0], sizes = [1, 1, 128], strides = [1, 1, 1]} : vector<4x3x128xf32> to vector<1x1x128xf32>
    %137 = vector.shape_cast %136 : vector<1x1x128xf32> to vector<1x128xf32>
    %138 = vector.broadcast %135 : vector<256x1xf32> to vector<256x128xf32>
    %139 = vector.broadcast %137 : vector<1x128xf32> to vector<256x128xf32>
    %140 = arith.subf %138, %139 : vector<256x128xf32>
    %141 = arith.mulf %140, %140 : vector<256x128xf32>
    %142 = arith.addf %133, %141 : vector<256x128xf32>
    %143 = vector.extract_strided_slice %0 {offsets = [0, 3], sizes = [256, 1], strides = [1, 1]} : vector<256x4xf32> to vector<256x1xf32>
    %144 = vector.extract_strided_slice %1 {offsets = [3, 0], sizes = [1, 128], strides = [1, 1]} : vector<4x128xf32> to vector<1x128xf32>
    %145 = vector.broadcast %143 : vector<256x1xf32> to vector<256x128xf32>
    %146 = vector.broadcast %144 : vector<1x128xf32> to vector<256x128xf32>
    %147 = arith.mulf %145, %146 : vector<256x128xf32>
    %148 = math.sqrt %142 : vector<256x128xf32>
    %149 = arith.mulf %147, %148 : vector<256x128xf32>
    %150 = arith.addf %114, %149 : vector<256x128xf32>
    %151 = tpu.iota {dimensions = array<i32: 0>} : vector<256x128xi32>
    %c128_i32 = arith.constant 128 : i32
    %152 = arith.muli %arg0, %c128_i32 : i32
    %153 = tpu.iota {dimensions = array<i32: 1>} : vector<256x128xi32>
    %154 = vector.broadcast %152 : i32 to vector<256x128xi32>
    %155 = arith.addi %154, %153 : vector<256x128xi32>
    %c200_i32 = arith.constant 200 : i32
    %156 = vector.broadcast %c200_i32 : i32 to vector<256x128xi32>
    %157 = arith.cmpi slt, %151, %156 : vector<256x128xi32>
    %c200_i32_17 = arith.constant 200 : i32
    %158 = vector.broadcast %c200_i32_17 : i32 to vector<256x128xi32>
    %159 = arith.cmpi slt, %155, %158 : vector<256x128xi32>
    %160 = arith.andi %157, %159 : vector<256x128xi1>
    %161 = vector.broadcast %4 : vector<256x1xi32> to vector<256x128xi32>
    %162 = vector.broadcast %5 : vector<1x128xi32> to vector<256x128xi32>
    %163 = arith.cmpi eq, %161, %162 : vector<256x128xi32>
    %164 = arith.cmpi ne, %151, %155 : vector<256x128xi32>
    %165 = arith.andi %163, %164 : vector<256x128xi1>
    %166 = arith.andi %165, %160 : vector<256x128xi1>
    %cst_18 = arith.constant dense<true> : vector<256x128xi1>
    %167 = arith.xori %163, %cst_18 : vector<256x128xi1>
    %168 = arith.andi %167, %160 : vector<256x128xi1>
    %cst_19 = arith.constant 2.000000e-01 : f32
    %169 = vector.broadcast %cst_19 : f32 to vector<256x128xf32>
    %170 = arith.addf %150, %169 : vector<256x128xf32>
    %cst_20 = arith.constant 0.000000e+00 : f32
    %cst_21 = arith.constant 1.000000e+30 : f32
    %171 = arith.subf %cst_20, %cst_21 : f32
    %172 = vector.broadcast %171 : f32 to vector<256x128xf32>
    %173 = arith.select %166, %170, %172 : vector<256x128xi1>, vector<256x128xf32>
    %cst_22 = arith.constant 1.000000e+30 : f32
    %174 = vector.broadcast %cst_22 : f32 to vector<256x128xf32>
    %175 = arith.select %168, %150, %174 : vector<256x128xi1>, vector<256x128xf32>
    %c0_23 = arith.constant 0 : index
    %c0_24 = arith.constant 0 : index
    %176 = vector.load %arg10[%c0_23, %c0_24] : memref<256x128xf32, #tpu.memory_space<vmem>>, vector<256x128xf32>
    tpu.vector_store %arg10[%c0_23, %c0_24], %173 {strides = array<i32>} : memref<256x128xf32, #tpu.memory_space<vmem>>, vector<256x128xf32>,
    %cst_25 = arith.constant 0.000000e+00 : f32
    %177 = vector.broadcast %cst_25 : f32 to vector<1x128xf32>
    %c0_i32 = arith.constant 0 : i32
    %178 = vector.broadcast %c0_i32 : i32 to vector<1x128xi32>
    %c0_i32_26 = arith.constant 0 : i32
    %c32_i32 = arith.constant 32 : i32
    %179 = arith.addi %c0_i32_26, %c32_i32 : i32
    %c1_i32 = arith.constant 1 : i32
    %180:2 = scf.for %arg11 = %c0_i32_26 to %179 step %c1_i32 iter_args(%arg12 = %177, %arg13 = %178) -> (vector<1x128xf32>, vector<1x128xi32>)  : i32 {
      %c8_i32 = arith.constant 8 : i32
      %194 = arith.muli %arg11, %c8_i32 : i32
      %195 = tpu.assume_multiple %194, 8 : i32
      %c0_i32_39 = arith.constant 0 : i32
      %196 = arith.addi %195, %c0_i32_39 : i32
      %197 = arith.index_cast %196 : i32 to index
      %c0_40 = arith.constant 0 : index
      %198 = vector.load %arg10[%197, %c0_40] : memref<256x128xf32, #tpu.memory_space<vmem>>, vector<1x128xf32>
      %199 = vector.broadcast %198 : vector<1x128xf32> to vector<256x128xf32>
      %200 = arith.subf %199, %175 : vector<256x128xf32>
      %cst_41 = arith.constant 0.000000e+00 : f32
      %201 = vector.broadcast %cst_41 : f32 to vector<256x128xf32>
      %202 = arith.maximumf %200, %201 : vector<256x128xf32>
      %cst_42 = arith.constant dense<0.000000e+00> : vector<128xf32>
      %203 = vector.multi_reduction <add>, %202, %cst_42 [0] : vector<256x128xf32> to vector<128xf32>
      %204 = vector.shape_cast %203 : vector<128xf32> to vector<1x128xf32>
      %205 = arith.addf %arg12, %204 : vector<1x128xf32>
      %cst_43 = arith.constant 0.000000e+00 : f32
      %206 = vector.broadcast %cst_43 : f32 to vector<256x128xf32>
      %207 = arith.cmpf ogt, %200, %206 : vector<256x128xf32>
      %208 = arith.extui %207 : vector<256x128xi1> to vector<256x128xi32>
      %cst_44 = arith.constant dense<0> : vector<128xi32>
      %209 = vector.multi_reduction <add>, %208, %cst_44 [0] : vector<256x128xi32> to vector<128xi32>
      %210 = vector.shape_cast %209 : vector<128xi32> to vector<1x128xi32>
      %211 = arith.addi %arg13, %210 : vector<1x128xi32>
      %c1_i32_45 = arith.constant 1 : i32
      %212 = arith.addi %195, %c1_i32_45 : i32
      %213 = arith.index_cast %212 : i32 to index
      %c0_46 = arith.constant 0 : index
      %214 = vector.load %arg10[%213, %c0_46] : memref<256x128xf32, #tpu.memory_space<vmem>>, vector<1x128xf32>
      %215 = vector.broadcast %214 : vector<1x128xf32> to vector<256x128xf32>
      %216 = arith.subf %215, %175 : vector<256x128xf32>
      %cst_47 = arith.constant 0.000000e+00 : f32
      %217 = vector.broadcast %cst_47 : f32 to vector<256x128xf32>
      %218 = arith.maximumf %216, %217 : vector<256x128xf32>
      %cst_48 = arith.constant dense<0.000000e+00> : vector<128xf32>
      %219 = vector.multi_reduction <add>, %218, %cst_48 [0] : vector<256x128xf32> to vector<128xf32>
      %220 = vector.shape_cast %219 : vector<128xf32> to vector<1x128xf32>
      %221 = arith.addf %205, %220 : vector<1x128xf32>
      %cst_49 = arith.constant 0.000000e+00 : f32
      %222 = vector.broadcast %cst_49 : f32 to vector<256x128xf32>
      %223 = arith.cmpf ogt, %216, %222 : vector<256x128xf32>
      %224 = arith.extui %223 : vector<256x128xi1> to vector<256x128xi32>
      %cst_50 = arith.constant dense<0> : vector<128xi32>
      %225 = vector.multi_reduction <add>, %224, %cst_50 [0] : vector<256x128xi32> to vector<128xi32>
      %226 = vector.shape_cast %225 : vector<128xi32> to vector<1x128xi32>
      %227 = arith.addi %211, %226 : vector<1x128xi32>
      %c2_i32 = arith.constant 2 : i32
      %228 = arith.addi %195, %c2_i32 : i32
      %229 = arith.index_cast %228 : i32 to index
      %c0_51 = arith.constant 0 : index
      %230 = vector.load %arg10[%229, %c0_51] : memref<256x128xf32, #tpu.memory_space<vmem>>, vector<1x128xf32>
      %231 = vector.broadcast %230 : vector<1x128xf32> to vector<256x128xf32>
      %232 = arith.subf %231, %175 : vector<256x128xf32>
      %cst_52 = arith.constant 0.000000e+00 : f32
      %233 = vector.broadcast %cst_52 : f32 to vector<256x128xf32>
      %234 = arith.maximumf %232, %233 : vector<256x128xf32>
      %cst_53 = arith.constant dense<0.000000e+00> : vector<128xf32>
      %235 = vector.multi_reduction <add>, %234, %cst_53 [0] : vector<256x128xf32> to vector<128xf32>
      %236 = vector.shape_cast %235 : vector<128xf32> to vector<1x128xf32>
      %237 = arith.addf %221, %236 : vector<1x128xf32>
      %cst_54 = arith.constant 0.000000e+00 : f32
      %238 = vector.broadcast %cst_54 : f32 to vector<256x128xf32>
      %239 = arith.cmpf ogt, %232, %238 : vector<256x128xf32>
      %240 = arith.extui %239 : vector<256x128xi1> to vector<256x128xi32>
      %cst_55 = arith.constant dense<0> : vector<128xi32>
      %241 = vector.multi_reduction <add>, %240, %cst_55 [0] : vector<256x128xi32> to vector<128xi32>
      %242 = vector.shape_cast %241 : vector<128xi32> to vector<1x128xi32>
      %243 = arith.addi %227, %242 : vector<1x128xi32>
      %c3_i32 = arith.constant 3 : i32
      %244 = arith.addi %195, %c3_i32 : i32
      %245 = arith.index_cast %244 : i32 to index
      %c0_56 = arith.constant 0 : index
      %246 = vector.load %arg10[%245, %c0_56] : memref<256x128xf32, #tpu.memory_space<vmem>>, vector<1x128xf32>
      %247 = vector.broadcast %246 : vector<1x128xf32> to vector<256x128xf32>
      %248 = arith.subf %247, %175 : vector<256x128xf32>
      %cst_57 = arith.constant 0.000000e+00 : f32
      %249 = vector.broadcast %cst_57 : f32 to vector<256x128xf32>
      %250 = arith.maximumf %248, %249 : vector<256x128xf32>
      %cst_58 = arith.constant dense<0.000000e+00> : vector<128xf32>
      %251 = vector.multi_reduction <add>, %250, %cst_58 [0] : vector<256x128xf32> to vector<128xf32>
      %252 = vector.shape_cast %251 : vector<128xf32> to vector<1x128xf32>
      %253 = arith.addf %237, %252 : vector<1x128xf32>
      %cst_59 = arith.constant 0.000000e+00 : f32
      %254 = vector.broadcast %cst_59 : f32 to vector<256x128xf32>
      %255 = arith.cmpf ogt, %248, %254 : vector<256x128xf32>
      %256 = arith.extui %255 : vector<256x128xi1> to vector<256x128xi32>
      %cst_60 = arith.constant dense<0> : vector<128xi32>
      %257 = vector.multi_reduction <add>, %256, %cst_60 [0] : vector<256x128xi32> to vector<128xi32>
      %258 = vector.shape_cast %257 : vector<128xi32> to vector<1x128xi32>
      %259 = arith.addi %243, %258 : vector<1x128xi32>
      %c4_i32 = arith.constant 4 : i32
      %260 = arith.addi %195, %c4_i32 : i32
      %261 = arith.index_cast %260 : i32 to index
      %c0_61 = arith.constant 0 : index
      %262 = vector.load %arg10[%261, %c0_61] : memref<256x128xf32, #tpu.memory_space<vmem>>, vector<1x128xf32>
      %263 = vector.broadcast %262 : vector<1x128xf32> to vector<256x128xf32>
      %264 = arith.subf %263, %175 : vector<256x128xf32>
      %cst_62 = arith.constant 0.000000e+00 : f32
      %265 = vector.broadcast %cst_62 : f32 to vector<256x128xf32>
      %266 = arith.maximumf %264, %265 : vector<256x128xf32>
      %cst_63 = arith.constant dense<0.000000e+00> : vector<128xf32>
      %267 = vector.multi_reduction <add>, %266, %cst_63 [0] : vector<256x128xf32> to vector<128xf32>
      %268 = vector.shape_cast %267 : vector<128xf32> to vector<1x128xf32>
      %269 = arith.addf %253, %268 : vector<1x128xf32>
      %cst_64 = arith.constant 0.000000e+00 : f32
      %270 = vector.broadcast %cst_64 : f32 to vector<256x128xf32>
      %271 = arith.cmpf ogt, %264, %270 : vector<256x128xf32>
      %272 = arith.extui %271 : vector<256x128xi1> to vector<256x128xi32>
      %cst_65 = arith.constant dense<0> : vector<128xi32>
      %273 = vector.multi_reduction <add>, %272, %cst_65 [0] : vector<256x128xi32> to vector<128xi32>
      %274 = vector.shape_cast %273 : vector<128xi32> to vector<1x128xi32>
      %275 = arith.addi %259, %274 : vector<1x128xi32>
      %c5_i32 = arith.constant 5 : i32
      %276 = arith.addi %195, %c5_i32 : i32
      %277 = arith.index_cast %276 : i32 to index
      %c0_66 = arith.constant 0 : index
      %278 = vector.load %arg10[%277, %c0_66] : memref<256x128xf32, #tpu.memory_space<vmem>>, vector<1x128xf32>
      %279 = vector.broadcast %278 : vector<1x128xf32> to vector<256x128xf32>
      %280 = arith.subf %279, %175 : vector<256x128xf32>
      %cst_67 = arith.constant 0.000000e+00 : f32
      %281 = vector.broadcast %cst_67 : f32 to vector<256x128xf32>
      %282 = arith.maximumf %280, %281 : vector<256x128xf32>
      %cst_68 = arith.constant dense<0.000000e+00> : vector<128xf32>
      %283 = vector.multi_reduction <add>, %282, %cst_68 [0] : vector<256x128xf32> to vector<128xf32>
      %284 = vector.shape_cast %283 : vector<128xf32> to vector<1x128xf32>
      %285 = arith.addf %269, %284 : vector<1x128xf32>
      %cst_69 = arith.constant 0.000000e+00 : f32
      %286 = vector.broadcast %cst_69 : f32 to vector<256x128xf32>
      %287 = arith.cmpf ogt, %280, %286 : vector<256x128xf32>
      %288 = arith.extui %287 : vector<256x128xi1> to vector<256x128xi32>
      %cst_70 = arith.constant dense<0> : vector<128xi32>
      %289 = vector.multi_reduction <add>, %288, %cst_70 [0] : vector<256x128xi32> to vector<128xi32>
      %290 = vector.shape_cast %289 : vector<128xi32> to vector<1x128xi32>
      %291 = arith.addi %275, %290 : vector<1x128xi32>
      %c6_i32 = arith.constant 6 : i32
      %292 = arith.addi %195, %c6_i32 : i32
      %293 = arith.index_cast %292 : i32 to index
      %c0_71 = arith.constant 0 : index
      %294 = vector.load %arg10[%293, %c0_71] : memref<256x128xf32, #tpu.memory_space<vmem>>, vector<1x128xf32>
      %295 = vector.broadcast %294 : vector<1x128xf32> to vector<256x128xf32>
      %296 = arith.subf %295, %175 : vector<256x128xf32>
      %cst_72 = arith.constant 0.000000e+00 : f32
      %297 = vector.broadcast %cst_72 : f32 to vector<256x128xf32>
      %298 = arith.maximumf %296, %297 : vector<256x128xf32>
      %cst_73 = arith.constant dense<0.000000e+00> : vector<128xf32>
      %299 = vector.multi_reduction <add>, %298, %cst_73 [0] : vector<256x128xf32> to vector<128xf32>
      %300 = vector.shape_cast %299 : vector<128xf32> to vector<1x128xf32>
      %301 = arith.addf %285, %300 : vector<1x128xf32>
      %cst_74 = arith.constant 0.000000e+00 : f32
      %302 = vector.broadcast %cst_74 : f32 to vector<256x128xf32>
      %303 = arith.cmpf ogt, %296, %302 : vector<256x128xf32>
      %304 = arith.extui %303 : vector<256x128xi1> to vector<256x128xi32>
      %cst_75 = arith.constant dense<0> : vector<128xi32>
      %305 = vector.multi_reduction <add>, %304, %cst_75 [0] : vector<256x128xi32> to vector<128xi32>
      %306 = vector.shape_cast %305 : vector<128xi32> to vector<1x128xi32>
      %307 = arith.addi %291, %306 : vector<1x128xi32>
      %c7_i32 = arith.constant 7 : i32
      %308 = arith.addi %195, %c7_i32 : i32
      %309 = arith.index_cast %308 : i32 to index
      %c0_76 = arith.constant 0 : index
      %310 = vector.load %arg10[%309, %c0_76] : memref<256x128xf32, #tpu.memory_space<vmem>>, vector<1x128xf32>
      %311 = vector.broadcast %310 : vector<1x128xf32> to vector<256x128xf32>
      %312 = arith.subf %311, %175 : vector<256x128xf32>
      %cst_77 = arith.constant 0.000000e+00 : f32
      %313 = vector.broadcast %cst_77 : f32 to vector<256x128xf32>
      %314 = arith.maximumf %312, %313 : vector<256x128xf32>
      %cst_78 = arith.constant dense<0.000000e+00> : vector<128xf32>
      %315 = vector.multi_reduction <add>, %314, %cst_78 [0] : vector<256x128xf32> to vector<128xf32>
      %316 = vector.shape_cast %315 : vector<128xf32> to vector<1x128xf32>
      %317 = arith.addf %301, %316 : vector<1x128xf32>
      %cst_79 = arith.constant 0.000000e+00 : f32
      %318 = vector.broadcast %cst_79 : f32 to vector<256x128xf32>
      %319 = arith.cmpf ogt, %312, %318 : vector<256x128xf32>
      %320 = arith.extui %319 : vector<256x128xi1> to vector<256x128xi32>
      %cst_80 = arith.constant dense<0> : vector<128xi32>
      %321 = vector.multi_reduction <add>, %320, %cst_80 [0] : vector<256x128xi32> to vector<128xi32>
      %322 = vector.shape_cast %321 : vector<128xi32> to vector<1x128xi32>
      %323 = arith.addi %307, %322 : vector<1x128xi32>
      scf.yield %317, %323 : vector<1x128xf32>, vector<1x128xi32>
    }
    %c32_i32_27 = arith.constant 32 : i32
    %181 = arith.extui %166 : vector<256x128xi1> to vector<256x128xi32>
    %cst_28 = arith.constant dense<0> : vector<128xi32>
    %182 = vector.multi_reduction <add>, %181, %cst_28 [0] : vector<256x128xi32> to vector<128xi32>
    %183 = vector.shape_cast %182 : vector<128xi32> to vector<1x128xi32>
    %184 = arith.extui %168 : vector<256x128xi1> to vector<256x128xi32>
    %cst_29 = arith.constant dense<0> : vector<128xi32>
    %185 = vector.multi_reduction <add>, %184, %cst_29 [0] : vector<256x128xi32> to vector<128xi32>
    %186 = vector.shape_cast %185 : vector<128xi32> to vector<1x128xi32>
    %187 = vector.shape_cast %180#0 : vector<1x128xf32> to vector<1x1x128xf32>
    %c0_30 = arith.constant 0 : index
    %c0_31 = arith.constant 0 : index
    %c0_32 = arith.constant 0 : index
    %188 = vector.load %arg7[%c0_30, %c0_31, %c0_32] : memref<1x1x128xf32, #tpu.memory_space<vmem>>, vector<1x1x128xf32>
    tpu.vector_store %arg7[%c0_30, %c0_31, %c0_32], %187 {strides = array<i32>} : memref<1x1x128xf32, #tpu.memory_space<vmem>>, vector<1x1x128xf32>,
    %189 = vector.shape_cast %180#1 : vector<1x128xi32> to vector<1x1x128xi32>
    %c0_33 = arith.constant 0 : index
    %c0_34 = arith.constant 0 : index
    %c0_35 = arith.constant 0 : index
    %190 = vector.load %arg8[%c0_33, %c0_34, %c0_35] : memref<1x1x128xi32, #tpu.memory_space<vmem>>, vector<1x1x128xi32>
    tpu.vector_store %arg8[%c0_33, %c0_34, %c0_35], %189 {strides = array<i32>} : memref<1x1x128xi32, #tpu.memory_space<vmem>>, vector<1x1x128xi32>,
    %191 = arith.muli %183, %186 : vector<1x128xi32>
    %192 = vector.shape_cast %191 : vector<1x128xi32> to vector<1x1x128xi32>
    %c0_36 = arith.constant 0 : index
    %c0_37 = arith.constant 0 : index
    %c0_38 = arith.constant 0 : index
    %193 = vector.load %arg9[%c0_36, %c0_37, %c0_38] : memref<1x1x128xi32, #tpu.memory_space<vmem>>, vector<1x1x128xi32>
    tpu.vector_store %arg9[%c0_36, %c0_37, %c0_38], %192 {strides = array<i32>} : memref<1x1x128xi32, #tpu.memory_space<vmem>>, vector<1x1x128xi32>,
    return
  }
  func.func @transform_0(%arg0: i32) -> (i32, i32) {
    %c0_i32 = arith.constant 0 : i32
    %c0_i32_0 = arith.constant 0 : i32
    %c0_i32_1 = arith.constant 0 : i32
    return %c0_i32, %c0_i32_0 : i32, i32
  }
  func.func @transform_1(%arg0: i32) -> (i32, i32) {
    %c0_i32 = arith.constant 0 : i32
    %c0_i32_0 = arith.constant 0 : i32
    return %c0_i32, %arg0 : i32, i32
  }
  func.func @transform_2(%arg0: i32) -> (i32, i32, i32) {
    %c0_i32 = arith.constant 0 : i32
    %c0_i32_0 = arith.constant 0 : i32
    %c0_i32_1 = arith.constant 0 : i32
    %c0_i32_2 = arith.constant 0 : i32
    return %c0_i32, %c0_i32_0, %c0_i32_1 : i32, i32, i32
  }
  func.func @transform_3(%arg0: i32) -> (i32, i32, i32) {
    %c0_i32 = arith.constant 0 : i32
    %c0_i32_0 = arith.constant 0 : i32
    %c0_i32_1 = arith.constant 0 : i32
    return %c0_i32, %c0_i32_0, %arg0 : i32, i32, i32
  }
  func.func @transform_4(%arg0: i32) -> (i32, i32) {
    %c0_i32 = arith.constant 0 : i32
    %c0_i32_0 = arith.constant 0 : i32
    %c0_i32_1 = arith.constant 0 : i32
    return %c0_i32, %c0_i32_0 : i32, i32
  }
  func.func @transform_5(%arg0: i32) -> (i32, i32) {
    %c0_i32 = arith.constant 0 : i32
    %c0_i32_0 = arith.constant 0 : i32
    return %c0_i32, %arg0 : i32, i32
  }
  func.func @transform_6(%arg0: i32) -> (i32, i32, i32) {
    %c0_i32 = arith.constant 0 : i32
    %c0_i32_0 = arith.constant 0 : i32
    %c0_i32_1 = arith.constant 0 : i32
    return %arg0, %c0_i32, %c0_i32_0 : i32, i32, i32
  }
  func.func @transform_7(%arg0: i32) -> (i32, i32, i32) {
    %c0_i32 = arith.constant 0 : i32
    %c0_i32_0 = arith.constant 0 : i32
    %c0_i32_1 = arith.constant 0 : i32
    return %arg0, %c0_i32, %c0_i32_0 : i32, i32, i32
  }
  func.func @transform_8(%arg0: i32) -> (i32, i32, i32) {
    %c0_i32 = arith.constant 0 : i32
    %c0_i32_0 = arith.constant 0 : i32
    %c0_i32_1 = arith.constant 0 : i32
    return %arg0, %c0_i32, %c0_i32_0 : i32, i32, i32
  }
}

</mosaic_0001>

<bundles_post_ra>
// kernel: tpu_custom_call.1
= control target key start
LH: loop header
LB: loop body
LE: loop exit
PB: predicated region body
PF: predicated region fallthrough
CT: control target
= control target key end

     0   :  { %14 = vsyncpa [#allocation5], 0  ;;  %s16582_s0 = inlined_call_operand.vmem [shape: f32[256,4], index: 0, kind: input, shape index: {}]   ;;  %s16583_s1 = inlined_call_operand.vmem [shape: f32[4,256], index: 1, kind: input, shape index: {}]   ;;  %s16584_s2 = inlined_call_operand.vmem [shape: f32[4,256,3], index: 2, kind: input, shape index: {}]   ;;  %s16585_s3 = inlined_call_operand.vmem [shape: f32[4,3,256], index: 3, kind: input, shape index: {}]   ;;  %s16586_s4 = inlined_call_operand.vmem [shape: s32[256,1], index: 4, kind: input, shape index: {}]   ;;  %s16587_s5 = inlined_call_operand.vmem [shape: s32[1,256], index: 5, kind: input, shape index: {}]   ;;  %s16588_s6 = inlined_call_operand.hbm [shape: f32[2,1,128], index: 6, kind: output, shape index: {0}]   ;;  %s16589_s7 = inlined_call_operand.hbm [shape: s32[2,1,128], index: 7, kind: output, shape index: {1}]   ;;  %s16590_s8 = inlined_call_operand.hbm [shape: s32[2,1,128], index: 8, kind: output, shape index: {2}]  }
   0x1   :  { %16 = vsyncpa [#allocation5 + $0x1], 0 }
   0x2   :  { %17 = vsyncpa [#allocation7], 0 }
   0x3   :  { %19 = vsyncpa [#allocation7 + $0x1], 0  ;;  %s8580_s27 = smov 0   ;;  %s8582_s28 = smov 0  }
   0x4   :  { %s8584_s29 = smov 0   ;;  %s8586_s30 = smov 0  }
   0x5 LB: > { %s8601_s9 = sadd.s32 4294967295, %s8511_s30   ;;  %s16802_s10 = sadd.s32 4294967294, %s8511_s30   ;;  %s8511_s30 = sphi %s8586_s30, %s18291_s30   ;;  %s8507_s29 = sphi %s8584_s29, %s18290_s29   ;;  %s8503_s28 = sphi %s8582_s28, %s18289_s28   ;;  %s8499_s27 = sphi %s8580_s27, %s18288_s27  }
   0x6   : > { %s8605_s11 = sadd.s32 1, %s8511_s30   ;;  %s100_s12 = sadd.s32 1, %s8507_s29 }
   0x7   : > { %s97_s13 = ssub.s32 %s8511_s30, %s8605_s11  ;;  %p107_p0 = scmp.ne.s32.totalorder %s8507_s29, %s8503_s28 }
   0x8   : > { %p98_p1 = scmp.eq.s32.totalorder %s97_s13, 0  ;;  %p108_p2 = scmp.eq.s32.totalorder %s8511_s30, 0 }
   0x9   : > { %p184_p3 = scmp.eq.s32.totalorder %s8601_s9, 1  ;;  %p189_p4 = scmp.ne.s32.totalorder %s8503_s28, %s8499_s27 }
   0xa   : > { %s8617_s14 = scalar_select %p98_p1, %s8507_s29, %s100_s12  }
   0xb   : > { %p109_p5 = por %p108_p2, %p107_p0  ;;  %p8619_p6 = por %p184_p3, %p107_p0 }
   0xc   : > { %p190_p7 = scmp.eq.s32.totalorder %s16802_s10, 1  ;;  %p7884_p9 = scmp.ge.s32.totalorder %s8511_s30, 2 }
   0xe   : > { %p8625_p8 = por %p190_p7, %p189_p4  ;;  %267 = sbr.rel (%p7884_p9) target bundleno = 28 (0x1c), region = 28 }
  0x15   : > { %277 = sbr.rel (!%p109_p5) target bundleno = 28 (0x1c), region = 36  ;;  %s279_s17 = sand.u32 (%p109_p5), 1, %s8507_s29  }
  0x16   : > { %s7886_s18 = sshll.u32 (%p109_p5), %s8511_s30, 2  ;;  %s7885_s19 = sshll.u32 (%p109_p5), %s279_s17, 4 }
  0x17   : > { %s283_s22 = scalar_lea.vmem (%p109_p5), %s16585_s3, %s7886_s18  ;;  %s281_s23 = scalar_lea.vmem (%p109_p5), [#allocation3], %s7885_s19 }
  0x18   : > { %v299_v0 = vld [vmem:[%s283_s22] sm:$0xf] (%p109_p5)  ;;  %v301_v1 = vld [vmem:[%s283_s22 + $0x8] sm:$0xf] (%p109_p5)  ;;  %v303_v2 = vld [vmem:[%s283_s22 + $0x10] sm:$0xf] (%p109_p5) }
  0x19   : > { %300 = vst [vmem:[%s281_s23] sm:$0xf] (%p109_p5), %v299_v0  ;;  %302 = vst [vmem:[%s281_s23 + $0x4] sm:$0xf] (%p109_p5), %v301_v1  ;;  %v305_v3 = vld [vmem:[%s283_s22 + $0x18] sm:$0xf] (%p109_p5) }
  0x1a   : > { %304 = vst [vmem:[%s281_s23 + $0x8] sm:$0xf] (%p109_p5), %v303_v2  ;;  %306 = vst [vmem:[%s281_s23 + $0xc] sm:$0xf] (%p109_p5), %v305_v3 }
  0x1c PF: > { %p7887_p10 = scmp.ge.s32.totalorder %s8511_s30, 1  ;;  %p342_p11 = scmp.lt.s32.totalorder %s8511_s30, 3 }
  0x1e   : > { %p343_p12 = pnand %p7887_p10, %p342_p11 }
  0x20   : > { %346 = sbr.rel (%p343_p12) target bundleno = 1622 (0x656), region = 81 }
  0x27   : > { %v8642_v4 = vld [vmem:[%s16584_s2 + $0x10] sm:$0xff]  ;;  %v8647_v5 = vld [vmem:[%s16584_s2 + $0x8] sm:$0xff]  ;;  %v16594_v6 = vmov 1   ;;  %v16591_v7 = vmov 0   ;;  %v8656_v8 = vld [vmem:[%s16584_s2 + $0x18] sm:$0xff]  ;;  %v16596_v45 = vmov 2  }
  0x28   : > { %8058 = vset.pattern.permute.xlu0 %v16594_v6  ;;  %8056 = vset.pattern.permute.xlu1 %v16591_v7  ;;  %v8661_v9 = vld [vmem:[%s16584_s2 + $0x20] sm:$0xff]  ;;  %v8668_v10 = vld [vmem:[%s16584_s2 + $0x28] sm:$0xff]  ;;  %v8673_v11 = vld [vmem:[%s16584_s2 + $0x30] sm:$0xff]  ;;  %s9813_s20 = sand.u32 1, %s8503_s28   ;;  %p396_p13 = scmp.lt.s32.totalorder %s8601_s9, 1 }
  0x29   : > { %613 = vperm.xlu1 %8056, %v8642_v4   ;;  %866 = vperm.xlu0 %8058, %v8647_v5   ;;  %v8680_v12 = vld [vmem:[%s16584_s2 + $0x38] sm:$0xff]  ;;  %v8685_v13 = vld [vmem:[%s16584_s2 + $0x40] sm:$0xff]  ;;  %v8692_v14 = vld [vmem:[%s16584_s2 + $0x48] sm:$0xff]  ;;  %s7888_s21 = sshll.u32 %s9813_s20, 4  ;;  %s389_s19 = scalar_lea.vmem [#allocation6], %s9813_s20 }
  0x2a   : > { %v8697_v15 = vld [vmem:[%s16584_s2 + $0x50] sm:$0xff]  ;;  %v8704_v16 = vld [vmem:[%s16584_s2 + $0x58] sm:$0xff]  ;;  %v8709_v17 = vld [vmem:[%s16584_s2 + $0x60] sm:$0xff]  ;;  %s9830_s22 = scalar_select %p396_p13, %s8601_s9, 1 }
  0x2b   : > { %v8716_v18 = vld [vmem:[%s16584_s2 + $0x68] sm:$0xff]  ;;  %v8721_v19 = vld [vmem:[%s16584_s2 + $0x70] sm:$0xff]  ;;  %v8728_v20 = vld [vmem:[%s16584_s2 + $0x78] sm:$0xff]  ;;  %s9841_s23 = scalar_lea.vmem [#allocation3], %s7888_s21  ;;  %s7890_s21 = sshll.u32 %s8601_s9, 7 }
  0x2c   : > { %v8733_v21 = vld [vmem:[%s16584_s2 + $0x80] sm:$0xff]  ;;  %v8740_v22 = vld [vmem:[%s16584_s2 + $0x88] sm:$0xff]  ;;  %v8745_v23 = vld [vmem:[%s16584_s2 + $0x90] sm:$0xff]  ;;  %s7889_s24 = sshll.u32 %s9830_s22, 2  ;;  %s13399_s18 = scalar_lea.vmem %s16587_s5, %s9830_s22 }
  0x2d   : > { %618 = vperm.xlu1 %8056, %v8656_v8   ;;  %878 = vperm.xlu0 %8058, %v8661_v9   ;;  %v8752_v24 = vld [vmem:[%s16584_s2 + $0x98] sm:$0xff]  ;;  %v8757_v25 = vld [vmem:[%s16584_s2 + $0xa0] sm:$0xff]  ;;  %v8764_v26 = vld [vmem:[%s16584_s2 + $0xa8] sm:$0xff]  ;;  %s9860_s12 = scalar_lea.vmem %s16583_s1, %s7889_s24  ;;  %s16803_s22 = scalar_lea.vmem [#allocation4], %s9813_s20 }
  0x2e   : > { %v8769_v27 = vld [vmem:[%s16584_s2 + $0xb0] sm:$0xff]  ;;  %v8776_v28 = vld [vmem:[%s16584_s2 + $0xb8] sm:$0xff]  ;;  %v8781_v29 = vld [vmem:[%s16584_s2 + $0xc0] sm:$0xff] }
  0x2f   : > { %v8788_v30 = vld [vmem:[%s16584_s2 + $0x100] sm:$0xff]  ;;  %v8798_v32 = vld [vmem:[%s16584_s2 + $0x118] sm:$0xff]  ;;  %v8805_v33 = vld [vmem:[%s16584_s2 + $0x128] sm:$0xff] }
  0x30   : > { %v436_v31 = vld [vmem:[%s16584_s2] sm:$0xff]  ;;  %v8812_v34 = vld [vmem:[%s16584_s2 + $0x138] sm:$0xff]  ;;  %v8819_v35 = vld [vmem:[%s16584_s2 + $0x148] sm:$0xff] }
  0x31   : > { %628 = vperm.xlu1 %8056, %v8668_v10   ;;  %886 = vperm.xlu0 %8058, %v8673_v11   ;;  %v8826_v36 = vld [vmem:[%s16584_s2 + $0x158] sm:$0xff]  ;;  %v8833_v37 = vld [vmem:[%s16584_s2 + $0x168] sm:$0xff]  ;;  %v8875_v43 = vld [vmem:[%s16582_s0] sm:$0xff] }
  0x32   : > { %v8840_v38 = vld [vmem:[%s16584_s2 + $0x178] sm:$0xff]  ;;  %v8847_v39 = vld [vmem:[%s16584_s2 + $0x188] sm:$0xff]  ;;  %v8974_v0 = vld [vmem:[%s16584_s2 + $0x200] sm:$0xff] }
  0x33   : > { %v8854_v40 = vld [vmem:[%s16584_s2 + $0x198] sm:$0xff]  ;;  %v8861_v41 = vld [vmem:[%s16584_s2 + $0x1a8] sm:$0xff] }
  0x34   : > { %v8868_v42 = vld [vmem:[%s16584_s2 + $0x1b8] sm:$0xff]  ;;  %v8889_v46 = vld [vmem:[%s16582_s0 + $0x28] sm:$0xff] }
  0x35   : > { %638 = vperm.xlu1 %8056, %v8680_v12   ;;  %894 = vperm.xlu0 %8058, %v8685_v13   ;;  %v8882_v44 = vld [vmem:[%s16582_s0 + $0x18] sm:$0xff]  ;;  %v8902_v48 = vld [vmem:[%s16582_s0 + $0x48] sm:$0xff] }
  0x36   : > { %v8895_v47 = vld [vmem:[%s16582_s0 + $0x38] sm:$0xff]  ;;  %v8916_v50 = vld [vmem:[%s16582_s0 + $0x68] sm:$0xff] }
  0x37   : > { %v8909_v49 = vld [vmem:[%s16582_s0 + $0x58] sm:$0xff]  ;;  %v8930_v52 = vld [vmem:[%s16582_s0 + $0x88] sm:$0xff] }
  0x38   : > { %v8923_v51 = vld [vmem:[%s16582_s0 + $0x78] sm:$0xff]  ;;  %v8952_v58 = vld [vmem:[%s16582_s0 + $0xa8] sm:$0xff] }
  0x39   : > { %648 = vperm.xlu1 %8056, %v8692_v14   ;;  %902 = vperm.xlu0 %8058, %v8697_v15   ;;  %v8941_v55 = vld [vmem:[%s16582_s0 + $0x98] sm:$0xff] }
  0x3a   : > { %v8963_v61 = vld [vmem:[%s16582_s0 + $0xb8] sm:$0xff] }
  0x3b   : > { %v8985_v3 = vld [vmem:[%s16584_s2 + $0x218] sm:$0xff] }
  0x3d   : > { %658 = vperm.xlu1 %8056, %v8704_v16   ;;  %910 = vperm.xlu0 %8058, %v8709_v17  }
  0x41   : > { %668 = vperm.xlu1 %8056, %v8716_v18   ;;  %918 = vperm.xlu0 %8058, %v8721_v19  }
  0x45   : > { %678 = vperm.xlu1 %8056, %v8728_v20   ;;  %926 = vperm.xlu0 %8058, %v8733_v21  }
  0x49   : > { %688 = vperm.xlu1 %8056, %v8740_v22   ;;  %934 = vperm.xlu0 %8058, %v8745_v23  }
  0x4d   : > { %698 = vperm.xlu1 %8056, %v8752_v24   ;;  %942 = vperm.xlu0 %8058, %v8757_v25  }
  0x51   : > { %708 = vperm.xlu1 %8056, %v8764_v26   ;;  %950 = vperm.xlu0 %8058, %v8769_v27  }
  0x55   : > { %718 = vperm.xlu1 %8056, %v8776_v28   ;;  %958 = vperm.xlu0 %8058, %v8781_v29  }
  0x59   : > { %8057 = vset.pattern.permute.xlu1 %v16594_v6  ;;  %2062 = vperm.xlu0 %8058, %v8788_v30  }
  0x5a   : > { %862 = vperm.xlu1 %8057, %v436_v31  }
  0x5d   : > { %2074 = vperm.xlu0 %8058, %v8798_v32  }
  0x5e   : > { %870 = vperm.xlu1 %8057, %v8642_v4  }
  0x61   : > { %2082 = vperm.xlu0 %8058, %v8805_v33  }
  0x62   : > { %874 = vperm.xlu1 %8057, %v8656_v8  }
  0x65   : > { %2090 = vperm.xlu0 %8058, %v8812_v34  }
  0x66   : > { %882 = vperm.xlu1 %8057, %v8668_v10  }
  0x69   : > { %2098 = vperm.xlu0 %8058, %v8819_v35  }
  0x6a   : > { %890 = vperm.xlu1 %8057, %v8680_v12  }
  0x6d   : > { %2106 = vperm.xlu0 %8058, %v8826_v36  }
  0x6e   : > { %898 = vperm.xlu1 %8057, %v8692_v14  }
  0x71   : > { %2114 = vperm.xlu0 %8058, %v8833_v37  }
  0x72   : > { %906 = vperm.xlu1 %8057, %v8704_v16  }
  0x75   : > { %2122 = vperm.xlu0 %8058, %v8840_v38  }
  0x76   : > { %914 = vperm.xlu1 %8057, %v8716_v18  }
  0x79   : > { %2130 = vperm.xlu0 %8058, %v8847_v39  }
  0x7a   : > { %922 = vperm.xlu1 %8057, %v8728_v20  }
  0x7d   : > { %2138 = vperm.xlu0 %8058, %v8854_v40  }
  0x7e   : > { %930 = vperm.xlu1 %8057, %v8740_v22  }
  0x81   : > { %2146 = vperm.xlu0 %8058, %v8861_v41  }
  0x82   : > { %938 = vperm.xlu1 %8057, %v8752_v24  }
  0x85   : > { %2154 = vperm.xlu0 %8058, %v8868_v42  }
  0x86   : > { %946 = vperm.xlu1 %8057, %v8764_v26  }
  0x89   : > { %2518 = vperm.xlu0 %8058, %v8875_v43  }
  0x8a   : > { %954 = vperm.xlu1 %8057, %v8776_v28  }
  0x8d   : > { %2530 = vperm.xlu0 %8058, %v8882_v44  }
  0x8e   : > { %8059 = vset.pattern.permute.xlu1 %v16596_v45  ;;  %v9046_v45 = vld [vmem:[%s16584_s2 + $0x268] sm:$0xff] }
  0x8f   : > { %1090 = vperm.xlu1 %8059, %v436_v31   ;;  %v9035_v31 = vld [vmem:[%s16584_s2 + $0x258] sm:$0xff] }
  0x91   : > { %2538 = vperm.xlu0 %8058, %v8889_v46  }
  0x93   : > { %1098 = vperm.xlu1 %8059, %v8642_v4  }
  0x95   : > { %2546 = vperm.xlu0 %8058, %v8895_v47  }
  0x97   : > { %1102 = vperm.xlu1 %8059, %v8656_v8  }
  0x99   : > { %2554 = vperm.xlu0 %8058, %v8902_v48  }
  0x9b   : > { %1110 = vperm.xlu1 %8059, %v8668_v10   ;;  %v8996_v10 = vld [vmem:[%s16584_s2 + $0x228] sm:$0xff] }
  0x9d   : > { %2562 = vperm.xlu0 %8058, %v8909_v49  }
  0x9f   : > { %1118 = vperm.xlu1 %8059, %v8680_v12  }
  0xa1   : > { %2570 = vperm.xlu0 %8058, %v8916_v50  }
  0xa3   : > { %1126 = vperm.xlu1 %8059, %v8692_v14  }
  0xa5   : > { %2578 = vperm.xlu0 %8058, %v8923_v51  }
  0xa7   : > { %1134 = vperm.xlu1 %8059, %v8704_v16   ;;  %v9007_v16 = vld [vmem:[%s16584_s2 + $0x238] sm:$0xff] }
  0xa8   : > { %v8933_v53 = vpop.permute.xlu1 %613  ;;  %v8935_v54 = vpop.permute.xlu0 %866 }
  0xa9   : > { %16806 = vst [vmem:[#allocation11_spill] sm:$0xff] %v8933_v53  ;;  %16807 = vst [vmem:[#allocation12_spill] sm:$0xff] %v8935_v54  ;;  %2586 = vperm.xlu0 %8058, %v8930_v52  }
  0xab   : > { %1142 = vperm.xlu1 %8059, %v8716_v18  }
  0xac   : > { %v8944_v56 = vpop.permute.xlu1 %618  ;;  %v8946_v57 = vpop.permute.xlu0 %878 }
  0xad   : > { %16808 = vst [vmem:[#allocation13_spill] sm:$0xff] %v8944_v56  ;;  %16809 = vst [vmem:[#allocation14_spill] sm:$0xff] %v8946_v57  ;;  %2594 = vperm.xlu0 %8058, %v8941_v55  }
  0xaf   : > { %1150 = vperm.xlu1 %8059, %v8728_v20  }
  0xb0   : > { %v8955_v59 = vpop.permute.xlu1 %628  ;;  %v8957_v60 = vpop.permute.xlu0 %886 }
  0xb1   : > { %16810 = vst [vmem:[#allocation15_spill] sm:$0xff] %v8955_v59  ;;  %16811 = vst [vmem:[#allocation16_spill] sm:$0xff] %v8957_v60  ;;  %2602 = vperm.xlu0 %8058, %v8952_v58  }
  0xb3   : > { %1158 = vperm.xlu1 %8059, %v8740_v22   ;;  %v9019_v22 = vld [vmem:[%s16582_s0 + $0x10] sm:$0xff] }
  0xb4   : > { %v8966_v62 = vpop.permute.xlu1 %638  ;;  %v8968_v63 = vpop.permute.xlu0 %894 }
  0xb5   : > { %16812 = vst [vmem:[#allocation17_spill] sm:$0xff] %v8966_v62  ;;  %16813 = vst [vmem:[#allocation18_spill] sm:$0xff] %v8968_v63  ;;  %2610 = vperm.xlu0 %8058, %v8963_v61   ;;  %v9252_v63 = vld [vmem:[%s16584_s2 + $0x3b0] sm:$0xff] }
  0xb6   : > { %16858 = vst [vmem:[#allocation63_spill] sm:$0xff] %v9252_v63 }
  0xb7   : > { %1166 = vperm.xlu1 %8059, %v8752_v24   ;;  %v9024_v24 = vld [vmem:[%s16584_s2 + $0x248] sm:$0xff] }
  0xb8   : > { %v8977_v1 = vpop.permute.xlu1 %648  ;;  %v8979_v2 = vpop.permute.xlu0 %902 }
  0xb9   : > { %16814 = vst [vmem:[#allocation19_spill] sm:$0xff] %v8977_v1  ;;  %16815 = vst [vmem:[#allocation20_spill] sm:$0xff] %v8979_v2  ;;  %3230 = vperm.xlu0 %8058, %v8974_v0   ;;  %v9236_v2 = vld [vmem:[%s16584_s2 + $0x3a0] sm:$0xff] }
  0xbb   : > { %1174 = vperm.xlu1 %8059, %v8764_v26  }
  0xbc   : > { %v8988_v4 = vpop.permute.xlu1 %658  ;;  %v8990_v8 = vpop.permute.xlu0 %910 }
  0xbd   : > { %16816 = vst [vmem:[#allocation21_spill] sm:$0xff] %v8988_v4  ;;  %16817 = vst [vmem:[#allocation22_spill] sm:$0xff] %v8990_v8  ;;  %3242 = vperm.xlu0 %8058, %v8985_v3   ;;  %v9220_v8 = vld [vmem:[%s16584_s2 + $0x390] sm:$0xff] }
  0xbf   : > { %1182 = vperm.xlu1 %8059, %v8776_v28  }
  0xc0   : > { %v8999_v12 = vpop.permute.xlu1 %668  ;;  %v9001_v14 = vpop.permute.xlu0 %918 }
  0xc1   : > { %16818 = vst [vmem:[#allocation23_spill] sm:$0xff] %v8999_v12  ;;  %16819 = vst [vmem:[#allocation24_spill] sm:$0xff] %v9001_v14  ;;  %3250 = vperm.xlu0 %8058, %v8996_v10   ;;  %v9204_v14 = vld [vmem:[%s16584_s2 + $0x380] sm:$0xff] }
  0xc3   : > { %8060 = vset.pattern.permute.xlu1 %v16591_v7 }
  0xc4   : > { %v9010_v18 = vpop.permute.xlu1 %678  ;;  %v9012_v20 = vpop.permute.xlu0 %926  ;;  %1319 = vperm.xlu1 %8060, %v8875_v43  }
  0xc5   : > { %16820 = vst [vmem:[#allocation25_spill] sm:$0xff] %v9010_v18  ;;  %16821 = vst [vmem:[#allocation26_spill] sm:$0xff] %v9012_v20  ;;  %3258 = vperm.xlu0 %8058, %v9007_v16   ;;  %v9188_v20 = vld [vmem:[%s16584_s2 + $0x370] sm:$0xff] }
  0xc8   : > { %v9026_v26 = vpop.permute.xlu1 %688  ;;  %v9028_v28 = vpop.permute.xlu0 %934  ;;  %1329 = vperm.xlu1 %8060, %v9019_v22  }
  0xc9   : > { %16822 = vst [vmem:[#allocation27_spill] sm:$0xff] %v9026_v26  ;;  %16823 = vst [vmem:[#allocation28_spill] sm:$0xff] %v9028_v28  ;;  %3266 = vperm.xlu0 %8058, %v9024_v24  }
  0xcc   : > { %v9037_v7 = vpop.permute.xlu1 %698  ;;  %v9039_v6 = vpop.permute.xlu0 %942  ;;  %1334 = vperm.xlu1 %8060, %v8882_v44  }
  0xcd   : > { %16824 = vst [vmem:[#allocation29_spill] sm:$0xff] %v9037_v7  ;;  %16825 = vst [vmem:[#allocation30_spill] sm:$0xff] %v9039_v6  ;;  %3274 = vperm.xlu0 %8058, %v9035_v31   ;;  %v9057_v6 = vld [vmem:[%s16584_s2 + $0x278] sm:$0xff] }
  0xd0   : > { %v9048_v28 = vpop.permute.xlu1 %708  ;;  %v9050_v26 = vpop.permute.xlu0 %950  ;;  %1344 = vperm.xlu1 %8060, %v8889_v46  }
  0xd1   : > { %16826 = vst [vmem:[#allocation31_spill] sm:$0xff] %v9048_v28  ;;  %16827 = vst [vmem:[#allocation32_spill] sm:$0xff] %v9050_v26  ;;  %3282 = vperm.xlu0 %8058, %v9046_v45   ;;  %v9068_v26 = vld [vmem:[%s16584_s2 + $0x288] sm:$0xff] }
  0xd4   : > { %v9059_v44 = vpop.permute.xlu1 %718  ;;  %v9061_v7 = vpop.permute.xlu0 %958  ;;  %1354 = vperm.xlu1 %8060, %v8895_v47  }
  0xd5   : > { %16828 = vst [vmem:[#allocation33_spill] sm:$0xff] %v9059_v44  ;;  %16829 = vst [vmem:[#allocation34_spill] sm:$0xff] %v9061_v7  ;;  %3290 = vperm.xlu0 %8058, %v9057_v6   ;;  %v9079_v7 = vld [vmem:[%s16584_s2 + $0x298] sm:$0xff] }
  0xd8   : > { %v9070_v46 = vpop.permute.xlu0 %2062  ;;  %1364 = vperm.xlu1 %8060, %v8902_v48   ;;  %v9090_v48 = vld [vmem:[%s16584_s2 + $0x2a8] sm:$0xff] }
  0xd9   : > { %16830 = vst [vmem:[#allocation35_spill] sm:$0xff] %v9070_v46  ;;  %v9073_v28 = vpop.permute.xlu1 %862  ;;  %3298 = vperm.xlu0 %8058, %v9068_v26  }
  0xda   : > { %16831 = vst [vmem:[#allocation36_spill] sm:$0xff] %v9073_v28 }
  0xdc   : > { %v9081_v47 = vpop.permute.xlu0 %2074  ;;  %1374 = vperm.xlu1 %8060, %v8909_v49   ;;  %v9101_v49 = vld [vmem:[%s16584_s2 + $0x2b8] sm:$0xff] }
  0xdd   : > { %16832 = vst [vmem:[#allocation37_spill] sm:$0xff] %v9081_v47  ;;  %v9084_v44 = vpop.permute.xlu1 %870  ;;  %3306 = vperm.xlu0 %8058, %v9079_v7  }
  0xde   : > { %16833 = vst [vmem:[#allocation38_spill] sm:$0xff] %v9084_v44 }
  0xe0   : > { %v9092_v28 = vpop.permute.xlu0 %2082  ;;  %1384 = vperm.xlu1 %8060, %v8916_v50   ;;  %v9112_v50 = vld [vmem:[%s16584_s2 + $0x308] sm:$0xff] }
  0xe1   : > { %16834 = vst [vmem:[#allocation39_spill] sm:$0xff] %v9092_v28  ;;  %v9095_v46 = vpop.permute.xlu1 %874  ;;  %3314 = vperm.xlu0 %8058, %v9090_v48  }
  0xe2   : > { %16835 = vst [vmem:[#allocation40_spill] sm:$0xff] %v9095_v46 }
  0xe4   : > { %v9103_v47 = vpop.permute.xlu0 %2090  ;;  %1394 = vperm.xlu1 %8060, %v8923_v51   ;;  %v9123_v51 = vld [vmem:[%s16584_s2 + $0x320] sm:$0xff] }
  0xe5   : > { %16836 = vst [vmem:[#allocation41_spill] sm:$0xff] %v9103_v47  ;;  %v9106_v44 = vpop.permute.xlu1 %882  ;;  %3322 = vperm.xlu0 %8058, %v9101_v49  }
  0xe6   : > { %16837 = vst [vmem:[#allocation42_spill] sm:$0xff] %v9106_v44 }
  0xe8   : > { %v9114_v28 = vpop.permute.xlu0 %2098  ;;  %1404 = vperm.xlu1 %8060, %v8930_v52   ;;  %v9134_v52 = vld [vmem:[%s16584_s2 + $0x330] sm:$0xff] }
  0xe9   : > { %16838 = vst [vmem:[#allocation43_spill] sm:$0xff] %v9114_v28  ;;  %v9117_v46 = vpop.permute.xlu1 %890  ;;  %4402 = vperm.xlu0 %8058, %v9112_v50  }
  0xea   : > { %16839 = vst [vmem:[#allocation44_spill] sm:$0xff] %v9117_v46 }
  0xec   : > { %v9125_v47 = vpop.permute.xlu0 %2106  ;;  %1414 = vperm.xlu1 %8060, %v8941_v55   ;;  %v9145_v55 = vld [vmem:[%s16584_s2 + $0x340] sm:$0xff] }
  0xed   : > { %16840 = vst [vmem:[#allocation45_spill] sm:$0xff] %v9125_v47  ;;  %v9128_v44 = vpop.permute.xlu1 %898  ;;  %4414 = vperm.xlu0 %8058, %v9123_v51  }
  0xee   : > { %16841 = vst [vmem:[#allocation46_spill] sm:$0xff] %v9128_v44 }
  0xf0   : > { %v9136_v28 = vpop.permute.xlu0 %2114  ;;  %1424 = vperm.xlu1 %8060, %v8952_v58   ;;  %v9156_v58 = vld [vmem:[%s16584_s2 + $0x350] sm:$0xff] }
  0xf1   : > { %16842 = vst [vmem:[#allocation47_spill] sm:$0xff] %v9136_v28  ;;  %v9139_v46 = vpop.permute.xlu1 %906  ;;  %4422 = vperm.xlu0 %8058, %v9134_v52  }
  0xf2   : > { %16843 = vst [vmem:[#allocation48_spill] sm:$0xff] %v9139_v46 }
  0xf4   : > { %v9147_v47 = vpop.permute.xlu0 %2122  ;;  %1434 = vperm.xlu1 %8060, %v8963_v61   ;;  %v9167_v61 = vld [vmem:[%s16584_s2 + $0x110] sm:$0xff] }
  0xf5   : > { %16844 = vst [vmem:[#allocation49_spill] sm:$0xff] %v9147_v47  ;;  %v9150_v44 = vpop.permute.xlu1 %914  ;;  %4430 = vperm.xlu0 %8058, %v9145_v55   ;;  %v9172_v47 = vld [vmem:[%s16584_s2 + $0x360] sm:$0xff] }
  0xf6   : > { %16845 = vst [vmem:[#allocation50_spill] sm:$0xff] %v9150_v44 }
  0xf8   : > { %v9158_v28 = vpop.permute.xlu0 %2130  ;;  %1803 = vperm.xlu1 %8060, %v8788_v30  }
  0xf9   : > { %16846 = vst [vmem:[#allocation51_spill] sm:$0xff] %v9158_v28  ;;  %v9161_v46 = vpop.permute.xlu1 %922  ;;  %4438 = vperm.xlu0 %8058, %v9156_v58  }
  0xfa   : > { %16847 = vst [vmem:[#allocation52_spill] sm:$0xff] %v9161_v46  ;;  %v9183_v46 = vld [vmem:[%s16584_s2 + $0x120] sm:$0xff] }
  0xfc   : > { %v9174_v44 = vpop.permute.xlu0 %2138  ;;  %1813 = vperm.xlu1 %8060, %v9167_v61  }
  0xfd   : > { %16848 = vst [vmem:[#allocation53_spill] sm:$0xff] %v9174_v44  ;;  %v9177_v28 = vpop.permute.xlu1 %930  ;;  %4446 = vperm.xlu0 %8058, %v9172_v47  }
  0xfe   : > { %16849 = vst [vmem:[#allocation54_spill] sm:$0xff] %v9177_v28  ;;  %v9199_v28 = vld [vmem:[%s16584_s2 + $0x130] sm:$0xff] }
 0x100   : > { %v9190_v18 = vpop.permute.xlu0 %2146  ;;  %1823 = vperm.xlu1 %8060, %v9183_v46  }
 0x101   : > { %16850 = vst [vmem:[#allocation55_spill] sm:$0xff] %v9190_v18  ;;  %v9193_v44 = vpop.permute.xlu1 %938  ;;  %4454 = vperm.xlu0 %8058, %v9188_v20  }
 0x102   : > { %16851 = vst [vmem:[#allocation56_spill] sm:$0xff] %v9193_v44  ;;  %v9215_v44 = vld [vmem:[%s16584_s2 + $0x140] sm:$0xff] }
 0x104   : > { %v9206_v12 = vpop.permute.xlu0 %2154  ;;  %1833 = vperm.xlu1 %8060, %v9199_v28  }
 0x105   : > { %16852 = vst [vmem:[#allocation57_spill] sm:$0xff] %v9206_v12  ;;  %v9209_v18 = vpop.permute.xlu1 %946  ;;  %4462 = vperm.xlu0 %8058, %v9204_v14  }
 0x106   : > { %16853 = vst [vmem:[#allocation58_spill] sm:$0xff] %v9209_v18  ;;  %v9231_v18 = vld [vmem:[%s16584_s2 + $0x150] sm:$0xff] }
 0x108   : > { %v9222_v4 = vpop.permute.xlu0 %2518  ;;  %1843 = vperm.xlu1 %8060, %v9215_v44  }
 0x109   : > { %16854 = vst [vmem:[#allocation59_spill] sm:$0xff] %v9222_v4  ;;  %v9225_v12 = vpop.permute.xlu1 %954  ;;  %4470 = vperm.xlu0 %8058, %v9220_v8   ;;  %v9245_v4 = vld [vmem:[%s16584_s2 + $0x160] sm:$0xff] }
 0x10a   : > { %16855 = vst [vmem:[#allocation60_spill] sm:$0xff] %v9225_v12 }
 0x10c   : > { %v9238_v1 = vpop.permute.xlu0 %2530  ;;  %1853 = vperm.xlu1 %8060, %v9231_v18  }
 0x10d   : > { %16856 = vst [vmem:[#allocation61_spill] sm:$0xff] %v9238_v1  ;;  %4478 = vperm.xlu0 %8058, %v9236_v2   ;;  %v9261_v1 = vld [vmem:[%s16584_s2 + $0x170] sm:$0xff] }
 0x10e   : > { %v9247_v12 = vpop.permute.xlu1 %1090 }
 0x10f   : > { %16857 = vst [vmem:[#allocation62_spill] sm:$0xff] %v9247_v12  ;;  %v9268_v12 = vld [vmem:[%s16584_s2 + $0x3c0] sm:$0xff] }
 0x110   : > { %v9254_v62 = vpop.permute.xlu0 %2538  ;;  %1863 = vperm.xlu1 %8060, %v9245_v4   ;;  %16861 = vst [vmem:[#allocation66_spill] sm:$0xff] %v9268_v12 }
 0x111   : > { %16859 = vst [vmem:[#allocation64_spill] sm:$0xff] %v9254_v62  ;;  %4486 = vperm.xlu0 %8058, %v9252_v63   ;;  %v9277_v62 = vld [vmem:[%s16584_s2 + $0x180] sm:$0xff]  ;;  %v16876_v63 = vmov 1  }
 0x112   : > { %v9263_v60 = vpop.permute.xlu1 %1098 }
 0x113   : > { %16860 = vst [vmem:[#allocation65_spill] sm:$0xff] %v9263_v60  ;;  %v16865_v60 = vmov 2  }
 0x114   : > { %v9270_v59 = vpop.permute.xlu0 %2546  ;;  %1873 = vperm.xlu1 %8060, %v9261_v1  }
 0x115   : > { %16862 = vst [vmem:[#allocation67_spill] sm:$0xff] %v9270_v59  ;;  %4494 = vperm.xlu0 %8058, %v9268_v12   ;;  %v9288_v59 = vld [vmem:[%s16584_s2 + $0x190] sm:$0xff] }
 0x116   : > { %v9279_v57 = vpop.permute.xlu1 %1102 }
 0x117   : > { %16863 = vst [vmem:[#allocation68_spill] sm:$0xff] %v9279_v57 }
 0x118   : > { %v9281_v56 = vpop.permute.xlu0 %2554  ;;  %1883 = vperm.xlu1 %8060, %v9277_v62  }
 0x119   : > { %16864 = vst [vmem:[#allocation69_spill] sm:$0xff] %v9281_v56  ;;  %8069 = vset.pattern.permute.xlu0 %v16865_v60  ;;  %v9299_v56 = vld [vmem:[%s16584_s2 + $0x1a0] sm:$0xff] }
 0x11a   : > { %v9290_v54 = vpop.permute.xlu1 %1110  ;;  %1094 = vperm.xlu0 %8069, %v8647_v5   ;;  %v9310_v5 = vld [vmem:[%s16584_s2 + $0x1b0] sm:$0xff] }
 0x11b   : > { %16866 = vst [vmem:[#allocation70_spill] sm:$0xff] %v9290_v54 }
 0x11c   : > { %v9293_v53 = vpop.permute.xlu0 %2562  ;;  %1893 = vperm.xlu1 %8060, %v9288_v59  }
 0x11d   : > { %16867 = vst [vmem:[#allocation71_spill] sm:$0xff] %v9293_v53 }
 0x11e   : > { %v9301_v57 = vpop.permute.xlu1 %1118  ;;  %1106 = vperm.xlu0 %8069, %v8661_v9   ;;  %v9321_v9 = vld [vmem:[%s16584_s2 + $0x1c0] sm:$0xff] }
 0x11f   : > { %16868 = vst [vmem:[#allocation72_spill] sm:$0xff] %v9301_v57 }
 0x120   : > { %v9304_v12 = vpop.permute.xlu0 %2570  ;;  %1903 = vperm.xlu1 %8060, %v9299_v56  }
 0x121   : > { %16869 = vst [vmem:[#allocation73_spill] sm:$0xff] %v9304_v12 }
 0x122   : > { %v9312_v53 = vpop.permute.xlu1 %1126  ;;  %1114 = vperm.xlu0 %8069, %v8673_v11   ;;  %v469_v11 = vld [vmem:[%s16584_s2 + $0x108] sm:$0xff] }
 0x123   : > { %16870 = vst [vmem:[#allocation74_spill] sm:$0xff] %v9312_v53 }
 0x124   : > { %v9315_v54 = vpop.permute.xlu0 %2578  ;;  %1913 = vperm.xlu1 %8060, %v9310_v5  }
 0x125   : > { %16871 = vst [vmem:[#allocation75_spill] sm:$0xff] %v9315_v54 }
 0x126   : > { %v9323_v12 = vpop.permute.xlu1 %1134  ;;  %1122 = vperm.xlu0 %8069, %v8685_v13  }
 0x127   : > { %16872 = vst [vmem:[#allocation76_spill] sm:$0xff] %v9323_v12 }
 0x128   : > { %v9326_v57 = vpop.permute.xlu0 %2586  ;;  %1923 = vperm.xlu1 %8060, %v9321_v9  }
 0x129   : > { %16873 = vst [vmem:[#allocation77_spill] sm:$0xff] %v9326_v57 }
 0x12a   : > { %v9329_v53 = vpop.permute.xlu1 %1142  ;;  %1130 = vperm.xlu0 %8069, %v8697_v15  }
 0x12b   : > { %16874 = vst [vmem:[#allocation78_spill] sm:$0xff] %v9329_v53 }
 0x12c   : > { %v9335_v54 = vpop.permute.xlu0 %2594  ;;  %8061 = vset.pattern.permute.xlu1 %v16876_v63 }
 0x12d   : > { %16875 = vst [vmem:[#allocation79_spill] sm:$0xff] %v9335_v54  ;;  %2066 = vperm.xlu1 %8061, %v469_v11  }
 0x12e   : > { %v9338_v12 = vpop.permute.xlu1 %1150  ;;  %1138 = vperm.xlu0 %8069, %v8709_v17  }
 0x130   : > { %v9341_v13 = vpop.permute.xlu0 %2602 }
 0x131   : > { %16877 = vst [vmem:[#allocation80_spill] sm:$0xff] %v9341_v13  ;;  %2070 = vperm.xlu1 %8061, %v9167_v61  }
 0x132   : > { %v9344_v57 = vpop.permute.xlu1 %1158  ;;  %1146 = vperm.xlu0 %8069, %v8721_v19  }
 0x134   : > { %v9347_v15 = vpop.permute.xlu0 %2610 }
 0x135   : > { %16878 = vst [vmem:[#allocation81_spill] sm:$0xff] %v9347_v15  ;;  %2078 = vperm.xlu1 %8061, %v9183_v46  }
 0x136   : > { %v9350_v54 = vpop.permute.xlu1 %1166  ;;  %1154 = vperm.xlu0 %8069, %v8733_v21  }
 0x138   : > { %v9353_v53 = vpop.permute.xlu0 %3230 }
 0x139   : > { %16879 = vst [vmem:[#allocation82_spill] sm:$0xff] %v9353_v53  ;;  %2086 = vperm.xlu1 %8061, %v9199_v28  }
 0x13a   : > { %v9356_v17 = vpop.permute.xlu1 %1174  ;;  %1162 = vperm.xlu0 %8069, %v8745_v23  }
 0x13c   : > { %v9359_v13 = vpop.permute.xlu0 %3242 }
 0x13d   : > { %16880 = vst [vmem:[#allocation83_spill] sm:$0xff] %v9359_v13  ;;  %2094 = vperm.xlu1 %8061, %v9215_v44  }
 0x13e   : > { %v9362_v19 = vpop.permute.xlu1 %1182  ;;  %1170 = vperm.xlu0 %8069, %v8757_v25  }
 0x140   : > { %v9365_v15 = vpop.permute.xlu0 %3250 }
 0x141   : > { %16881 = vst [vmem:[#allocation84_spill] sm:$0xff] %v9365_v15  ;;  %2102 = vperm.xlu1 %8061, %v9231_v18  }
 0x142   : > { %1178 = vperm.xlu0 %8069, %v8769_v27  }
 0x143   : > { %v9369_v21 = vpop.permute.xlu1 %1319 }
 0x144   : > { %16882 = vst [vmem:[#allocation85_spill] sm:$0xff] %v9369_v21  ;;  %v9371_v53 = vpop.permute.xlu0 %3258 }
 0x145   : > { %2110 = vperm.xlu1 %8061, %v9245_v4  }
 0x146   : > { %1186 = vperm.xlu0 %8069, %v8781_v29  }
 0x147   : > { %v9375_v23 = vpop.permute.xlu1 %1329 }
 0x148   : > { %v9377_v13 = vpop.permute.xlu0 %3266 }
 0x149   : > { %16883 = vst [vmem:[#allocation86_spill] sm:$0xff] %v9377_v13  ;;  %2118 = vperm.xlu1 %8061, %v9261_v1  }
 0x14a   : > { %2290 = vperm.xlu0 %8069, %v8788_v30  }
 0x14b   : > { %v9381_v25 = vpop.permute.xlu1 %1334 }
 0x14c   : > { %16884 = vst [vmem:[#allocation87_spill] sm:$0xff] %v9381_v25  ;;  %v9383_v15 = vpop.permute.xlu0 %3274 }
 0x14d   : > { %16885 = vst [vmem:[#allocation88_spill] sm:$0xff] %v9383_v15  ;;  %2126 = vperm.xlu1 %8061, %v9277_v62  }
 0x14e   : > { %2302 = vperm.xlu0 %8069, %v8798_v32  }
 0x14f   : > { %v9387_v27 = vpop.permute.xlu1 %1344 }
 0x150   : > { %16886 = vst [vmem:[#allocation89_spill] sm:$0xff] %v9387_v27  ;;  %v9389_v21 = vpop.permute.xlu0 %3282 }
 0x151   : > { %16887 = vst [vmem:[#allocation90_spill] sm:$0xff] %v9389_v21  ;;  %2134 = vperm.xlu1 %8061, %v9288_v59  }
 0x152   : > { %2310 = vperm.xlu0 %8069, %v8805_v33  }
 0x153   : > { %v9393_v29 = vpop.permute.xlu1 %1354 }
 0x154   : > { %16888 = vst [vmem:[#allocation91_spill] sm:$0xff] %v9393_v29  ;;  %v9395_v13 = vpop.permute.xlu0 %3290 }
 0x155   : > { %16889 = vst [vmem:[#allocation92_spill] sm:$0xff] %v9395_v13  ;;  %2142 = vperm.xlu1 %8061, %v9299_v56  }
 0x156   : > { %2318 = vperm.xlu0 %8069, %v8812_v34  }
 0x157   : > { %v9399_v30 = vpop.permute.xlu1 %1364 }
 0x158   : > { %16890 = vst [vmem:[#allocation93_spill] sm:$0xff] %v9399_v30  ;;  %v9401_v15 = vpop.permute.xlu0 %3298 }
 0x159   : > { %16891 = vst [vmem:[#allocation94_spill] sm:$0xff] %v9401_v15  ;;  %2150 = vperm.xlu1 %8061, %v9310_v5  }
 0x15a   : > { %2326 = vperm.xlu0 %8069, %v8819_v35  }
 0x15b   : > { %v9405_v32 = vpop.permute.xlu1 %1374 }
 0x15c   : > { %16892 = vst [vmem:[#allocation95_spill] sm:$0xff] %v9405_v32  ;;  %v9407_v21 = vpop.permute.xlu0 %3306 }
 0x15d   : > { %16893 = vst [vmem:[#allocation96_spill] sm:$0xff] %v9407_v21  ;;  %2158 = vperm.xlu1 %8061, %v9321_v9  }
 0x15e   : > { %2334 = vperm.xlu0 %8069, %v8826_v36  }
 0x15f   : > { %v9411_v33 = vpop.permute.xlu1 %1384 }
 0x160   : > { %16894 = vst [vmem:[#allocation97_spill] sm:$0xff] %v9411_v33  ;;  %v9413_v13 = vpop.permute.xlu0 %3314 }
 0x161   : > { %16895 = vst [vmem:[#allocation98_spill] sm:$0xff] %v9413_v13  ;;  %8062 = vset.pattern.permute.xlu1 %v16865_v60 }
 0x162   : > { %2342 = vperm.xlu0 %8069, %v8833_v37   ;;  %2294 = vperm.xlu1 %8062, %v469_v11  }
 0x163   : > { %v9417_v34 = vpop.permute.xlu1 %1394 }
 0x164   : > { %16896 = vst [vmem:[#allocation99_spill] sm:$0xff] %v9417_v34  ;;  %v9419_v35 = vpop.permute.xlu0 %3322 }
 0x165   : > { %16897 = vst [vmem:[#allocation100_spill] sm:$0xff] %v9419_v35 }
 0x166   : > { %2350 = vperm.xlu0 %8069, %v8840_v38   ;;  %2298 = vperm.xlu1 %8062, %v9167_v61  }
 0x167   : > { %v9423_v21 = vpop.permute.xlu1 %1404 }
 0x168   : > { %16898 = vst [vmem:[#allocation101_spill] sm:$0xff] %v9423_v21  ;;  %v9425_v36 = vpop.permute.xlu0 %4402  ;;  %v9921_v21 = vld [vmem:[%s9841_s23 + $0x8] sm:$0x7] }
 0x169   : > { %16899 = vst [vmem:[#allocation102_spill] sm:$0xff] %v9425_v36 }
 0x16a   : > { %2358 = vperm.xlu0 %8069, %v8847_v39   ;;  %2306 = vperm.xlu1 %8062, %v9183_v46  }
 0x16b   : > { %v9429_v13 = vpop.permute.xlu1 %1414 }
 0x16c   : > { %16900 = vst [vmem:[#allocation103_spill] sm:$0xff] %v9429_v13  ;;  %v9431_v37 = vpop.permute.xlu0 %4414 }
 0x16d   : > { %16901 = vst [vmem:[#allocation104_spill] sm:$0xff] %v9431_v37 }
 0x16e   : > { %2366 = vperm.xlu0 %8069, %v8854_v40   ;;  %2314 = vperm.xlu1 %8062, %v9199_v28  }
 0x16f   : > { %v9435_v11 = vpop.permute.xlu1 %1424 }
 0x170   : > { %16902 = vst [vmem:[#allocation105_spill] sm:$0xff] %v9435_v11  ;;  %v9437_v38 = vpop.permute.xlu0 %4422 }
 0x171   : > { %16903 = vst [vmem:[#allocation106_spill] sm:$0xff] %v9437_v38 }
 0x172   : > { %2374 = vperm.xlu0 %8069, %v8861_v41   ;;  %2322 = vperm.xlu1 %8062, %v9215_v44  }
 0x173   : > { %v9441_v61 = vpop.permute.xlu1 %1434 }
 0x174   : > { %16904 = vst [vmem:[#allocation107_spill] sm:$0xff] %v9441_v61  ;;  %v9443_v39 = vpop.permute.xlu0 %4430  ;;  %v17008_v61 = vld [vmem:[#allocation17_spill] sm:$0xff] }
 0x175   : > { %16905 = vst [vmem:[#allocation108_spill] sm:$0xff] %v9443_v39 }
 0x176   : > { %2382 = vperm.xlu0 %8069, %v8868_v42   ;;  %2330 = vperm.xlu1 %8062, %v9231_v18  }
 0x177   : > { %v9447_v46 = vpop.permute.xlu1 %1803 }
 0x178   : > { %16906 = vst [vmem:[#allocation109_spill] sm:$0xff] %v9447_v46  ;;  %v9449_v40 = vpop.permute.xlu0 %4438  ;;  %v17014_v46 = vld [vmem:[#allocation21_spill] sm:$0xff] }
 0x179   : > { %16907 = vst [vmem:[#allocation110_spill] sm:$0xff] %v9449_v40 }
 0x17a   : > { %3458 = vperm.xlu0 %8069, %v8974_v0   ;;  %2338 = vperm.xlu1 %8062, %v9245_v4  }
 0x17b   : > { %v9453_v28 = vpop.permute.xlu1 %1813 }
 0x17c   : > { %16908 = vst [vmem:[#allocation111_spill] sm:$0xff] %v9453_v28  ;;  %v9455_v41 = vpop.permute.xlu0 %4446 }
 0x17d   : > { %16909 = vst [vmem:[#allocation112_spill] sm:$0xff] %v9455_v41 }
 0x17e   : > { %3470 = vperm.xlu0 %8069, %v8985_v3   ;;  %2346 = vperm.xlu1 %8062, %v9261_v1  }
 0x17f   : > { %v9459_v44 = vpop.permute.xlu1 %1823 }
 0x180   : > { %16910 = vst [vmem:[#allocation113_spill] sm:$0xff] %v9459_v44  ;;  %v9461_v42 = vpop.permute.xlu0 %4454  ;;  %v9702_v44 = vld [vmem:[%s16584_s2 + $0x260] sm:$0xff] }
 0x181   : > { %16911 = vst [vmem:[#allocation114_spill] sm:$0xff] %v9461_v42  ;;  %v9691_v42 = vld [vmem:[%s16584_s2 + $0x250] sm:$0xff] }
 0x182   : > { %3478 = vperm.xlu0 %8069, %v8996_v10   ;;  %2354 = vperm.xlu1 %8062, %v9277_v62  }
 0x183   : > { %v9465_v18 = vpop.permute.xlu1 %1833 }
 0x184   : > { %16912 = vst [vmem:[#allocation115_spill] sm:$0xff] %v9465_v18  ;;  %v9467_v0 = vpop.permute.xlu0 %4462  ;;  %v9680_v18 = vld [vmem:[%s16584_s2 + $0x240] sm:$0xff] }
 0x185   : > { %16913 = vst [vmem:[#allocation116_spill] sm:$0xff] %v9467_v0  ;;  %v9669_v0 = vld [vmem:[%s16584_s2 + $0x230] sm:$0xff] }
 0x186   : > { %3486 = vperm.xlu0 %8069, %v9007_v16   ;;  %2362 = vperm.xlu1 %8062, %v9288_v59  }
 0x187   : > { %v9471_v4 = vpop.permute.xlu1 %1843 }
 0x188   : > { %16914 = vst [vmem:[#allocation117_spill] sm:$0xff] %v9471_v4  ;;  %v9473_v3 = vpop.permute.xlu0 %4470  ;;  %v9658_v4 = vld [vmem:[%s16584_s2 + $0x220] sm:$0xff] }
 0x189   : > { %16915 = vst [vmem:[#allocation118_spill] sm:$0xff] %v9473_v3 }
 0x18a   : > { %3494 = vperm.xlu0 %8069, %v9024_v24   ;;  %2370 = vperm.xlu1 %8062, %v9299_v56   ;;  %v9496_v56 = vld [vmem:[%s16582_s0 + $0x8] sm:$0xff] }
 0x18b   : > { %v9477_v1 = vpop.permute.xlu1 %1853 }
 0x18c   : > { %16916 = vst [vmem:[#allocation119_spill] sm:$0xff] %v9477_v1  ;;  %v9479_v10 = vpop.permute.xlu0 %4478 }
 0x18d   : > { %16917 = vst [vmem:[#allocation120_spill] sm:$0xff] %v9479_v10  ;;  %v9635_v10 = vld [vmem:[%s16584_s2 + $0x208] sm:$0xff] }
 0x18e   : > { %3502 = vperm.xlu0 %8069, %v9035_v31   ;;  %2378 = vperm.xlu1 %8062, %v9310_v5  }
 0x18f   : > { %v9483_v62 = vpop.permute.xlu1 %1863 }
 0x190   : > { %16918 = vst [vmem:[#allocation121_spill] sm:$0xff] %v9483_v62  ;;  %v9485_v16 = vpop.permute.xlu0 %4486 }
 0x191   : > { %16919 = vst [vmem:[#allocation122_spill] sm:$0xff] %v9485_v16 }
 0x192   : > { %3510 = vperm.xlu0 %8069, %v9046_v45   ;;  %2386 = vperm.xlu1 %8062, %v9321_v9   ;;  %v9512_v9 = vld [vmem:[%s16582_s0 + $0x20] sm:$0xff] }
 0x193   : > { %v9489_v59 = vpop.permute.xlu1 %1873 }
 0x194   : > { %16920 = vst [vmem:[#allocation123_spill] sm:$0xff] %v9489_v59  ;;  %v9491_v24 = vpop.permute.xlu0 %4494 }
 0x195   : > { %16921 = vst [vmem:[#allocation124_spill] sm:$0xff] %v9491_v24 }
 0x196   : > { %3518 = vperm.xlu0 %8069, %v9057_v6   ;;  %8063 = vset.pattern.permute.xlu1 %v16876_v63 }
 0x197   : > { %2522 = vperm.xlu1 %8063, %v9496_v56   ;;  %v9501_v31 = vpop.permute.xlu1 %1883 }
 0x198   : > { %16922 = vst [vmem:[#allocation125_spill] sm:$0xff] %v9501_v31 }
 0x199   : > { %v9503_v45 = vpop.permute.xlu0 %1094 }
 0x19a   : > { %16923 = vst [vmem:[#allocation126_spill] sm:$0xff] %v9503_v45  ;;  %3526 = vperm.xlu0 %8069, %v9068_v26   ;;  %v9523_v26 = vld [vmem:[%s16582_s0 + $0x30] sm:$0xff] }
 0x19b   : > { %2526 = vperm.xlu1 %8063, %v9019_v22   ;;  %v9507_v5 = vpop.permute.xlu1 %1893 }
 0x19c   : > { %16924 = vst [vmem:[#allocation127_spill] sm:$0xff] %v9507_v5 }
 0x19d   : > { %v9514_v6 = vpop.permute.xlu0 %1106 }
 0x19e   : > { %16925 = vst [vmem:[#allocation128_spill] sm:$0xff] %v9514_v6  ;;  %3534 = vperm.xlu0 %8069, %v9079_v7   ;;  %v9534_v7 = vld [vmem:[%s16582_s0 + $0x40] sm:$0xff] }
 0x19f   : > { %2534 = vperm.xlu1 %8063, %v9512_v9   ;;  %v9518_v31 = vpop.permute.xlu1 %1903 }
 0x1a0   : > { %16926 = vst [vmem:[#allocation129_spill] sm:$0xff] %v9518_v31 }
 0x1a1   : > { %v9525_v45 = vpop.permute.xlu0 %1114 }
 0x1a2   : > { %16927 = vst [vmem:[#allocation130_spill] sm:$0xff] %v9525_v45  ;;  %3542 = vperm.xlu0 %8069, %v9090_v48   ;;  %v9545_v48 = vld [vmem:[%s16582_s0 + $0x50] sm:$0xff] }
 0x1a3   : > { %2542 = vperm.xlu1 %8063, %v9523_v26   ;;  %v9529_v5 = vpop.permute.xlu1 %1913 }
 0x1a4   : > { %16928 = vst [vmem:[#allocation131_spill] sm:$0xff] %v9529_v5 }
 0x1a5   : > { %v9536_v6 = vpop.permute.xlu0 %1122 }
 0x1a6   : > { %16929 = vst [vmem:[#allocation132_spill] sm:$0xff] %v9536_v6  ;;  %3550 = vperm.xlu0 %8069, %v9101_v49   ;;  %v9556_v49 = vld [vmem:[%s16582_s0 + $0x60] sm:$0xff] }
 0x1a7   : > { %2550 = vperm.xlu1 %8063, %v9534_v7   ;;  %v9540_v31 = vpop.permute.xlu1 %1923 }
 0x1a8   : > { %16930 = vst [vmem:[#allocation133_spill] sm:$0xff] %v9540_v31 }
 0x1a9   : > { %v9547_v45 = vpop.permute.xlu0 %1130 }
 0x1aa   : > { %16931 = vst [vmem:[#allocation134_spill] sm:$0xff] %v9547_v45  ;;  %3686 = vperm.xlu0 %8069, %v8875_v43   ;;  %v9567_v43 = vld [vmem:[%s16582_s0 + $0x70] sm:$0xff] }
 0x1ab   : > { %2558 = vperm.xlu1 %8063, %v9545_v48  }
 0x1ac   : > { %v9551_v5 = vpop.permute.xlu1 %2066 }
 0x1ad   : > { %16932 = vst [vmem:[#allocation135_spill] sm:$0xff] %v9551_v5  ;;  %v9558_v6 = vpop.permute.xlu0 %1138 }
 0x1ae   : > { %16933 = vst [vmem:[#allocation136_spill] sm:$0xff] %v9558_v6  ;;  %3694 = vperm.xlu0 %8069, %v9019_v22   ;;  %v9578_v22 = vld [vmem:[%s16582_s0 + $0x80] sm:$0xff] }
 0x1af   : > { %2566 = vperm.xlu1 %8063, %v9556_v49  }
 0x1b0   : > { %v9562_v31 = vpop.permute.xlu1 %2070 }
 0x1b1   : > { %16934 = vst [vmem:[#allocation137_spill] sm:$0xff] %v9562_v31  ;;  %v9569_v45 = vpop.permute.xlu0 %1146 }
 0x1b2   : > { %16935 = vst [vmem:[#allocation138_spill] sm:$0xff] %v9569_v45  ;;  %3702 = vperm.xlu0 %8069, %v9512_v9   ;;  %v9589_v45 = vld [vmem:[%s16582_s0 + $0x90] sm:$0xff] }
 0x1b3   : > { %2574 = vperm.xlu1 %8063, %v9567_v43  }
 0x1b4   : > { %v9573_v5 = vpop.permute.xlu1 %2078 }
 0x1b5   : > { %16936 = vst [vmem:[#allocation139_spill] sm:$0xff] %v9573_v5  ;;  %v9580_v6 = vpop.permute.xlu0 %1154 }
 0x1b6   : > { %16937 = vst [vmem:[#allocation140_spill] sm:$0xff] %v9580_v6  ;;  %3710 = vperm.xlu0 %8069, %v9523_v26   ;;  %v9600_v6 = vld [vmem:[%s16582_s0 + $0xa0] sm:$0xff] }
 0x1b7   : > { %2582 = vperm.xlu1 %8063, %v9578_v22  }
 0x1b8   : > { %v9584_v31 = vpop.permute.xlu1 %2086 }
 0x1b9   : > { %16938 = vst [vmem:[#allocation141_spill] sm:$0xff] %v9584_v31  ;;  %v9591_v24 = vpop.permute.xlu0 %1162 }
 0x1ba   : > { %16939 = vst [vmem:[#allocation142_spill] sm:$0xff] %v9591_v24  ;;  %3718 = vperm.xlu0 %8069, %v9534_v7   ;;  %v9611_v24 = vld [vmem:[%s16582_s0 + $0xb0] sm:$0xff] }
 0x1bb   : > { %2590 = vperm.xlu1 %8063, %v9589_v45  }
 0x1bc   : > { %v9595_v5 = vpop.permute.xlu1 %2094 }
 0x1bd   : > { %16940 = vst [vmem:[#allocation143_spill] sm:$0xff] %v9595_v5  ;;  %v9602_v59 = vpop.permute.xlu0 %1170 }
 0x1be   : > { %16941 = vst [vmem:[#allocation144_spill] sm:$0xff] %v9602_v59  ;;  %3726 = vperm.xlu0 %8069, %v9545_v48   ;;  %v9622_v59 = vld [vmem:[%s16582_s0 + $0xc0] sm:$0xff] }
 0x1bf   : > { %2598 = vperm.xlu1 %8063, %v9600_v6  }
 0x1c0   : > { %v9606_v31 = vpop.permute.xlu1 %2102 }
 0x1c1   : > { %16942 = vst [vmem:[#allocation145_spill] sm:$0xff] %v9606_v31  ;;  %v9613_v16 = vpop.permute.xlu0 %1178 }
 0x1c2   : > { %16943 = vst [vmem:[#allocation146_spill] sm:$0xff] %v9613_v16  ;;  %3734 = vperm.xlu0 %8069, %v9556_v49  }
 0x1c3   : > { %2606 = vperm.xlu1 %8063, %v9611_v24  }
 0x1c4   : > { %v9617_v5 = vpop.permute.xlu1 %2110 }
 0x1c5   : > { %16944 = vst [vmem:[#allocation147_spill] sm:$0xff] %v9617_v5  ;;  %v9624_v62 = vpop.permute.xlu0 %1186  ;;  %v16948_v5 = vmov 0  }
 0x1c6   : > { %16945 = vst [vmem:[#allocation148_spill] sm:$0xff] %v9624_v62  ;;  %3742 = vperm.xlu0 %8069, %v9567_v43  }
 0x1c7   : > { %2614 = vperm.xlu1 %8063, %v9622_v59  }
 0x1c8   : > { %v9628_v31 = vpop.permute.xlu1 %2118 }
 0x1c9   : > { %16946 = vst [vmem:[#allocation149_spill] sm:$0xff] %v9628_v31  ;;  %v9630_v16 = vpop.permute.xlu0 %2290  ;;  %v9647_v31 = vld [vmem:[%s16584_s2 + $0x210] sm:$0xff] }
 0x1ca   : > { %16947 = vst [vmem:[#allocation150_spill] sm:$0xff] %v9630_v16  ;;  %3750 = vperm.xlu0 %8069, %v9578_v22  }
 0x1cb   : > { %8064 = vset.pattern.permute.xlu1 %v16948_v5 }
 0x1cc   : > { %2976 = vperm.xlu1 %8064, %v9635_v10   ;;  %v9640_v62 = vpop.permute.xlu1 %2126 }
 0x1cd   : > { %16949 = vst [vmem:[#allocation151_spill] sm:$0xff] %v9640_v62  ;;  %v9642_v1 = vpop.permute.xlu0 %2302 }
 0x1ce   : > { %16950 = vst [vmem:[#allocation152_spill] sm:$0xff] %v9642_v1  ;;  %3758 = vperm.xlu0 %8069, %v9589_v45  }
 0x1d0   : > { %2981 = vperm.xlu1 %8064, %v9647_v31   ;;  %v9651_v16 = vpop.permute.xlu1 %2134 }
 0x1d1   : > { %16951 = vst [vmem:[#allocation153_spill] sm:$0xff] %v9651_v16  ;;  %v9653_v3 = vpop.permute.xlu0 %2310 }
 0x1d2   : > { %16952 = vst [vmem:[#allocation154_spill] sm:$0xff] %v9653_v3  ;;  %3766 = vperm.xlu0 %8069, %v9600_v6  }
 0x1d4   : > { %2991 = vperm.xlu1 %8064, %v9658_v4   ;;  %v9662_v1 = vpop.permute.xlu1 %2142 }
 0x1d5   : > { %16953 = vst [vmem:[#allocation155_spill] sm:$0xff] %v9662_v1  ;;  %v9664_v62 = vpop.permute.xlu0 %2318 }
 0x1d6   : > { %16954 = vst [vmem:[#allocation156_spill] sm:$0xff] %v9664_v62  ;;  %3774 = vperm.xlu0 %8069, %v9611_v24  }
 0x1d8   : > { %3001 = vperm.xlu1 %8064, %v9669_v0   ;;  %v9673_v3 = vpop.permute.xlu1 %2150 }
 0x1d9   : > { %16955 = vst [vmem:[#allocation157_spill] sm:$0xff] %v9673_v3  ;;  %v9675_v16 = vpop.permute.xlu0 %2326 }
 0x1da   : > { %16956 = vst [vmem:[#allocation158_spill] sm:$0xff] %v9675_v16  ;;  %3782 = vperm.xlu0 %8069, %v9622_v59  }
 0x1dc   : > { %3011 = vperm.xlu1 %8064, %v9680_v18   ;;  %v9684_v62 = vpop.permute.xlu1 %2158 }
 0x1dd   : > { %16957 = vst [vmem:[#allocation159_spill] sm:$0xff] %v9684_v62  ;;  %v9686_v1 = vpop.permute.xlu0 %2334 }
 0x1de   : > { %16958 = vst [vmem:[#allocation160_spill] sm:$0xff] %v9686_v1  ;;  %4630 = vperm.xlu0 %8069, %v9112_v50   ;;  %v9713_v50 = vld [vmem:[%s16584_s2 + $0x270] sm:$0xff] }
 0x1e0   : > { %3021 = vperm.xlu1 %8064, %v9691_v42  }
 0x1e1   : > { %v9695_v16 = vpop.permute.xlu0 %2342  ;;  %v9697_v3 = vpop.permute.xlu1 %2294 }
 0x1e2   : > { %16959 = vst [vmem:[#allocation161_spill] sm:$0xff] %v9695_v16  ;;  %16960 = vst [vmem:[#allocation162_spill] sm:$0xff] %v9697_v3  ;;  %4642 = vperm.xlu0 %8069, %v9123_v51   ;;  %v9724_v51 = vld [vmem:[%s16584_s2 + $0x280] sm:$0xff] }
 0x1e4   : > { %3031 = vperm.xlu1 %8064, %v9702_v44  }
 0x1e5   : > { %v9706_v1 = vpop.permute.xlu0 %2350  ;;  %v9708_v62 = vpop.permute.xlu1 %2298 }
 0x1e6   : > { %16961 = vst [vmem:[#allocation163_spill] sm:$0xff] %v9706_v1  ;;  %16962 = vst [vmem:[#allocation164_spill] sm:$0xff] %v9708_v62  ;;  %4650 = vperm.xlu0 %8069, %v9134_v52   ;;  %v9735_v52 = vld [vmem:[%s16584_s2 + $0x290] sm:$0xff] }
 0x1e8   : > { %3041 = vperm.xlu1 %8064, %v9713_v50  }
 0x1e9   : > { %v9717_v3 = vpop.permute.xlu0 %2358  ;;  %v9719_v16 = vpop.permute.xlu1 %2306 }
 0x1ea   : > { %16963 = vst [vmem:[#allocation165_spill] sm:$0xff] %v9717_v3  ;;  %16964 = vst [vmem:[#allocation166_spill] sm:$0xff] %v9719_v16  ;;  %4658 = vperm.xlu0 %8069, %v9145_v55   ;;  %v9746_v55 = vld [vmem:[%s16584_s2 + $0x2a0] sm:$0xff] }
 0x1ec   : > { %3051 = vperm.xlu1 %8064, %v9724_v51  }
 0x1ed   : > { %v9728_v1 = vpop.permute.xlu0 %2366  ;;  %v9730_v62 = vpop.permute.xlu1 %2314 }
 0x1ee   : > { %16965 = vst [vmem:[#allocation167_spill] sm:$0xff] %v9728_v1  ;;  %16966 = vst [vmem:[#allocation168_spill] sm:$0xff] %v9730_v62  ;;  %4666 = vperm.xlu0 %8069, %v9156_v58   ;;  %v9757_v58 = vld [vmem:[%s16584_s2 + $0x2b0] sm:$0xff] }
 0x1f0   : > { %3061 = vperm.xlu1 %8064, %v9735_v52  }
 0x1f1   : > { %v9739_v3 = vpop.permute.xlu0 %2374  ;;  %v9741_v16 = vpop.permute.xlu1 %2322 }
 0x1f2   : > { %16967 = vst [vmem:[#allocation169_spill] sm:$0xff] %v9739_v3  ;;  %16968 = vst [vmem:[#allocation170_spill] sm:$0xff] %v9741_v16  ;;  %4674 = vperm.xlu0 %8069, %v9172_v47   ;;  %v9768_v47 = vld [vmem:[%s16584_s2 + $0x2c0] sm:$0xff] }
 0x1f4   : > { %3071 = vperm.xlu1 %8064, %v9746_v55  }
 0x1f5   : > { %v9750_v1 = vpop.permute.xlu0 %2382  ;;  %v9752_v62 = vpop.permute.xlu1 %2330 }
 0x1f6   : > { %16969 = vst [vmem:[#allocation171_spill] sm:$0xff] %v9750_v1  ;;  %16970 = vst [vmem:[#allocation172_spill] sm:$0xff] %v9752_v62  ;;  %4682 = vperm.xlu0 %8069, %v9188_v20  }
 0x1f8   : > { %3081 = vperm.xlu1 %8064, %v9757_v58  }
 0x1f9   : > { %v9761_v3 = vpop.permute.xlu0 %3458  ;;  %v9763_v16 = vpop.permute.xlu1 %2338 }
 0x1fa   : > { %16971 = vst [vmem:[#allocation173_spill] sm:$0xff] %v9761_v3  ;;  %16972 = vst [vmem:[#allocation174_spill] sm:$0xff] %v9763_v16  ;;  %4690 = vperm.xlu0 %8069, %v9204_v14  }
 0x1fc   : > { %3091 = vperm.xlu1 %8064, %v9768_v47  }
 0x1fd   : > { %v9772_v1 = vpop.permute.xlu0 %3470  ;;  %v9774_v62 = vpop.permute.xlu1 %2346 }
 0x1fe   : > { %16973 = vst [vmem:[#allocation175_spill] sm:$0xff] %v9772_v1  ;;  %16974 = vst [vmem:[#allocation176_spill] sm:$0xff] %v9774_v62  ;;  %4698 = vperm.xlu0 %8069, %v9220_v8   ;;  %v16979_v1 = vld [vmem:[#allocation63_spill] sm:$0xff] }
 0x200   : > { %8065 = vset.pattern.permute.xlu1 %v16876_v63  ;;  %v16982_v63 = vld [vmem:[#allocation66_spill] sm:$0xff] }
 0x201   : > { %v9778_v20 = vpop.permute.xlu0 %3478  ;;  %3234 = vperm.xlu1 %8065, %v9635_v10   ;;  %v9781_v3 = vpop.permute.xlu1 %2354 }
 0x202   : > { %16975 = vst [vmem:[#allocation177_spill] sm:$0xff] %v9778_v20  ;;  %16976 = vst [vmem:[#allocation178_spill] sm:$0xff] %v9781_v3  ;;  %4706 = vperm.xlu0 %8069, %v9236_v2   ;;  %v17004_v3 = vld [vmem:[#allocation13_spill] sm:$0xff] }
 0x205   : > { %v9784_v16 = vpop.permute.xlu0 %3486  ;;  %3238 = vperm.xlu1 %8065, %v9647_v31   ;;  %v9787_v14 = vpop.permute.xlu1 %2362 }
 0x206   : > { %16977 = vst [vmem:[#allocation179_spill] sm:$0xff] %v9784_v16  ;;  %16978 = vst [vmem:[#allocation180_spill] sm:$0xff] %v9787_v14  ;;  %4714 = vperm.xlu0 %8069, %v16979_v1   ;;  %v16601_v16 = vmov 3  }
 0x209   : > { %v9790_v62 = vpop.permute.xlu0 %3494  ;;  %3246 = vperm.xlu1 %8065, %v9658_v4   ;;  %v9793_v8 = vpop.permute.xlu1 %2370 }
 0x20a   : > { %16980 = vst [vmem:[#allocation63_spill] sm:$0xff] %v9790_v62  ;;  %16981 = vst [vmem:[#allocation181_spill] sm:$0xff] %v9793_v8  ;;  %4722 = vperm.xlu0 %8069, %v16982_v63   ;;  %v9879_v8 = vld [vmem:[%s9860_s12] sm:$0xf] }
 0x20d   : > { %v9796_v20 = vpop.permute.xlu0 %3502  ;;  %3254 = vperm.xlu1 %8065, %v9669_v0   ;;  %v9799_v2 = vpop.permute.xlu1 %2378 }
 0x20e   : > { %16983 = vst [vmem:[#allocation66_spill] sm:$0xff] %v9796_v20  ;;  %16984 = vst [vmem:[#allocation182_spill] sm:$0xff] %v9799_v2  ;;  %8072 = vset.pattern.permute.xlu0 %v16601_v16  ;;  %v16602_v16 = vlaneseq  ;;  %v9876_v2 = vld [vmem:[%s9841_s23 + $0x4] sm:$0x7] }
 0x20f   : > { %4858 = vperm.xlu0 %8072, %v9496_v56  }
 0x211   : > { %v9803_v1 = vpop.permute.xlu0 %3510  ;;  %3262 = vperm.xlu1 %8065, %v9680_v18   ;;  %v9806_v62 = vpop.permute.xlu1 %2386 }
 0x212   : > { %16985 = vst [vmem:[#allocation183_spill] sm:$0xff] %v9803_v1  ;;  %16986 = vst [vmem:[#allocation184_spill] sm:$0xff] %v9806_v62 }
 0x213   : > { %4870 = vperm.xlu0 %8072, %v9512_v9   ;;  %v9826_v9 = vshrl.u32 %v16602_v16, 7  ;;  %v564_v16 = vld [vmem:[%s9841_s23] sm:$0x7] }
 0x215   : > { %v9809_v63 = vpop.permute.xlu0 %3518  ;;  %3270 = vperm.xlu1 %8065, %v9691_v42   ;;  %16991 = vst [vmem:[#allocation189_spill] sm:$0xff] %v9826_v9 }
 0x216   : > { %16987 = vst [vmem:[#allocation185_spill] sm:$0xff] %v9809_v63  ;;  %v9815_v20 = vpop.permute.xlu1 %2522 }
 0x217   : > { %16988 = vst [vmem:[#allocation186_spill] sm:$0xff] %v9815_v20  ;;  %4878 = vperm.xlu0 %8072, %v9523_v26  }
 0x219   : > { %v9820_v56 = vpop.permute.xlu0 %3526  ;;  %3278 = vperm.xlu1 %8065, %v9702_v44  }
 0x21a   : > { %16989 = vst [vmem:[#allocation187_spill] sm:$0xff] %v9820_v56  ;;  %v9823_v1 = vpop.permute.xlu1 %2526  ;;  %v9838_v56 = vsub.s32 0, %v9826_v9 }
 0x21b   : > { %16990 = vst [vmem:[#allocation188_spill] sm:$0xff] %v9823_v1  ;;  %4886 = vperm.xlu0 %8072, %v9534_v7  }
 0x21c   : > { %16994 = vst [vmem:[#allocation192_spill] sm:$0xff] %v9838_v56 }
 0x21d   : > { %v9832_v20 = vpop.permute.xlu0 %3534  ;;  %3286 = vperm.xlu1 %8065, %v9713_v50  }
 0x21e   : > { %16992 = vst [vmem:[#allocation190_spill] sm:$0xff] %v9832_v20  ;;  %v9835_v26 = vpop.permute.xlu1 %2534  ;;  %v9849_v20 = vsub.s32 1, %v9826_v9 }
 0x21f   : > { %16993 = vst [vmem:[#allocation191_spill] sm:$0xff] %v9835_v26  ;;  %4894 = vperm.xlu0 %8072, %v9545_v48   ;;  %v9854_v26 = vrot.slane %v564_v16, %v9838_v56 }
 0x220   : > { %v9901_v11 = vrot.slane %v9876_v2, %v9849_v20 }
 0x221   : > { %v9845_v7 = vpop.permute.xlu0 %3542  ;;  %3294 = vperm.xlu1 %8065, %v9724_v51   ;;  %16997 = vst [vmem:[#allocation195_spill] sm:$0xff] %v9854_v26  ;;  %v768_v41 = vsub.f32 %v17004_v3, %v9854_v26  ;;  %v772_v38 = vsub.f32 %v17008_v61, %v9854_v26  ;;  %v776_v36 = vsub.f32 %v17014_v46, %v9854_v26  ;;  %v17020_v46 = vld [vmem:[#allocation23_spill] sm:$0xff] }
 0x222   : > { %16995 = vst [vmem:[#allocation193_spill] sm:$0xff] %v9845_v7  ;;  %v9851_v1 = vpop.permute.xlu1 %2542  ;;  %v9866_v7 = vrot.slane %v564_v16, %v9849_v20  ;;  %v778_v32 = vsub.f32 %v17020_v46, %v9854_v26 }
 0x223   : > { %16996 = vst [vmem:[#allocation194_spill] sm:$0xff] %v9851_v1  ;;  %4902 = vperm.xlu0 %8072, %v9556_v49   ;;  %v9869_v1 = vsub.s32 2, %v9826_v9  ;;  %v17001_v49 = vld [vmem:[#allocation11_spill] sm:$0xff]  ;;  %v17005_v9 = vld [vmem:[#allocation14_spill] sm:$0xff] }
 0x224   : > { %v767_v62 = vsub.f32 %v17001_v49, %v9854_v26  ;;  %17002 = vst [vmem:[#allocation11_spill] sm:$0xff] %v9879_v8  ;;  %v997_v28 = vsub.f32 %v17005_v9, %v9866_v7  ;;  %v17007_v49 = vld [vmem:[#allocation16_spill] sm:$0xff]  ;;  %17015 = vst [vmem:[#allocation14_spill] sm:$0xff] %v9921_v21 }
 0x225   : > { %v9862_v48 = vpop.permute.xlu0 %3550  ;;  %3302 = vperm.xlu1 %8065, %v9735_v52   ;;  %16999 = vst [vmem:[#allocation197_spill] sm:$0xff] %v9869_v1  ;;  %v999_v39 = vsub.f32 %v17007_v49, %v9866_v7  ;;  %v9908_v9 = vrot.slane %v564_v16, %v9869_v1  ;;  %v9926_v16 = vmul.f32 %v768_v41, %v768_v41 }
 0x226   : > { %16998 = vst [vmem:[#allocation196_spill] sm:$0xff] %v9862_v48  ;;  %v9871_v63 = vpop.permute.xlu1 %2550  ;;  %v17003_v48 = vld [vmem:[#allocation12_spill] sm:$0xff]  ;;  %v9912_v61 = vmul.f32 %v767_v62, %v767_v62  ;;  %v17018_v62 = vld [vmem:[#allocation22_spill] sm:$0xff] }
 0x227   : > { %17000 = vst [vmem:[#allocation198_spill] sm:$0xff] %v9871_v63  ;;  %4910 = vperm.xlu0 %8072, %v9567_v43   ;;  %v994_v14 = vsub.f32 %v17003_v48, %v9866_v7  ;;  %v17006_v63 = vld [vmem:[#allocation15_spill] sm:$0xff]  ;;  %v17010_v48 = vld [vmem:[#allocation18_spill] sm:$0xff]  ;;  %v1005_v34 = vsub.f32 %v17018_v62, %v9866_v7  ;;  %v9934_v33 = vmul.f32 %v999_v39, %v999_v39 }
 0x228   : > { %v770_v40 = vsub.f32 %v17006_v63, %v9854_v26  ;;  %v1001_v3 = vsub.f32 %v17010_v48, %v9866_v7  ;;  %v9905_v63 = vrot.slane %v9879_v8, %v9849_v20  ;;  %v17013_v48 = vld [vmem:[#allocation20_spill] sm:$0xff]  ;;  %v9951_v39 = vrot.slane %v9921_v21, %v9849_v20 }
 0x229   : > { %v9894_v43 = vpop.permute.xlu0 %3686  ;;  %3310 = vperm.xlu1 %8065, %v9746_v55   ;;  %v1003_v13 = vsub.f32 %v17013_v48, %v9866_v7  ;;  %v9924_v35 = vmul.f32 %v994_v14, %v994_v14  ;;  %17019 = vst [vmem:[#allocation17_spill] sm:$0xff] %v9934_v33  ;;  %v9936_v48 = vmul.f32 %v772_v38, %v772_v38  ;;  %v17024_v14 = vld [vmem:[#allocation25_spill] sm:$0xff] }
 0x22a   : > { %17009 = vst [vmem:[#allocation12_spill] sm:$0xff] %v9894_v43  ;;  %v9910_v49 = vpop.permute.xlu1 %2558  ;;  %v17012_v43 = vld [vmem:[#allocation19_spill] sm:$0xff]  ;;  %v9943_v41 = vmul.f32 %v1001_v3, %v1001_v3  ;;  %17025 = vst [vmem:[#allocation20_spill] sm:$0xff] %v9951_v39  ;;  %v9959_v33 = vmul.f32 %v776_v36, %v776_v36  ;;  %v17028_v3 = vld [vmem:[#allocation26_spill] sm:$0xff] }
 0x22b   : > { %17011 = vst [vmem:[#allocation13_spill] sm:$0xff] %v9910_v49  ;;  %v774_v37 = vsub.f32 %v17012_v43, %v9854_v26  ;;  %4918 = vperm.xlu0 %8072, %v9578_v22   ;;  %17016 = vst [vmem:[#allocation15_spill] sm:$0xff] %v9924_v35  ;;  %v9928_v49 = vmul.f32 %v997_v28, %v997_v28  ;;  %v9932_v43 = vmul.f32 %v770_v40, %v770_v40  ;;  %v17023_v28 = vld [vmem:[#allocation24_spill] sm:$0xff]  ;;  %v17033_v36 = vld [vmem:[#allocation30_spill] sm:$0xff] }
 0x22c   : > { %17022 = vst [vmem:[#allocation19_spill] sm:$0xff] %v9943_v41  ;;  %v1007_v22 = vsub.f32 %v17023_v28, %v9866_v7  ;;  %v780_v40 = vsub.f32 %v17024_v14, %v9854_v26  ;;  %v9957_v46 = vmul.f32 %v1003_v13, %v1003_v13  ;;  %v1009_v41 = vsub.f32 %v17028_v3, %v9866_v7  ;;  %v17030_v14 = vld [vmem:[#allocation27_spill] sm:$0xff]  ;;  %v17031_v35 = vld [vmem:[#allocation28_spill] sm:$0xff]  ;;  %v17034_v3 = vld [vmem:[#allocation38_spill] sm:$0xff] }
 0x22d   : > { %17017 = vst [vmem:[#allocation16_spill] sm:$0xff] %v9928_v49  ;;  %v9940_v15 = vpop.permute.xlu0 %3694  ;;  %3318 = vperm.xlu1 %8065, %v9757_v58   ;;  %v9955_v62 = vmul.f32 %v774_v37, %v774_v37  ;;  %v9964_v28 = vmul.f32 %v1005_v34, %v1005_v34  ;;  %v782_v49 = vsub.f32 %v17030_v14, %v9854_v26  ;;  %v17032_v37 = vld [vmem:[#allocation29_spill] sm:$0xff] }
 0x22e   : > { %17021 = vst [vmem:[#allocation18_spill] sm:$0xff] %v9940_v15  ;;  %v9953_v38 = vpop.permute.xlu1 %2566  ;;  %17027 = vst [vmem:[#allocation22_spill] sm:$0xff] %v9957_v46  ;;  %v1011_v15 = vsub.f32 %v17031_v35, %v9866_v7  ;;  %v9972_v13 = vmul.f32 %v778_v32, %v778_v32  ;;  %v1013_v46 = vsub.f32 %v17033_v36, %v9866_v7  ;;  %v17038_v32 = vld [vmem:[#allocation31_spill] sm:$0xff]  ;;  %v17039_v36 = vld [vmem:[#allocation32_spill] sm:$0xff] }
 0x22f   : > { %17026 = vst [vmem:[#allocation21_spill] sm:$0xff] %v9953_v38  ;;  %4926 = vperm.xlu0 %8072, %v9589_v45   ;;  %17029 = vst [vmem:[#allocation23_spill] sm:$0xff] %v9964_v28  ;;  %v784_v38 = vsub.f32 %v17032_v37, %v9854_v26  ;;  %v995_v21 = vsub.f32 %v17034_v3, %v9866_v7  ;;  %v9980_v34 = vrot.slane %v9879_v8, %v9838_v56  ;;  %v17042_v8 = vld [vmem:[#allocation33_spill] sm:$0xff] }
 0x230   : > { %v9985_v35 = vmul.f32 %v1007_v22, %v1007_v22  ;;  %v9987_v14 = vmul.f32 %v780_v40, %v780_v40  ;;  %v786_v37 = vsub.f32 %v17038_v32, %v9854_v26  ;;  %v1015_v28 = vsub.f32 %v17039_v36, %v9866_v7  ;;  %v17044_v22 = vld [vmem:[#allocation40_spill] sm:$0xff] }
 0x231   : > { %17035 = vst [vmem:[#allocation24_spill] sm:$0xff] %v9980_v34  ;;  %v9982_v45 = vpop.permute.xlu0 %3702  ;;  %3326 = vperm.xlu1 %8065, %v9768_v47   ;;  %v9995_v3 = vmul.f32 %v1009_v41, %v1009_v41  ;;  %v788_v29 = vsub.f32 %v17042_v8, %v9854_v26  ;;  %v996_v40 = vsub.f32 %v17044_v22, %v9866_v7  ;;  %v17046_v41 = vld [vmem:[#allocation35_spill] sm:$0xff]  ;;  %v17048_v8 = vld [vmem:[#allocation36_spill] sm:$0xff] }
 0x232   : > { %17036 = vst [vmem:[#allocation25_spill] sm:$0xff] %v9982_v45  ;;  %17037 = vst [vmem:[#allocation26_spill] sm:$0xff] %v9985_v35  ;;  %v9993_v30 = vpop.permute.xlu1 %2574  ;;  %v17043_v45 = vld [vmem:[#allocation34_spill] sm:$0xff]  ;;  %v10004_v35 = vmul.f32 %v782_v49, %v782_v49  ;;  %v10006_v32 = vmul.f32 %v1011_v15, %v1011_v15  ;;  %v10008_v36 = vmul.f32 %v784_v38, %v784_v38  ;;  %v17052_v49 = vld [vmem:[#allocation39_spill] sm:$0xff] }
 0x233   : > { %17040 = vst [vmem:[#allocation27_spill] sm:$0xff] %v9993_v30  ;;  %17041 = vst [vmem:[#allocation28_spill] sm:$0xff] %v9995_v3  ;;  %v1017_v1 = vsub.f32 %v17043_v45, %v9866_v7  ;;  %4934 = vperm.xlu0 %8072, %v9600_v6   ;;  %v2193_v3 = vsub.f32 %v17046_v41, %v9901_v11  ;;  %v10012_v30 = vmul.f32 %v1013_v46, %v1013_v46  ;;  %v17049_v45 = vld [vmem:[#allocation37_spill] sm:$0xff]  ;;  %v17053_v46 = vld [vmem:[#allocation42_spill] sm:$0xff] }
 0x234   : > { %17045 = vst [vmem:[#allocation29_spill] sm:$0xff] %v10006_v32  ;;  %v993_v26 = vsub.f32 %v17048_v8, %v9866_v7  ;;  %v2196_v27 = vsub.f32 %v17049_v45, %v9901_v11  ;;  %v1027_v22 = vmul.f32 %v995_v21, %v995_v21  ;;  %v10021_v15 = vmul.f32 %v786_v37, %v786_v37  ;;  %v17056_v37 = vld [vmem:[#allocation44_spill] sm:$0xff] }
 0x235   : > { %17047 = vst [vmem:[#allocation30_spill] sm:$0xff] %v10012_v30  ;;  %v10018_v25 = vpop.permute.xlu0 %3710  ;;  %8066 = vset.pattern.permute.xlu1 %v16865_v60  ;;  %v10023_v6 = vmul.f32 %v1015_v28, %v1015_v28  ;;  %v2198_v38 = vsub.f32 %v17052_v49, %v9901_v11  ;;  %v998_v41 = vsub.f32 %v17053_v46, %v9866_v7  ;;  %v17058_v49 = vld [vmem:[#allocation41_spill] sm:$0xff] }
 0x236   : > { %17050 = vst [vmem:[#allocation38_spill] sm:$0xff] %v10018_v25  ;;  %3462 = vperm.xlu1 %8066, %v9635_v10   ;;  %v10030_v8 = vpop.permute.xlu1 %2582  ;;  %v10032_v45 = vmul.f32 %v788_v29, %v788_v29  ;;  %v10034_v21 = vmul.f32 %v1017_v1, %v1017_v1  ;;  %v1028_v30 = vmul.f32 %v996_v40, %v996_v40  ;;  %v17059_v10 = vld [vmem:[#allocation46_spill] sm:$0xff]  ;;  %v17060_v29 = vld [vmem:[#allocation65_spill] sm:$0xff] }
 0x237   : > { %17051 = vst [vmem:[#allocation31_spill] sm:$0xff] %v10023_v6  ;;  %17054 = vst [vmem:[#allocation32_spill] sm:$0xff] %v10030_v8  ;;  %v1000_v28 = vsub.f32 %v17056_v37, %v9866_v7  ;;  %4942 = vperm.xlu0 %8072, %v9611_v24   ;;  %v10039_v60 = vmul.f32 %v2193_v3, %v2193_v3  ;;  %v2200_v46 = vsub.f32 %v17058_v49, %v9901_v11  ;;  %v17063_v37 = vld [vmem:[#allocation48_spill] sm:$0xff]  ;;  %v17066_v8 = vld [vmem:[#allocation43_spill] sm:$0xff] }
 0x238   : > { %17055 = vst [vmem:[#allocation33_spill] sm:$0xff] %v10034_v21  ;;  %v1002_v6 = vsub.f32 %v17059_v10, %v9866_v7  ;;  %v1223_v32 = vsub.f32 %v17060_v29, %v9908_v9  ;;  %v10047_v1 = vmul.f32 %v993_v26, %v993_v26  ;;  %v10049_v40 = vmul.f32 %v2196_v27, %v2196_v27  ;;  %v10063_v26 = vld [vmem:[%s9841_s23 + $0xc] sm:$0x7] }
 0x239   : > { %17057 = vst [vmem:[#allocation34_spill] sm:$0xff] %v10039_v60  ;;  %v1059_v21 = vadd.f32 %v1027_v22, %v9912_v61  ;;  %v1004_v24 = vsub.f32 %v17063_v37, %v9866_v7  ;;  %v10054_v3 = vpop.permute.xlu0 %3718  ;;  %v10056_v25 = vmul.f32 %v2198_v38, %v2198_v38  ;;  %v1030_v49 = vmul.f32 %v998_v41, %v998_v41  ;;  %v17067_v60 = vld [vmem:[#allocation68_spill] sm:$0xff]  ;;  %v17069_v37 = vld [vmem:[#allocation45_spill] sm:$0xff]  ;;  %v17070_v41 = vld [vmem:[#allocation50_spill] sm:$0xff] }
 0x23a   : > { %17061 = vst [vmem:[#allocation40_spill] sm:$0xff] %v10047_v1  ;;  %17062 = vst [vmem:[#allocation35_spill] sm:$0xff] %v10049_v40  ;;  %v2202_v10 = vsub.f32 %v17066_v8, %v9901_v11  ;;  %v1224_v29 = vsub.f32 %v17067_v60, %v9908_v9  ;;  %3466 = vperm.xlu1 %8066, %v9647_v31   ;;  %v10066_v27 = vpop.permute.xlu1 %2590  ;;  %v1060_v61 = vadd.f32 %v1028_v30, %v9926_v16  ;;  %v17072_v1 = vld [vmem:[#allocation70_spill] sm:$0xff]  ;;  %v17074_v16 = vld [vmem:[#allocation49_spill] sm:$0xff] }
 0x23b   : > { %17064 = vst [vmem:[#allocation36_spill] sm:$0xff] %v10054_v3  ;;  %17065 = vst [vmem:[#allocation37_spill] sm:$0xff] %v10056_v25  ;;  %v1032_v22 = vmul.f32 %v1000_v28, %v1000_v28  ;;  %v2204_v38 = vsub.f32 %v17069_v37, %v9901_v11  ;;  %v1006_v25 = vsub.f32 %v17070_v41, %v9866_v7  ;;  %4950 = vperm.xlu0 %8072, %v9622_v59   ;;  %v17073_v3 = vld [vmem:[#allocation47_spill] sm:$0xff] }
 0x23c   : > { %17068 = vst [vmem:[#allocation39_spill] sm:$0xff] %v10066_v27  ;;  %v10074_v8 = vmul.f32 %v2200_v46, %v2200_v46  ;;  %v1034_v60 = vmul.f32 %v1002_v6, %v1002_v6  ;;  %v1255_v40 = vmul.f32 %v1223_v32, %v1223_v32  ;;  %v1226_v31 = vsub.f32 %v17072_v1, %v9908_v9  ;;  %v17078_v46 = vld [vmem:[#allocation72_spill] sm:$0xff] }
 0x23d   : > { %v2206_v27 = vsub.f32 %v17073_v3, %v9901_v11  ;;  %v1036_v30 = vmul.f32 %v1004_v24, %v1004_v24  ;;  %v2208_v28 = vsub.f32 %v17074_v16, %v9901_v11  ;;  %v10084_v37 = vrot.slane %v10063_v26, %v9849_v20  ;;  %v10086_v41 = vpop.permute.xlu0 %3726 }
 0x23e   : > { %17071 = vst [vmem:[#allocation42_spill] sm:$0xff] %v10074_v8  ;;  %17076 = vst [vmem:[#allocation41_spill] sm:$0xff] %v10086_v41  ;;  %v1062_v59 = vadd.f32 %v1030_v49, %v9932_v43  ;;  %v10089_v6 = vmul.f32 %v2202_v10, %v2202_v10  ;;  %v1256_v32 = vmul.f32 %v1224_v29, %v1224_v29  ;;  %3474 = vperm.xlu1 %8066, %v9658_v4   ;;  %v10094_v24 = vpop.permute.xlu1 %2598  ;;  %v17080_v8 = vld [vmem:[#allocation52_spill] sm:$0xff]  ;;  %v17081_v29 = vld [vmem:[#allocation74_spill] sm:$0xff] }
 0x23f   : > { %17075 = vst [vmem:[#allocation44_spill] sm:$0xff] %v10084_v37  ;;  %v1228_v1 = vsub.f32 %v17078_v46, %v9908_v9  ;;  %v1064_v3 = vadd.f32 %v1032_v22, %v9936_v48  ;;  %v10097_v16 = vmul.f32 %v2204_v38, %v2204_v38  ;;  %v1038_v20 = vmul.f32 %v1006_v25, %v1006_v25  ;;  %v8275_v48 = vld [vmem:[%s16584_s2] sm:$0xff] }
 0x240   : > { %17077 = vst [vmem:[#allocation46_spill] sm:$0xff] %v10089_v6  ;;  %v1008_v41 = vsub.f32 %v17080_v8, %v9866_v7  ;;  %8073 = vset.pattern.permute.xlu0 %v16948_v5  ;;  %v1066_v43 = vadd.f32 %v1034_v60, %v9955_v62  ;;  %v10103_v49 = vadd.f32 %v1255_v40, %v1059_v21  ;;  %v17084_v8 = vld [vmem:[#allocation54_spill] sm:$0xff] }
 0x241   : > { %17079 = vst [vmem:[#allocation65_spill] sm:$0xff] %v10097_v16  ;;  %v1258_v10 = vmul.f32 %v1226_v31, %v1226_v31  ;;  %v1230_v4 = vsub.f32 %v17081_v29, %v9908_v9  ;;  %603 = vperm.xlu0 %8073, %v8275_v48   ;;  %v10110_v22 = vmul.f32 %v2206_v27, %v2206_v27  ;;  %v10117_v21 = vpop.permute.xlu0 %3734  ;;  %v17085_v31 = vld [vmem:[#allocation76_spill] sm:$0xff] }
 0x242   : > { %v1068_v25 = vadd.f32 %v1036_v30, %v9959_v33  ;;  %v10113_v38 = vmul.f32 %v2208_v28, %v2208_v28  ;;  %v1010_v62 = vsub.f32 %v17084_v8, %v9866_v7  ;;  %v10119_v40 = vadd.f32 %v1256_v32, %v1060_v61  ;;  %3482 = vperm.xlu1 %8066, %v9669_v0   ;;  %v10128_v33 = vpop.permute.xlu1 %2606  ;;  %v17087_v30 = vld [vmem:[#allocation51_spill] sm:$0xff]  ;;  %v17088_v61 = vld [vmem:[#allocation78_spill] sm:$0xff] }
 0x243   : > { %17082 = vst [vmem:[#allocation48_spill] sm:$0xff] %v10110_v22  ;;  %v1260_v60 = vmul.f32 %v1228_v1, %v1228_v1  ;;  %v1232_v46 = vsub.f32 %v17085_v31, %v9908_v9  ;;  %v10125_v29 = vrot.slane %v9876_v2, %v9838_v56  ;;  %v1070_v27 = vadd.f32 %v1038_v20, %v9972_v13  ;;  %v17089_v1 = vld [vmem:[#allocation56_spill] sm:$0xff]  ;;  %v17090_v13 = vld [vmem:[#allocation53_spill] sm:$0xff] }
 0x244   : > { %17083 = vst [vmem:[#allocation43_spill] sm:$0xff] %v10113_v38  ;;  %v2210_v28 = vsub.f32 %v17087_v30, %v9901_v11  ;;  %v1040_v48 = vmul.f32 %v1008_v41, %v1008_v41  ;;  %v1234_v32 = vsub.f32 %v17088_v61, %v9908_v9  ;;  %v1012_v8 = vsub.f32 %v17089_v1, %v9866_v7  ;;  %v8276_v0 = vld [vmem:[%s16584_s2 + $0x8] sm:$0xff]  ;;  %v17091_v30 = vld [vmem:[#allocation58_spill] sm:$0xff] }
 0x245   : > { %17086 = vst [vmem:[#allocation68_spill] sm:$0xff] %v10125_v29  ;;  %8075 = vrsqrt.f32 %v10103_v49  ;;  %v10138_v31 = vadd.f32 %v1258_v10, %v1062_v59  ;;  %v1262_v38 = vmul.f32 %v1230_v4, %v1230_v4  ;;  %608 = vperm.xlu0 %8073, %v8276_v0   ;;  %v2212_v20 = vsub.f32 %v17090_v13, %v9901_v11  ;;  %v10149_v22 = vpop.permute.xlu0 %3742  ;;  %v17093_v59 = vld [vmem:[#allocation60_spill] sm:$0xff] }
 0x246   : > { %v1042_v41 = vmul.f32 %v1010_v62, %v1010_v62  ;;  %v1014_v61 = vsub.f32 %v17091_v30, %v9866_v7  ;;  %v1236_v1 = vsub.f32 %v9338_v12, %v9908_v9  ;;  %17092 = vst [vmem:[#allocation45_spill] sm:$0xff] %v10149_v22  ;;  %v1016_v10 = vsub.f32 %v17093_v59, %v9866_v7  ;;  %v10157_v13 = vpop.permute.xlu1 %2614  ;;  %v17095_v12 = vld [vmem:[#allocation55_spill] sm:$0xff] }
 0x247   : > { %8077 = vrsqrt.f32 %v10119_v40  ;;  %v10154_v4 = vadd.f32 %v1260_v60, %v1064_v3  ;;  %v1264_v0 = vmul.f32 %v1232_v46, %v1232_v46  ;;  %3490 = vperm.xlu1 %8066, %v9680_v18   ;;  %v10159_v62 = vmul.f32 %v2210_v28, %v2210_v28  ;;  %v8277_v18 = vld [vmem:[%s16584_s2 + $0x20] sm:$0xff] }
 0x248   : > { %v1072_v30 = vadd.f32 %v1040_v48, %v9987_v14  ;;  %v2214_v16 = vsub.f32 %v17095_v12, %v9901_v11  ;;  %v1266_v6 = vmul.f32 %v1234_v32, %v1234_v32  ;;  %v1044_v22 = vmul.f32 %v1012_v8, %v1012_v8  ;;  %v17097_v14 = vld [vmem:[#allocation57_spill] sm:$0xff] }
 0x249   : > { %17094 = vst [vmem:[#allocation50_spill] sm:$0xff] %v10159_v62  ;;  %8079 = vrsqrt.f32 %v10138_v31  ;;  %v10165_v7 = vadd.f32 %v1262_v38, %v1066_v43  ;;  %v1238_v3 = vsub.f32 %v9344_v57, %v9908_v9  ;;  %623 = vperm.xlu0 %8073, %v8277_v18   ;;  %v10172_v60 = vmul.f32 %v2212_v20, %v2212_v20  ;;  %v10176_v32 = vpop.permute.xlu0 %3750  ;;  %v17099_v20 = vld [vmem:[#allocation62_spill] sm:$0xff] }
 0x24a   : > { %v2216_v46 = vsub.f32 %v17097_v14, %v9901_v11  ;;  %v1046_v28 = vmul.f32 %v1014_v61, %v1014_v61  ;;  %v1268_v48 = vmul.f32 %v1236_v1, %v1236_v1  ;;  %v1074_v43 = vadd.f32 %v1042_v41, %v10004_v35 }
 0x24b   : > { %17096 = vst [vmem:[#allocation70_spill] sm:$0xff] %v10172_v60  ;;  %v1048_v38 = vmul.f32 %v1016_v10, %v1016_v10  ;;  %8081 = vrsqrt.f32 %v10154_v4  ;;  %v10180_v57 = vadd.f32 %v1264_v0, %v1068_v25  ;;  %3498 = vperm.xlu1 %8066, %v9691_v42   ;;  %v10183_v8 = vmul.f32 %v2214_v16, %v2214_v16  ;;  %v10191_v1 = vpop.permute.xlu1 %2976  ;;  %v8278_v16 = vld [vmem:[%s16584_s2 + $0x30] sm:$0xff] }
 0x24c   : > { %v1221_v59 = vsub.f32 %v17099_v20, %v9908_v9  ;;  %v10187_v12 = vadd.f32 %v1266_v6, %v1070_v27  ;;  %v1240_v61 = vsub.f32 %v9350_v54, %v9908_v9  ;;  %v1076_v35 = vadd.f32 %v1044_v22, %v10008_v36  ;;  %v17101_v54 = vld [vmem:[#allocation59_spill] sm:$0xff]  ;;  %v17102_v0 = vld [vmem:[#allocation61_spill] sm:$0xff] }
 0x24d   : > { %17098 = vst [vmem:[#allocation47_spill] sm:$0xff] %v10183_v8  ;;  %8083 = vrsqrt.f32 %v10165_v7  ;;  %v1270_v25 = vmul.f32 %v1238_v3, %v1238_v3  ;;  %v1242_v42 = vsub.f32 %v9356_v17, %v9908_v9  ;;  %633 = vperm.xlu0 %8073, %v8278_v16   ;;  %v10200_v6 = vmul.f32 %v2216_v46, %v2216_v46  ;;  %v10209_v22 = vpop.permute.xlu0 %3758  ;;  %v17109_v20 = vld [vmem:[#allocation69_spill] sm:$0xff]  ;;  %v8279_v16 = vld [vmem:[%s16584_s2 + $0x40] sm:$0xff] }
 0x24e   : > { %v1078_v27 = vadd.f32 %v1046_v28, %v10021_v15  ;;  %v10205_v41 = vmul.f32 %v9905_v63, %v17101_v54  ;;  %v10207_v36 = vadd.f32 %v1268_v48, %v1072_v30  ;;  %v1080_v17 = vadd.f32 %v1048_v38, %v10032_v45  ;;  %v17105_v30 = vld [vmem:[#allocation64_spill] sm:$0xff]  ;;  %v17107_v48 = vld [vmem:[#allocation67_spill] sm:$0xff] }
 0x24f   : > { %17100 = vst [vmem:[#allocation49_spill] sm:$0xff] %v10200_v6  ;;  %v8076_v10 = vpop.eup %8075  ;;  %v10214_v3 = vmul.f32 %v9905_v63, %v17102_v0  ;;  %8085 = vrsqrt.f32 %v10180_v57  ;;  %v1244_v15 = vsub.f32 %v9362_v19, %v9908_v9  ;;  %3506 = vperm.xlu1 %8066, %v9702_v44   ;;  %v10220_v18 = vmul.f32 %v1221_v59, %v1221_v59  ;;  %v10227_v46 = vpop.permute.xlu1 %2981 }
 0x250   : > { %v10224_v14 = vmul.f32 %v9905_v63, %v17105_v30  ;;  %8087 = vrsqrt.f32 %v10187_v12  ;;  %v1272_v45 = vmul.f32 %v1240_v61, %v1240_v61  ;;  %v10231_v38 = vmul.f32 %v9905_v63, %v17107_v48  ;;  %v17111_v30 = vld [vmem:[#allocation71_spill] sm:$0xff] }
 0x251   : > { %17103 = vst [vmem:[#allocation72_spill] sm:$0xff] %v10214_v3  ;;  %17104 = vst [vmem:[#allocation52_spill] sm:$0xff] %v10220_v18  ;;  %v8078_v28 = vpop.eup %8077  ;;  %v10235_v19 = vmul.f32 %v9905_v63, %v17109_v20  ;;  %v10237_v44 = vadd.f32 %v1270_v25, %v1074_v43  ;;  %v1274_v59 = vmul.f32 %v1242_v42, %v1242_v42  ;;  %643 = vperm.xlu0 %8073, %v8279_v16   ;;  %v10246_v54 = vpop.permute.xlu0 %3766 }
 0x252   : > { %17106 = vst [vmem:[#allocation74_spill] sm:$0xff] %v10224_v14  ;;  %17108 = vst [vmem:[#allocation54_spill] sm:$0xff] %v10231_v38  ;;  %8089 = vrsqrt.f32 %v10207_v36  ;;  %v1528_v61 = vmul.f32 %v8076_v10, %v10103_v49  ;;  %vm1529_vm0 = vcmp.eq.f32.partialorder %v10103_v49, inf  ;;  %vm1531_vm1 = vcmp.eq.f32.partialorder %v10103_v49, 0.0 }
 0x253   : > { %17110 = vst [vmem:[#allocation76_spill] sm:$0xff] %v10235_v19  ;;  %v8080_v0 = vpop.eup %8079  ;;  %v10250_v43 = vmul.f32 %v9905_v63, %v17111_v30  ;;  %v1276_v25 = vmul.f32 %v1244_v15, %v1244_v15  ;;  %v1532_v42 = vand.u32 2147483648, %v10103_v49  ;;  %vm1536_vm2 = vcmp.eq.f32.partialorder %v10119_v40, inf  ;;  %3514 = vperm.xlu1 %8066, %v9713_v50   ;;  %v10260_v16 = vpop.permute.xlu1 %2991  ;;  %v17113_v30 = vld [vmem:[#allocation73_spill] sm:$0xff] }
 0x254   : > { %v10255_v48 = vadd.f32 %v1272_v45, %v1076_v35  ;;  %v1535_v10 = vmul.f32 %v8078_v28, %v10119_v40  ;;  %vm1538_vm3 = vcmp.eq.f32.partialorder %v10119_v40, 0.0  ;;  %v1539_v20 = vand.u32 2147483648, %v10119_v40  ;;  %v8280_v50 = vld [vmem:[%s16584_s2 + $0x50] sm:$0xff] }
 0x255   : > { %17112 = vst [vmem:[#allocation51_spill] sm:$0xff] %v10250_v43  ;;  %v8082_v6 = vpop.eup %8081  ;;  %v10264_v15 = vmul.f32 %v9905_v63, %v17113_v30  ;;  %8091 = vrsqrt.f32 %v10237_v44  ;;  %v10267_v43 = vadd.f32 %v1274_v59, %v1078_v27  ;;  %vm1550_vm4 = vcmp.eq.f32.partialorder %v10138_v31, inf  ;;  %653 = vperm.xlu0 %8073, %v8280_v50   ;;  %v10279_v30 = vpop.permute.xlu0 %3774  ;;  %v17116_v59 = vld [vmem:[#allocation75_spill] sm:$0xff] }
 0x256   : > { %v1530_v35 = vsel %vm1529_vm0, %v10103_v49, %v1528_v61  ;;  %v1549_v45 = vmul.f32 %v8080_v0, %v10138_v31  ;;  %vm1552_vm5 = vcmp.eq.f32.partialorder %v10138_v31, 0.0  ;;  %v1553_v28 = vand.u32 2147483648, %v10138_v31  ;;  %17115 = vst [vmem:[#allocation56_spill] sm:$0xff] %v10279_v30 }
 0x257   : > { %17114 = vst [vmem:[#allocation78_spill] sm:$0xff] %v10264_v15  ;;  %v8084_v27 = vpop.eup %8083  ;;  %v10283_v15 = vmul.f32 %v9905_v63, %v17116_v59  ;;  %v10285_v8 = vadd.f32 %v1276_v25, %v1080_v17  ;;  %vm1564_vm6 = vcmp.eq.f32.partialorder %v10154_v4, inf  ;;  %vm1566_vm7 = vcmp.eq.f32.partialorder %v10154_v4, 0.0  ;;  %3522 = vperm.xlu1 %8066, %v9724_v51   ;;  %v10296_v59 = vpop.permute.xlu1 %3001  ;;  %v17118_v25 = vld [vmem:[#allocation77_spill] sm:$0xff] }
 0x258   : > { %8093 = vrsqrt.f32 %v10255_v48  ;;  %v1537_v61 = vsel %vm1536_vm2, %v10119_v40, %v1535_v10  ;;  %v1563_v0 = vmul.f32 %v8082_v6, %v10154_v4  ;;  %v1567_v50 = vand.u32 2147483648, %v10154_v4  ;;  %v8281_v6 = vld [vmem:[%s16584_s2 + $0x60] sm:$0xff]  ;;  %v17123_v40 = vld [vmem:[#allocation80_spill] sm:$0xff] }
 0x259   : > { %17117 = vst [vmem:[#allocation53_spill] sm:$0xff] %v10283_v15  ;;  %v8086_v17 = vpop.eup %8085  ;;  %v10300_v15 = vmul.f32 %v9905_v63, %v17118_v25  ;;  %8095 = vrsqrt.f32 %v10267_v43  ;;  %v10305_v51 = vsel %vm1531_vm1, %v1532_v42, %v1530_v35  ;;  %vm1578_vm8 = vcmp.eq.f32.partialorder %v10165_v7, inf  ;;  %663 = vperm.xlu0 %8073, %v8281_v6   ;;  %v10317_v42 = vpop.permute.xlu0 %3782  ;;  %v17121_v35 = vld [vmem:[#allocation79_spill] sm:$0xff] }
 0x25a   : > { %v8088_v10 = vpop.eup %8087  ;;  %v1551_v19 = vsel %vm1550_vm4, %v10138_v31, %v1549_v45  ;;  %v1577_v25 = vmul.f32 %v8084_v27, %v10165_v7  ;;  %vm1580_vm9 = vcmp.eq.f32.partialorder %v10165_v7, 0.0  ;;  %v1581_v49 = vand.u32 2147483648, %v10165_v7  ;;  %17120 = vst [vmem:[#allocation60_spill] sm:$0xff] %v10317_v42  ;;  %v17147_v42 = vld [vmem:[#allocation91_spill] sm:$0xff] }
 0x25b   : > { %17119 = vst [vmem:[#allocation58_spill] sm:$0xff] %v10300_v15  ;;  %v10321_v15 = vmul.f32 %v9905_v63, %v17121_v35  ;;  %8097 = vrsqrt.f32 %v10285_v8  ;;  %v10326_v6 = vsel %vm1538_vm3, %v1539_v20, %v1537_v61  ;;  %vm1592_vm10 = vcmp.eq.f32.partialorder %v10180_v57, inf  ;;  %3530 = vperm.xlu1 %8066, %v9735_v52  }
 0x25c   : > { %v8090_v45 = vpop.eup %8089  ;;  %v1565_v27 = vsel %vm1564_vm6, %v10154_v4, %v1563_v0  ;;  %v1591_v38 = vmul.f32 %v8086_v17, %v10180_v57  ;;  %vm1594_vm11 = vcmp.eq.f32.partialorder %v10180_v57, 0.0  ;;  %v1595_v35 = vand.u32 2147483648, %v10180_v57  ;;  %v8282_v0 = vld [vmem:[%s16584_s2 + $0x70] sm:$0xff]  ;;  %v17125_v17 = vld [vmem:[#allocation82_spill] sm:$0xff] }
 0x25d   : > { %17122 = vst [vmem:[#allocation55_spill] sm:$0xff] %v10321_v15  ;;  %v10336_v15 = vpop.permute.xlu1 %3011  ;;  %v10340_v20 = vmul.f32 %v9905_v63, %v17123_v40  ;;  %v10344_v52 = vsel %vm1552_vm5, %v1553_v28, %v1551_v19  ;;  %v1605_v61 = vmul.f32 %v8088_v10, %v10187_v12  ;;  %vm1606_vm12 = vcmp.eq.f32.partialorder %v10187_v12, inf  ;;  %673 = vperm.xlu0 %8073, %v8282_v0   ;;  %v10358_v19 = vpop.permute.xlu0 %4630  ;;  %v17126_v10 = vld [vmem:[#allocation81_spill] sm:$0xff] }
 0x25e   : > { %v3361_v60 = vsub.f32 %v17125_v17, %v9951_v39  ;;  %v1579_v40 = vsel %vm1578_vm8, %v10165_v7, %v1577_v25  ;;  %vm1608_vm13 = vcmp.eq.f32.partialorder %v10187_v12, 0.0  ;;  %v1609_v31 = vand.u32 2147483648, %v10187_v12  ;;  %v17128_v25 = vld [vmem:[#allocation83_spill] sm:$0xff]  ;;  %v17130_v7 = vld [vmem:[#allocation84_spill] sm:$0xff] }
 0x25f   : > { %17124 = vst [vmem:[#allocation57_spill] sm:$0xff] %v10340_v20  ;;  %v8092_v28 = vpop.eup %8091  ;;  %v10362_v20 = vmul.f32 %v9905_v63, %v17126_v10  ;;  %v10366_v0 = vsel %vm1566_vm7, %v1567_v50, %v1565_v27  ;;  %v1619_v17 = vmul.f32 %v8090_v45, %v10207_v36  ;;  %vm1620_vm14 = vcmp.eq.f32.partialorder %v10207_v36, inf  ;;  %3538 = vperm.xlu1 %8066, %v9746_v55  }
 0x260   : > { %v3364_v14 = vsub.f32 %v17128_v25, %v9951_v39  ;;  %v1593_v3 = vsel %vm1592_vm10, %v10180_v57, %v1591_v38  ;;  %vm1622_vm15 = vcmp.eq.f32.partialorder %v10207_v36, 0.0  ;;  %v1623_v10 = vand.u32 2147483648, %v10207_v36  ;;  %v8283_v38 = vld [vmem:[%s16584_s2 + $0x80] sm:$0xff] }
 0x261   : > { %17127 = vst [vmem:[#allocation62_spill] sm:$0xff] %v10362_v20  ;;  %v10378_v4 = vpop.permute.xlu1 %3021  ;;  %v10382_v50 = vsel %vm1580_vm9, %v1581_v49, %v1579_v40  ;;  %v1607_v55 = vsel %vm1606_vm12, %v10187_v12, %v1605_v61  ;;  %vm1634_vm0 = vcmp.eq.f32.partialorder %v10237_v44, inf  ;;  %vm1636_vm1 = vcmp.eq.f32.partialorder %v10237_v44, 0.0  ;;  %683 = vperm.xlu0 %8073, %v8283_v38   ;;  %v10398_v61 = vpop.permute.xlu0 %4642  ;;  %v8284_v12 = vld [vmem:[%s16584_s2 + $0x90] sm:$0xff] }
 0x262   : > { %v8094_v45 = vpop.eup %8093  ;;  %v10392_v27 = vmul.f32 %v3361_v60, %v3361_v60  ;;  %v3366_v49 = vsub.f32 %v17130_v7, %v9951_v39  ;;  %v1633_v40 = vmul.f32 %v8092_v28, %v10237_v44  ;;  %v1637_v25 = vand.u32 2147483648, %v10237_v44 }
 0x263   : > { %v8096_v20 = vpop.eup %8095  ;;  %v10402_v62 = vsel %vm1594_vm11, %v1595_v35, %v1593_v3  ;;  %v1621_v38 = vsel %vm1620_vm14, %v10207_v36, %v1619_v17  ;;  %vm1648_vm2 = vcmp.eq.f32.partialorder %v10255_v48, inf  ;;  %vm1650_vm3 = vcmp.eq.f32.partialorder %v10255_v48, 0.0  ;;  %3546 = vperm.xlu1 %8066, %v9757_v58  }
 0x264   : > { %17129 = vst [vmem:[#allocation59_spill] sm:$0xff] %v10392_v27  ;;  %v10410_v60 = vmul.f32 %v3364_v14, %v3364_v14  ;;  %v10414_v28 = vsel %vm1608_vm13, %v1609_v31, %v1607_v55  ;;  %v1651_v57 = vand.u32 2147483648, %v10255_v48  ;;  %vm1662_vm4 = vcmp.eq.f32.partialorder %v10267_v43, inf }
 0x265   : > { %v10418_v3 = vpop.permute.xlu1 %3031  ;;  %v8098_v35 = vpop.eup %8097  ;;  %v3368_v17 = vsub.f32 %v9371_v53, %v9951_v39  ;;  %v1647_v7 = vmul.f32 %v8094_v45, %v10255_v48  ;;  %vm1664_vm5 = vcmp.eq.f32.partialorder %v10267_v43, 0.0  ;;  %v1665_v58 = vand.u32 2147483648, %v10267_v43  ;;  %693 = vperm.xlu0 %8073, %v8284_v12   ;;  %v17137_v12 = vld [vmem:[#allocation86_spill] sm:$0xff] }
 0x266   : > { %17131 = vst [vmem:[#allocation61_spill] sm:$0xff] %v10410_v60  ;;  %17132 = vst [vmem:[#allocation64_spill] sm:$0xff] %v10418_v3  ;;  %v10428_v14 = vmul.f32 %v3366_v49, %v3366_v49  ;;  %v10432_v31 = vsel %vm1622_vm15, %v1623_v10, %v1621_v38  ;;  %v1635_v53 = vsel %vm1634_vm0, %v10237_v44, %v1633_v40  ;;  %v10438_v45 = vpop.permute.xlu0 %4650  ;;  %v17135_v60 = vld [vmem:[#allocation85_spill] sm:$0xff]  ;;  %vm1676_vm6 = vcmp.eq.f32.partialorder %v10285_v8, inf  ;;  %v17138_v10 = vld [vmem:[#allocation87_spill] sm:$0xff] }
 0x267   : > { %v1661_v55 = vmul.f32 %v8096_v20, %v10267_v43  ;;  %17134 = vst [vmem:[#allocation69_spill] sm:$0xff] %v10438_v45  ;;  %v10442_v27 = vmul.f32 %v9980_v34, %v17135_v60  ;;  %v1483_v49 = vmul.f32 %v9980_v34, %v9375_v23  ;;  %v3370_v36 = vsub.f32 %v17137_v12, %v9951_v39  ;;  %v17141_v23 = vld [vmem:[#allocation88_spill] sm:$0xff]  ;;  %v17154_v3 = vld [vmem:[#allocation95_spill] sm:$0xff] }
 0x268   : > { %17133 = vst [vmem:[#allocation67_spill] sm:$0xff] %v10428_v14  ;;  %3554 = vperm.xlu1 %8066, %v9768_v47   ;;  %v1484_v40 = vmul.f32 %v9980_v34, %v17138_v10  ;;  %v1675_v20 = vmul.f32 %v8098_v35, %v10285_v8  ;;  %vm1678_vm7 = vcmp.eq.f32.partialorder %v10285_v8, 0.0  ;;  %v1679_v38 = vand.u32 2147483648, %v10285_v8  ;;  %v8285_v35 = vld [vmem:[%s16584_s2 + $0xa0] sm:$0xff]  ;;  %v17142_v10 = vld [vmem:[#allocation89_spill] sm:$0xff] }
 0x269   : > { %17136 = vst [vmem:[#allocation71_spill] sm:$0xff] %v10442_v27  ;;  %v10455_v60 = vpop.permute.xlu1 %3041  ;;  %v10457_v14 = vmul.f32 %v3368_v17, %v3368_v17  ;;  %v3372_v12 = vsub.f32 %v17141_v23, %v9951_v39  ;;  %v1638_v27 = vsel %vm1636_vm1, %v1637_v25, %v1635_v53  ;;  %v1649_v47 = vsel %vm1648_vm2, %v10255_v48, %v1647_v7  ;;  %v17143_v17 = vld [vmem:[#allocation90_spill] sm:$0xff]  ;;  %v17144_v25 = vld [vmem:[#allocation197_spill] sm:$0xff] }
 0x26a   : > { %17139 = vst [vmem:[#allocation73_spill] sm:$0xff] %v10455_v60  ;;  %703 = vperm.xlu0 %8073, %v8285_v35   ;;  %v1486_v18 = vmul.f32 %v9980_v34, %v17142_v10  ;;  %v1663_v44 = vsel %vm1662_vm4, %v10267_v43, %v1661_v55  ;;  %v10478_v53 = vrot.slane %v9876_v2, %v17144_v25  ;;  %v10480_v7 = vpop.permute.xlu0 %4658  ;;  %v8286_v55 = vld [vmem:[%s16582_s0 + $0x8] sm:$0xff]  ;;  %v8287_v48 = vld [vmem:[%s16584_s2 + $0xb0] sm:$0xff] }
 0x26b   : > { %17140 = vst [vmem:[#allocation75_spill] sm:$0xff] %v10457_v14  ;;  %v3374_v14 = vsub.f32 %v17143_v17, %v9951_v39  ;;  %17145 = vst [vmem:[#allocation77_spill] sm:$0xff] %v10480_v7  ;;  %v10483_v23 = vmul.f32 %v10305_v51, %v1483_v49  ;;  %v10485_v35 = vmul.f32 %v3370_v36, %v3370_v36  ;;  %v17148_v17 = vld [vmem:[#allocation92_spill] sm:$0xff]  ;;  %v17150_v7 = vld [vmem:[#allocation93_spill] sm:$0xff] }
 0x26c   : > { %v1488_v10 = vmul.f32 %v9980_v34, %v17147_v42  ;;  %v3376_v60 = vsub.f32 %v17148_v17, %v9951_v39  ;;  %3690 = vperm.xlu1 %8066, %v8286_v55   ;;  %v10495_v2 = vmul.f32 %v10326_v6, %v1484_v40  ;;  %v1490_v51 = vmul.f32 %v9980_v34, %v17150_v7  ;;  %v17158_v7 = vld [vmem:[#allocation97_spill] sm:$0xff] }
 0x26d   : > { %17146 = vst [vmem:[#allocation79_spill] sm:$0xff] %v10485_v35  ;;  %v1652_v49 = vsel %vm1650_vm3, %v1651_v57, %v1649_v47  ;;  %v1677_v42 = vsel %vm1676_vm6, %v10285_v8, %v1675_v20  ;;  %v10504_v36 = vpop.permute.xlu1 %3051  ;;  %v10506_v17 = vmul.f32 %v3372_v12, %v3372_v12  ;;  %v17153_v35 = vld [vmem:[#allocation94_spill] sm:$0xff]  ;;  %v1492_v6 = vmul.f32 %v9980_v34, %v17154_v3  ;;  %v17157_v12 = vld [vmem:[#allocation96_spill] sm:$0xff] }
 0x26e   : > { %17149 = vst [vmem:[#allocation80_spill] sm:$0xff] %v10495_v2  ;;  %17151 = vst [vmem:[#allocation82_spill] sm:$0xff] %v10504_v36  ;;  %v3378_v45 = vsub.f32 %v17153_v35, %v9951_v39  ;;  %v1666_v40 = vsel %vm1664_vm5, %v1665_v58, %v1663_v44  ;;  %713 = vperm.xlu0 %8073, %v8287_v48   ;;  %v10518_v57 = vmul.f32 %v10344_v52, %v1486_v18  ;;  %v10526_v3 = vpop.permute.xlu0 %4666  ;;  %v17162_v44 = vld [vmem:[#allocation98_spill] sm:$0xff]  ;;  %v17264_v36 = vld [vmem:[#allocation151_spill] sm:$0xff] }
 0x26f   : > { %17152 = vst [vmem:[#allocation81_spill] sm:$0xff] %v10506_v17  ;;  %v10520_v20 = vmul.f32 %v3374_v14, %v3374_v14  ;;  %v3380_v47 = vsub.f32 %v17157_v12, %v9951_v39  ;;  %v1494_v35 = vmul.f32 %v9980_v34, %v17158_v7  ;;  %17159 = vst [vmem:[#allocation85_spill] sm:$0xff] %v10526_v3  ;;  %v8288_v52 = vld [vmem:[%s16582_s0 + $0x18] sm:$0xff]  ;;  %v17164_v12 = vld [vmem:[#allocation99_spill] sm:$0xff] }
 0x270   : > { %17155 = vst [vmem:[#allocation83_spill] sm:$0xff] %v10518_v57  ;;  %v10529_v43 = vmul.f32 %v10366_v0, %v1488_v10  ;;  %v10531_v58 = vmul.f32 %v3376_v60, %v3376_v60  ;;  %v3382_v48 = vsub.f32 %v17162_v44, %v9951_v39  ;;  %v1680_v18 = vsel %vm1678_vm7, %v1679_v38, %v1677_v42  ;;  %v17165_v60 = vld [vmem:[#allocation100_spill] sm:$0xff]  ;;  %v17166_v7 = vld [vmem:[#allocation101_spill] sm:$0xff]  ;;  %v17170_v42 = vld [vmem:[#allocation102_spill] sm:$0xff] }
 0x271   : > { %17156 = vst [vmem:[#allocation84_spill] sm:$0xff] %v10520_v20  ;;  %3698 = vperm.xlu1 %8066, %v8288_v52   ;;  %v10541_v14 = vmul.f32 %v10382_v50, %v1490_v51  ;;  %v1496_v0 = vmul.f32 %v9980_v34, %v17164_v12  ;;  %v3384_v10 = vsub.f32 %v17165_v60, %v9951_v39  ;;  %v17171_v51 = vld [vmem:[#allocation109_spill] sm:$0xff]  ;;  %v8289_v12 = vld [vmem:[%s16584_s2 + $0xc0] sm:$0xff] }
 0x272   : > { %17160 = vst [vmem:[#allocation86_spill] sm:$0xff] %v10529_v43  ;;  %17161 = vst [vmem:[#allocation87_spill] sm:$0xff] %v10531_v58  ;;  %v1498_v44 = vmul.f32 %v9980_v34, %v17166_v7  ;;  %v10549_v58 = vpop.permute.xlu1 %3061  ;;  %v10551_v8 = vmul.f32 %v3378_v45, %v3378_v45  ;;  %v10554_v38 = vmul.f32 %v10402_v62, %v1492_v6  ;;  %723 = vperm.xlu0 %8073, %v8289_v12   ;;  %v17174_v45 = vld [vmem:[#allocation103_spill] sm:$0xff]  ;;  %v17175_v6 = vld [vmem:[#allocation104_spill] sm:$0xff] }
 0x273   : > { %17163 = vst [vmem:[#allocation88_spill] sm:$0xff] %v10541_v14  ;;  %17167 = vst [vmem:[#allocation89_spill] sm:$0xff] %v10549_v58  ;;  %v4530_v50 = vsub.f32 %v17170_v42, %v10084_v37  ;;  %v1965_v52 = vsub.f32 %v17171_v51, %v10125_v29  ;;  %v10563_v60 = vmul.f32 %v3380_v47, %v3380_v47  ;;  %v10572_v42 = vpop.permute.xlu0 %4674  ;;  %v17178_v51 = vld [vmem:[#allocation105_spill] sm:$0xff]  ;;  %v17179_v12 = vld [vmem:[#allocation106_spill] sm:$0xff] }
 0x274   : > { %17168 = vst [vmem:[#allocation90_spill] sm:$0xff] %v10551_v8  ;;  %17169 = vst [vmem:[#allocation197_spill] sm:$0xff] %v10554_v38  ;;  %v10566_v7 = vmul.f32 %v10414_v28, %v1494_v35  ;;  %v1500_v62 = vmul.f32 %v9980_v34, %v17174_v45  ;;  %v4533_v8 = vsub.f32 %v17175_v6, %v10084_v37  ;;  %v8290_v35 = vld [vmem:[%s16582_s0 + $0x28] sm:$0xff]  ;;  %v17187_v38 = vld [vmem:[#allocation110_spill] sm:$0xff] }
 0x275   : > { %17172 = vst [vmem:[#allocation91_spill] sm:$0xff] %v10563_v60  ;;  %17176 = vst [vmem:[#allocation93_spill] sm:$0xff] %v10572_v42  ;;  %v10574_v20 = vmul.f32 %v3382_v48, %v3382_v48  ;;  %v1502_v17 = vmul.f32 %v9980_v34, %v17178_v51  ;;  %v4535_v47 = vsub.f32 %v17179_v12, %v10084_v37  ;;  %v17180_v60 = vld [vmem:[#allocation107_spill] sm:$0xff]  ;;  %3706 = vperm.xlu1 %8066, %v8290_v35   ;;  %v17184_v51 = vld [vmem:[#allocation108_spill] sm:$0xff] }
 0x276   : > { %17173 = vst [vmem:[#allocation92_spill] sm:$0xff] %v10566_v7  ;;  %v1504_v28 = vmul.f32 %v9980_v34, %v17180_v60  ;;  %v10586_v45 = vmul.f32 %v10432_v31, %v1496_v0  ;;  %v10588_v6 = vmul.f32 %v3384_v10, %v3384_v10  ;;  %v10590_v48 = vmul.f32 %v1638_v27, %v1498_v44  ;;  %v10594_v7 = vpop.permute.xlu1 %3071  ;;  %v17188_v35 = vld [vmem:[#allocation111_spill] sm:$0xff]  ;;  %v17191_v27 = vld [vmem:[#allocation112_spill] sm:$0xff]  ;;  %v17192_v44 = vld [vmem:[#allocation113_spill] sm:$0xff] }
 0x277   : > { %17177 = vst [vmem:[#allocation94_spill] sm:$0xff] %v10574_v20  ;;  %v4537_v20 = vsub.f32 %v17184_v51, %v10084_v37  ;;  %17185 = vst [vmem:[#allocation98_spill] sm:$0xff] %v10594_v7  ;;  %v10596_v12 = vmul.f32 %v4530_v50, %v4530_v50  ;;  %v1997_v60 = vmul.f32 %v1965_v52, %v1965_v52  ;;  %1324 = vperm.xlu0 %8073, %v8286_v55   ;;  %v10610_v50 = vpop.permute.xlu0 %4682  ;;  %v17197_v55 = vld [vmem:[#allocation114_spill] sm:$0xff]  ;;  %v17226_v34 = vld [vmem:[#allocation129_spill] sm:$0xff] }
 0x278   : > { %17181 = vst [vmem:[#allocation95_spill] sm:$0xff] %v10586_v45  ;;  %17182 = vst [vmem:[#allocation96_spill] sm:$0xff] %v10588_v6  ;;  %v4539_v14 = vsub.f32 %v17187_v38, %v10084_v37  ;;  %v1967_v43 = vsub.f32 %v17188_v35, %v10125_v29  ;;  %v10602_v31 = vmul.f32 %v1652_v49, %v1500_v62  ;;  %v17199_v35 = vld [vmem:[#allocation115_spill] sm:$0xff]  ;;  %v17219_v45 = vld [vmem:[#allocation125_spill] sm:$0xff] }
 0x279   : > { %17183 = vst [vmem:[#allocation97_spill] sm:$0xff] %v10590_v48  ;;  %17186 = vst [vmem:[#allocation99_spill] sm:$0xff] %v10596_v12  ;;  %v10604_v0 = vmul.f32 %v4533_v8, %v4533_v8  ;;  %v4541_v10 = vsub.f32 %v17191_v27, %v10084_v37  ;;  %v1969_v51 = vsub.f32 %v17192_v44, %v10125_v29  ;;  %v8291_v8 = vld [vmem:[%s16582_s0 + $0x38] sm:$0xff]  ;;  %v17253_v7 = vld [vmem:[#allocation140_spill] sm:$0xff] }
 0x27a   : > { %17189 = vst [vmem:[#allocation100_spill] sm:$0xff] %v10602_v31  ;;  %17193 = vst [vmem:[#allocation102_spill] sm:$0xff] %v10610_v50  ;;  %v10612_v52 = vmul.f32 %v1666_v40, %v1502_v17  ;;  %v10614_v12 = vmul.f32 %v4535_v47, %v4535_v47  ;;  %v10616_v38 = vmul.f32 %v1680_v18, %v1504_v28  ;;  %3714 = vperm.xlu1 %8066, %v8291_v8   ;;  %v17200_v17 = vld [vmem:[#allocation116_spill] sm:$0xff]  ;;  %v17201_v47 = vld [vmem:[#allocation117_spill] sm:$0xff]  ;;  %v10631_v28 = vpop.permute.xlu1 %3081 }
 0x27b   : > { %17190 = vst [vmem:[#allocation101_spill] sm:$0xff] %v10604_v0  ;;  %v4543_v49 = vsub.f32 %v17197_v55, %v10084_v37  ;;  %v10623_v62 = vmul.f32 %v4537_v20, %v4537_v20  ;;  %v1971_v27 = vsub.f32 %v17199_v35, %v10125_v29  ;;  %v4545_v40 = vsub.f32 %v17200_v17, %v10084_v37  ;;  %v17203_v44 = vld [vmem:[#allocation34_spill] sm:$0xff]  ;;  %v17212_v31 = vld [vmem:[#allocation121_spill] sm:$0xff]  ;;  %v17259_v42 = vld [vmem:[#allocation144_spill] sm:$0xff] }
 0x27c   : > { %17194 = vst [vmem:[#allocation109_spill] sm:$0xff] %v10612_v52  ;;  %17195 = vst [vmem:[#allocation103_spill] sm:$0xff] %v10614_v12  ;;  %v1973_v18 = vsub.f32 %v17201_v47, %v10125_v29  ;;  %v2257_v55 = vadd.f32 %v17203_v44, %v1997_v60  ;;  %v10636_v52 = vmul.f32 %v1967_v43, %v1967_v43  ;;  %v17205_v20 = vld [vmem:[#allocation14_spill] sm:$0xff]  ;;  %v10653_v44 = vpop.permute.xlu0 %4690 }
 0x27d   : > { %17196 = vst [vmem:[#allocation104_spill] sm:$0xff] %v10616_v38  ;;  %17198 = vst [vmem:[#allocation105_spill] sm:$0xff] %v10623_v62  ;;  %v10634_v38 = vmul.f32 %v4539_v14, %v4539_v14  ;;  %v10640_v8 = vrot.slane %v17205_v20, %v17144_v25  ;;  %v8292_v35 = vld [vmem:[%s16582_s0 + $0x20] sm:$0xff]  ;;  %v10645_v17 = vmul.f32 %v4541_v10, %v4541_v10  ;;  %v17211_v20 = vld [vmem:[#allocation120_spill] sm:$0xff] }
 0x27e   : > { %17202 = vst [vmem:[#allocation106_spill] sm:$0xff] %v10631_v28  ;;  %1339 = vperm.xlu0 %8073, %v8292_v35   ;;  %v10647_v47 = vmul.f32 %v1969_v51, %v1969_v51  ;;  %v17207_v62 = vld [vmem:[#allocation118_spill] sm:$0xff]  ;;  %v17208_v14 = vld [vmem:[#allocation119_spill] sm:$0xff]  ;;  %17209 = vst [vmem:[#allocation110_spill] sm:$0xff] %v10653_v44  ;;  %v4549_v12 = vsub.f32 %v17211_v20, %v10084_v37  ;;  %v1977_v35 = vsub.f32 %v17212_v31, %v10125_v29  ;;  %v10674_v0 = vpop.permute.xlu1 %3091 }
 0x27f   : > { %17204 = vst [vmem:[#allocation107_spill] sm:$0xff] %v10634_v38  ;;  %17206 = vst [vmem:[#allocation108_spill] sm:$0xff] %v10645_v17  ;;  %v4547_v60 = vsub.f32 %v17207_v62, %v10084_v37  ;;  %v1975_v43 = vsub.f32 %v17208_v14, %v10125_v29  ;;  %v10655_v38 = vmul.f32 %v4543_v49, %v4543_v49  ;;  %v17213_v10 = vld [vmem:[#allocation150_spill] sm:$0xff]  ;;  %v8293_v62 = vld [vmem:[%s16582_s0 + $0x48] sm:$0xff] }
 0x280   : > { %v2421_v51 = vsub.f32 %v17213_v10, %v10478_v53  ;;  %3722 = vperm.xlu1 %8066, %v8293_v62   ;;  %v10666_v17 = vmul.f32 %v1971_v27, %v1971_v27  ;;  %v10668_v14 = vmul.f32 %v4545_v40, %v4545_v40  ;;  %v10670_v49 = vmul.f32 %v1973_v18, %v1973_v18  ;;  %v17217_v31 = vld [vmem:[#allocation123_spill] sm:$0xff]  ;;  %v17218_v10 = vld [vmem:[#allocation124_spill] sm:$0xff]  ;;  %v17220_v27 = vld [vmem:[#allocation126_spill] sm:$0xff]  ;;  %v10695_v2 = vpop.permute.xlu0 %4698 }
 0x281   : > { %17210 = vst [vmem:[#allocation111_spill] sm:$0xff] %v10655_v38  ;;  %v17215_v38 = vld [vmem:[#allocation122_spill] sm:$0xff]  ;;  %17216 = vst [vmem:[#allocation113_spill] sm:$0xff] %v10674_v0  ;;  %v1979_v6 = vsub.f32 %v17217_v31, %v10125_v29  ;;  %v4553_v48 = vsub.f32 %v17218_v10, %v10084_v37  ;;  %v1981_v62 = vsub.f32 %v17219_v45, %v10125_v29  ;;  %v8294_v18 = vld [vmem:[%s16582_s0 + $0x30] sm:$0xff] }
 0x282   : > { %17214 = vst [vmem:[#allocation112_spill] sm:$0xff] %v10668_v14  ;;  %v4551_v20 = vsub.f32 %v17215_v38, %v10084_v37  ;;  %v1222_v40 = vsub.f32 %v17220_v27, %v9908_v9  ;;  %1349 = vperm.xlu0 %8073, %v8294_v18   ;;  %v10687_v38 = vmul.f32 %v4547_v60, %v4547_v60  ;;  %v17222_v31 = vld [vmem:[#allocation127_spill] sm:$0xff]  ;;  %v17223_v10 = vld [vmem:[#allocation128_spill] sm:$0xff]  ;;  %17224 = vst [vmem:[#allocation115_spill] sm:$0xff] %v10695_v2 }
 0x283   : > { %v10689_v14 = vmul.f32 %v1975_v43, %v1975_v43  ;;  %v1983_v57 = vsub.f32 %v17222_v31, %v10125_v29  ;;  %v1225_v37 = vsub.f32 %v17223_v10, %v9908_v9  ;;  %v10697_v45 = vmul.f32 %v4549_v12, %v4549_v12  ;;  %v8295_v60 = vld [vmem:[%s16582_s0 + $0x58] sm:$0xff] }
 0x284   : > { %17221 = vst [vmem:[#allocation114_spill] sm:$0xff] %v10687_v38  ;;  %v10699_v27 = vmul.f32 %v1977_v35, %v1977_v35  ;;  %v1985_v0 = vsub.f32 %v17226_v34, %v10125_v29  ;;  %v2453_v18 = vmul.f32 %v2421_v51, %v2421_v51  ;;  %3730 = vperm.xlu1 %8066, %v8295_v60   ;;  %v17228_v31 = vld [vmem:[#allocation130_spill] sm:$0xff]  ;;  %v17229_v38 = vld [vmem:[#allocation131_spill] sm:$0xff]  ;;  %v17230_v35 = vld [vmem:[#allocation132_spill] sm:$0xff]  ;;  %v10725_v60 = vpop.permute.xlu1 %3234 }
 0x285   : > { %17225 = vst [vmem:[#allocation116_spill] sm:$0xff] %v10697_v45  ;;  %v10706_v43 = vmul.f32 %v4551_v20, %v4551_v20  ;;  %v1227_v10 = vsub.f32 %v17228_v31, %v9908_v9  ;;  %v1987_v12 = vsub.f32 %v17229_v38, %v10125_v29  ;;  %v1229_v45 = vsub.f32 %v17230_v35, %v9908_v9  ;;  %v8296_v20 = vld [vmem:[%s16582_s0 + $0x40] sm:$0xff] }
 0x286   : > { %v10714_v2 = vmul.f32 %v1979_v6, %v1979_v6  ;;  %v10716_v34 = vmul.f32 %v4553_v48, %v4553_v48  ;;  %v10718_v51 = vmul.f32 %v1981_v62, %v1981_v62  ;;  %v10720_v44 = vmul.f32 %v1222_v40, %v1222_v40  ;;  %1359 = vperm.xlu0 %8073, %v8296_v20   ;;  %v17235_v6 = vld [vmem:[#allocation133_spill] sm:$0xff]  ;;  %v17236_v48 = vld [vmem:[#allocation134_spill] sm:$0xff] }
 0x287   : > { %17227 = vst [vmem:[#allocation117_spill] sm:$0xff] %v10706_v43  ;;  %17233 = vst [vmem:[#allocation118_spill] sm:$0xff] %v10725_v60  ;;  %v10727_v31 = vmul.f32 %v1983_v57, %v1983_v57  ;;  %v10729_v38 = vmul.f32 %v1225_v37, %v1225_v37  ;;  %v1989_v35 = vsub.f32 %v17235_v6, %v10125_v29  ;;  %v17238_v43 = vld [vmem:[#allocation135_spill] sm:$0xff]  ;;  %v17239_v20 = vld [vmem:[#allocation137_spill] sm:$0xff] }
 0x288   : > { %17231 = vst [vmem:[#allocation34_spill] sm:$0xff] %v10716_v34  ;;  %17232 = vst [vmem:[#allocation14_spill] sm:$0xff] %v10720_v44  ;;  %v1231_v62 = vsub.f32 %v17236_v48, %v9908_v9  ;;  %v10735_v34 = vpop.permute.xlu0 %4706  ;;  %v10737_v40 = vmul.f32 %v1985_v0, %v1985_v0  ;;  %v2194_v44 = vsub.f32 %v17238_v43, %v9901_v11  ;;  %v8297_v37 = vld [vmem:[%s16582_s0 + $0x68] sm:$0xff]  ;;  %v17260_v3 = vld [vmem:[#allocation146_spill] sm:$0xff] }
 0x289   : > { %17234 = vst [vmem:[#allocation119_spill] sm:$0xff] %v10729_v38  ;;  %17237 = vst [vmem:[#allocation120_spill] sm:$0xff] %v10735_v34  ;;  %v2195_v28 = vsub.f32 %v17239_v20, %v9901_v11  ;;  %v10743_v57 = vadd.f32 %v2453_v18, %v2257_v55  ;;  %3738 = vperm.xlu1 %8066, %v8297_v37   ;;  %v10748_v6 = vmul.f32 %v1227_v10, %v1227_v10  ;;  %v17242_v0 = vld [vmem:[#allocation139_spill] sm:$0xff]  ;;  %v17243_v43 = vld [vmem:[#allocation136_spill] sm:$0xff] }
 0x28a   : > { %v10750_v48 = vmul.f32 %v1987_v12, %v1987_v12  ;;  %v10752_v29 = vmul.f32 %v1229_v45, %v1229_v45  ;;  %v2197_v38 = vsub.f32 %v17242_v0, %v9901_v11  ;;  %v1233_v34 = vsub.f32 %v17243_v43, %v9908_v9  ;;  %v17244_v55 = vld [vmem:[#allocation138_spill] sm:$0xff]  ;;  %v17245_v20 = vld [vmem:[#allocation141_spill] sm:$0xff]  ;;  %v17246_v37 = vld [vmem:[#allocation11_spill] sm:$0xff]  ;;  %v10769_v12 = vpop.permute.xlu1 %3238 }
 0x28b   : > { %17240 = vst [vmem:[#allocation121_spill] sm:$0xff] %v10748_v6  ;;  %v1235_v18 = vsub.f32 %v17244_v55, %v9908_v9  ;;  %v2199_v50 = vsub.f32 %v17245_v20, %v9901_v11  ;;  %v10764_v10 = vrot.slane %v17246_v37, %v17144_v25  ;;  %v8298_v45 = vld [vmem:[%s16582_s0 + $0x50] sm:$0xff]  ;;  %17247 = vst [vmem:[#allocation122_spill] sm:$0xff] %v10769_v12  ;;  %v17249_v55 = vld [vmem:[#allocation143_spill] sm:$0xff]  ;;  %8099 = vrsqrt.f32 %v10743_v57 }
 0x28c   : > { %17241 = vst [vmem:[#allocation150_spill] sm:$0xff] %v10752_v29  ;;  %1369 = vperm.xlu0 %8073, %v8298_v45   ;;  %v10771_v0 = vmul.f32 %v1989_v35, %v1989_v35  ;;  %v10773_v43 = vmul.f32 %v1231_v62, %v1231_v62  ;;  %v2201_v29 = vsub.f32 %v17249_v55, %v9901_v11  ;;  %v17250_v20 = vld [vmem:[#allocation145_spill] sm:$0xff]  ;;  %v10779_v60 = vpop.permute.xlu0 %4714  ;;  %v17254_v55 = vld [vmem:[#allocation142_spill] sm:$0xff]  ;;  %vm2683_vm8 = vcmp.eq.f32.partialorder %v10743_v57, inf }
 0x28d   : > { %v2203_v6 = vsub.f32 %v17250_v20, %v9901_v11  ;;  %17251 = vst [vmem:[#allocation124_spill] sm:$0xff] %v10779_v60  ;;  %v10781_v37 = vmul.f32 %v2194_v44, %v2194_v44  ;;  %v2227_v39 = vmul.f32 %v2195_v28, %v2195_v28  ;;  %v1237_v45 = vsub.f32 %v17253_v7, %v9908_v9  ;;  %v8299_v35 = vld [vmem:[%s16582_s0 + $0x78] sm:$0xff]  ;;  %v17255_v20 = vld [vmem:[#allocation147_spill] sm:$0xff] }
 0x28e   : > { %17248 = vst [vmem:[#allocation123_spill] sm:$0xff] %v10773_v43  ;;  %3746 = vperm.xlu1 %8066, %v8299_v35   ;;  %v2229_v62 = vmul.f32 %v2197_v38, %v2197_v38  ;;  %v1239_v43 = vsub.f32 %v17254_v55, %v9908_v9  ;;  %v2205_v60 = vsub.f32 %v17255_v20, %v9901_v11  ;;  %v17256_v44 = vld [vmem:[#allocation149_spill] sm:$0xff]  ;;  %v8300_v38 = vld [vmem:[%s16582_s0 + $0x60] sm:$0xff]  ;;  %v10804_v35 = vpop.permute.xlu1 %3246  ;;  %vm2685_vm9 = vcmp.eq.f32.partialorder %v10743_v57, 0.0 }
 0x28f   : > { %17252 = vst [vmem:[#allocation125_spill] sm:$0xff] %v10781_v37  ;;  %v2207_v28 = vsub.f32 %v17256_v44, %v9901_v11  ;;  %v10795_v37 = vmul.f32 %v1233_v34, %v1233_v34  ;;  %v10797_v7 = vmul.f32 %v1235_v18, %v1235_v18  ;;  %v2231_v12 = vmul.f32 %v2199_v50, %v2199_v50  ;;  %v17261_v34 = vld [vmem:[#allocation164_spill] sm:$0xff] }
 0x290   : > { %v1241_v58 = vsub.f32 %v17259_v42, %v9908_v9  ;;  %1379 = vperm.xlu0 %8073, %v8300_v38   ;;  %v2233_v55 = vmul.f32 %v2201_v29, %v2201_v29  ;;  %v2235_v20 = vmul.f32 %v2203_v6, %v2203_v6  ;;  %v1243_v44 = vsub.f32 %v17260_v3, %v9908_v9  ;;  %v17263_v42 = vld [vmem:[#allocation148_spill] sm:$0xff]  ;;  %v10817_v30 = vpop.permute.xlu0 %4722 }
 0x291   : > { %17257 = vst [vmem:[#allocation126_spill] sm:$0xff] %v10795_v37  ;;  %17258 = vst [vmem:[#allocation127_spill] sm:$0xff] %v10797_v7  ;;  %v2423_v18 = vsub.f32 %v17261_v34, %v10478_v53  ;;  %v2259_v50 = vadd.f32 %v2227_v39, %v10636_v52  ;;  %v10811_v7 = vmul.f32 %v1237_v45, %v1237_v45  ;;  %v8301_v29 = vld [vmem:[%s16582_s0 + $0x88] sm:$0xff] }
 0x292   : > { %v1245_v37 = vsub.f32 %v17263_v42, %v9908_v9  ;;  %v2209_v38 = vsub.f32 %v17264_v36, %v9901_v11  ;;  %17265 = vst [vmem:[#allocation129_spill] sm:$0xff] %v10817_v30  ;;  %3754 = vperm.xlu1 %8066, %v8301_v29   ;;  %v2261_v3 = vadd.f32 %v2229_v62, %v10647_v47  ;;  %v17268_v9 = vld [vmem:[#allocation152_spill] sm:$0xff]  ;;  %v17269_v42 = vld [vmem:[#allocation166_spill] sm:$0xff]  ;;  %v10835_v47 = vpop.permute.xlu1 %3254 }
 0x293   : > { %17262 = vst [vmem:[#allocation128_spill] sm:$0xff] %v10811_v7  ;;  %v10823_v6 = vmul.f32 %v1239_v43, %v1239_v43  ;;  %v2237_v39 = vmul.f32 %v2205_v60, %v2205_v60  ;;  %v2239_v52 = vmul.f32 %v2207_v28, %v2207_v28  ;;  %v2263_v45 = vadd.f32 %v2231_v12, %v10666_v17  ;;  %v8302_v29 = vld [vmem:[%s16582_s0 + $0x70] sm:$0xff] }
 0x294   : > { %v10826_v34 = vmul.f32 %v1241_v58, %v1241_v58  ;;  %v2424_v36 = vsub.f32 %v17268_v9, %v10478_v53  ;;  %v2425_v7 = vsub.f32 %v17269_v42, %v10478_v53  ;;  %1389 = vperm.xlu0 %8073, %v8302_v29   ;;  %v2265_v60 = vadd.f32 %v2233_v55, %v10670_v49  ;;  %v17272_v28 = vld [vmem:[#allocation153_spill] sm:$0xff]  ;;  %v17273_v42 = vld [vmem:[#allocation168_spill] sm:$0xff]  ;;  %v10852_v49 = vpop.permute.xlu0 %4858  ;;  %v17275_v55 = vld [vmem:[#allocation155_spill] sm:$0xff] }
 0x295   : > { %17266 = vst [vmem:[#allocation130_spill] sm:$0xff] %v10823_v6  ;;  %v10839_v17 = vadd.f32 %v2235_v20, %v10689_v14  ;;  %v10841_v58 = vmul.f32 %v1243_v44, %v1243_v44  ;;  %v2455_v12 = vmul.f32 %v2423_v18, %v2423_v18  ;;  %v10843_v43 = vmul.f32 %v1245_v37, %v1245_v37  ;;  %v8304_v44 = vld [vmem:[%s9841_s23 + $0x8] sm:$0x7] }
 0x296   : > { %17267 = vst [vmem:[#allocation131_spill] sm:$0xff] %v10826_v34  ;;  %v2241_v62 = vmul.f32 %v2209_v38, %v2209_v38  ;;  %v2211_v9 = vsub.f32 %v17272_v28, %v9901_v11  ;;  %v2427_v29 = vsub.f32 %v17273_v42, %v10478_v53  ;;  %v8303_v34 = vld [vmem:[%s16582_s0 + $0x98] sm:$0xff]  ;;  %17274 = vst [vmem:[#allocation134_spill] sm:$0xff] %v10852_v49  ;;  %v8100_v38 = vpop.eup %8099  ;;  %v8306_v6 = vld [vmem:[%s16582_s0 + $0xa8] sm:$0xff] }
 0x297   : > { %17270 = vst [vmem:[#allocation132_spill] sm:$0xff] %v10841_v58  ;;  %17271 = vst [vmem:[#allocation133_spill] sm:$0xff] %v10843_v43  ;;  %3762 = vperm.xlu1 %8066, %v8303_v34   ;;  %v10855_v14 = vadd.f32 %v2237_v39, %v10699_v27  ;;  %v10858_v37 = vadd.f32 %v2239_v52, %v10714_v2  ;;  %v2213_v20 = vsub.f32 %v17275_v55, %v9901_v11  ;;  %v17278_v34 = vld [vmem:[#allocation170_spill] sm:$0xff]  ;;  %v10873_v2 = vpop.permute.xlu1 %3262  ;;  %v17280_v55 = vld [vmem:[#allocation157_spill] sm:$0xff] }
 0x298   : > { %v10864_v18 = vrot.slane %v8304_v44, %v9838_v56  ;;  %v10866_v28 = vmul.f32 %v2424_v36, %v2424_v36  ;;  %v2457_v42 = vmul.f32 %v2425_v7, %v2425_v7  ;;  %v2429_v43 = vsub.f32 %v17278_v34, %v10478_v53  ;;  %v8305_v27 = vld [vmem:[%s16582_s0 + $0x80] sm:$0xff] }
 0x299   : > { %1399 = vperm.xlu0 %8073, %v8305_v27   ;;  %v17279_v39 = vld [vmem:[#allocation154_spill] sm:$0xff]  ;;  %v2215_v36 = vsub.f32 %v17280_v55, %v9901_v11  ;;  %v10880_v44 = vadd.f32 %v2455_v12, %v2259_v50  ;;  %v10884_v7 = vadd.f32 %v2241_v62, %v10718_v51  ;;  %v2243_v34 = vmul.f32 %v2211_v9, %v2211_v9  ;;  %v17281_v27 = vld [vmem:[#allocation172_spill] sm:$0xff] }
 0x29a   : > { %17276 = vst [vmem:[#allocation135_spill] sm:$0xff] %v10864_v18  ;;  %17277 = vst [vmem:[#allocation137_spill] sm:$0xff] %v10866_v28  ;;  %v2426_v52 = vsub.f32 %v17279_v39, %v10478_v53  ;;  %v2459_v28 = vmul.f32 %v2427_v29, %v2427_v29  ;;  %v2431_v58 = vsub.f32 %v17281_v27, %v10478_v53  ;;  %v10891_v39 = vpop.permute.xlu0 %4870  ;;  %v17283_v50 = vld [vmem:[#allocation156_spill] sm:$0xff]  ;;  %v17284_v56 = vld [vmem:[#allocation158_spill] sm:$0xff] }
 0x29b   : > { %3770 = vperm.xlu1 %8066, %v8306_v6   ;;  %17282 = vst [vmem:[#allocation139_spill] sm:$0xff] %v10891_v39  ;;  %v2245_v55 = vmul.f32 %v2213_v20, %v2213_v20  ;;  %v2428_v12 = vsub.f32 %v17283_v50, %v10478_v53  ;;  %v2430_v51 = vsub.f32 %v17284_v56, %v10478_v53  ;;  %v17285_v27 = vld [vmem:[#allocation174_spill] sm:$0xff]  ;;  %v8307_v6 = vld [vmem:[%s16582_s0 + $0x90] sm:$0xff]  ;;  %v10905_v20 = vpop.permute.xlu1 %3270  ;;  %v2686_v50 = vand.u32 2147483648, %v10743_v57 }
 0x29c   : > { %v2682_v62 = vmul.f32 %v8100_v38, %v10743_v57  ;;  %v10898_v9 = vadd.f32 %v2457_v42, %v2261_v3  ;;  %v2461_v29 = vmul.f32 %v2429_v43, %v2429_v43  ;;  %v2433_v49 = vsub.f32 %v17285_v27, %v10478_v53  ;;  %v17287_v38 = vld [vmem:[#allocation159_spill] sm:$0xff] }
 0x29d   : > { %1409 = vperm.xlu0 %8073, %v8307_v6   ;;  %v10908_v39 = vmul.f32 %v2426_v52, %v2426_v52  ;;  %v2247_v56 = vmul.f32 %v2215_v36, %v2215_v36  ;;  %v2217_v3 = vsub.f32 %v17287_v38, %v9901_v11  ;;  %8101 = vrsqrt.f32 %v10880_v44  ;;  %v17288_v6 = vld [vmem:[#allocation176_spill] sm:$0xff]  ;;  %v8308_v52 = vld [vmem:[%s16582_s0 + $0xb8] sm:$0xff] }
 0x29e   : > { %v10914_v43 = vadd.f32 %v2243_v34, %v10727_v31  ;;  %v10916_v42 = vadd.f32 %v2459_v28, %v2263_v45  ;;  %v2463_v27 = vmul.f32 %v2431_v58, %v2431_v58  ;;  %v2435_v30 = vsub.f32 %v17288_v6, %v10478_v53  ;;  %v10923_v36 = vpop.permute.xlu0 %4878  ;;  %v17292_v34 = vld [vmem:[#allocation178_spill] sm:$0xff] }
 0x29f   : > { %17286 = vst [vmem:[#allocation136_spill] sm:$0xff] %v10908_v39  ;;  %3778 = vperm.xlu1 %8066, %v8308_v52   ;;  %17289 = vst [vmem:[#allocation138_spill] sm:$0xff] %v10923_v36  ;;  %v10926_v11 = vadd.f32 %v2245_v55, %v10737_v40  ;;  %v10928_v38 = vmul.f32 %v2428_v12, %v2428_v12  ;;  %v10930_v31 = vmul.f32 %v2430_v51, %v2430_v51  ;;  %v8309_v40 = vld [vmem:[%s16582_s0 + $0xa0] sm:$0xff]  ;;  %v10943_v55 = vpop.permute.xlu1 %3278 }
 0x2a0   : > { %v2684_v45 = vsel %vm2683_vm8, %v10743_v57, %v2682_v62  ;;  %8103 = vrsqrt.f32 %v10898_v9  ;;  %v10936_v58 = vadd.f32 %v2461_v29, %v2265_v60  ;;  %v2465_v28 = vmul.f32 %v2433_v49, %v2433_v49  ;;  %v10948_v12 = vld [vmem:[%s16584_s2 + $0x300] sm:$0xff]  ;;  %v17293_v49 = vld [vmem:[#allocation160_spill] sm:$0xff]  ;;  %v17294_v29 = vld [vmem:[#allocation161_spill] sm:$0xff] }
 0x2a1   : > { %17290 = vst [vmem:[#allocation141_spill] sm:$0xff] %v10928_v38  ;;  %17291 = vst [vmem:[#allocation11_spill] sm:$0xff] %v10930_v31  ;;  %v2437_v6 = vsub.f32 %v17292_v34, %v10478_v53  ;;  %1419 = vperm.xlu0 %8073, %v8309_v40   ;;  %v10951_v51 = vadd.f32 %v2247_v56, %v10750_v48  ;;  %v2249_v60 = vmul.f32 %v2217_v3, %v2217_v3  ;;  %v17296_v56 = vld [vmem:[#allocation162_spill] sm:$0xff] }
 0x2a2   : > { %v2432_v62 = vsub.f32 %v17293_v49, %v10478_v53  ;;  %v2434_v52 = vsub.f32 %v17294_v29, %v10478_v53  ;;  %8105 = vrsqrt.f32 %v10916_v42  ;;  %v10959_v34 = vadd.f32 %v2463_v27, %v10839_v17  ;;  %v10962_v31 = vpop.permute.xlu0 %4886  ;;  %v17297_v49 = vld [vmem:[#allocation163_spill] sm:$0xff]  ;;  %v17298_v29 = vld [vmem:[#allocation165_spill] sm:$0xff] }
 0x2a3   : > { %v2467_v40 = vmul.f32 %v2435_v30, %v2435_v30  ;;  %8067 = vset.pattern.permute.xlu1 %v16948_v5  ;;  %17295 = vst [vmem:[#allocation143_spill] sm:$0xff] %v10962_v31  ;;  %v2687_v48 = vsel %vm2685_vm9, %v2686_v50, %v2684_v45  ;;  %v2422_v3 = vsub.f32 %v17296_v56, %v10478_v53  ;;  %8107 = vrsqrt.f32 %v10936_v58  ;;  %v17300_v50 = vld [vmem:[#allocation180_spill] sm:$0xff]  ;;  %v10986_v56 = vpop.permute.xlu1 %3286 }
 0x2a4   : > { %v2436_v38 = vsub.f32 %v17297_v49, %v10478_v53  ;;  %v2438_v39 = vsub.f32 %v17298_v29, %v10478_v53  ;;  %v10974_v17 = vrot.slane %v10063_v26, %v17144_v25  ;;  %4139 = vperm.xlu1 %8067, %v10948_v12   ;;  %v10979_v30 = vadd.f32 %v2465_v28, %v10855_v14  ;;  %v8310_v45 = vld [vmem:[%s16582_s0 + $0xb0] sm:$0xff]  ;;  %v17305_v49 = vld [vmem:[#allocation167_spill] sm:$0xff] }
 0x2a5   : > { %v2469_v57 = vmul.f32 %v2437_v6, %v2437_v6  ;;  %v2439_v27 = vsub.f32 %v17300_v50, %v10478_v53  ;;  %1429 = vperm.xlu0 %8073, %v8310_v45   ;;  %17301 = vst [vmem:[#allocation140_spill] sm:$0xff] %v10986_v56  ;;  %v10991_v26 = vld [vmem:[%s16584_s2 + $0x310] sm:$0xff]  ;;  %v10994_v25 = vadd.f32 %v2249_v60, %v10771_v0  ;;  %8109 = vrsqrt.f32 %v10959_v34  ;;  %v8317_v56 = vld [vmem:[%s9860_s12] sm:$0xf] }
 0x2a6   : > { %17299 = vst [vmem:[#allocation145_spill] sm:$0xff] %v10974_v17  ;;  %v10996_v14 = vmul.f32 %v2432_v62, %v2432_v62  ;;  %v10998_v28 = vmul.f32 %v2434_v52, %v2434_v52  ;;  %v11001_v6 = vmul.f32 %v2687_v48, %v10205_v41  ;;  %v2440_v29 = vsub.f32 %v17305_v49, %v10478_v53  ;;  %v17306_v45 = vld [vmem:[#allocation181_spill] sm:$0xff]  ;;  %v11011_v0 = vpop.permute.xlu0 %4894  ;;  %v17311_v48 = vld [vmem:[#allocation182_spill] sm:$0xff] }
 0x2a7   : > { %v11007_v50 = vadd.f32 %v2467_v40, %v10858_v37  ;;  %v2441_v5 = vsub.f32 %v17306_v45, %v10478_v53  ;;  %17307 = vst [vmem:[#allocation144_spill] sm:$0xff] %v11011_v0  ;;  %v8102_v60 = vpop.eup %8101  ;;  %v11013_v62 = vmul.f32 %v2422_v3, %v2422_v3  ;;  %v11015_v52 = vmul.f32 %v2436_v38, %v2436_v38  ;;  %v17312_v45 = vld [vmem:[#allocation184_spill] sm:$0xff]  ;;  %v8311_v38 = vld [vmem:[%s16582_s0 + $0xc0] sm:$0xff]  ;;  %v11036_v3 = vld [vmem:[%s16584_s2 + $0x318] sm:$0xff] }
 0x2a8   : > { %17302 = vst [vmem:[#allocation142_spill] sm:$0xff] %v10996_v14  ;;  %17303 = vst [vmem:[#allocation147_spill] sm:$0xff] %v10998_v28  ;;  %v11017_v41 = vmul.f32 %v2438_v39, %v2438_v39  ;;  %v2443_v49 = vsub.f32 %v17311_v48, %v10478_v53  ;;  %4149 = vperm.xlu1 %8067, %v10991_v26   ;;  %8111 = vrsqrt.f32 %v10979_v30  ;;  %v11031_v39 = vpop.permute.xlu1 %3294  ;;  %v17315_v48 = vld [vmem:[#allocation169_spill] sm:$0xff]  ;;  %vm2697_vm10 = vcmp.eq.f32.partialorder %v10880_v44, inf  ;;  %v17318_v14 = vld [vmem:[#allocation171_spill] sm:$0xff] }
 0x2a9   : > { %17304 = vst [vmem:[#allocation149_spill] sm:$0xff] %v11001_v6  ;;  %17308 = vst [vmem:[#allocation146_spill] sm:$0xff] %v11013_v62  ;;  %v11024_v37 = vadd.f32 %v2469_v57, %v10884_v7  ;;  %v2471_v40 = vmul.f32 %v2439_v27, %v2439_v27  ;;  %v2445_v28 = vsub.f32 %v17312_v45, %v10478_v53  ;;  %1439 = vperm.xlu0 %8073, %v8311_v38  }
 0x2aa   : > { %17309 = vst [vmem:[#allocation164_spill] sm:$0xff] %v11015_v52  ;;  %17310 = vst [vmem:[#allocation148_spill] sm:$0xff] %v11017_v41  ;;  %v2442_v7 = vsub.f32 %v17315_v48, %v10478_v53  ;;  %vm2699_vm11 = vcmp.eq.f32.partialorder %v10880_v44, 0.0  ;;  %v2700_v57 = vand.u32 2147483648, %v10880_v44  ;;  %v8104_v27 = vpop.eup %8103  ;;  %v11043_v45 = vmul.f32 %v2440_v29, %v2440_v29  ;;  %v11047_v52 = vpop.permute.xlu0 %4902 }
 0x2ab   : > { %17313 = vst [vmem:[#allocation151_spill] sm:$0xff] %v11031_v39  ;;  %17314 = vst [vmem:[#allocation152_spill] sm:$0xff] %v11036_v3  ;;  %8113 = vrsqrt.f32 %v11007_v50  ;;  %v2473_v38 = vmul.f32 %v2441_v5, %v2441_v5  ;;  %v2696_v41 = vmul.f32 %v8102_v60, %v10880_v44  ;;  %v2444_v62 = vsub.f32 %v17318_v14, %v10478_v53  ;;  %v8312_v53 = vld [vmem:[%s16584_s2 + $0x108] sm:$0xff] }
 0x2ac   : > { %17316 = vst [vmem:[#allocation166_spill] sm:$0xff] %v11043_v45  ;;  %17317 = vst [vmem:[#allocation153_spill] sm:$0xff] %v11047_v52  ;;  %v2475_v48 = vmul.f32 %v2443_v49, %v2443_v49  ;;  %vm2711_vm12 = vcmp.eq.f32.partialorder %v10898_v9, inf  ;;  %vm2713_vm13 = vcmp.eq.f32.partialorder %v10898_v9, 0.0  ;;  %4154 = vperm.xlu1 %8067, %v11036_v3   ;;  %v8106_v6 = vpop.eup %8105  ;;  %8115 = vrsqrt.f32 %v11024_v37  ;;  %v11062_v14 = vpop.permute.xlu1 %3302  ;;  %v11067_v49 = vld [vmem:[%s16584_s2 + $0x328] sm:$0xff] }
 0x2ad   : > { %v11056_v29 = vadd.f32 %v2471_v40, %v10914_v43  ;;  %v2477_v5 = vmul.f32 %v2445_v28, %v2445_v28  ;;  %v2714_v60 = vand.u32 2147483648, %v10898_v9  ;;  %1808 = vperm.xlu0 %8073, %v8312_v53   ;;  %17319 = vst [vmem:[#allocation168_spill] sm:$0xff] %v11062_v14  ;;  %17320 = vst [vmem:[#allocation155_spill] sm:$0xff] %v11067_v49  ;;  %vm2725_vm14 = vcmp.eq.f32.partialorder %v10916_v42, inf  ;;  %v8108_v28 = vpop.eup %8107  ;;  %v17322_v40 = vld [vmem:[#allocation173_spill] sm:$0xff] }
 0x2ae   : > { %v11069_v45 = vmul.f32 %v2442_v7, %v2442_v7  ;;  %v2710_v43 = vmul.f32 %v8104_v27, %v10898_v9  ;;  %vm2727_vm15 = vcmp.eq.f32.partialorder %v10916_v42, 0.0  ;;  %v3589_v52 = vsub.f32 %v17322_v40, %v10640_v8 }
 0x2af   : > { %v11077_v53 = vadd.f32 %v2473_v38, %v10926_v11  ;;  %v2698_v0 = vsel %vm2697_vm10, %v10880_v44, %v2696_v41  ;;  %v2728_v7 = vand.u32 2147483648, %v10916_v42  ;;  %v11085_v27 = vmul.f32 %v2444_v62, %v2444_v62  ;;  %v8110_v11 = vpop.eup %8109  ;;  %v17325_v38 = vld [vmem:[#allocation175_spill] sm:$0xff]  ;;  %v11108_v62 = vld [vmem:[%s16584_s2 + $0x338] sm:$0xff] }
 0x2b0   : > { %17321 = vst [vmem:[#allocation170_spill] sm:$0xff] %v11069_v45  ;;  %v11083_v45 = vpop.permute.xlu0 %4910  ;;  %v11088_v31 = vadd.f32 %v2475_v48, %v10951_v51  ;;  %v2724_v14 = vmul.f32 %v8106_v6, %v10916_v42  ;;  %vm2739_vm0 = vcmp.eq.f32.partialorder %v10936_v58, inf  ;;  %4164 = vperm.xlu1 %8067, %v11067_v49   ;;  %v3592_v40 = vsub.f32 %v17325_v38, %v10640_v8  ;;  %v8313_v51 = vld [vmem:[%s16584_s2 + $0x118] sm:$0xff]  ;;  %v11103_v6 = vpop.permute.xlu1 %3310 }
 0x2b1   : > { %17323 = vst [vmem:[#allocation154_spill] sm:$0xff] %v11083_v45  ;;  %17324 = vst [vmem:[#allocation157_spill] sm:$0xff] %v11085_v27  ;;  %8117 = vrsqrt.f32 %v11056_v29  ;;  %v11097_v41 = vadd.f32 %v2477_v5, %v10994_v25  ;;  %vm2741_vm1 = vcmp.eq.f32.partialorder %v10936_v58, 0.0  ;;  %1818 = vperm.xlu0 %8073, %v8313_v51   ;;  %v11112_v48 = vsel %vm2699_vm11, %v2700_v57, %v2698_v0  ;;  %v17330_v0 = vld [vmem:[#allocation177_spill] sm:$0xff]  ;;  %v8314_v45 = vld [vmem:[%s16584_s2 + $0x128] sm:$0xff] }
 0x2b2   : > { %17326 = vst [vmem:[#allocation172_spill] sm:$0xff] %v11103_v6  ;;  %17327 = vst [vmem:[#allocation156_spill] sm:$0xff] %v11108_v62  ;;  %v2712_v25 = vsel %vm2711_vm12, %v10898_v9, %v2710_v43  ;;  %v2738_v5 = vmul.f32 %v8108_v28, %v10936_v58  ;;  %v2742_v38 = vand.u32 2147483648, %v10936_v58  ;;  %v8112_v51 = vpop.eup %8111  ;;  %v11119_v27 = vmul.f32 %v3589_v52, %v3589_v52 }
 0x2b3   : > { %8119 = vrsqrt.f32 %v11077_v53  ;;  %vm2753_vm2 = vcmp.eq.f32.partialorder %v10959_v34, inf  ;;  %vm2755_vm3 = vcmp.eq.f32.partialorder %v10959_v34, 0.0  ;;  %v3594_v57 = vsub.f32 %v17330_v0, %v10640_v8 }
 0x2b4   : > { %17328 = vst [vmem:[#allocation158_spill] sm:$0xff] %v11119_v27  ;;  %v11124_v44 = vpop.permute.xlu0 %4918  ;;  %8121 = vrsqrt.f32 %v11088_v31  ;;  %v2726_v43 = vsel %vm2725_vm14, %v10916_v42, %v2724_v14  ;;  %v2752_v52 = vmul.f32 %v8110_v11, %v10959_v34  ;;  %4174 = vperm.xlu1 %8067, %v11108_v62   ;;  %v11134_v27 = vmul.f32 %v3592_v40, %v3592_v40  ;;  %v11145_v14 = vpop.permute.xlu1 %3318  ;;  %v11150_v11 = vld [vmem:[%s16584_s2 + $0x348] sm:$0xff]  ;;  %v17338_v42 = vld [vmem:[#allocation66_spill] sm:$0xff] }
 0x2b5   : > { %17329 = vst [vmem:[#allocation174_spill] sm:$0xff] %v11124_v44  ;;  %v8114_v28 = vpop.eup %8113  ;;  %8123 = vrsqrt.f32 %v11097_v41  ;;  %v11139_v44 = vsel %vm2713_vm13, %v2714_v60, %v2712_v25  ;;  %v2756_v0 = vand.u32 2147483648, %v10959_v34  ;;  %1828 = vperm.xlu0 %8073, %v8314_v45   ;;  %17332 = vst [vmem:[#allocation176_spill] sm:$0xff] %v11145_v14  ;;  %v17334_v40 = vld [vmem:[#allocation179_spill] sm:$0xff]  ;;  %v2740_v9 = vsel %vm2739_vm0, %v10936_v58, %v2738_v5 }
 0x2b6   : > { %17331 = vst [vmem:[#allocation159_spill] sm:$0xff] %v11134_v27  ;;  %17333 = vst [vmem:[#allocation178_spill] sm:$0xff] %v11150_v11  ;;  %v3596_v27 = vsub.f32 %v17334_v40, %v10640_v8  ;;  %v2766_v60 = vmul.f32 %v8112_v51, %v10979_v30  ;;  %vm2767_vm4 = vcmp.eq.f32.partialorder %v10979_v30, inf  ;;  %v8116_v25 = vpop.eup %8115  ;;  %v17335_v45 = vld [vmem:[#allocation63_spill] sm:$0xff]  ;;  %v11163_v14 = vsel %vm2727_vm15, %v2728_v7, %v2726_v43 }
 0x2b7   : > { %v3598_v62 = vsub.f32 %v17335_v45, %v10640_v8  ;;  %vm2769_vm5 = vcmp.eq.f32.partialorder %v10979_v30, 0.0  ;;  %v2770_v40 = vand.u32 2147483648, %v10979_v30  ;;  %v11169_v36 = vmul.f32 %v3594_v57, %v3594_v57  ;;  %v11193_v45 = vld [vmem:[%s16584_s2 + $0x358] sm:$0xff] }
 0x2b8   : > { %v11167_v6 = vpop.permute.xlu0 %4926  ;;  %v2754_v5 = vsel %vm2753_vm2, %v10959_v34, %v2752_v52  ;;  %v2780_v51 = vmul.f32 %v8114_v28, %v11007_v50  ;;  %vm2781_vm6 = vcmp.eq.f32.partialorder %v11007_v50, inf  ;;  %4184 = vperm.xlu1 %8067, %v11150_v11   ;;  %v3600_v7 = vsub.f32 %v17338_v42, %v10640_v8  ;;  %v8315_v52 = vld [vmem:[%s16584_s2 + $0x138] sm:$0xff]  ;;  %v11188_v28 = vpop.permute.xlu1 %3326  ;;  %17340 = vst [vmem:[#allocation163_spill] sm:$0xff] %v11193_v45 }
 0x2b9   : > { %17336 = vst [vmem:[#allocation160_spill] sm:$0xff] %v11167_v6  ;;  %17337 = vst [vmem:[#allocation161_spill] sm:$0xff] %v11169_v36  ;;  %v11181_v43 = vsel %vm2741_vm1, %v2742_v38, %v2740_v9  ;;  %vm2783_vm7 = vcmp.eq.f32.partialorder %v11007_v50, 0.0  ;;  %v2784_v57 = vand.u32 2147483648, %v11007_v50  ;;  %1838 = vperm.xlu0 %8073, %v8315_v52   ;;  %v11195_v42 = vmul.f32 %v3596_v27, %v3596_v27  ;;  %v17344_v6 = vld [vmem:[#allocation183_spill] sm:$0xff] }
 0x2ba   : > { %17339 = vst [vmem:[#allocation162_spill] sm:$0xff] %v11188_v28  ;;  %v2768_v58 = vsel %vm2767_vm4, %v10979_v30, %v2766_v60  ;;  %v2794_v38 = vmul.f32 %v8116_v25, %v11024_v37  ;;  %vm2795_vm8 = vcmp.eq.f32.partialorder %v11024_v37, inf  ;;  %v11202_v36 = vmul.f32 %v3598_v62, %v3598_v62  ;;  %v17345_v62 = vld [vmem:[#allocation189_spill] sm:$0xff] }
 0x2bb   : > { %17341 = vst [vmem:[#allocation165_spill] sm:$0xff] %v11195_v42  ;;  %v8118_v9 = vpop.eup %8117  ;;  %v11206_v52 = vsel %vm2755_vm3, %v2756_v0, %v2754_v5  ;;  %vm2797_vm9 = vcmp.eq.f32.partialorder %v11024_v37, 0.0  ;;  %v2798_v27 = vand.u32 2147483648, %v11024_v37  ;;  %v3602_v60 = vsub.f32 %v17344_v6, %v10640_v8 }
 0x2bc   : > { %17342 = vst [vmem:[#allocation180_spill] sm:$0xff] %v11202_v36  ;;  %v11210_v42 = vpop.permute.xlu0 %4934  ;;  %v2782_v25 = vsel %vm2781_vm6, %v11007_v50, %v2780_v51  ;;  %vm2809_vm10 = vcmp.eq.f32.partialorder %v11056_v29, inf  ;;  %v4983_v36 = vsub.s32 3, %v17345_v62  ;;  %4194 = vperm.xlu1 %8067, %v11193_v45   ;;  %v11220_v0 = vmul.f32 %v3600_v7, %v3600_v7  ;;  %v8316_v51 = vld [vmem:[%s16584_s2 + $0x148] sm:$0xff] }
 0x2bd   : > { %17343 = vst [vmem:[#allocation167_spill] sm:$0xff] %v11210_v42  ;;  %v8120_v34 = vpop.eup %8119  ;;  %v11224_v5 = vsel %vm2769_vm5, %v2770_v40, %v2768_v58  ;;  %vm2811_vm11 = vcmp.eq.f32.partialorder %v11056_v29, 0.0  ;;  %v2812_v6 = vand.u32 2147483648, %v11056_v29  ;;  %1848 = vperm.xlu0 %8073, %v8316_v51   ;;  %v11234_v62 = vld [vmem:[%s16584_s2 + $0x368] sm:$0xff]  ;;  %v2796_v30 = vsel %vm2795_vm8, %v11024_v37, %v2794_v38  ;;  %v11242_v58 = vpop.permute.xlu1 %3462 }
 0x2be   : > { %17346 = vst [vmem:[#allocation181_spill] sm:$0xff] %v11220_v0  ;;  %17347 = vst [vmem:[#allocation182_spill] sm:$0xff] %v11234_v62  ;;  %v8122_v7 = vpop.eup %8121  ;;  %v2808_v40 = vmul.f32 %v8118_v9, %v11056_v29  ;;  %vm2823_vm12 = vcmp.eq.f32.partialorder %v11077_v53, inf  ;;  %vm2825_vm13 = vcmp.eq.f32.partialorder %v11077_v53, 0.0  ;;  %v17348_v0 = vld [vmem:[#allocation185_spill] sm:$0xff]  ;;  %v17349_v42 = vld [vmem:[#allocation188_spill] sm:$0xff]  ;;  %v11250_v28 = vsel %vm2783_vm7, %v2784_v57, %v2782_v25 }
 0x2bf   : > { %v8124_v51 = vpop.eup %8123  ;;  %v3604_v45 = vsub.f32 %v17348_v0, %v10640_v8  ;;  %v2651_v11 = vmul.f32 %v9905_v63, %v17349_v42  ;;  %v2826_v38 = vand.u32 2147483648, %v11077_v53  ;;  %v11255_v49 = vmul.f32 %v3602_v60, %v3602_v60  ;;  %v8318_v60 = vld [vmem:[%s16584_s2 + $0x158] sm:$0xff] }
 0x2c0   : > { %v11253_v9 = vpop.permute.xlu0 %4942  ;;  %v2822_v39 = vmul.f32 %v8120_v34, %v11077_v53  ;;  %vm2837_vm14 = vcmp.eq.f32.partialorder %v11088_v31, inf  ;;  %v11260_v3 = vrot.slane %v8317_v56, %v4983_v36  ;;  %4204 = vperm.xlu1 %8067, %v11234_v62   ;;  %v11265_v50 = vsel %vm2797_vm9, %v2798_v27, %v2796_v30  ;;  %v11276_v36 = vld [vmem:[%s16584_s2 + $0x378] sm:$0xff]  ;;  %v17356_v27 = vld [vmem:[#allocation187_spill] sm:$0xff] }
 0x2c1   : > { %17350 = vst [vmem:[#allocation184_spill] sm:$0xff] %v11253_v9  ;;  %17351 = vst [vmem:[#allocation169_spill] sm:$0xff] %v11255_v49  ;;  %v2836_v57 = vmul.f32 %v8122_v7, %v11088_v31  ;;  %vm2839_vm15 = vcmp.eq.f32.partialorder %v11088_v31, 0.0  ;;  %v2840_v42 = vand.u32 2147483648, %v11088_v31  ;;  %1858 = vperm.xlu0 %8073, %v8318_v60   ;;  %v17354_v56 = vld [vmem:[#allocation186_spill] sm:$0xff]  ;;  %v3606_v25 = vsub.f32 %v17356_v27, %v10640_v8  ;;  %v11288_v7 = vpop.permute.xlu1 %3466  ;;  %v17361_v27 = vld [vmem:[#allocation191_spill] sm:$0xff] }
 0x2c2   : > { %17352 = vst [vmem:[#allocation171_spill] sm:$0xff] %v11260_v3  ;;  %17353 = vst [vmem:[#allocation173_spill] sm:$0xff] %v11276_v36  ;;  %v11280_v37 = vmul.f32 %v9905_v63, %v17354_v56  ;;  %v2810_v34 = vsel %vm2809_vm10, %v11056_v29, %v2808_v40  ;;  %v2850_v0 = vmul.f32 %v8124_v51, %v11097_v41  ;;  %v17359_v49 = vld [vmem:[#allocation190_spill] sm:$0xff]  ;;  %vm2851_vm0 = vcmp.eq.f32.partialorder %v11097_v41, inf  ;;  %v17362_v40 = vld [vmem:[#allocation193_spill] sm:$0xff] }
 0x2c3   : > { %17357 = vst [vmem:[#allocation177_spill] sm:$0xff] %v11288_v7  ;;  %v11290_v30 = vmul.f32 %v3604_v45, %v3604_v45  ;;  %v2907_v60 = vmul.f32 %v11112_v48, %v2651_v11  ;;  %v3608_v62 = vsub.f32 %v17359_v49, %v10640_v8  ;;  %v3610_v9 = vsub.f32 %v17362_v40, %v10640_v8  ;;  %v17363_v48 = vld [vmem:[#allocation194_spill] sm:$0xff]  ;;  %v11321_v40 = vld [vmem:[%s16584_s2 + $0x388] sm:$0xff]  ;;  %v17368_v7 = vld [vmem:[#allocation13_spill] sm:$0xff] }
 0x2c4   : > { %17355 = vst [vmem:[#allocation175_spill] sm:$0xff] %v11280_v37  ;;  %v11296_v56 = vpop.permute.xlu0 %4950  ;;  %v2653_v37 = vmul.f32 %v9905_v63, %v17361_v27  ;;  %v2824_v45 = vsel %vm2823_vm12, %v11077_v53, %v2822_v39  ;;  %vm2853_vm1 = vcmp.eq.f32.partialorder %v11097_v41, 0.0  ;;  %4214 = vperm.xlu1 %8067, %v11276_v36   ;;  %v2655_v49 = vmul.f32 %v9905_v63, %v17363_v48  ;;  %v8319_v39 = vld [vmem:[%s16584_s2 + $0x168] sm:$0xff]  ;;  %v17371_v3 = vld [vmem:[#allocation21_spill] sm:$0xff] }
 0x2c5   : > { %17358 = vst [vmem:[#allocation179_spill] sm:$0xff] %v11290_v30  ;;  %17360 = vst [vmem:[#allocation63_spill] sm:$0xff] %v11296_v56  ;;  %v2813_v11 = vsel %vm2811_vm11, %v2812_v6, %v2810_v34  ;;  %v2838_v51 = vsel %vm2837_vm14, %v11088_v31, %v2836_v57  ;;  %v2854_v27 = vand.u32 2147483648, %v11097_v41  ;;  %1868 = vperm.xlu0 %8073, %v8319_v39   ;;  %v17365_v29 = vld [vmem:[#allocation196_spill] sm:$0xff]  ;;  %v17366_v34 = vld [vmem:[#allocation198_spill] sm:$0xff]  ;;  %v11332_v36 = vpop.permute.xlu1 %3474 }
 0x2c6   : > { %v11323_v48 = vmul.f32 %v3606_v25, %v3606_v25  ;;  %v3612_v6 = vsub.f32 %v17365_v29, %v10640_v8  ;;  %v2657_v57 = vmul.f32 %v9905_v63, %v17366_v34  ;;  %v2852_v30 = vsel %vm2851_vm0, %v11097_v41, %v2850_v0  ;;  %v17373_v53 = vld [vmem:[#allocation27_spill] sm:$0xff]  ;;  %v8320_v31 = vld [vmem:[%s16584_s2 + $0x178] sm:$0xff] }
 0x2c7   : > { %v11335_v39 = vadd.f32 %v2907_v60, %v10483_v23  ;;  %v11337_v56 = vmul.f32 %v3608_v62, %v3608_v62  ;;  %v2659_v25 = vmul.f32 %v9905_v63, %v17368_v7  ;;  %v2827_v29 = vsel %vm2825_vm13, %v2826_v38, %v2824_v45  ;;  %v17377_v7 = vld [vmem:[#allocation12_spill] sm:$0xff]  ;;  %v17379_v41 = vld [vmem:[#allocation39_spill] sm:$0xff] }
 0x2c8   : > { %17364 = vst [vmem:[#allocation66_spill] sm:$0xff] %v11323_v48  ;;  %v11344_v48 = vmul.f32 %v11139_v44, %v2653_v37  ;;  %v11346_v34 = vmul.f32 %v3610_v9, %v3610_v9  ;;  %v2661_v0 = vmul.f32 %v9905_v63, %v17371_v3  ;;  %v2841_v23 = vsel %vm2839_vm15, %v2840_v42, %v2838_v51  ;;  %v11352_v60 = vpop.permute.xlu0 %603  ;;  %v17374_v44 = vld [vmem:[#allocation32_spill] sm:$0xff]  ;;  %v11370_v3 = vld [vmem:[%s16584_s2 + $0x398] sm:$0xff] }
 0x2c9   : > { %17367 = vst [vmem:[#allocation183_spill] sm:$0xff] %v11337_v56  ;;  %4224 = vperm.xlu1 %8067, %v11321_v40   ;;  %v11356_v62 = vmul.f32 %v11163_v14, %v2655_v49  ;;  %v2663_v38 = vmul.f32 %v9905_v63, %v17373_v53  ;;  %v2665_v9 = vmul.f32 %v9905_v63, %v17374_v44  ;;  %v11383_v49 = vpop.permute.xlu1 %3482  ;;  %v17383_v44 = vld [vmem:[#allocation25_spill] sm:$0xff] }
 0x2ca   : > { %17369 = vst [vmem:[#allocation185_spill] sm:$0xff] %v11344_v48  ;;  %17370 = vst [vmem:[#allocation188_spill] sm:$0xff] %v11346_v34  ;;  %v2855_v37 = vsel %vm2853_vm1, %v2854_v27, %v2852_v30  ;;  %1878 = vperm.xlu0 %8073, %v8320_v31   ;;  %v11372_v14 = vmul.f32 %v3612_v6, %v3612_v6  ;;  %v11375_v42 = vmul.f32 %v11181_v43, %v2657_v57  ;;  %v17381_v27 = vld [vmem:[#allocation18_spill] sm:$0xff] }
 0x2cb   : > { %17372 = vst [vmem:[#allocation186_spill] sm:$0xff] %v11356_v62  ;;  %v11379_v45 = vmul.f32 %v10764_v10, %v17377_v7  ;;  %v2667_v30 = vmul.f32 %v9905_v63, %v17379_v41  ;;  %v11386_v51 = vmul.f32 %v11206_v52, %v2659_v25  ;;  %v11390_v53 = vmul.f32 %v10764_v10, %v17381_v27 }
 0x2cc   : > { %17375 = vst [vmem:[#allocation187_spill] sm:$0xff] %v11372_v14  ;;  %17376 = vst [vmem:[#allocation190_spill] sm:$0xff] %v11375_v42  ;;  %v2669_v43 = vmul.f32 %v9905_v63, %v10094_v24  ;;  %v2671_v6 = vmul.f32 %v9905_v63, %v10128_v33  ;;  %v11397_v57 = vmul.f32 %v11224_v5, %v2661_v0  ;;  %v11407_v7 = vpop.permute.xlu0 %608  ;;  %v17385_v33 = vld [vmem:[#allocation38_spill] sm:$0xff] }
 0x2cd   : > { %17378 = vst [vmem:[#allocation191_spill] sm:$0xff] %v11379_v45  ;;  %17380 = vst [vmem:[#allocation193_spill] sm:$0xff] %v11386_v51  ;;  %v11401_v31 = vmul.f32 %v10764_v10, %v17383_v44  ;;  %v2673_v52 = vmul.f32 %v9905_v63, %v10157_v13  ;;  %v3134_v25 = vsub.f32 %v10191_v1, %v10864_v18  ;;  %4234 = vperm.xlu1 %8067, %v11370_v3   ;;  %v8321_v13 = vld [vmem:[%s16584_s2 + $0x188] sm:$0xff]  ;;  %v11442_v27 = vpop.permute.xlu1 %3490 }
 0x2ce   : > { %17382 = vst [vmem:[#allocation194_spill] sm:$0xff] %v11397_v57  ;;  %v11411_v24 = vmul.f32 %v11250_v28, %v2663_v38  ;;  %v11415_v5 = vmul.f32 %v10764_v10, %v17385_v33  ;;  %v11418_v0 = vmul.f32 %v11265_v50, %v2665_v9  ;;  %v3135_v63 = vsub.f32 %v10227_v46, %v10864_v18  ;;  %v11428_v1 = vld [vmem:[%s16584_s2 + $0x3a8] sm:$0xff]  ;;  %v17390_v50 = vld [vmem:[#allocation41_spill] sm:$0xff] }
 0x2cf   : > { %1888 = vperm.xlu0 %8073, %v8321_v13   ;;  %v17387_v28 = vld [vmem:[#allocation36_spill] sm:$0xff]  ;;  %v11434_v41 = vmul.f32 %v2813_v11, %v2667_v30  ;;  %v11438_v9 = vmul.f32 %v10764_v10, %v17390_v50  ;;  %v3137_v46 = vsub.f32 %v10260_v16, %v10864_v18  ;;  %v11444_v44 = vmul.f32 %v2827_v29, %v2669_v43 }
 0x2d0   : > { %17384 = vst [vmem:[#allocation196_spill] sm:$0xff] %v11411_v24  ;;  %17386 = vst [vmem:[#allocation198_spill] sm:$0xff] %v11418_v0  ;;  %v11432_v38 = vmul.f32 %v10764_v10, %v17387_v28  ;;  %v11448_v33 = vmul.f32 %v10764_v10, %v10117_v21  ;;  %v11450_v13 = vmul.f32 %v2841_v23, %v2671_v6  ;;  %v17395_v28 = vld [vmem:[#allocation45_spill] sm:$0xff]  ;;  %v11468_v21 = vpop.permute.xlu0 %623  ;;  %v17417_v57 = vld [vmem:[#allocation20_spill] sm:$0xff] }
 0x2d1   : > { %17389 = vst [vmem:[#allocation21_spill] sm:$0xff] %v11434_v41  ;;  %17391 = vst [vmem:[#allocation27_spill] sm:$0xff] %v11438_v9  ;;  %v11454_v11 = vmul.f32 %v10764_v10, %v17395_v28  ;;  %v11456_v30 = vmul.f32 %v2855_v37, %v2673_v52  ;;  %v11460_v50 = vmul.f32 %v10764_v10, %v10176_v32  ;;  %4244 = vperm.xlu1 %8067, %v11428_v1   ;;  %v11485_v6 = vld [vmem:[%s16584_s2 + $0x3b8] sm:$0xff] }
 0x2d2   : > { %17388 = vst [vmem:[#allocation13_spill] sm:$0xff] %v11432_v38  ;;  %17392 = vst [vmem:[#allocation32_spill] sm:$0xff] %v11444_v44  ;;  %v11462_v16 = vmul.f32 %v3134_v25, %v3134_v25  ;;  %v11466_v29 = vmul.f32 %v10764_v10, %v10209_v22  ;;  %v11471_v23 = vmul.f32 %v3135_v63, %v3135_v63  ;;  %v8322_v22 = vld [vmem:[%s16584_s2 + $0x198] sm:$0xff]  ;;  %v11497_v25 = vpop.permute.xlu1 %3498  ;;  %v17401_v63 = vld [vmem:[#allocation56_spill] sm:$0xff] }
 0x2d3   : > { %17393 = vst [vmem:[#allocation12_spill] sm:$0xff] %v11448_v33  ;;  %17394 = vst [vmem:[#allocation39_spill] sm:$0xff] %v11450_v13  ;;  %v3139_v37 = vsub.f32 %v10296_v59, %v10864_v18  ;;  %v3141_v43 = vsub.f32 %v10336_v15, %v10864_v18  ;;  %v4758_v32 = vsub.f32 %v10358_v19, %v10974_v17  ;;  %1898 = vperm.xlu0 %8073, %v8322_v22   ;;  %v17403_v22 = vld [vmem:[#allocation64_spill] sm:$0xff]  ;;  %v17408_v13 = vld [vmem:[#allocation85_spill] sm:$0xff] }
 0x2d4   : > { %17396 = vst [vmem:[#allocation18_spill] sm:$0xff] %v11454_v11  ;;  %17397 = vst [vmem:[#allocation25_spill] sm:$0xff] %v11456_v30  ;;  %v11489_v52 = vmul.f32 %v10764_v10, %v10246_v54  ;;  %v11491_v59 = vmul.f32 %v3137_v46, %v3137_v46  ;;  %v3143_v15 = vsub.f32 %v10378_v4, %v10864_v18  ;;  %v17404_v54 = vld [vmem:[#allocation69_spill] sm:$0xff]  ;;  %v11517_v41 = vpop.permute.xlu0 %633  ;;  %v17421_v11 = vmov 1  }
 0x2d5   : > { %17398 = vst [vmem:[#allocation38_spill] sm:$0xff] %v11460_v50  ;;  %17399 = vst [vmem:[#allocation36_spill] sm:$0xff] %v11466_v29  ;;  %v4761_v19 = vsub.f32 %v10398_v61, %v10974_v17  ;;  %v11501_v28 = vmul.f32 %v10764_v10, %v17401_v63  ;;  %v3145_v14 = vsub.f32 %v17403_v22, %v10864_v18  ;;  %v17405_v46 = vld [vmem:[#allocation73_spill] sm:$0xff]  ;;  %v17407_v61 = vld [vmem:[#allocation82_spill] sm:$0xff]  ;;  %4254 = vperm.xlu1 %8067, %v11485_v6  }
 0x2d6   : > { %17400 = vst [vmem:[#allocation41_spill] sm:$0xff] %v11489_v52  ;;  %v4763_v34 = vsub.f32 %v17404_v54, %v10974_v17  ;;  %v3147_v56 = vsub.f32 %v17405_v46, %v10864_v18  ;;  %v17406_v4 = vld [vmem:[#allocation77_spill] sm:$0xff]  ;;  %v3149_v30 = vsub.f32 %v17407_v61, %v10864_v18  ;;  %v4767_v44 = vsub.f32 %v17408_v13, %v10974_v17  ;;  %v17410_v54 = vld [vmem:[#allocation60_spill] sm:$0xff]  ;;  %v17415_v29 = vld [vmem:[#allocation98_spill] sm:$0xff]  ;;  %v11541_v24 = vpop.permute.xlu1 %3506 }
 0x2d7   : > { %17402 = vst [vmem:[#allocation45_spill] sm:$0xff] %v11501_v28  ;;  %v4765_v45 = vsub.f32 %v17406_v4, %v10974_v17  ;;  %v17409_v63 = vld [vmem:[#allocation89_spill] sm:$0xff]  ;;  %v11520_v22 = vmul.f32 %v3139_v37, %v3139_v37  ;;  %v11524_v46 = vmul.f32 %v10764_v10, %v17410_v54  ;;  %v11526_v4 = vmul.f32 %v3141_v43, %v3141_v43  ;;  %v8323_v13 = vld [vmem:[%s16584_s2 + $0x1a8] sm:$0xff] }
 0x2d8   : > { %v3151_v28 = vsub.f32 %v17409_v63, %v10864_v18  ;;  %v11528_v0 = vmul.f32 %v4758_v32, %v4758_v32  ;;  %1908 = vperm.xlu0 %8073, %v8323_v13   ;;  %v11533_v61 = vmul.f32 %v3143_v15, %v3143_v15  ;;  %v11535_v63 = vmul.f32 %v4761_v19, %v4761_v19  ;;  %v17414_v37 = vld [vmem:[#allocation93_spill] sm:$0xff]  ;;  %v17418_v13 = vld [vmem:[#allocation118_spill] sm:$0xff] }
 0x2d9   : > { %17411 = vst [vmem:[#allocation56_spill] sm:$0xff] %v11524_v46  ;;  %v4769_v52 = vsub.f32 %v17414_v37, %v10974_v17  ;;  %v3153_v54 = vsub.f32 %v17415_v29, %v10864_v18  ;;  %v11543_v43 = vmul.f32 %v3145_v14, %v3145_v14  ;;  %v11545_v32 = vmul.f32 %v4763_v34, %v4763_v34  ;;  %v11559_v29 = vpop.permute.xlu0 %643  ;;  %v17422_v34 = vld [vmem:[#allocation102_spill] sm:$0xff] }
 0x2da   : > { %17412 = vst [vmem:[#allocation64_spill] sm:$0xff] %v11528_v0  ;;  %17413 = vst [vmem:[#allocation69_spill] sm:$0xff] %v11535_v63  ;;  %v11547_v0 = vmul.f32 %v3147_v56, %v3147_v56  ;;  %v3362_v15 = vsub.f32 %v17418_v13, %v17417_v57  ;;  %v11551_v50 = vmul.f32 %v4765_v45, %v4765_v45  ;;  %8068 = vset.pattern.permute.xlu1 %v17421_v11  ;;  %v17423_v56 = vld [vmem:[#allocation106_spill] sm:$0xff] }
 0x2db   : > { %17416 = vst [vmem:[#allocation73_spill] sm:$0xff] %v11545_v32  ;;  %v11553_v19 = vmul.f32 %v3149_v30, %v3149_v30  ;;  %v11555_v63 = vmul.f32 %v4767_v44, %v4767_v44  ;;  %v11557_v37 = vmul.f32 %v3151_v28, %v3151_v28  ;;  %v4771_v14 = vsub.f32 %v17422_v34, %v10974_v17  ;;  %v8324_v44 = vld [vmem:[%s16584_s2 + $0x1b8] sm:$0xff] }
 0x2dc   : > { %17419 = vst [vmem:[#allocation77_spill] sm:$0xff] %v11551_v50  ;;  %v3155_v32 = vsub.f32 %v17423_v56, %v10864_v18  ;;  %v3590_v45 = vsub.f32 %v11242_v58, %v10640_v8  ;;  %1918 = vperm.xlu0 %8073, %v8324_v44   ;;  %4398 = vperm.xlu1 %8068, %v10948_v12   ;;  %v17425_v11 = vld [vmem:[#allocation122_spill] sm:$0xff]  ;;  %v11580_v56 = vpop.permute.xlu1 %3514  ;;  %v17427_v50 = vld [vmem:[#allocation113_spill] sm:$0xff]  ;;  %v17428_v12 = vld [vmem:[#allocation115_spill] sm:$0xff] }
 0x2dd   : > { %17420 = vst [vmem:[#allocation82_spill] sm:$0xff] %v11555_v63  ;;  %v11572_v30 = vmul.f32 %v4769_v52, %v4769_v52  ;;  %v11574_v28 = vmul.f32 %v3153_v54, %v3153_v54  ;;  %v3363_v13 = vsub.f32 %v17425_v11, %v17417_v57  ;;  %v3365_v34 = vsub.f32 %v10804_v35, %v17417_v57  ;;  %v17426_v58 = vld [vmem:[#allocation110_spill] sm:$0xff]  ;;  %v17429_v54 = vld [vmem:[#allocation120_spill] sm:$0xff] }
 0x2de   : > { %v4773_v63 = vsub.f32 %v17426_v58, %v10974_v17  ;;  %v3157_v44 = vsub.f32 %v17427_v50, %v10864_v18  ;;  %v4775_v52 = vsub.f32 %v17428_v12, %v10974_v17  ;;  %v4777_v51 = vsub.f32 %v17429_v54, %v10974_v17  ;;  %v17430_v11 = vld [vmem:[#allocation124_spill] sm:$0xff]  ;;  %v11596_v58 = vpop.permute.xlu0 %653 }
 0x2df   : > { %17424 = vst [vmem:[#allocation85_spill] sm:$0xff] %v11572_v30  ;;  %v3394_v30 = vmul.f32 %v3362_v15, %v3362_v15  ;;  %v4779_v33 = vsub.f32 %v17430_v11, %v10974_v17  ;;  %v3367_v35 = vsub.f32 %v10835_v47, %v17417_v57  ;;  %v3369_v42 = vsub.f32 %v10873_v2, %v17417_v57  ;;  %v8325_v15 = vld [vmem:[%s16584_s2 + $0x200] sm:$0xff]  ;;  %v17432_v47 = vld [vmem:[#allocation129_spill] sm:$0xff] }
 0x2e0   : > { %v11598_v9 = vmul.f32 %v4771_v14, %v4771_v14  ;;  %v11600_v50 = vmul.f32 %v3155_v32, %v3155_v32  ;;  %v3622_v12 = vmul.f32 %v3590_v45, %v3590_v45  ;;  %2971 = vperm.xlu0 %8073, %v8325_v15   ;;  %4406 = vperm.xlu1 %8068, %v10991_v26   ;;  %v11610_v14 = vpop.permute.xlu1 %3522  ;;  %v8328_v38 = vld [vmem:[%s9841_s23 + $0xc] sm:$0x7] }
 0x2e1   : > { %v3395_v54 = vmul.f32 %v3363_v13, %v3363_v13  ;;  %v3397_v11 = vmul.f32 %v3365_v34, %v3365_v34  ;;  %v4781_v18 = vsub.f32 %v17432_v47, %v10974_v17  ;;  %v3371_v2 = vsub.f32 %v10905_v20, %v17417_v57 }
 0x2e2   : > { %17431 = vst [vmem:[#allocation89_spill] sm:$0xff] %v11598_v9  ;;  %v11612_v32 = vmul.f32 %v4773_v63, %v4773_v63  ;;  %v11614_v45 = vmul.f32 %v3157_v44, %v3157_v44  ;;  %v11616_v9 = vmul.f32 %v4775_v52, %v4775_v52  ;;  %v3426_v15 = vadd.f32 %v3394_v30, %v11462_v16  ;;  %v11623_v47 = vpop.permute.xlu0 %663  ;;  %v8326_v16 = vld [vmem:[%s16584_s2 + $0x218] sm:$0xff] }
 0x2e3   : > { %v11619_v62 = vmul.f32 %v4777_v51, %v4777_v51  ;;  %v11621_v26 = vmul.f32 %v4779_v33, %v4779_v33  ;;  %v3399_v13 = vmul.f32 %v3367_v35, %v3367_v35  ;;  %v3401_v34 = vmul.f32 %v3369_v42, %v3369_v42  ;;  %v17437_v51 = vld [vmem:[#allocation152_spill] sm:$0xff]  ;;  %v17439_v52 = vld [vmem:[#allocation134_spill] sm:$0xff]  ;;  %v17440_v35 = vld [vmem:[#allocation171_spill] sm:$0xff] }
 0x2e4   : > { %17433 = vst [vmem:[#allocation60_spill] sm:$0xff] %v11612_v32  ;;  %17434 = vst [vmem:[#allocation93_spill] sm:$0xff] %v11616_v9  ;;  %v3373_v20 = vsub.f32 %v10943_v55, %v17417_v57  ;;  %v11627_v17 = vadd.f32 %v3622_v12, %v3426_v15  ;;  %v3593_v63 = vsub.f32 %v11332_v36, %v10640_v8  ;;  %2986 = vperm.xlu0 %8073, %v8326_v16   ;;  %v11639_v55 = vpop.permute.xlu1 %3530  ;;  %v17442_v36 = vld [vmem:[#allocation140_spill] sm:$0xff]  ;;  %v17443_v16 = vld [vmem:[#allocation177_spill] sm:$0xff] }
 0x2e5   : > { %17435 = vst [vmem:[#allocation98_spill] sm:$0xff] %v11619_v62  ;;  %17436 = vst [vmem:[#allocation20_spill] sm:$0xff] %v11621_v26  ;;  %4410 = vperm.xlu1 %8068, %v17437_v51   ;;  %v3427_v33 = vadd.f32 %v3395_v54, %v11471_v23  ;;  %v3429_v42 = vadd.f32 %v3397_v11, %v11491_v59  ;;  %v11637_v30 = vmul.f32 %v4781_v18, %v4781_v18  ;;  %v17444_v51 = vld [vmem:[#allocation195_spill] sm:$0xff] }
 0x2e6   : > { %v3403_v44 = vmul.f32 %v3371_v2, %v3371_v2  ;;  %v11643_v12 = vmul.f32 %v17440_v35, %v17439_v52  ;;  %v3375_v15 = vsub.f32 %v17442_v36, %v17417_v57  ;;  %v3591_v26 = vsub.f32 %v17443_v16, %v10640_v8  ;;  %v17445_v54 = vld [vmem:[#allocation139_spill] sm:$0xff]  ;;  %v11663_v36 = vpop.permute.xlu0 %673 }
 0x2e7   : > { %17438 = vst [vmem:[#allocation118_spill] sm:$0xff] %v11637_v30  ;;  %v765_v23 = vsub.f32 %v11352_v60, %v17444_v51  ;;  %v11652_v59 = vadd.f32 %v3399_v13, %v11520_v22  ;;  %v11655_v18 = vadd.f32 %v3401_v34, %v11526_v4  ;;  %v11659_v11 = vmul.f32 %v17440_v35, %v17445_v54  ;;  %v17447_v2 = vld [vmem:[#allocation151_spill] sm:$0xff]  ;;  %v17449_v34 = vld [vmem:[#allocation138_spill] sm:$0xff] }
 0x2e8   : > { %17441 = vst [vmem:[#allocation102_spill] sm:$0xff] %v11643_v12  ;;  %v3377_v52 = vsub.f32 %v17447_v2, %v17417_v57  ;;  %v3405_v30 = vmul.f32 %v3373_v20, %v3373_v20  ;;  %8125 = vrsqrt.f32 %v11627_v17  ;;  %v3625_v16 = vmul.f32 %v3593_v63, %v3593_v63  ;;  %v8327_v22 = vld [vmem:[%s16584_s2 + $0x228] sm:$0xff]  ;;  %v11683_v62 = vpop.permute.xlu1 %3538 }
 0x2e9   : > { %17446 = vst [vmem:[#allocation106_spill] sm:$0xff] %v11659_v11  ;;  %v766_v60 = vsub.f32 %v11407_v7, %v17444_v51  ;;  %2996 = vperm.xlu0 %8073, %v8327_v22   ;;  %v17448_v4 = vld [vmem:[#allocation155_spill] sm:$0xff]  ;;  %v11673_v13 = vadd.f32 %v3403_v44, %v11533_v61  ;;  %v11677_v20 = vmul.f32 %v17440_v35, %v17449_v34  ;;  %v17451_v63 = vld [vmem:[#allocation168_spill] sm:$0xff]  ;;  %vm3858_vm2 = vcmp.eq.f32.partialorder %v11627_v17, inf }
 0x2ea   : > { %4418 = vperm.xlu1 %8068, %v17448_v4   ;;  %v3379_v54 = vsub.f32 %v17451_v63, %v17417_v57  ;;  %v17452_v7 = vld [vmem:[#allocation172_spill] sm:$0xff]  ;;  %v17453_v9 = vld [vmem:[#allocation143_spill] sm:$0xff]  ;;  %v3407_v4 = vmul.f32 %v3375_v15, %v3375_v15  ;;  %v3623_v32 = vmul.f32 %v3591_v26, %v3591_v26  ;;  %v797_v61 = vmul.f32 %v765_v23, %v765_v23  ;;  %v11693_v63 = vpop.permute.xlu0 %683  ;;  %v8329_v15 = vld [vmem:[%s16584_s2 + $0x238] sm:$0xff] }
 0x2eb   : > { %17450 = vst [vmem:[#allocation122_spill] sm:$0xff] %v11677_v20  ;;  %v3381_v2 = vsub.f32 %v17452_v7, %v17417_v57  ;;  %v11687_v22 = vmul.f32 %v17440_v35, %v17453_v9  ;;  %v3409_v44 = vmul.f32 %v3377_v52, %v3377_v52  ;;  %v17455_v11 = vld [vmem:[#allocation176_spill] sm:$0xff]  ;;  %v17456_v20 = vld [vmem:[#allocation162_spill] sm:$0xff]  ;;  %v11700_v48 = vadd.f32 %v3405_v30, %v11543_v43 }
 0x2ec   : > { %v3383_v34 = vsub.f32 %v17455_v11, %v17417_v57  ;;  %v3385_v12 = vsub.f32 %v17456_v20, %v17417_v57  ;;  %v17457_v7 = vld [vmem:[#allocation192_spill] sm:$0xff]  ;;  %v11702_v9 = vadd.f32 %v3625_v16, %v3429_v42  ;;  %v798_v26 = vmul.f32 %v766_v60, %v766_v60  ;;  %v11714_v30 = vpop.permute.xlu1 %3546 }
 0x2ed   : > { %17454 = vst [vmem:[#allocation110_spill] sm:$0xff] %v11687_v22  ;;  %v11697_v46 = vrot.slane %v8328_v38, %v17457_v7  ;;  %3006 = vperm.xlu0 %8073, %v8329_v15   ;;  %v17459_v23 = vld [vmem:[#allocation156_spill] sm:$0xff]  ;;  %v3411_v52 = vmul.f32 %v3379_v54, %v3379_v54  ;;  %v3413_v38 = vmul.f32 %v3381_v2, %v3381_v2  ;;  %v17463_v54 = vld [vmem:[#allocation153_spill] sm:$0xff]  ;;  %vm3860_vm3 = vcmp.eq.f32.partialorder %v11627_v17, 0.0 }
 0x2ee   : > { %4426 = vperm.xlu1 %8068, %v17459_v23   ;;  %v17460_v57 = vld [vmem:[#allocation144_spill] sm:$0xff]  ;;  %v769_v43 = vsub.f32 %v11468_v21, %v17444_v51  ;;  %v11717_v42 = vadd.f32 %v3407_v4, %v11547_v0  ;;  %v11719_v16 = vadd.f32 %v3623_v32, %v3427_v33  ;;  %v3595_v7 = vsub.f32 %v11383_v49, %v10640_v8  ;;  %v17465_v0 = vld [vmem:[#allocation154_spill] sm:$0xff]  ;;  %v17467_v33 = vld [vmem:[#allocation15_spill] sm:$0xff] }
 0x2ef   : > { %17458 = vst [vmem:[#allocation113_spill] sm:$0xff] %v11697_v46  ;;  %v11710_v11 = vmul.f32 %v17440_v35, %v17460_v57  ;;  %v17462_v60 = vld [vmem:[#allocation40_spill] sm:$0xff]  ;;  %v11725_v15 = vadd.f32 %v3409_v44, %v11553_v19  ;;  %v11729_v2 = vmul.f32 %v17440_v35, %v17463_v54  ;;  %v3415_v21 = vmul.f32 %v3383_v34, %v3383_v34  ;;  %v11731_v57 = vpop.permute.xlu0 %693  ;;  %v17469_v34 = vld [vmem:[#allocation174_spill] sm:$0xff]  ;;  %v17518_v46 = vld [vmem:[#allocation133_spill] sm:$0xff] }
 0x2f0   : > { %v1057_v20 = vadd.f32 %v17462_v60, %v797_v61  ;;  %v3417_v23 = vmul.f32 %v3385_v12, %v3385_v12  ;;  %v11735_v32 = vmul.f32 %v17440_v35, %v17465_v0  ;;  %8127 = vrsqrt.f32 %v11702_v9  ;;  %v8330_v19 = vld [vmem:[%s16584_s2 + $0x248] sm:$0xff]  ;;  %v17468_v61 = vld [vmem:[#allocation178_spill] sm:$0xff]  ;;  %v11755_v54 = vpop.permute.xlu1 %3554 }
 0x2f1   : > { %17461 = vst [vmem:[#allocation115_spill] sm:$0xff] %v11710_v11  ;;  %17464 = vst [vmem:[#allocation120_spill] sm:$0xff] %v11729_v2  ;;  %v1058_v4 = vadd.f32 %v17467_v33, %v798_v26  ;;  %v3597_v49 = vsub.f32 %v11442_v27, %v10640_v8  ;;  %3016 = vperm.xlu0 %8073, %v8330_v19   ;;  %v11746_v12 = vadd.f32 %v3411_v52, %v11557_v37  ;;  %v17471_v0 = vld [vmem:[#allocation52_spill] sm:$0xff] }
 0x2f2   : > { %17466 = vst [vmem:[#allocation124_spill] sm:$0xff] %v11735_v32  ;;  %4434 = vperm.xlu1 %8068, %v17468_v61   ;;  %v11749_v44 = vadd.f32 %v3413_v38, %v11574_v28  ;;  %v11753_v60 = vmul.f32 %v17440_v35, %v17469_v34  ;;  %v801_v26 = vmul.f32 %v769_v43, %v769_v43  ;;  %v8126_v27 = vpop.eup %8125  ;;  %8129 = vrsqrt.f32 %v11719_v16  ;;  %v17472_v52 = vld [vmem:[#allocation160_spill] sm:$0xff]  ;;  %v17474_v61 = vld [vmem:[#allocation167_spill] sm:$0xff] }
 0x2f3   : > { %v11759_v33 = vadd.f32 %v17471_v0, %v1057_v20  ;;  %v3627_v19 = vmul.f32 %v3595_v7, %v3595_v7  ;;  %v771_v37 = vsub.f32 %v11517_v41, %v17444_v51  ;;  %v11764_v28 = vadd.f32 %v3415_v21, %v11600_v50  ;;  %v11777_v20 = vpop.permute.xlu0 %703  ;;  %v17476_v7 = vld [vmem:[#allocation14_spill] sm:$0xff] }
 0x2f4   : > { %17470 = vst [vmem:[#allocation129_spill] sm:$0xff] %v11753_v60  ;;  %v11768_v38 = vmul.f32 %v17440_v35, %v17472_v52  ;;  %v11771_v43 = vadd.f32 %v3417_v23, %v11614_v45  ;;  %v11775_v34 = vmul.f32 %v17440_v35, %v17474_v61  ;;  %v11780_v0 = vadd.f32 %v17476_v7, %v1058_v4  ;;  %v8331_v21 = vld [vmem:[%s16584_s2 + $0x258] sm:$0xff]  ;;  %v17477_v45 = vld [vmem:[#allocation163_spill] sm:$0xff]  ;;  %v17478_v23 = vld [vmem:[#allocation184_spill] sm:$0xff] }
 0x2f5   : > { %v3629_v41 = vmul.f32 %v3597_v49, %v3597_v49  ;;  %v773_v50 = vsub.f32 %v11559_v29, %v17444_v51  ;;  %3026 = vperm.xlu0 %8073, %v8331_v21   ;;  %v11790_v52 = vmul.f32 %v17440_v35, %v17478_v23  ;;  %v17480_v61 = vld [vmem:[#allocation16_spill] sm:$0xff]  ;;  %v3599_v4 = vsub.f32 %v11497_v25, %v10640_v8  ;;  %v11795_v49 = vpop.permute.xlu1 %3690  ;;  %v17481_v23 = vld [vmem:[#allocation63_spill] sm:$0xff] }
 0x2f6   : > { %17473 = vst [vmem:[#allocation152_spill] sm:$0xff] %v11768_v38  ;;  %17475 = vst [vmem:[#allocation134_spill] sm:$0xff] %v11775_v34  ;;  %4442 = vperm.xlu1 %8068, %v17477_v45   ;;  %v1061_v34 = vadd.f32 %v17480_v61, %v801_v26  ;;  %v3857_v29 = vmul.f32 %v8126_v27, %v11627_v17  ;;  %8131 = vrsqrt.f32 %v11759_v33  ;;  %v17485_v38 = vld [vmem:[#allocation17_spill] sm:$0xff]  ;;  %vm3879_vm4 = vcmp.eq.f32.partialorder %v11702_v9, inf }
 0x2f7   : > { %17479 = vst [vmem:[#allocation140_spill] sm:$0xff] %v11790_v52  ;;  %v11800_v7 = vadd.f32 %v3627_v19, %v11652_v59  ;;  %v803_v21 = vmul.f32 %v771_v37, %v771_v37  ;;  %v775_v45 = vsub.f32 %v11596_v58, %v17444_v51  ;;  %v11806_v52 = vmul.f32 %v17440_v35, %v17481_v23  ;;  %v11812_v26 = vpop.permute.xlu0 %713  ;;  %v8332_v58 = vld [vmem:[%s16584_s2 + $0x268] sm:$0xff]  ;;  %v17483_v37 = vld [vmem:[#allocation182_spill] sm:$0xff] }
 0x2f8   : > { %v3601_v25 = vsub.f32 %v11541_v24, %v10640_v8  ;;  %v11815_v59 = vadd.f32 %v3629_v41, %v11655_v18  ;;  %v805_v27 = vmul.f32 %v773_v50, %v773_v50  ;;  %v3861_v19 = vand.u32 2147483648, %v11627_v17  ;;  %v17484_v24 = vld [vmem:[#allocation119_spill] sm:$0xff] }
 0x2f9   : > { %17482 = vst [vmem:[#allocation177_spill] sm:$0xff] %v11806_v52  ;;  %3036 = vperm.xlu0 %8073, %v8332_v58   ;;  %8133 = vrsqrt.f32 %v11780_v0  ;;  %v11824_v61 = vadd.f32 %v17484_v24, %v1061_v34  ;;  %v3631_v23 = vmul.f32 %v3599_v4, %v3599_v4  ;;  %v3859_v52 = vsel %vm3858_vm2, %v11627_v17, %v3857_v29  ;;  %v11827_v18 = vpop.permute.xlu1 %3698 }
 0x2fa   : > { %4450 = vperm.xlu1 %8068, %v17483_v37   ;;  %v8128_v50 = vpop.eup %8127  ;;  %8135 = vrsqrt.f32 %v11800_v7  ;;  %v1063_v60 = vadd.f32 %v17485_v38, %v803_v21  ;;  %v807_v58 = vmul.f32 %v775_v45, %v775_v45  ;;  %v777_v37 = vsub.f32 %v11623_v47, %v17444_v51  ;;  %v17486_v38 = vld [vmem:[#allocation19_spill] sm:$0xff] }
 0x2fb   : > { %v3633_v32 = vmul.f32 %v3601_v25, %v3601_v25  ;;  %v779_v34 = vsub.f32 %v11663_v36, %v17444_v51  ;;  %v11836_v4 = vpop.permute.xlu0 %723  ;;  %vm3865_vm5 = vcmp.eq.f32.partialorder %v11719_v16, inf  ;;  %8137 = vrsqrt.f32 %v11815_v59  ;;  %v8333_v36 = vld [vmem:[%s16584_s2 + $0x278] sm:$0xff] }
 0x2fc   : > { %v8130_v24 = vpop.eup %8129  ;;  %v1065_v21 = vadd.f32 %v17486_v38, %v805_v27  ;;  %v3603_v47 = vsub.f32 %v11580_v56, %v10640_v8  ;;  %v11847_v45 = vsel %vm3860_vm3, %v3861_v19, %v3859_v52  ;;  %v17487_v25 = vld [vmem:[#allocation173_spill] sm:$0xff]  ;;  %vm3881_vm6 = vcmp.eq.f32.partialorder %v11702_v9, 0.0  ;;  %v17489_v38 = vld [vmem:[#allocation22_spill] sm:$0xff] }
 0x2fd   : > { %3046 = vperm.xlu0 %8073, %v8333_v36   ;;  %v11855_v41 = vadd.f32 %v3631_v23, %v11673_v13  ;;  %v11857_v27 = vpop.permute.xlu1 %3706  ;;  %8139 = vrsqrt.f32 %v11824_v61  ;;  %v3878_v17 = vmul.f32 %v8128_v50, %v11702_v9  ;;  %v17488_v52 = vld [vmem:[#allocation121_spill] sm:$0xff]  ;;  %v1067_v36 = vadd.f32 %v17489_v38, %v807_v58  ;;  %v17492_v38 = vld [vmem:[#allocation23_spill] sm:$0xff] }
 0x2fe   : > { %4458 = vperm.xlu1 %8068, %v17487_v25   ;;  %v11863_v19 = vadd.f32 %v17488_v52, %v1063_v60  ;;  %v809_v29 = vmul.f32 %v777_v37, %v777_v37  ;;  %v781_v25 = vsub.f32 %v11693_v63, %v17444_v51  ;;  %vm1515_vm7 = vcmp.eq.f32.partialorder %v11759_v33, inf  ;;  %v17490_v52 = vld [vmem:[#allocation150_spill] sm:$0xff] }
 0x2ff   : > { %v11870_v13 = vadd.f32 %v3633_v32, %v11700_v48  ;;  %v811_v23 = vmul.f32 %v779_v34, %v779_v34  ;;  %v11872_v35 = vpop.permute.xlu0 %1324  ;;  %v3864_v56 = vmul.f32 %v8130_v24, %v11719_v16  ;;  %v11877_v2 = vadd.f32 %v17490_v52, %v1065_v21  ;;  %v8334_v48 = vld [vmem:[%s16584_s2 + $0x288] sm:$0xff] }
 0x300   : > { %v8132_v60 = vpop.eup %8131  ;;  %v3635_v58 = vmul.f32 %v3603_v47, %v3603_v47  ;;  %v783_v63 = vsub.f32 %v11731_v57, %v17444_v51  ;;  %vm3867_vm8 = vcmp.eq.f32.partialorder %v11719_v16, 0.0  ;;  %8141 = vrsqrt.f32 %v11855_v41  ;;  %v17491_v21 = vld [vmem:[#allocation123_spill] sm:$0xff] }
 0x301   : > { %3056 = vperm.xlu0 %8073, %v8334_v48   ;;  %v3605_v37 = vsub.f32 %v11610_v14, %v10640_v8  ;;  %vm1522_vm9 = vcmp.eq.f32.partialorder %v11780_v0, inf  ;;  %v11891_v34 = vpop.permute.xlu1 %3714  ;;  %v3880_v24 = vsel %vm3879_vm4, %v11702_v9, %v3878_v17  ;;  %v11898_v47 = vadd.f32 %v17491_v21, %v1067_v36  ;;  %v17493_v14 = vld [vmem:[#allocation26_spill] sm:$0xff] }
 0x302   : > { %4466 = vperm.xlu1 %8068, %v11321_v40   ;;  %v1069_v52 = vadd.f32 %v17492_v38, %v809_v29  ;;  %v813_v48 = vmul.f32 %v781_v25, %v781_v25  ;;  %8143 = vrsqrt.f32 %v11863_v19  ;;  %v1071_v32 = vadd.f32 %v17493_v14, %v811_v23  ;;  %v8335_v29 = vld [vmem:[%s16584_s2 + $0x298] sm:$0xff] }
 0x303   : > { %v8134_v40 = vpop.eup %8133  ;;  %8145 = vrsqrt.f32 %v11870_v13  ;;  %v3613_v57 = vsub.f32 %v11755_v54, %v10640_v8  ;;  %v11906_v50 = vpop.permute.xlu0 %1339  ;;  %v1514_v17 = vmul.f32 %v8132_v60, %v11759_v33  ;;  %v11910_v36 = vadd.f32 %v3635_v58, %v11717_v42  ;;  %v17495_v38 = vld [vmem:[#allocation126_spill] sm:$0xff] }
 0x304   : > { %v8136_v11 = vpop.eup %8135  ;;  %v815_v21 = vmul.f32 %v783_v63, %v783_v63  ;;  %8147 = vrsqrt.f32 %v11877_v2  ;;  %v3866_v54 = vsel %vm3865_vm5, %v11719_v16, %v3864_v56  ;;  %v3637_v25 = vmul.f32 %v3605_v37, %v3605_v37 }
 0x305   : > { %3066 = vperm.xlu0 %8073, %v8335_v29   ;;  %v785_v23 = vsub.f32 %v11777_v20, %v17444_v51  ;;  %v1521_v42 = vmul.f32 %v8134_v40, %v11780_v0  ;;  %v11923_v60 = vpop.permute.xlu1 %3722  ;;  %v17494_v58 = vand.u32 2147483648, %v11702_v9  ;;  %vm1517_vm10 = vcmp.eq.f32.partialorder %v11759_v33, 0.0  ;;  %v17496_v20 = vld [vmem:[#allocation28_spill] sm:$0xff]  ;;  %v17497_v29 = vld [vmem:[#allocation127_spill] sm:$0xff] }
 0x306   : > { %4474 = vperm.xlu1 %8068, %v11370_v3   ;;  %v11930_v3 = vpop.eup %8137  ;;  %v11933_v14 = vadd.f32 %v17495_v38, %v1069_v52  ;;  %v3607_v56 = vsub.f32 %v11639_v55, %v10640_v8  ;;  %v1073_v37 = vadd.f32 %v17496_v20, %v813_v48  ;;  %vm1524_vm11 = vcmp.eq.f32.partialorder %v11780_v0, 0.0  ;;  %v17498_v38 = vld [vmem:[#allocation29_spill] sm:$0xff] }
 0x307   : > { %v3883_v63 = vsel %vm3881_vm6, %v17494_v58, %v3880_v24  ;;  %8149 = vrsqrt.f32 %v11898_v47  ;;  %v8140_v40 = vpop.eup %8139  ;;  %v11941_v9 = vadd.f32 %v17497_v29, %v1071_v32  ;;  %v3645_v24 = vmul.f32 %v3613_v57, %v3613_v57  ;;  %v11944_v58 = vpop.permute.xlu0 %1349  ;;  %v8336_v29 = vld [vmem:[%s16584_s2 + $0x2a8] sm:$0xff] }
 0x308   : > { %vm1543_vm12 = vcmp.eq.f32.partialorder %v11824_v61, inf  ;;  %v1516_v52 = vsel %vm1515_vm7, %v11759_v33, %v1514_v17  ;;  %v11950_v55 = vmul.f32 %v8136_v11, %v11800_v7  ;;  %v3609_v48 = vsub.f32 %v11683_v62, %v10640_v8  ;;  %v17500_v57 = vld [vmem:[#allocation128_spill] sm:$0xff] }
 0x309   : > { %v1075_v20 = vadd.f32 %v17498_v38, %v815_v21  ;;  %v787_v32 = vsub.f32 %v11812_v26, %v17444_v51  ;;  %3076 = vperm.xlu0 %8073, %v8336_v29   ;;  %8151 = vrsqrt.f32 %v11910_v36  ;;  %v11964_v11 = vadd.f32 %v3637_v25, %v11725_v15  ;;  %v11966_v17 = vpop.permute.xlu1 %3730 }
 0x30a   : > { %4482 = vperm.xlu1 %8068, %v11428_v1   ;;  %v817_v62 = vmul.f32 %v785_v23, %v785_v23  ;;  %v17499_v21 = vand.u32 2147483648, %v11719_v16  ;;  %v3639_v38 = vmul.f32 %v3607_v56, %v3607_v56  ;;  %v11975_v22 = vadd.f32 %v17500_v57, %v1073_v37  ;;  %v11983_v15 = vpop.eup %8141  ;;  %v17501_v37 = vld [vmem:[#allocation130_spill] sm:$0xff] }
 0x30b   : > { %v1523_v1 = vsel %vm1522_vm9, %v11780_v0, %v1521_v42  ;;  %vm1545_vm13 = vcmp.eq.f32.partialorder %v11824_v61, 0.0  ;;  %vm1557_vm14 = vcmp.eq.f32.partialorder %v11863_v19, inf  ;;  %8153 = vrsqrt.f32 %v11933_v14  ;;  %v11991_v23 = vpop.permute.xlu0 %1359 }
 0x30c   : > { %v11972_v26 = vsel %vm3867_vm8, %v17499_v21, %v3866_v54  ;;  %v3611_v16 = vsub.f32 %v11714_v30, %v10640_v8  ;;  %v11988_v54 = vadd.f32 %v3645_v24, %v11771_v43  ;;  %v1542_v25 = vmul.f32 %v8140_v40, %v11824_v61  ;;  %v8144_v42 = vpop.eup %8143  ;;  %v8337_v8 = vld [vmem:[%s16584_s2 + $0x2b8] sm:$0xff] }
 0x30d   : > { %8155 = vrsqrt.f32 %v11941_v9  ;;  %v3641_v56 = vmul.f32 %v3609_v48, %v3609_v48  ;;  %v11995_v57 = vadd.f32 %v17501_v37, %v1075_v20  ;;  %v819_v29 = vmul.f32 %v787_v32, %v787_v32  ;;  %3086 = vperm.xlu0 %8073, %v8337_v8   ;;  %v12002_v30 = vpop.eup %8145  ;;  %v17502_v43 = vld [vmem:[#allocation30_spill] sm:$0xff]  ;;  %v12010_v20 = vpop.permute.xlu1 %3738 }
 0x30e   : > { %vm1571_vm15 = vcmp.eq.f32.partialorder %v11877_v2, inf  ;;  %4490 = vperm.xlu1 %8068, %v11485_v6   ;;  %8157 = vrsqrt.f32 %v11964_v11  ;;  %v1077_v40 = vadd.f32 %v17502_v43, %v817_v62  ;;  %v789_v24 = vsub.f32 %v11836_v4, %v17444_v51  ;;  %v8148_v32 = vpop.eup %8147 }
 0x30f   : > { %vm1559_vm0 = vcmp.eq.f32.partialorder %v11863_v19, 0.0  ;;  %vm3893_vm1 = vcmp.eq.f32.partialorder %v11800_v7, inf  ;;  %v12014_v6 = vadd.f32 %v3639_v38, %v11746_v12  ;;  %8159 = vrsqrt.f32 %v11975_v22 }
 0x310   : > { %v12018_v21 = vmul.f32 %v3883_v63, %v11401_v31  ;;  %v17503_v62 = vand.u32 2147483648, %v11759_v33  ;;  %v3643_v4 = vmul.f32 %v3611_v16, %v3611_v16  ;;  %8161 = vrsqrt.f32 %v11988_v54  ;;  %v12033_v31 = vpop.permute.xlu0 %1369  ;;  %v17506_v33 = vld [vmem:[#allocation31_spill] sm:$0xff] }
 0x311   : > { %v17504_v37 = vand.u32 2147483648, %v11780_v0  ;;  %v1556_v12 = vmul.f32 %v8144_v42, %v11863_v19  ;;  %vm1573_vm2 = vcmp.eq.f32.partialorder %v11877_v2, 0.0  ;;  %v8150_v63 = vpop.eup %8149  ;;  %v12036_v38 = vadd.f32 %v3641_v56, %v11749_v44  ;;  %v8338_v0 = vld [vmem:[%s16584_s2 + $0x308] sm:$0xff]  ;;  %v12055_v43 = vpop.permute.xlu1 %3746 }
 0x312   : > { %v1519_v51 = vsel %vm1517_vm10, %v17503_v62, %v1516_v52  ;;  %v1079_v52 = vadd.f32 %v17506_v33, %v819_v29  ;;  %v1544_v16 = vsel %vm1543_vm12, %v11824_v61, %v1542_v25  ;;  %4144 = vperm.xlu0 %8073, %v8338_v0   ;;  %8163 = vrsqrt.f32 %v11995_v57  ;;  %v17508_v42 = vld [vmem:[#allocation131_spill] sm:$0xff] }
 0x313   : > { %v12029_v8 = vsel %vm1524_vm11, %v17504_v37, %v1523_v1  ;;  %17505 = vst [vmem:[#allocation195_spill] sm:$0xff] %v12036_v38  ;;  %v17507_v1 = vmov 2   ;;  %vm3895_vm3 = vcmp.eq.f32.partialorder %v11800_v7, 0.0  ;;  %v12049_v44 = vadd.f32 %v17508_v42, %v1077_v40  ;;  %v8339_v25 = vld [vmem:[%s16584_s2 + $0x300] sm:$0xff] }
 0x314   : > { %8070 = vset.pattern.permute.xlu1 %v17507_v1  ;;  %v821_v56 = vmul.f32 %v789_v24, %v789_v24  ;;  %v1570_v29 = vmul.f32 %v8148_v32, %v11877_v2  ;;  %v17509_v62 = vld [vmem:[#allocation71_spill] sm:$0xff]  ;;  %8165 = vrsqrt.f32 %v12014_v6  ;;  %vm1585_vm4 = vcmp.eq.f32.partialorder %v11898_v47, inf  ;;  %v12062_v24 = vpop.eup %8151  ;;  %v12077_v42 = vpop.permute.xlu0 %1379 }
 0x315   : > { %4626 = vperm.xlu1 %8070, %v8339_v25   ;;  %v1737_v37 = vmul.f32 %v1519_v51, %v17509_v62  ;;  %vm1587_vm5 = vcmp.eq.f32.partialorder %v11898_v47, 0.0  ;;  %v1588_v40 = vand.u32 2147483648, %v11898_v47  ;;  %v12065_v32 = vadd.f32 %v3643_v4, %v11764_v28  ;;  %v8154_v25 = vpop.eup %8153  ;;  %v17512_v62 = vld [vmem:[#allocation132_spill] sm:$0xff]  ;;  %v8340_v4 = vld [vmem:[%s16584_s2 + $0x320] sm:$0xff] }
 0x316   : > { %v17511_v33 = vand.u32 2147483648, %v11824_v61  ;;  %v1558_v51 = vsel %vm1557_vm14, %v11863_v19, %v1556_v12  ;;  %v1584_v1 = vmul.f32 %v8150_v63, %v11898_v47  ;;  %8167 = vrsqrt.f32 %v12036_v38  ;;  %4159 = vperm.xlu0 %8073, %v8340_v4   ;;  %v17514_v61 = vld [vmem:[#allocation149_spill] sm:$0xff] }
 0x317   : > { %17510 = vst [vmem:[#allocation139_spill] sm:$0xff] %v12065_v32  ;;  %v12081_v28 = vadd.f32 %v17512_v62, %v1079_v52  ;;  %vm1599_vm6 = vcmp.eq.f32.partialorder %v11933_v14, inf  ;;  %v8156_v12 = vpop.eup %8155  ;;  %vm1601_vm7 = vcmp.eq.f32.partialorder %v11933_v14, 0.0  ;;  %v8341_v52 = vld [vmem:[%s16584_s2 + $0x310] sm:$0xff]  ;;  %v12096_v62 = vpop.permute.xlu1 %3754  ;;  %8169 = vrsqrt.f32 %v12049_v44 }
 0x318   : > { %v12071_v0 = vsel %vm1545_vm13, %v17511_v33, %v1544_v16  ;;  %v17513_v16 = vld [vmem:[#allocation33_spill] sm:$0xff]  ;;  %v1572_v33 = vsel %vm1571_vm15, %v11877_v2, %v1570_v29  ;;  %v12100_v4 = vadd.f32 %v17514_v61, %v1737_v37  ;;  %vm1613_vm8 = vcmp.eq.f32.partialorder %v11941_v9, inf  ;;  %v12115_v48 = vpop.eup %8157 }
 0x319   : > { %v1081_v63 = vadd.f32 %v17513_v16, %v821_v56  ;;  %4634 = vperm.xlu1 %8070, %v8341_v52   ;;  %v3818_v56 = vmul.f32 %v10764_v10, %v11795_v49  ;;  %v17516_v16 = vand.u32 2147483648, %v11863_v19  ;;  %v3894_v52 = vsel %vm3893_vm1, %v11800_v7, %v11950_v55  ;;  %v12122_v19 = vpop.permute.xlu0 %1389 }
 0x31a   : > { %17515 = vst [vmem:[#allocation151_spill] sm:$0xff] %v12100_v4  ;;  %8171 = vrsqrt.f32 %v12065_v32  ;;  %v1586_v49 = vsel %vm1585_vm4, %v11898_v47, %v1584_v1  ;;  %v1598_v37 = vmul.f32 %v8154_v25, %v11933_v14  ;;  %vm1615_vm9 = vcmp.eq.f32.partialorder %v11941_v9, 0.0  ;;  %v8342_v1 = vld [vmem:[%s16584_s2 + $0x330] sm:$0xff] }
 0x31b   : > { %v12108_v29 = vsel %vm1559_vm0, %v17516_v16, %v1558_v51  ;;  %v8160_v51 = vpop.eup %8159  ;;  %v17517_v61 = vand.u32 2147483648, %v11877_v2  ;;  %v1612_v16 = vmul.f32 %v8156_v12, %v11941_v9  ;;  %v1616_v4 = vand.u32 2147483648, %v11941_v9  ;;  %4169 = vperm.xlu0 %8073, %v8342_v1   ;;  %v8343_v2 = vld [vmem:[%s16584_s2 + $0x318] sm:$0xff]  ;;  %v12144_v12 = vpop.permute.xlu1 %3762  ;;  %v17523_v47 = vld [vmem:[#allocation24_spill] sm:$0xff] }
 0x31c   : > { %8173 = vrsqrt.f32 %v12081_v28  ;;  %vm3907_vm10 = vcmp.eq.f32.partialorder %v11815_v59, inf  ;;  %v8162_v25 = vpop.eup %8161  ;;  %v12139_v32 = vadd.f32 %v17518_v46, %v1081_v63  ;;  %17519 = vst [vmem:[#allocation155_spill] sm:$0xff] %v12144_v12  ;;  %vm1627_vm11 = vcmp.eq.f32.partialorder %v11975_v22, inf }
 0x31d   : > { %v12129_v55 = vsel %vm1573_vm2, %v17517_v61, %v1572_v33  ;;  %4638 = vperm.xlu1 %8070, %v8343_v2   ;;  %v17520_v61 = vand.u32 2147483648, %v11800_v7  ;;  %v8164_v38 = vpop.eup %8163  ;;  %v12153_v46 = vmul.f32 %v11847_v45, %v3818_v56  ;;  %v12157_v63 = vmul.f32 %v10764_v10, %v11827_v18 }
 0x31e   : > { %v12161_v2 = vsel %vm1587_vm5, %v1588_v40, %v1586_v49  ;;  %vm1629_vm12 = vcmp.eq.f32.partialorder %v11975_v22, 0.0  ;;  %vm1641_vm13 = vcmp.eq.f32.partialorder %v11995_v57, inf  ;;  %v1600_v7 = vsel %vm1599_vm6, %v11933_v14, %v1598_v37  ;;  %v12175_v18 = vpop.eup %8165  ;;  %v8344_v37 = vld [vmem:[%s16584_s2 + $0x340] sm:$0xff] }
 0x31f   : > { %v3897_v1 = vsel %vm3895_vm3, %v17520_v61, %v3894_v52  ;;  %17521 = vst [vmem:[#allocation138_spill] sm:$0xff] %v12153_v46  ;;  %17522 = vst [vmem:[#allocation168_spill] sm:$0xff] %v12157_v63  ;;  %v12168_v52 = vpop.permute.xlu0 %1399  ;;  %vm1643_vm14 = vcmp.eq.f32.partialorder %v11995_v57, 0.0  ;;  %v1644_v45 = vand.u32 2147483648, %v11995_v57  ;;  %vm4019_vm15 = vcmp.eq.f32.partialorder %v11988_v54, inf  ;;  %4179 = vperm.xlu0 %8073, %v8344_v37   ;;  %v12192_v63 = vpop.permute.xlu1 %3770 }
 0x320   : > { %vm4021_vm0 = vcmp.eq.f32.partialorder %v11988_v54, 0.0  ;;  %vm3909_vm1 = vcmp.eq.f32.partialorder %v11815_v59, 0.0  ;;  %v1482_v40 = vmul.f32 %v17523_v47, %v11872_v35  ;;  %v1614_v56 = vsel %vm1613_vm8, %v11941_v9, %v1612_v16  ;;  %v8345_v35 = vld [vmem:[%s16584_s2 + $0x328] sm:$0xff]  ;;  %17524 = vst [vmem:[#allocation172_spill] sm:$0xff] %v12192_v63  ;;  %v12198_v37 = vpop.eup %8167 }
 0x321   : > { %v1626_v49 = vmul.f32 %v8160_v51, %v11975_v22  ;;  %v4018_v61 = vmul.f32 %v8162_v25, %v11988_v54  ;;  %v1485_v33 = vmul.f32 %v17523_v47, %v11906_v50  ;;  %4646 = vperm.xlu1 %8070, %v8345_v35   ;;  %v1640_v16 = vmul.f32 %v8164_v38, %v11995_v57  ;;  %v8170_v46 = vpop.eup %8169 }
 0x322   : > { %8175 = vrsqrt.f32 %v12139_v32  ;;  %v3906_v51 = vmul.f32 %v11930_v3, %v11815_v59  ;;  %v17525_v25 = vand.u32 2147483648, %v11933_v14  ;;  %vm1655_vm2 = vcmp.eq.f32.partialorder %v12049_v44, inf }
 0x323   : > { %v1658_v35 = vand.u32 2147483648, %v12049_v44  ;;  %v4075_v38 = vmul.f32 %v11972_v26, %v11390_v53  ;;  %v12212_v63 = vmul.f32 %v10764_v10, %v11857_v27  ;;  %v12216_v3 = vsel %vm1615_vm9, %v1616_v4, %v1614_v56  ;;  %v12218_v12 = vpop.permute.xlu0 %1409  ;;  %v8346_v27 = vld [vmem:[%s16584_s2 + $0x350] sm:$0xff] }
 0x324   : > { %v12204_v50 = vsel %vm1601_vm7, %v17525_v25, %v1600_v7  ;;  %v4022_v14 = vand.u32 2147483648, %v11988_v54  ;;  %v12222_v7 = vmul.f32 %v3897_v1, %v11415_v5  ;;  %v12225_v25 = vmul.f32 %v12029_v8, %v1482_v40  ;;  %4189 = vperm.xlu0 %8073, %v8346_v27   ;;  %v12239_v26 = vpop.eup %8171  ;;  %v8347_v1 = vld [vmem:[%s16584_s2 + $0x338] sm:$0xff]  ;;  %v12248_v40 = vpop.permute.xlu1 %3778 }
 0x325   : > { %v1628_v53 = vsel %vm1627_vm11, %v11975_v22, %v1626_v49  ;;  %vm1657_vm3 = vcmp.eq.f32.partialorder %v12049_v44, 0.0  ;;  %vm1669_vm4 = vcmp.eq.f32.partialorder %v12081_v28, inf  ;;  %v4020_v5 = vsel %vm4019_vm15, %v11988_v54, %v4018_v61  ;;  %4654 = vperm.xlu1 %8070, %v8347_v1   ;;  %v17528_v54 = vld [vmem:[#allocation185_spill] sm:$0xff] }
 0x326   : > { %v1741_v8 = vmul.f32 %v12071_v0, %v1485_v33  ;;  %v1642_v4 = vsel %vm1641_vm13, %v11995_v57, %v1640_v16  ;;  %v3908_v56 = vsel %vm3907_vm10, %v11815_v59, %v3906_v51  ;;  %v3920_v49 = vmul.f32 %v11983_v15, %v11855_v41  ;;  %v8174_v61 = vpop.eup %8173 }
 0x327   : > { %v12257_v0 = vmul.f32 %v10764_v10, %v11891_v34  ;;  %v1654_v33 = vmul.f32 %v8170_v46, %v12049_v44  ;;  %v12261_v16 = vadd.f32 %v4075_v38, %v11335_v39  ;;  %v3910_v27 = vand.u32 2147483648, %v11815_v59  ;;  %v12272_v9 = vpop.permute.xlu0 %1419 }
 0x328   : > { %v1487_v1 = vmul.f32 %v17523_v47, %v11944_v58  ;;  %v17527_v51 = vand.u32 2147483648, %v11975_v22  ;;  %v1686_v34 = vand.u32 2147483648, %v12139_v32  ;;  %v4023_v46 = vsel %vm4021_vm0, %v4022_v14, %v4020_v5  ;;  %v8348_v22 = vld [vmem:[%s16584_s2 + $0x360] sm:$0xff] }
 0x329   : > { %17526 = vst [vmem:[#allocation143_spill] sm:$0xff] %v12261_v16  ;;  %v12279_v39 = vmul.f32 %v10764_v10, %v11923_v60  ;;  %v12283_v58 = vsel %vm1643_vm14, %v1644_v45, %v1642_v4  ;;  %4199 = vperm.xlu0 %8073, %v8348_v22   ;;  %vm1671_vm5 = vcmp.eq.f32.partialorder %v12081_v28, 0.0  ;;  %v3911_v38 = vsel %vm3909_vm1, %v3910_v27, %v3908_v56  ;;  %v8349_v60 = vld [vmem:[%s16584_s2 + $0x348] sm:$0xff] }
 0x32a   : > { %v12270_v15 = vsel %vm1629_vm12, %v17527_v51, %v1628_v53  ;;  %vm3921_vm6 = vcmp.eq.f32.partialorder %v11855_v41, inf  ;;  %v2941_v14 = vadd.f32 %v17528_v54, %v1741_v8  ;;  %4662 = vperm.xlu1 %8070, %v8349_v60   ;;  %v1668_v57 = vmul.f32 %v8174_v61, %v12081_v28  ;;  %v12306_v8 = vpop.permute.xlu1 %4139  ;;  %v17529_v4 = vld [vmem:[#allocation56_spill] sm:$0xff] }
 0x32b   : > { %vm1683_vm7 = vcmp.eq.f32.partialorder %v12139_v32, inf  ;;  %v3922_v45 = vsel %vm3921_vm6, %v11855_v41, %v3920_v49  ;;  %v3934_v53 = vmul.f32 %v12002_v30, %v11870_v13  ;;  %v1489_v59 = vmul.f32 %v17523_v47, %v11991_v23  ;;  %v12317_v51 = vpop.permute.xlu0 %1429  ;;  %v17530_v23 = vld [vmem:[#allocation13_spill] sm:$0xff] }
 0x32c   : > { %v1656_v5 = vsel %vm1655_vm2, %v12049_v44, %v1654_v33  ;;  %v12309_v56 = vmul.f32 %v4023_v46, %v17529_v4  ;;  %v3924_v61 = vand.u32 2147483648, %v11855_v41  ;;  %v8176_v27 = vpop.eup %8175  ;;  %v1743_v49 = vmul.f32 %v12108_v29, %v1487_v1  ;;  %v8350_v46 = vld [vmem:[%s16584_s2 + $0x370] sm:$0xff]  ;;  %v8351_v1 = vld [vmem:[%s16584_s2 + $0x358] sm:$0xff] }
 0x32d   : > { %v12315_v30 = vmul.f32 %v10764_v10, %v11966_v17  ;;  %v4081_v22 = vmul.f32 %v3911_v38, %v17530_v23  ;;  %vm3923_vm8 = vcmp.eq.f32.partialorder %v11855_v41, 0.0  ;;  %v1491_v33 = vmul.f32 %v17523_v47, %v12033_v31  ;;  %4209 = vperm.xlu0 %8073, %v8350_v46   ;;  %v17535_v23 = vld [vmem:[#allocation190_spill] sm:$0xff] }
 0x32e   : > { %vm1685_vm9 = vcmp.eq.f32.partialorder %v12139_v32, 0.0  ;;  %v3925_v29 = vsel %vm3923_vm8, %v3924_v61, %v3922_v45  ;;  %vm3935_vm10 = vcmp.eq.f32.partialorder %v11870_v13, inf  ;;  %v3948_v17 = vmul.f32 %v12062_v24, %v11910_v36  ;;  %4670 = vperm.xlu1 %8070, %v8351_v1   ;;  %v12347_v60 = vpop.permute.xlu1 %4149  ;;  %v17532_v45 = vld [vmem:[#allocation186_spill] sm:$0xff]  ;;  %v17533_v61 = vld [vmem:[#allocation27_spill] sm:$0xff] }
 0x32f   : > { %v12334_v41 = vsel %vm1657_vm3, %v1658_v35, %v1656_v5  ;;  %v1670_v31 = vsel %vm1669_vm4, %v12081_v28, %v1668_v57  ;;  %v12343_v38 = vadd.f32 %v12018_v21, %v2941_v14  ;;  %v3936_v24 = vsel %vm3935_vm10, %v11870_v13, %v3934_v53  ;;  %v12354_v4 = vpop.permute.xlu0 %1439 }
 0x330   : > { %v1745_v54 = vmul.f32 %v12129_v55, %v1489_v59  ;;  %v1682_v44 = vmul.f32 %v8176_v27, %v12139_v32  ;;  %v3938_v35 = vand.u32 2147483648, %v11870_v13  ;;  %v3962_v57 = vmul.f32 %v12115_v48, %v11964_v11  ;;  %v8352_v48 = vld [vmem:[%s16584_s2 + $0x380] sm:$0xff] }
 0x331   : > { %17531 = vst [vmem:[#allocation176_spill] sm:$0xff] %v12343_v38  ;;  %v2943_v5 = vadd.f32 %v17532_v45, %v1743_v49  ;;  %v4083_v21 = vmul.f32 %v3925_v29, %v17533_v61  ;;  %vm3937_vm11 = vcmp.eq.f32.partialorder %v11870_v13, 0.0  ;;  %vm3949_vm12 = vcmp.eq.f32.partialorder %v11910_v36, inf  ;;  %4219 = vperm.xlu0 %8073, %v8352_v48   ;;  %v17539_v61 = vld [vmem:[#allocation68_spill] sm:$0xff] }
 0x332   : > { %v12361_v55 = vmul.f32 %v10764_v10, %v12010_v20  ;;  %v1747_v14 = vmul.f32 %v12161_v2, %v1491_v33  ;;  %v3939_v53 = vsel %vm3937_vm11, %v3938_v35, %v3936_v24  ;;  %v3950_v59 = vsel %vm3949_vm12, %v11910_v36, %v3948_v17  ;;  %v8353_v20 = vld [vmem:[%s16584_s2 + $0x368] sm:$0xff]  ;;  %v12385_v46 = vpop.permute.xlu1 %4154 }
 0x333   : > { %v1493_v27 = vmul.f32 %v17523_v47, %v12077_v42  ;;  %v17534_v13 = vand.u32 2147483648, %v12081_v28  ;;  %4678 = vperm.xlu1 %8070, %v8353_v20   ;;  %v3952_v2 = vand.u32 2147483648, %v11910_v36  ;;  %vm3963_vm13 = vcmp.eq.f32.partialorder %v11964_v11, inf  ;;  %v1809_v29 = vpop.permute.xlu0 %1808 }
 0x334   : > { %v2945_v33 = vadd.f32 %v17535_v23, %v1745_v54  ;;  %v1684_v42 = vsel %vm1683_vm7, %v12139_v32, %v1682_v44  ;;  %vm3951_vm14 = vcmp.eq.f32.partialorder %v11910_v36, 0.0  ;;  %v3964_v28 = vsel %vm3963_vm13, %v11964_v11, %v3962_v57  ;;  %v17538_v54 = vld [vmem:[#allocation193_spill] sm:$0xff] }
 0x335   : > { %v12374_v49 = vsel %vm1671_vm5, %v17534_v13, %v1670_v31  ;;  %v12390_v17 = vadd.f32 %v12222_v7, %v2943_v5  ;;  %v17537_v31 = vld [vmem:[#allocation12_spill] sm:$0xff]  ;;  %v3953_v24 = vsel %vm3951_vm14, %v3952_v2, %v3950_v59  ;;  %v3966_v35 = vand.u32 2147483648, %v11964_v11 }
 0x336   : > { %v4085_v1 = vmul.f32 %v3939_v53, %v17537_v31  ;;  %v2947_v45 = vadd.f32 %v17538_v54, %v1747_v14  ;;  %v12397_v44 = vmul.f32 %v10764_v10, %v12055_v43  ;;  %v1966_v48 = vsub.f32 %v1809_v29, %v17539_v61  ;;  %v8354_v36 = vld [vmem:[%s16584_s2 + $0x390] sm:$0xff]  ;;  %v8355_v43 = vld [vmem:[%s16584_s2 + $0x378] sm:$0xff]  ;;  %v12416_v59 = vpop.permute.xlu1 %4164 }
 0x337   : > { %17536 = vst [vmem:[#allocation162_spill] sm:$0xff] %v12390_v17  ;;  %4229 = vperm.xlu0 %8073, %v8354_v36   ;;  %vm3965_vm15 = vcmp.eq.f32.partialorder %v11964_v11, 0.0  ;;  %v1749_v7 = vmul.f32 %v12204_v50, %v1493_v27  ;;  %v12409_v57 = vsel %vm1685_vm9, %v1686_v34, %v1684_v42  ;;  %4686 = vperm.xlu1 %8070, %v8355_v43   ;;  %v17541_v50 = vld [vmem:[#allocation18_spill] sm:$0xff]  ;;  %vm3977_vm0 = vcmp.eq.f32.partialorder %v12014_v6, inf  ;;  %v1819_v13 = vpop.permute.xlu0 %1818 }
 0x338   : > { %v3967_v5 = vsel %vm3965_vm15, %v3966_v35, %v3964_v28  ;;  %v3976_v14 = vmul.f32 %v12175_v18, %v12014_v6  ;;  %v1998_v53 = vmul.f32 %v1966_v48, %v1966_v48  ;;  %v12418_v11 = vadd.f32 %v4081_v22, %v2945_v33  ;;  %v17542_v18 = vld [vmem:[#allocation195_spill] sm:$0xff]  ;;  %v17543_v22 = vld [vmem:[#allocation125_spill] sm:$0xff]  ;;  %v17545_v42 = vld [vmem:[#allocation38_spill] sm:$0xff] }
 0x339   : > { %v12421_v27 = vmul.f32 %v3953_v24, %v17541_v50  ;;  %v12426_v32 = vmul.f32 %v10764_v10, %v12096_v62  ;;  %v1495_v34 = vmul.f32 %v17523_v47, %v12122_v19  ;;  %vm3979_vm1 = vcmp.eq.f32.partialorder %v12014_v6, 0.0  ;;  %v8356_v33 = vld [vmem:[%s16584_s2 + $0x3a0] sm:$0xff] }
 0x33a   : > { %17540 = vst [vmem:[#allocation192_spill] sm:$0xff] %v12418_v11  ;;  %v3990_v20 = vmul.f32 %v12198_v37, %v17542_v18  ;;  %v2258_v2 = vadd.f32 %v17543_v22, %v1998_v53  ;;  %v1968_v23 = vsub.f32 %v1819_v13, %v17539_v61  ;;  %v12438_v62 = vadd.f32 %v4083_v21, %v2947_v45  ;;  %v17546_v19 = vld [vmem:[#allocation194_spill] sm:$0xff]  ;;  %v8357_v37 = vld [vmem:[%s16584_s2 + $0x388] sm:$0xff]  ;;  %v12453_v45 = vpop.permute.xlu1 %4174 }
 0x33b   : > { %4239 = vperm.xlu0 %8073, %v8356_v33   ;;  %v12441_v28 = vmul.f32 %v3967_v5, %v17545_v42  ;;  %v2949_v29 = vadd.f32 %v17546_v19, %v1749_v7  ;;  %4694 = vperm.xlu1 %8070, %v8357_v37   ;;  %v3978_v31 = vsel %vm3977_vm0, %v12014_v6, %v3976_v14  ;;  %v3980_v24 = vand.u32 2147483648, %v12014_v6  ;;  %v17547_v35 = vld [vmem:[#allocation146_spill] sm:$0xff]  ;;  %v17548_v48 = vld [vmem:[#allocation139_spill] sm:$0xff]  ;;  %v1829_v5 = vpop.permute.xlu0 %1828  ;;  %v17553_v37 = vld [vmem:[#allocation196_spill] sm:$0xff] }
 0x33c   : > { %17544 = vst [vmem:[#allocation156_spill] sm:$0xff] %v12438_v62  ;;  %vm3991_vm2 = vcmp.eq.f32.partialorder %v17542_v18, inf  ;;  %v12451_v54 = vadd.f32 %v17547_v35, %v2258_v2  ;;  %v2000_v21 = vmul.f32 %v1968_v23, %v1968_v23  ;;  %vm3993_vm3 = vcmp.eq.f32.partialorder %v17542_v18, 0.0  ;;  %v17549_v50 = vld [vmem:[#allocation35_spill] sm:$0xff]  ;;  %v8359_v2 = vld [vmem:[%s16584_s2 + $0x398] sm:$0xff] }
 0x33d   : > { %v4004_v36 = vmul.f32 %v12239_v26, %v17548_v48  ;;  %v1751_v7 = vmul.f32 %v12216_v3, %v1495_v34  ;;  %v1497_v43 = vmul.f32 %v17523_v47, %v12168_v52  ;;  %v3992_v14 = vsel %vm3991_vm2, %v17542_v18, %v3990_v20  ;;  %v8358_v26 = vld [vmem:[%s16584_s2 + $0x3b0] sm:$0xff]  ;;  %v17550_v52 = vld [vmem:[#allocation155_spill] sm:$0xff]  ;;  %v17616_v62 = vld [vmem:[#allocation170_spill] sm:$0xff] }
 0x33e   : > { %v3994_v53 = vand.u32 2147483648, %v17542_v18  ;;  %8177 = vrsqrt.f32 %v12451_v54  ;;  %v2260_v13 = vadd.f32 %v17549_v50, %v2000_v21  ;;  %v1970_v22 = vsub.f32 %v1829_v5, %v17539_v61  ;;  %v12485_v42 = vpop.permute.xlu1 %4184  ;;  %v17554_v21 = vld [vmem:[#allocation137_spill] sm:$0xff] }
 0x33f   : > { %4249 = vperm.xlu0 %8073, %v8358_v26   ;;  %v3981_v3 = vsel %vm3979_vm1, %v3980_v24, %v3978_v31  ;;  %v12473_v34 = vmul.f32 %v10764_v10, %v17550_v52  ;;  %v1499_v20 = vmul.f32 %v17523_v47, %v12218_v12  ;;  %4702 = vperm.xlu1 %8070, %v8359_v2   ;;  %vm4005_vm4 = vcmp.eq.f32.partialorder %v17548_v48, inf  ;;  %v17555_v18 = vld [vmem:[#allocation37_spill] sm:$0xff]  ;;  %v17559_v2 = vld [vmem:[#allocation198_spill] sm:$0xff] }
 0x340   : > { %v12480_v23 = vadd.f32 %v4085_v1, %v2949_v29  ;;  %v1501_v6 = vmul.f32 %v17523_v47, %v12272_v9  ;;  %v2002_v33 = vmul.f32 %v1970_v22, %v1970_v22  ;;  %v3995_v19 = vsel %vm3993_vm3, %v3994_v53, %v3992_v14  ;;  %v1839_v29 = vpop.permute.xlu0 %1838  ;;  %v17557_v53 = vld [vmem:[#allocation41_spill] sm:$0xff]  ;;  %v17558_v22 = vld [vmem:[#allocation136_spill] sm:$0xff] }
 0x341   : > { %17551 = vst [vmem:[#allocation144_spill] sm:$0xff] %v12473_v34  ;;  %v4006_v12 = vsel %vm4005_vm4, %v17548_v48, %v4004_v36  ;;  %v2951_v31 = vadd.f32 %v17553_v37, %v1751_v7  ;;  %v1753_v24 = vmul.f32 %v12270_v15, %v1497_v43  ;;  %v1503_v1 = vmul.f32 %v17523_v47, %v12317_v51  ;;  %v8360_v15 = vld [vmem:[%s16584_s2 + $0x3c0] sm:$0xff]  ;;  %v8361_v7 = vld [vmem:[%s16584_s2 + $0x3a8] sm:$0xff] }
 0x342   : > { %17552 = vst [vmem:[#allocation40_spill] sm:$0xff] %v12480_v23  ;;  %v4008_v35 = vand.u32 2147483648, %v17548_v48  ;;  %v1505_v9 = vmul.f32 %v17523_v47, %v12354_v4  ;;  %v12498_v5 = vadd.f32 %v17554_v21, %v2260_v13  ;;  %v2262_v14 = vadd.f32 %v17555_v18, %v2002_v33  ;;  %v569_v47 = vld [vmem:[%s16586_s4 + $0x8] sm:$0xff]  ;;  %v12519_v52 = vpop.permute.xlu1 %4194 }
 0x343   : > { %v1972_v36 = vsub.f32 %v1839_v29, %v17539_v61  ;;  %4259 = vperm.xlu0 %8073, %v8360_v15   ;;  %v1755_v51 = vmul.f32 %v12283_v58, %v1499_v20  ;;  %4710 = vperm.xlu1 %8070, %v8361_v7   ;;  %v17556_v4 = vld [vmem:[#allocation36_spill] sm:$0xff]  ;;  %v4093_v50 = vmul.f32 %v3995_v19, %v17557_v53  ;;  %vm4007_vm5 = vcmp.eq.f32.partialorder %v17548_v48, 0.0 }
 0x344   : > { %v4091_v43 = vmul.f32 %v3981_v3, %v17556_v4  ;;  %v1757_v13 = vmul.f32 %v12334_v41, %v1501_v6  ;;  %v12517_v26 = vadd.f32 %v17558_v22, %v2262_v14  ;;  %v4009_v20 = vsel %vm4007_vm5, %v4008_v35, %v4006_v12  ;;  %v17560_v37 = vld [vmem:[#allocation172_spill] sm:$0xff]  ;;  %v1849_v19 = vpop.permute.xlu0 %1848  ;;  %v17563_v6 = vld [vmem:[#allocation42_spill] sm:$0xff] }
 0x345   : > { %v2004_v58 = vmul.f32 %v1972_v36, %v1972_v36  ;;  %v2953_v33 = vadd.f32 %v17559_v2, %v1753_v24  ;;  %v12524_v29 = vmul.f32 %v10764_v10, %v17560_v37  ;;  %v1759_v3 = vmul.f32 %v12374_v49, %v1503_v1  ;;  %v17564_v24 = vld [vmem:[#allocation21_spill] sm:$0xff] }
 0x346   : > { %v12528_v48 = vadd.f32 %v12421_v27, %v2951_v31  ;;  %v1761_v41 = vmul.f32 %v12409_v57, %v1505_v9  ;;  %8179 = vrsqrt.f32 %v12498_v5  ;;  %v1974_v12 = vsub.f32 %v1849_v19, %v17539_v61  ;;  %v8362_v49 = vld [vmem:[%s16584_s2 + $0x3b8] sm:$0xff]  ;;  %v572_v57 = vld [vmem:[%s16586_s4 + $0x20] sm:$0xff]  ;;  %v17567_v9 = vld [vmem:[#allocation32_spill] sm:$0xff]  ;;  %v4205_v7 = vpop.permute.xlu1 %4204 }
 0x347   : > { %17561 = vst [vmem:[#allocation153_spill] sm:$0xff] %v12524_v29  ;;  %v2264_v21 = vadd.f32 %v17563_v6, %v2004_v58  ;;  %5412 = vperm.xlu0 %8073, %v569_v47   ;;  %v2955_v35 = vadd.f32 %v17564_v24, %v1755_v51  ;;  %v12537_v18 = vmul.f32 %v10764_v10, %v12248_v40  ;;  %8181 = vrsqrt.f32 %v12517_v26  ;;  %v17566_v27 = vld [vmem:[#allocation45_spill] sm:$0xff]  ;;  %v17570_v47 = vld [vmem:[#allocation39_spill] sm:$0xff]  ;;  %v17595_v29 = vld [vmem:[#allocation138_spill] sm:$0xff] }
 0x348   : > { %17562 = vst [vmem:[#allocation154_spill] sm:$0xff] %v12528_v48  ;;  %4718 = vperm.xlu1 %8070, %v8362_v49   ;;  %v4095_v31 = vmul.f32 %v4009_v20, %v17566_v27  ;;  %v8178_v1 = vpop.eup %8177  ;;  %v2957_v14 = vadd.f32 %v17567_v9, %v1757_v13  ;;  %v17568_v36 = vld [vmem:[#allocation113_spill] sm:$0xff]  ;;  %v2006_v51 = vmul.f32 %v1974_v12, %v1974_v12  ;;  %v1859_v58 = vpop.permute.xlu0 %1858  ;;  %vm2690_vm6 = vcmp.eq.f32.partialorder %v12451_v54, inf  ;;  %v17610_v48 = vld [vmem:[#allocation44_spill] sm:$0xff] }
 0x349   : > { %17565 = vst [vmem:[#allocation15_spill] sm:$0xff] %v12537_v18  ;;  %v4301_v10 = vsub.f32 %v12306_v8, %v17568_v36  ;;  %v17569_v40 = vld [vmem:[#allocation141_spill] sm:$0xff]  ;;  %v2959_v4 = vadd.f32 %v17570_v47, %v1759_v3  ;;  %v4303_v53 = vsub.f32 %v12347_v60, %v17568_v36  ;;  %v4304_v22 = vsub.f32 %v12385_v46, %v17568_v36  ;;  %v17573_v8 = vld [vmem:[#allocation46_spill] sm:$0xff] }
 0x34a   : > { %v12551_v15 = vadd.f32 %v17569_v40, %v2264_v21  ;;  %v12559_v20 = vadd.f32 %v12441_v28, %v2953_v33  ;;  %v17572_v13 = vld [vmem:[#allocation25_spill] sm:$0xff]  ;;  %v2266_v37 = vadd.f32 %v17573_v8, %v2006_v51  ;;  %v1976_v19 = vsub.f32 %v1859_v58, %v17539_v61  ;;  %v17576_v21 = vld [vmem:[#allocation11_spill] sm:$0xff]  ;;  %v17581_v47 = vld [vmem:[#allocation142_spill] sm:$0xff] }
 0x34b   : > { %v2961_v2 = vadd.f32 %v17572_v13, %v1761_v41  ;;  %5421 = vperm.xlu0 %8073, %v572_v57   ;;  %v4306_v3 = vsub.f32 %v12416_v59, %v17568_v36  ;;  %v4308_v60 = vsub.f32 %v12453_v45, %v17568_v36  ;;  %v17574_v46 = vmov 3   ;;  %v574_v28 = vld [vmem:[%s16586_s4 + $0x30] sm:$0xff]  ;;  %v8363_v59 = vld [vmem:[%s16582_s0] sm:$0xff]  ;;  %v4215_v45 = vpop.permute.xlu1 %4214 }
 0x34c   : > { %17571 = vst [vmem:[#allocation178_spill] sm:$0xff] %v12559_v20  ;;  %8183 = vrsqrt.f32 %v12551_v15  ;;  %8071 = vset.pattern.permute.xlu1 %v17574_v46  ;;  %v2689_v33 = vmul.f32 %v8178_v1, %v12451_v54  ;;  %v12574_v41 = vadd.f32 %v4091_v43, %v2955_v35  ;;  %v12576_v6 = vmul.f32 %v4301_v10, %v4301_v10  ;;  %v1869_v35 = vpop.permute.xlu0 %1868  ;;  %v17580_v10 = vld [vmem:[#allocation65_spill] sm:$0xff]  ;;  %v17609_v20 = vld [vmem:[#allocation47_spill] sm:$0xff] }
 0x34d   : > { %v12579_v12 = vadd.f32 %v17576_v21, %v2266_v37  ;;  %v2008_v24 = vmul.f32 %v1976_v19, %v1976_v19  ;;  %4854 = vperm.xlu1 %8071, %v8363_v59   ;;  %v12584_v49 = vadd.f32 %v4093_v50, %v2957_v14  ;;  %v12586_v57 = vmul.f32 %v4303_v53, %v4303_v53  ;;  %v17583_v59 = vld [vmem:[#allocation147_spill] sm:$0xff] }
 0x34e   : > { %17575 = vst [vmem:[#allocation174_spill] sm:$0xff] %v12574_v41  ;;  %v12588_v27 = vmul.f32 %v4304_v22, %v4304_v22  ;;  %v4310_v43 = vsub.f32 %v12485_v42, %v17568_v36  ;;  %v12592_v1 = vadd.f32 %v4095_v31, %v2959_v4  ;;  %v12595_v9 = vadd.f32 %v12309_v56, %v2961_v2  ;;  %v576_v42 = vld [vmem:[%s16586_s4 + $0x40] sm:$0xff]  ;;  %v8364_v22 = vld [vmem:[%s16582_s0 + $0x10] sm:$0xff] }
 0x34f   : > { %17577 = vst [vmem:[#allocation52_spill] sm:$0xff] %v12584_v49  ;;  %v2268_v40 = vadd.f32 %v17580_v10, %v2008_v24  ;;  %v1978_v51 = vsub.f32 %v1869_v35, %v17539_v61  ;;  %5427 = vperm.xlu0 %8073, %v574_v28   ;;  %v12600_v50 = vmul.f32 %v4306_v3, %v4306_v3  ;;  %8185 = vrsqrt.f32 %v12579_v12  ;;  %v4225_v58 = vpop.permute.xlu1 %4224  ;;  %v17582_v3 = vld [vmem:[#allocation48_spill] sm:$0xff]  ;;  %v8365_v10 = vld [vmem:[%s16582_s0 + $0x18] sm:$0xff] }
 0x350   : > { %17578 = vst [vmem:[#allocation160_spill] sm:$0xff] %v12592_v1  ;;  %17579 = vst [vmem:[#allocation167_spill] sm:$0xff] %v12595_v9  ;;  %v12602_v14 = vmul.f32 %v4308_v60, %v4308_v60  ;;  %v2691_v56 = vsel %vm2690_vm6, %v12451_v54, %v2689_v33  ;;  %v8180_v31 = vpop.eup %8179  ;;  %vm2692_vm7 = vcmp.eq.f32.partialorder %v12451_v54, 0.0  ;;  %v2693_v13 = vand.u32 2147483648, %v12451_v54  ;;  %v1879_v19 = vpop.permute.xlu0 %1878  ;;  %v17601_v1 = vld [vmem:[#allocation80_spill] sm:$0xff] }
 0x351   : > { %v12610_v4 = vadd.f32 %v17581_v47, %v2268_v40  ;;  %v2010_v53 = vmul.f32 %v1978_v51, %v1978_v51  ;;  %4862 = vperm.xlu1 %8071, %v8364_v22   ;;  %v8182_v2 = vpop.eup %8181  ;;  %v12617_v8 = vmul.f32 %v4310_v43, %v4310_v43  ;;  %v4312_v37 = vsub.f32 %v12519_v52, %v17568_v36  ;;  %v578_v52 = vld [vmem:[%s16586_s4 + $0x50] sm:$0xff] }
 0x352   : > { %vm2704_vm8 = vcmp.eq.f32.partialorder %v12498_v5, inf  ;;  %vm2706_vm9 = vcmp.eq.f32.partialorder %v12498_v5, 0.0  ;;  %v1980_v46 = vsub.f32 %v1879_v19, %v17539_v61  ;;  %v2694_v54 = vsel %vm2692_vm7, %v2693_v13, %v2691_v56  ;;  %v17586_v13 = vld [vmem:[#allocation43_spill] sm:$0xff] }
 0x353   : > { %8187 = vrsqrt.f32 %v12610_v4  ;;  %v2270_v60 = vadd.f32 %v17582_v3, %v2010_v53  ;;  %5433 = vperm.xlu0 %8073, %v576_v42   ;;  %v4314_v28 = vsub.f32 %v4205_v7, %v17568_v36  ;;  %v2703_v33 = vmul.f32 %v8180_v31, %v12498_v5  ;;  %v4235_v7 = vpop.permute.xlu1 %4234  ;;  %v17585_v53 = vld [vmem:[#allocation175_spill] sm:$0xff] }
 0x354   : > { %v2707_v21 = vand.u32 2147483648, %v12498_v5  ;;  %vm2718_vm10 = vcmp.eq.f32.partialorder %v12517_v26, inf  ;;  %v2012_v35 = vmul.f32 %v1980_v46, %v1980_v46  ;;  %v17584_v40 = vlaneseq  ;;  %v1889_v31 = vpop.permute.xlu0 %1888 }
 0x355   : > { %v12635_v43 = vadd.f32 %v17583_v59, %v2270_v60  ;;  %4866 = vperm.xlu1 %8071, %v8365_v10   ;;  %v2717_v42 = vmul.f32 %v8182_v2, %v12517_v26  ;;  %v12642_v56 = vmul.f32 %v4312_v37, %v4312_v37  ;;  %v5341_v47 = vstv %s7890_s21  ;;  %v580_v37 = vld [vmem:[%s16586_s4 + $0x60] sm:$0xff]  ;;  %s14409_s21 = smov 0  }
 0x356   : > { %v8184_v24 = vpop.eup %8183  ;;  %v5340_v51 = vand.u32 127, %v17584_v40  ;;  %v2906_v22 = vmul.f32 %v2694_v54, %v17585_v53  ;;  %vm2720_vm11 = vcmp.eq.f32.partialorder %v12517_v26, 0.0  ;;  %v2272_v19 = vadd.f32 %v17586_v13, %v2012_v35  ;;  %v17587_v54 = vld [vmem:[#allocation189_spill] sm:$0xff] }
 0x357   : > { %v1982_v3 = vsub.f32 %v1889_v31, %v17539_v61  ;;  %5439 = vperm.xlu0 %8073, %v578_v52   ;;  %v2721_v60 = vand.u32 2147483648, %v12517_v26  ;;  %v2731_v46 = vmul.f32 %v8184_v24, %v12551_v15  ;;  %v12650_v59 = vmul.f32 %v4314_v28, %v4314_v28  ;;  %v17589_v52 = vld [vmem:[#allocation164_spill] sm:$0xff]  ;;  %v4245_v28 = vpop.permute.xlu1 %4244 }
 0x358   : > { %v4316_v2 = vsub.f32 %v4215_v45, %v17568_v36  ;;  %v12657_v10 = vadd.s32 8, %v17587_v54  ;;  %v2705_v35 = vsel %vm2704_vm8, %v12498_v5, %v2703_v33  ;;  %8189 = vrsqrt.f32 %v12635_v43  ;;  %v8366_v45 = vld [vmem:[%s16582_s0 + $0x28] sm:$0xff]  ;;  %v1899_v33 = vpop.permute.xlu0 %1898 }
 0x359   : > { %v12664_v40 = vadd.f32 %v17589_v52, %v2272_v19  ;;  %4874 = vperm.xlu1 %8071, %v8366_v45   ;;  %v12669_v24 = vadd.s32 %v5341_v47, %v5340_v51  ;;  %v2719_v31 = vsel %vm2718_vm10, %v12517_v26, %v2717_v42  ;;  %v8186_v53 = vpop.eup %8185  ;;  %v2014_v13 = vmul.f32 %v1982_v3, %v1982_v3 }
 0x35a   : > { %17588 = vst [vmem:[#allocation14_spill] sm:$0xff] %v12657_v10  ;;  %v2938_v16 = vadd.f32 %v2906_v22, %v12225_v25  ;;  %v12676_v19 = vadd.s32 32, %v17587_v54  ;;  %vm2732_vm12 = vcmp.eq.f32.partialorder %v12551_v15, inf  ;;  %v4318_v52 = vsub.f32 %v4225_v58, %v17568_v36  ;;  %v582_v25 = vld [vmem:[%s16586_s4 + $0x70] sm:$0xff] }
 0x35b   : > { %17590 = vst [vmem:[#allocation163_spill] sm:$0xff] %v12669_v24  ;;  %v1984_v45 = vsub.f32 %v1899_v33, %v17539_v61  ;;  %5445 = vperm.xlu0 %8073, %v580_v37   ;;  %v2708_v51 = vsel %vm2706_vm9, %v2707_v21, %v2705_v35  ;;  %v2733_v42 = vsel %vm2732_vm12, %v12551_v15, %v2731_v46  ;;  %v2735_v58 = vand.u32 2147483648, %v12551_v15  ;;  %v8367_v21 = vld [vmem:[%s16582_s0 + $0x38] sm:$0xff]  ;;  %v4255_v46 = vpop.permute.xlu1 %4254  ;;  %v17594_v35 = vld [vmem:[#allocation72_spill] sm:$0xff] }
 0x35c   : > { %17591 = vst [vmem:[#allocation184_spill] sm:$0xff] %v12676_v19  ;;  %v12684_v47 = vmul.f32 %v4316_v2, %v4316_v2  ;;  %v4320_v3 = vsub.f32 %v4235_v7, %v17568_v36  ;;  %v2722_v22 = vsel %vm2720_vm11, %v2721_v60, %v2719_v31  ;;  %8191 = vrsqrt.f32 %v12664_v40  ;;  %v17592_v2 = vld [vmem:[#allocation50_spill] sm:$0xff]  ;;  %v1909_v26 = vpop.permute.xlu0 %1908 }
 0x35d   : > { %v8188_v33 = vpop.eup %8187  ;;  %v2016_v5 = vmul.f32 %v1984_v45, %v1984_v45  ;;  %4882 = vperm.xlu1 %8071, %v8367_v21   ;;  %vm2734_vm13 = vcmp.eq.f32.partialorder %v12551_v15, 0.0  ;;  %v2745_v7 = vmul.f32 %v8186_v53, %v12579_v12  ;;  %v2274_v37 = vadd.f32 %v17592_v2, %v2014_v13  ;;  %v17597_v15 = vld [vmem:[#allocation74_spill] sm:$0xff]  ;;  %v17600_v2 = vld [vmem:[#allocation148_spill] sm:$0xff] }
 0x35e   : > { %v12701_v60 = vadd.s32 48, %v17587_v54  ;;  %v2908_v31 = vmul.f32 %v2708_v51, %v17594_v35  ;;  %v2736_v18 = vsel %vm2734_vm13, %v2735_v58, %v2733_v42  ;;  %v12704_v45 = vmul.f32 %v4318_v52, %v4318_v52  ;;  %v584_v51 = vld [vmem:[%s16586_s4 + $0x80] sm:$0xff] }
 0x35f   : > { %5451 = vperm.xlu0 %8073, %v582_v25   ;;  %v12707_v34 = vadd.f32 %v17595_v29, %v2938_v16  ;;  %v12710_v21 = vadd.s32 64, %v17587_v54  ;;  %v2910_v53 = vmul.f32 %v2722_v22, %v17597_v15  ;;  %v12713_v9 = vmul.f32 %v4320_v3, %v4320_v3  ;;  %v17598_v29 = vld [vmem:[#allocation70_spill] sm:$0xff]  ;;  %v8368_v25 = vld [vmem:[%s16582_s0 + $0x48] sm:$0xff]  ;;  %v4399_v15 = vpop.permute.xlu1 %4398 }
 0x360   : > { %17593 = vst [vmem:[#allocation16_spill] sm:$0xff] %v12701_v60  ;;  %v1986_v13 = vsub.f32 %v1909_v26, %v17539_v61  ;;  %vm2746_vm14 = vcmp.eq.f32.partialorder %v12579_v12, inf  ;;  %v2759_v52 = vmul.f32 %v8188_v33, %v12610_v4  ;;  %v4322_v16 = vsub.f32 %v4245_v28, %v17568_v36  ;;  %v17599_v3 = vld [vmem:[#allocation54_spill] sm:$0xff]  ;;  %v1919_v35 = vpop.permute.xlu0 %1918 }
 0x361   : > { %17596 = vst [vmem:[#allocation63_spill] sm:$0xff] %v12710_v21  ;;  %v2276_v42 = vadd.f32 %v17598_v29, %v2016_v5  ;;  %4890 = vperm.xlu1 %8071, %v8368_v25   ;;  %v2912_v22 = vmul.f32 %v2736_v18, %v17599_v3  ;;  %v2747_v58 = vsel %vm2746_vm14, %v12579_v12, %v2745_v7  ;;  %v12735_v28 = vadd.s32 80, %v17587_v54  ;;  %v17603_v18 = vld [vmem:[#allocation83_spill] sm:$0xff] }
 0x362   : > { %v12729_v26 = vadd.f32 %v17600_v2, %v2274_v37  ;;  %v12732_v33 = vadd.f32 %v2908_v31, %v17601_v1  ;;  %v2749_v5 = vand.u32 2147483648, %v12579_v12  ;;  %v8190_v29 = vpop.eup %8189  ;;  %v1988_v25 = vsub.f32 %v1919_v35, %v17539_v61  ;;  %v586_v37 = vld [vmem:[%s16586_s4 + $0x90] sm:$0xff]  ;;  %v17604_v61 = vld [vmem:[#allocation166_spill] sm:$0xff] }
 0x363   : > { %17602 = vst [vmem:[#allocation182_spill] sm:$0xff] %v12735_v28  ;;  %5457 = vperm.xlu0 %8073, %v584_v51   ;;  %v12740_v3 = vadd.f32 %v2910_v53, %v17603_v18  ;;  %vm2748_vm15 = vcmp.eq.f32.partialorder %v12579_v12, 0.0  ;;  %vm2760_vm0 = vcmp.eq.f32.partialorder %v12610_v4, inf  ;;  %v4324_v7 = vsub.f32 %v4255_v46, %v17568_v36  ;;  %v8369_v12 = vld [vmem:[%s16582_s0 + $0x58] sm:$0xff] }
 0x364   : > { %v2018_v1 = vmul.f32 %v1986_v13, %v1986_v13  ;;  %v2750_v31 = vsel %vm2748_vm15, %v2749_v5, %v2747_v58  ;;  %v2761_v2 = vsel %vm2760_vm0, %v12610_v4, %v2759_v52  ;;  %v12749_v49 = vmul.f32 %v4322_v16, %v4322_v16  ;;  %v17605_v53 = vld [vmem:[#allocation86_spill] sm:$0xff]  ;;  %v2972_v35 = vpop.permute.xlu0 %2971  ;;  %v4407_v52 = vpop.permute.xlu1 %4406  ;;  %v17606_v5 = vld [vmem:[#allocation135_spill] sm:$0xff] }
 0x365   : > { %v12752_v51 = vadd.f32 %v17604_v61, %v2276_v42  ;;  %4898 = vperm.xlu1 %8071, %v8369_v12   ;;  %v12758_v46 = vadd.f32 %v2912_v22, %v17605_v53  ;;  %v2763_v13 = vand.u32 2147483648, %v12610_v4  ;;  %8193 = vrsqrt.f32 %v12729_v26  ;;  %v17608_v22 = vld [vmem:[#allocation76_spill] sm:$0xff] }
 0x366   : > { %v2020_v58 = vmul.f32 %v1988_v25, %v1988_v25  ;;  %vm2762_vm1 = vcmp.eq.f32.partialorder %v12610_v4, 0.0  ;;  %v2773_v16 = vmul.f32 %v8190_v29, %v12635_v43  ;;  %v8192_v42 = vpop.eup %8191  ;;  %v3133_v18 = vsub.f32 %v2972_v35, %v17606_v5  ;;  %v588_v4 = vld [vmem:[%s16586_s4 + $0xa0] sm:$0xff] }
 0x367   : > { %5463 = vperm.xlu0 %8073, %v586_v37   ;;  %v12766_v61 = vadd.s32 96, %v17587_v54  ;;  %v2914_v12 = vmul.f32 %v2750_v31, %v17608_v22  ;;  %v2764_v53 = vsel %vm2762_vm1, %v2763_v13, %v2761_v2  ;;  %v12769_v41 = vmul.f32 %v4324_v7, %v4324_v7  ;;  %v8370_v31 = vld [vmem:[%s16582_s0 + $0x68] sm:$0xff] }
 0x368   : > { %v2278_v25 = vadd.f32 %v17609_v20, %v2018_v1  ;;  %v4529_v23 = vsub.f32 %v4399_v15, %v17610_v48  ;;  %v12777_v29 = vadd.s32 112, %v17587_v54  ;;  %8195 = vrsqrt.f32 %v12752_v51  ;;  %v17612_v20 = vld [vmem:[#allocation49_spill] sm:$0xff]  ;;  %v2987_v7 = vpop.permute.xlu0 %2986  ;;  %v4411_v1 = vpop.permute.xlu1 %4410  ;;  %v17613_v2 = vld [vmem:[#allocation51_spill] sm:$0xff] }
 0x369   : > { %17607 = vst [vmem:[#allocation119_spill] sm:$0xff] %v12766_v61  ;;  %v3165_v37 = vmul.f32 %v3133_v18, %v3133_v18  ;;  %4906 = vperm.xlu1 %8071, %v8370_v31   ;;  %vm2774_vm2 = vcmp.eq.f32.partialorder %v12635_v43, inf  ;;  %vm2776_vm3 = vcmp.eq.f32.partialorder %v12635_v43, 0.0  ;;  %v2280_v15 = vadd.f32 %v17612_v20, %v2020_v58  ;;  %v17614_v18 = vld [vmem:[#allocation59_spill] sm:$0xff]  ;;  %v17615_v31 = vld [vmem:[#allocation88_spill] sm:$0xff] }
 0x36a   : > { %17611 = vst [vmem:[#allocation17_spill] sm:$0xff] %v12777_v29  ;;  %v2916_v13 = vmul.f32 %v2764_v53, %v17613_v2  ;;  %v2775_v35 = vsel %vm2774_vm2, %v12635_v43, %v2773_v16  ;;  %v2787_v22 = vmul.f32 %v8192_v42, %v12664_v40  ;;  %v3136_v61 = vsub.f32 %v2987_v7, %v17606_v5  ;;  %v590_v16 = vld [vmem:[%s16586_s4 + $0xb0] sm:$0xff]  ;;  %v8371_v7 = vld [vmem:[%s16582_s0 + $0x78] sm:$0xff] }
 0x36b   : > { %v3425_v29 = vadd.f32 %v17614_v18, %v3165_v37  ;;  %5469 = vperm.xlu0 %8073, %v588_v4   ;;  %v12792_v28 = vadd.f32 %v2914_v12, %v17615_v31  ;;  %v2777_v21 = vand.u32 2147483648, %v12635_v43  ;;  %v12796_v58 = vadd.f32 %v17616_v62, %v2278_v25  ;;  %v17618_v37 = vld [vmem:[#allocation158_spill] sm:$0xff] }
 0x36c   : > { %v4561_v20 = vmul.f32 %v4529_v23, %v4529_v23  ;;  %v4531_v53 = vsub.f32 %v4407_v52, %v17610_v48  ;;  %v12803_v42 = vadd.s32 128, %v17587_v54  ;;  %v3168_v12 = vmul.f32 %v3136_v61, %v3136_v61  ;;  %v17619_v23 = vld [vmem:[#allocation157_spill] sm:$0xff]  ;;  %v2997_v2 = vpop.permute.xlu0 %2996  ;;  %v4419_v18 = vpop.permute.xlu1 %4418 }
 0x36d   : > { %v12806_v4 = vadd.f32 %v17618_v37, %v3425_v29  ;;  %4914 = vperm.xlu1 %8071, %v8371_v7   ;;  %v2778_v62 = vsel %vm2776_vm3, %v2777_v21, %v2775_v35  ;;  %vm2788_vm4 = vcmp.eq.f32.partialorder %v12664_v40, inf  ;;  %v12815_v52 = vadd.f32 %v17619_v23, %v2280_v15  ;;  %v17621_v29 = vld [vmem:[#allocation197_spill] sm:$0xff]  ;;  %v17623_v35 = vld [vmem:[#allocation78_spill] sm:$0xff] }
 0x36e   : > { %17617 = vst [vmem:[#allocation19_spill] sm:$0xff] %v12803_v42  ;;  %v4532_v25 = vsub.f32 %v4411_v1, %v17610_v48  ;;  %v12819_v31 = vadd.f32 %v2916_v13, %v17621_v29  ;;  %v2789_v61 = vsel %vm2788_vm4, %v12664_v40, %v2787_v22  ;;  %v17622_v37 = vld [vmem:[#allocation61_spill] sm:$0xff]  ;;  %v3138_v43 = vsub.f32 %v2997_v2, %v17606_v5  ;;  %v592_v13 = vld [vmem:[%s16586_s4 + $0xc0] sm:$0xff]  ;;  %v8372_v29 = vld [vmem:[%s16582_s0 + $0x88] sm:$0xff] }
 0x36f   : > { %17620 = vst [vmem:[#allocation173_spill] sm:$0xff] %v12815_v52  ;;  %8197 = vrsqrt.f32 %v12806_v4  ;;  %v3428_v7 = vadd.f32 %v17622_v37, %v3168_v12  ;;  %5475 = vperm.xlu0 %8073, %v590_v16   ;;  %v2791_v21 = vand.u32 2147483648, %v12664_v40  ;;  %v8194_v15 = vpop.eup %8193  ;;  %v4563_v1 = vmul.f32 %v4531_v53, %v4531_v53  ;;  %v17624_v12 = vld [vmem:[#allocation159_spill] sm:$0xff]  ;;  %v17630_v42 = vld [vmem:[#allocation161_spill] sm:$0xff] }
 0x370   : > { %8199 = vrsqrt.f32 %v12796_v58  ;;  %v2918_v23 = vmul.f32 %v2778_v62, %v17623_v35  ;;  %vm2790_vm5 = vcmp.eq.f32.partialorder %v12664_v40, 0.0  ;;  %v12833_v22 = vadd.f32 %v4561_v20, %v12576_v6  ;;  %v3007_v35 = vpop.permute.xlu0 %3006  ;;  %v4427_v40 = vpop.permute.xlu1 %4426 }
 0x371   : > { %v12836_v2 = vadd.f32 %v17624_v12, %v3428_v7  ;;  %v3170_v16 = vmul.f32 %v3138_v43, %v3138_v43  ;;  %4922 = vperm.xlu1 %8071, %v8372_v29   ;;  %v2792_v53 = vsel %vm2790_vm5, %v2791_v21, %v2789_v61  ;;  %8201 = vrsqrt.f32 %v12815_v52  ;;  %v17626_v7 = vld [vmem:[#allocation67_spill] sm:$0xff]  ;;  %v17629_v52 = vld [vmem:[#allocation53_spill] sm:$0xff] }
 0x372   : > { %v4564_v37 = vmul.f32 %v4532_v25, %v4532_v25  ;;  %v4534_v62 = vsub.f32 %v4419_v18, %v17610_v48  ;;  %v12844_v6 = vadd.s32 144, %v17587_v54  ;;  %v8196_v20 = vpop.eup %8195  ;;  %v3140_v12 = vsub.f32 %v3007_v35, %v17606_v5  ;;  %v17627_v25 = vld [vmem:[#allocation92_spill] sm:$0xff] }
 0x373   : > { %8203 = vrsqrt.f32 %v12836_v2  ;;  %v3430_v43 = vadd.f32 %v17626_v7, %v3170_v16  ;;  %5481 = vperm.xlu0 %8073, %v592_v13   ;;  %v2801_v61 = vmul.f32 %v8194_v15, %v12729_v26  ;;  %v12851_v21 = vadd.f32 %v4563_v1, %v12586_v57  ;;  %v8373_v15 = vld [vmem:[%s16582_s0 + $0x98] sm:$0xff] }
 0x374   : > { %17625 = vst [vmem:[#allocation121_spill] sm:$0xff] %v12844_v6  ;;  %v12854_v18 = vadd.f32 %v2918_v23, %v17627_v25  ;;  %v12857_v29 = vadd.s32 160, %v17587_v54  ;;  %v2920_v6 = vmul.f32 %v2792_v53, %v17629_v52  ;;  %v3172_v16 = vmul.f32 %v3140_v12, %v3140_v12  ;;  %v3017_v13 = vpop.permute.xlu0 %3016  ;;  %v4435_v23 = vpop.permute.xlu1 %4434  ;;  %v17631_v52 = vld [vmem:[#allocation75_spill] sm:$0xff]  ;;  %v17634_v25 = vld [vmem:[#allocation165_spill] sm:$0xff] }
 0x375   : > { %v12861_v60 = vadd.f32 %v17630_v42, %v3430_v43  ;;  %v4536_v35 = vsub.f32 %v4427_v40, %v17610_v48  ;;  %4930 = vperm.xlu1 %8071, %v8373_v15   ;;  %vm2802_vm6 = vcmp.eq.f32.partialorder %v12729_v26, inf  ;;  %v12869_v57 = vadd.f32 %v4564_v37, %v12588_v27  ;;  %v17632_v43 = vld [vmem:[#allocation95_spill] sm:$0xff] }
 0x376   : > { %17628 = vst [vmem:[#allocation22_spill] sm:$0xff] %v12857_v29  ;;  %v4566_v1 = vmul.f32 %v4534_v62, %v4534_v62  ;;  %vm2804_vm7 = vcmp.eq.f32.partialorder %v12729_v26, 0.0  ;;  %v2805_v42 = vand.u32 2147483648, %v12729_v26  ;;  %v3432_v53 = vadd.f32 %v17631_v52, %v3172_v16 }
 0x377   : > { %8205 = vrsqrt.f32 %v12861_v60  ;;  %v3142_v40 = vsub.f32 %v3017_v13, %v17606_v5  ;;  %vm3851_vm8 = vcmp.eq.f32.partialorder %v12806_v4, inf  ;;  %v12879_v27 = vadd.f32 %v2920_v6, %v17632_v43  ;;  %v8374_v13 = vld [vmem:[%s16582_s0 + $0xa8] sm:$0xff] }
 0x378   : > { %v12882_v37 = vadd.s32 176, %v17587_v54  ;;  %v2803_v62 = vsel %vm2802_vm6, %v12729_v26, %v2801_v61  ;;  %v12886_v15 = vadd.f32 %v17634_v25, %v3432_v53  ;;  %v4568_v29 = vmul.f32 %v4536_v35, %v4536_v35  ;;  %v3027_v7 = vpop.permute.xlu0 %3026  ;;  %v17635_v35 = vld [vmem:[#allocation79_spill] sm:$0xff] }
 0x379   : > { %v8198_v12 = vpop.eup %8197  ;;  %v3174_v16 = vmul.f32 %v3142_v40, %v3142_v40  ;;  %4938 = vperm.xlu1 %8071, %v8374_v13   ;;  %v2815_v52 = vmul.f32 %v8196_v20, %v12752_v51  ;;  %v12895_v43 = vadd.f32 %v4566_v1, %v12600_v50  ;;  %v4538_v61 = vsub.f32 %v4435_v23, %v17610_v48 }
 0x37a   : > { %17633 = vst [vmem:[#allocation150_spill] sm:$0xff] %v12882_v37  ;;  %v12892_v6 = vpop.eup %8199  ;;  %v4443_v37 = vpop.permute.xlu1 %4442  ;;  %vm3853_vm9 = vcmp.eq.f32.partialorder %v12806_v4, 0.0  ;;  %vm3872_vm10 = vcmp.eq.f32.partialorder %v12836_v2, inf  ;;  %vm3874_vm11 = vcmp.eq.f32.partialorder %v12836_v2, 0.0  ;;  %8207 = vrsqrt.f32 %v12886_v15 }
 0x37b   : > { %v3434_v53 = vadd.f32 %v17635_v35, %v3174_v16  ;;  %v3144_v20 = vsub.f32 %v3027_v7, %v17606_v5  ;;  %v3875_v40 = vand.u32 2147483648, %v12836_v2  ;;  %v12905_v50 = vpop.eup %8201  ;;  %v3850_v1 = vmul.f32 %v8198_v12, %v12806_v4  ;;  %v17638_v16 = vld [vmem:[#allocation180_spill] sm:$0xff]  ;;  %v8375_v12 = vld [vmem:[%s16582_s0 + $0xb8] sm:$0xff] }
 0x37c   : > { %17636 = vst [vmem:[#allocation123_spill] sm:$0xff] %v12905_v50  ;;  %v2806_v23 = vsel %vm2804_vm7, %v2805_v42, %v2803_v62  ;;  %v12911_v25 = vadd.s32 192, %v17587_v54  ;;  %vm2816_vm12 = vcmp.eq.f32.partialorder %v12752_v51, inf  ;;  %v12915_v11 = vadd.f32 %v4568_v29, %v12602_v14  ;;  %v3037_v42 = vpop.permute.xlu0 %3036  ;;  %v17639_v29 = vld [vmem:[#allocation81_spill] sm:$0xff] }
 0x37d   : > { %v8204_v13 = vpop.eup %8203  ;;  %v12918_v7 = vadd.f32 %v17638_v16, %v3434_v53  ;;  %v3176_v35 = vmul.f32 %v3144_v20, %v3144_v20  ;;  %4946 = vperm.xlu1 %8071, %v8375_v12   ;;  %vm3886_vm13 = vcmp.eq.f32.partialorder %v12861_v60, inf  ;;  %v4570_v26 = vmul.f32 %v4538_v61, %v4538_v61  ;;  %v568_v16 = vld [vmem:[%s16586_s4] sm:$0xff] }
 0x37e   : > { %17637 = vst [vmem:[#allocation23_spill] sm:$0xff] %v12911_v25  ;;  %v4451_v62 = vpop.permute.xlu1 %4450  ;;  %v3871_v54 = vmul.f32 %v8204_v13, %v12836_v2  ;;  %vm3888_vm14 = vcmp.eq.f32.partialorder %v12861_v60, 0.0  ;;  %v3889_v14 = vand.u32 2147483648, %v12861_v60  ;;  %v3146_v20 = vsub.f32 %v3037_v42, %v17606_v5  ;;  %v17640_v12 = vld [vmem:[#allocation58_spill] sm:$0xff] }
 0x37f   : > { %8209 = vrsqrt.f32 %v12918_v7  ;;  %v3436_v53 = vadd.f32 %v17639_v29, %v3176_v35  ;;  %v2922_v61 = vmul.f32 %v2806_v23, %v17640_v12  ;;  %v4540_v50 = vsub.f32 %v4443_v37, %v17610_v48  ;;  %v17641_v29 = vld [vmem:[#allocation181_spill] sm:$0xff] }
 0x380   : > { %v3852_v13 = vsel %vm3851_vm8, %v12806_v4, %v3850_v1  ;;  %v3873_v25 = vsel %vm3872_vm10, %v12836_v2, %v3871_v54  ;;  %v12944_v35 = vsel %vm2816_vm12, %v12752_v51, %v2815_v52  ;;  %v3178_v23 = vmul.f32 %v3146_v20, %v3146_v20  ;;  %v3047_v54 = vpop.permute.xlu0 %3046  ;;  %v17643_v52 = vld [vmem:[#allocation168_spill] sm:$0xff] }
 0x381   : > { %v8206_v42 = vpop.eup %8205  ;;  %v12947_v19 = vadd.f32 %v17641_v29, %v3436_v53  ;;  %v17642_v12 = vmov 0   ;;  %v3876_v37 = vsel %vm3874_vm11, %v3875_v40, %v3873_v25  ;;  %v2819_v1 = vand.u32 2147483648, %v12752_v51  ;;  %v17644_v53 = vld [vmem:[#allocation84_spill] sm:$0xff] }
 0x382   : > { %8074 = vset.pattern.permute.xlu1 %v17642_v12  ;;  %v12954_v10 = vadd.f32 %v4570_v26, %v12617_v8  ;;  %v4459_v24 = vpop.permute.xlu1 %4458  ;;  %v4076_v17 = vmul.f32 %v3876_v37, %v17643_v52  ;;  %v3885_v38 = vmul.f32 %v8206_v42, %v12861_v60  ;;  %vm3900_vm15 = vcmp.eq.f32.partialorder %v12886_v15, inf  ;;  %v570_v8 = vld [vmem:[%s16586_s4 + $0x10] sm:$0xff] }
 0x383   : > { %5409 = vperm.xlu1 %8074, %v568_v16   ;;  %8211 = vrsqrt.f32 %v12947_v19  ;;  %v3438_v20 = vadd.f32 %v17644_v53, %v3178_v23  ;;  %v3148_v2 = vsub.f32 %v3047_v54, %v17606_v5  ;;  %v17645_v40 = vand.u32 2147483648, %v12806_v4  ;;  %v17646_v12 = vld [vmem:[#allocation169_spill] sm:$0xff]  ;;  %v17648_v53 = vld [vmem:[#allocation87_spill] sm:$0xff] }
 0x384   : > { %v4572_v26 = vmul.f32 %v4540_v50, %v4540_v50  ;;  %v4542_v16 = vsub.f32 %v4451_v62, %v17610_v48  ;;  %v12971_v42 = vadd.f32 %v4076_v17, %v12732_v33  ;;  %v3887_v29 = vsel %vm3886_vm13, %v12861_v60, %v3885_v38  ;;  %v8208_v23 = vpop.eup %8207  ;;  %v3057_v4 = vpop.permute.xlu0 %3056  ;;  %v17647_v62 = vld [vmem:[#allocation191_spill] sm:$0xff] }
 0x385   : > { %v3855_v25 = vsel %vm3853_vm9, %v17645_v40, %v3852_v13  ;;  %v12977_v37 = vadd.f32 %v17646_v12, %v3438_v20  ;;  %v3180_v54 = vmul.f32 %v3148_v2, %v3148_v2  ;;  %v3890_v52 = vsel %vm3888_vm14, %v3889_v14, %v3887_v29  ;;  %v571_v14 = vld [vmem:[%s16586_s4 + $0x18] sm:$0xff]  ;;  %v17650_v12 = vld [vmem:[#allocation179_spill] sm:$0xff] }
 0x386   : > { %vm3902_vm0 = vcmp.eq.f32.partialorder %v12886_v15, 0.0  ;;  %v4467_v50 = vpop.permute.xlu1 %4466  ;;  %v4073_v17 = vmul.f32 %v3855_v25, %v17647_v62  ;;  %v4078_v33 = vmul.f32 %v3890_v52, %v12212_v63  ;;  %v3899_v13 = vmul.f32 %v8208_v23, %v12886_v15  ;;  %v17649_v2 = vld [vmem:[#allocation97_spill] sm:$0xff] }
 0x387   : > { %5415 = vperm.xlu1 %8074, %v570_v8   ;;  %v3903_v38 = vand.u32 2147483648, %v12886_v15  ;;  %8213 = vrsqrt.f32 %v12977_v37  ;;  %v3440_v20 = vadd.f32 %v17648_v53, %v3180_v54  ;;  %v3150_v60 = vsub.f32 %v3057_v4, %v17606_v5  ;;  %v17652_v53 = vld [vmem:[#allocation151_spill] sm:$0xff] }
 0x388   : > { %v12993_v8 = vadd.f32 %v2922_v61, %v17649_v2  ;;  %v12996_v40 = vadd.f32 %v4572_v26, %v12642_v56  ;;  %v4574_v63 = vmul.f32 %v4542_v16, %v4542_v16  ;;  %v12999_v25 = vadd.f32 %v4078_v33, %v12740_v3  ;;  %v3067_v56 = vpop.permute.xlu0 %3066  ;;  %v17651_v33 = vld [vmem:[#allocation90_spill] sm:$0xff] }
 0x389   : > { %v3901_v29 = vsel %vm3900_vm15, %v12886_v15, %v3899_v13  ;;  %v8210_v23 = vpop.eup %8209  ;;  %v13005_v54 = vadd.f32 %v17650_v12, %v3440_v20  ;;  %v4544_v52 = vsub.f32 %v4459_v24, %v17610_v48  ;;  %v3182_v4 = vmul.f32 %v3150_v60, %v3150_v60 }
 0x38a   : > { %v3904_v61 = vsel %vm3902_vm0, %v3903_v38, %v3901_v29  ;;  %v4475_v26 = vpop.permute.xlu1 %4474  ;;  %v3913_v16 = vmul.f32 %v8210_v23, %v12918_v7  ;;  %vm3914_vm1 = vcmp.eq.f32.partialorder %v12918_v7, inf  ;;  %v3917_v62 = vand.u32 2147483648, %v12918_v7  ;;  %v573_v38 = vld [vmem:[%s16586_s4 + $0x28] sm:$0xff]  ;;  %v17653_v29 = vld [vmem:[#allocation66_spill] sm:$0xff] }
 0x38b   : > { %5418 = vperm.xlu1 %8074, %v571_v14   ;;  %v4080_v3 = vmul.f32 %v3904_v61, %v12257_v0  ;;  %8215 = vrsqrt.f32 %v13005_v54  ;;  %v3442_v13 = vadd.f32 %v17651_v33, %v3182_v4  ;;  %v4546_v24 = vsub.f32 %v4467_v50, %v17610_v48 }
 0x38c   : > { %v3152_v15 = vsub.f32 %v3067_v56, %v17606_v5  ;;  %v13022_v0 = vadd.f32 %v4073_v17, %v17652_v53  ;;  %v3915_v60 = vsel %vm3914_vm1, %v12918_v7, %v3913_v16  ;;  %vm3916_vm2 = vcmp.eq.f32.partialorder %v12918_v7, 0.0  ;;  %v3077_v61 = vpop.permute.xlu0 %3076 }
 0x38d   : > { %v13025_v20 = vadd.f32 %v4080_v3, %v12758_v46  ;;  %v8212_v14 = vpop.eup %8211  ;;  %v13030_v2 = vadd.f32 %v4574_v63, %v12650_v59  ;;  %v4576_v50 = vmul.f32 %v4544_v52, %v4544_v52  ;;  %v13033_v23 = vadd.f32 %v17653_v29, %v3442_v13  ;;  %v575_v63 = vld [vmem:[%s16586_s4 + $0x38] sm:$0xff]  ;;  %v577_v29 = vld [vmem:[%s16586_s4 + $0x48] sm:$0xff] }
 0x38e   : > { %v3918_v12 = vsel %vm3916_vm2, %v3917_v62, %v3915_v60  ;;  %v3184_v4 = vmul.f32 %v3152_v15, %v3152_v15  ;;  %v4483_v17 = vpop.permute.xlu1 %4482  ;;  %v3927_v56 = vmul.f32 %v8212_v14, %v12947_v19  ;;  %vm3928_vm3 = vcmp.eq.f32.partialorder %v12947_v19, inf }
 0x38f   : > { %5424 = vperm.xlu1 %8074, %v573_v38   ;;  %v4082_v46 = vmul.f32 %v3918_v12, %v12279_v39  ;;  %8217 = vrsqrt.f32 %v13033_v23  ;;  %v4578_v7 = vmul.f32 %v4546_v24, %v4546_v24  ;;  %v3154_v59 = vsub.f32 %v3077_v61, %v17606_v5  ;;  %v17654_v24 = vld [vmem:[#allocation91_spill] sm:$0xff] }
 0x390   : > { %v3931_v52 = vand.u32 2147483648, %v12947_v19  ;;  %v4548_v3 = vsub.f32 %v4475_v26, %v17610_v48  ;;  %v3929_v39 = vsel %vm3928_vm3, %v12947_v19, %v3927_v56  ;;  %vm3930_vm4 = vcmp.eq.f32.partialorder %v12947_v19, 0.0  ;;  %v3087_v38 = vpop.permute.xlu0 %3086 }
 0x391   : > { %v13046_v16 = vadd.f32 %v4082_v46, %v12792_v28  ;;  %v8214_v62 = vpop.eup %8213  ;;  %v13051_v33 = vadd.f32 %v4576_v50, %v12684_v47  ;;  %vm3942_vm5 = vcmp.eq.f32.partialorder %v12977_v37, inf  ;;  %vm3944_vm6 = vcmp.eq.f32.partialorder %v12977_v37, 0.0  ;;  %v17655_v46 = vld [vmem:[#allocation183_spill] sm:$0xff] }
 0x392   : > { %v3932_v13 = vsel %vm3930_vm4, %v3931_v52, %v3929_v39  ;;  %v3444_v15 = vadd.f32 %v17654_v24, %v3184_v4  ;;  %v4491_v26 = vpop.permute.xlu1 %4490  ;;  %v3941_v53 = vmul.f32 %v8214_v62, %v12977_v37  ;;  %v3945_v19 = vand.u32 2147483648, %v12977_v37  ;;  %v579_v62 = vld [vmem:[%s16586_s4 + $0x58] sm:$0xff] }
 0x393   : > { %5430 = vperm.xlu1 %8074, %v575_v63   ;;  %v4084_v28 = vmul.f32 %v3932_v13, %v12315_v30  ;;  %vm2818_vm7 = vcmp.eq.f32.partialorder %v12752_v51, 0.0  ;;  %v13061_v47 = vadd.f32 %v4578_v7, %v12704_v45  ;;  %v3186_v60 = vmul.f32 %v3154_v59, %v3154_v59  ;;  %v17656_v63 = vld [vmem:[#allocation94_spill] sm:$0xff]  ;;  %v17657_v13 = vld [vmem:[#allocation145_spill] sm:$0xff] }
 0x394   : > { %v4550_v14 = vsub.f32 %v4483_v17, %v17610_v48  ;;  %v3156_v50 = vsub.f32 %v3087_v38, %v17606_v5  ;;  %v4580_v12 = vmul.f32 %v4548_v3, %v4548_v3  ;;  %v3943_v4 = vsel %vm3942_vm5, %v12977_v37, %v3941_v53  ;;  %v17658_v53 = vld [vmem:[#allocation96_spill] sm:$0xff] }
 0x395   : > { %v13069_v30 = vadd.f32 %v4084_v28, %v12819_v31  ;;  %vm3956_vm8 = vcmp.eq.f32.partialorder %v13005_v54, inf  ;;  %v8216_v45 = vpop.eup %8215  ;;  %v3946_v17 = vsel %vm3944_vm6, %v3945_v19, %v3943_v4  ;;  %vm3958_vm9 = vcmp.eq.f32.partialorder %v13005_v54, 0.0  ;;  %v4145_v31 = vpop.permute.xlu0 %4144 }
 0x396   : > { %v3188_v61 = vmul.f32 %v3156_v50, %v3156_v50  ;;  %v3959_v5 = vand.u32 2147483648, %v13005_v54  ;;  %v13080_v56 = vadd.f32 %v17655_v46, %v3444_v15  ;;  %v4086_v7 = vmul.f32 %v3946_v17, %v12361_v55  ;;  %v4627_v39 = vpop.permute.xlu1 %4626  ;;  %v17659_v17 = vld [vmem:[#allocation188_spill] sm:$0xff] }
 0x397   : > { %5436 = vperm.xlu1 %8074, %v577_v29   ;;  %v3955_v59 = vmul.f32 %v8216_v45, %v13005_v54  ;;  %vm3970_vm10 = vcmp.eq.f32.partialorder %v13033_v23, inf  ;;  %v3446_v52 = vadd.f32 %v17656_v63, %v3186_v60  ;;  %v4582_v3 = vmul.f32 %v4550_v14, %v4550_v14 }
 0x398   : > { %v4302_v37 = vsub.f32 %v4145_v31, %v17568_v36  ;;  %vm3972_vm11 = vcmp.eq.f32.partialorder %v13033_v23, 0.0  ;;  %v4757_v24 = vsub.f32 %v4627_v39, %v17657_v13  ;;  %v13093_v55 = vadd.f32 %v4086_v7, %v12854_v18  ;;  %v17661_v31 = vld [vmem:[#allocation99_spill] sm:$0xff] }
 0x399   : > { %v3957_v15 = vsel %vm3956_vm8, %v13005_v54, %v3955_v59  ;;  %v3973_v38 = vand.u32 2147483648, %v13033_v23  ;;  %v8218_v28 = vpop.eup %8217  ;;  %v3448_v19 = vadd.f32 %v17658_v53, %v3188_v61  ;;  %v4552_v60 = vsub.f32 %v4491_v26, %v17610_v48  ;;  %v4160_v18 = vpop.permute.xlu0 %4159  ;;  %v581_v54 = vld [vmem:[%s16586_s4 + $0x68] sm:$0xff]  ;;  %v17666_v53 = vld [vmem:[#allocation101_spill] sm:$0xff] }
 0x39a   : > { %v4334_v14 = vmul.f32 %v4302_v37, %v4302_v37  ;;  %v3960_v50 = vsel %vm3958_vm9, %v3959_v5, %v3957_v15  ;;  %8219 = vrsqrt.f32 %v13080_v56  ;;  %v4789_v29 = vmul.f32 %v4757_v24, %v4757_v24  ;;  %v4635_v26 = vpop.permute.xlu1 %4634 }
 0x39b   : > { %5442 = vperm.xlu1 %8074, %v579_v62   ;;  %v4088_v4 = vmul.f32 %v3960_v50, %v12397_v44  ;;  %v3969_v45 = vmul.f32 %v8218_v28, %v13033_v23  ;;  %v13107_v46 = vadd.f32 %v17659_v17, %v3446_v52  ;;  %v4305_v48 = vsub.f32 %v4160_v18, %v17568_v36  ;;  %v17662_v52 = vld [vmem:[#allocation187_spill] sm:$0xff]  ;;  %v17664_v62 = vld [vmem:[#allocation64_spill] sm:$0xff]  ;;  %v583_v50 = vld [vmem:[%s16586_s4 + $0x78] sm:$0xff] }
 0x39c   : > { %v4594_v61 = vadd.f32 %v17661_v31, %v4334_v14  ;;  %v2820_v44 = vsel %vm2818_vm7, %v2819_v1, %v12944_v35  ;;  %v13120_v5 = vadd.f32 %v4789_v29, %v12833_v22  ;;  %v4759_v7 = vsub.f32 %v4635_v26, %v17657_v13  ;;  %v17665_v1 = vld [vmem:[#allocation55_spill] sm:$0xff] }
 0x39d   : > { %17660 = vst [vmem:[#allocation26_spill] sm:$0xff] %v13107_v46  ;;  %v13124_v59 = vadd.f32 %v4088_v4, %v12879_v27  ;;  %v3971_v63 = vsel %vm3970_vm10, %v13033_v23, %v3969_v45  ;;  %v13130_v37 = vadd.f32 %v17662_v52, %v3448_v19  ;;  %v4584_v39 = vmul.f32 %v4552_v60, %v4552_v60  ;;  %v4170_v35 = vpop.permute.xlu0 %4169  ;;  %v17670_v31 = vld [vmem:[#allocation103_spill] sm:$0xff] }
 0x39e   : > { %v13133_v24 = vadd.f32 %v17664_v62, %v4594_v61  ;;  %v4337_v51 = vmul.f32 %v4305_v48, %v4305_v48  ;;  %8221 = vrsqrt.f32 %v13120_v5  ;;  %v4791_v22 = vmul.f32 %v4759_v7, %v4759_v7  ;;  %v4639_v14 = vpop.permute.xlu1 %4638 }
 0x39f   : > { %17663 = vst [vmem:[#allocation126_spill] sm:$0xff] %v13130_v37  ;;  %5448 = vperm.xlu1 %8074, %v581_v54   ;;  %v3974_v27 = vsel %vm3972_vm11, %v3973_v38, %v3971_v63  ;;  %v2924_v15 = vmul.f32 %v2820_v44, %v17665_v1  ;;  %v13140_v28 = vadd.f32 %v4580_v12, %v12713_v9  ;;  %v17667_v12 = vld [vmem:[#allocation69_spill] sm:$0xff]  ;;  %vm5019_vm14 = vcmp.eq.f32.partialorder %v13120_v5, inf }
 0x3a0   : > { %8223 = vrsqrt.f32 %v13133_v24  ;;  %v4597_v19 = vadd.f32 %v17666_v53, %v4337_v51  ;;  %v4307_v60 = vsub.f32 %v4170_v35, %v17568_v36  ;;  %v13150_v23 = vadd.f32 %v4582_v3, %v12749_v49  ;;  %v17671_v63 = vld [vmem:[#allocation73_spill] sm:$0xff] }
 0x3a1   : > { %8225 = vrsqrt.f32 %v13107_v46  ;;  %v13153_v38 = vadd.f32 %v4791_v22, %v12851_v21  ;;  %v4760_v9 = vsub.f32 %v4639_v14, %v17657_v13  ;;  %v4090_v4 = vmul.f32 %v3974_v27, %v12426_v32  ;;  %v4180_v3 = vpop.permute.xlu0 %4179  ;;  %v17668_v21 = vld [vmem:[#allocation100_spill] sm:$0xff]  ;;  %v17673_v1 = vld [vmem:[#allocation105_spill] sm:$0xff]  ;;  %v17701_v46 = vld [vmem:[#allocation115_spill] sm:$0xff] }
 0x3a2   : > { %8227 = vrsqrt.f32 %v13130_v37  ;;  %v13158_v29 = vadd.f32 %v17667_v12, %v4597_v19  ;;  %v4339_v18 = vmul.f32 %v4307_v60, %v4307_v60  ;;  %v13162_v45 = vadd.f32 %v4584_v39, %v12769_v41  ;;  %v4647_v26 = vpop.permute.xlu1 %4646  ;;  %v585_v32 = vld [vmem:[%s16586_s4 + $0x88] sm:$0xff]  ;;  %v17674_v12 = vld [vmem:[#allocation77_spill] sm:$0xff] }
 0x3a3   : > { %8229 = vrsqrt.f32 %v13153_v38  ;;  %v4792_v49 = vmul.f32 %v4760_v9, %v4760_v9  ;;  %5454 = vperm.xlu1 %8074, %v583_v50   ;;  %v13166_v17 = vadd.f32 %v2924_v15, %v17668_v21  ;;  %v4309_v48 = vsub.f32 %v4180_v3, %v17568_v36 }
 0x3a4   : > { %8231 = vrsqrt.f32 %v13158_v29  ;;  %v4599_v61 = vadd.f32 %v17670_v31, %v4339_v18  ;;  %v13175_v54 = vpop.eup %8219  ;;  %v4762_v44 = vsub.f32 %v4647_v26, %v17657_v13  ;;  %vm5026_vm12 = vcmp.eq.f32.partialorder %v13133_v24, inf }
 0x3a5   : > { %17669 = vst [vmem:[#allocation28_spill] sm:$0xff] %v13166_v17  ;;  %vm5028_vm13 = vcmp.eq.f32.partialorder %v13133_v24, 0.0  ;;  %v13182_v7 = vmul.f32 %v12892_v6, %v12796_v58  ;;  %v13188_v39 = vadd.f32 %v4792_v49, %v12869_v57  ;;  %v4341_v62 = vmul.f32 %v4309_v48, %v4309_v48  ;;  %v4190_v35 = vpop.permute.xlu0 %4189 }
 0x3a6   : > { %v13185_v52 = vadd.f32 %v17671_v63, %v4599_v61  ;;  %v13192_v51 = vadd.f32 %v4090_v4, %v12993_v8  ;;  %v4794_v22 = vmul.f32 %v4762_v44, %v4762_v44  ;;  %v5029_v27 = vand.u32 2147483648, %v13133_v24  ;;  %v4655_v53 = vpop.permute.xlu1 %4654  ;;  %v587_v8 = vld [vmem:[%s16586_s4 + $0x98] sm:$0xff] }
 0x3a7   : > { %5460 = vperm.xlu1 %8074, %v585_v32   ;;  %v5022_v6 = vand.u32 2147483648, %v13120_v5  ;;  %vm5033_vm15 = vcmp.eq.f32.partialorder %v13153_v38, inf  ;;  %v4601_v57 = vadd.f32 %v17673_v1, %v4341_v62  ;;  %v4311_v15 = vsub.f32 %v4190_v35, %v17568_v36  ;;  %v17677_v32 = vld [vmem:[#allocation107_spill] sm:$0xff] }
 0x3a8   : > { %17672 = vst [vmem:[#allocation127_spill] sm:$0xff] %v13192_v51  ;;  %8233 = vrsqrt.f32 %v13185_v52  ;;  %vm5047_vm0 = vcmp.eq.f32.partialorder %v13158_v29, inf  ;;  %v8222_v19 = vpop.eup %8221  ;;  %v13205_v60 = vadd.f32 %v4794_v22, %v12895_v43  ;;  %v4764_v14 = vsub.f32 %v4655_v53, %v17657_v13  ;;  %v589_v22 = vld [vmem:[%s16586_s4 + $0xa8] sm:$0xff] }
 0x3a9   : > { %vm5049_vm1 = vcmp.eq.f32.partialorder %v13158_v29, 0.0  ;;  %v5050_v50 = vand.u32 2147483648, %v13158_v29  ;;  %vm5021_vm2 = vcmp.eq.f32.partialorder %v13120_v5, 0.0  ;;  %8235 = vrsqrt.f32 %v13188_v39  ;;  %v4200_v21 = vpop.permute.xlu0 %4199 }
 0x3aa   : > { %v8224_v9 = vpop.eup %8223  ;;  %v13213_v18 = vadd.f32 %v17674_v12, %v4601_v57  ;;  %v4343_v4 = vmul.f32 %v4311_v15, %v4311_v15  ;;  %vm5035_vm3 = vcmp.eq.f32.partialorder %v13153_v38, 0.0  ;;  %v5036_v43 = vand.u32 2147483648, %v13153_v38  ;;  %v4663_v62 = vpop.permute.xlu1 %4662 }
 0x3ab   : > { %v13217_v49 = vpop.eup %8225  ;;  %v4796_v3 = vmul.f32 %v4764_v14, %v4764_v14  ;;  %5466 = vperm.xlu1 %8074, %v587_v8   ;;  %v5025_v31 = vmul.f32 %v8224_v9, %v13133_v24  ;;  %v5018_v61 = vmul.f32 %v8222_v19, %v13120_v5  ;;  %v5064_v48 = vand.u32 2147483648, %v13185_v52  ;;  %v17678_v19 = vld [vmem:[#allocation82_spill] sm:$0xff] }
 0x3ac   : > { %17675 = vst [vmem:[#allocation29_spill] sm:$0xff] %v13217_v49  ;;  %v13222_v26 = vpop.eup %8227  ;;  %8237 = vrsqrt.f32 %v13213_v18  ;;  %v4603_v44 = vadd.f32 %v17677_v32, %v4343_v4  ;;  %v4313_v63 = vsub.f32 %v4200_v21, %v17568_v36  ;;  %v5043_v35 = vand.u32 2147483648, %v13188_v39  ;;  %v17679_v21 = vld [vmem:[#allocation102_spill] sm:$0xff] }
 0x3ad   : > { %17676 = vst [vmem:[#allocation128_spill] sm:$0xff] %v13222_v26  ;;  %v8230_v1 = vpop.eup %8229  ;;  %8239 = vrsqrt.f32 %v13205_v60  ;;  %v13233_v57 = vadd.f32 %v4796_v3, %v12915_v11  ;;  %v4766_v15 = vsub.f32 %v4663_v62, %v17657_v13  ;;  %v5027_v53 = vsel %vm5026_vm12, %v13133_v24, %v5025_v31  ;;  %v4210_v3 = vpop.permute.xlu0 %4209 }
 0x3ae   : > { %vm5061_vm4 = vcmp.eq.f32.partialorder %v13185_v52, inf  ;;  %v8232_v8 = vpop.eup %8231  ;;  %v13241_v14 = vadd.f32 %v17678_v19, %v4603_v44  ;;  %v4345_v9 = vmul.f32 %v4313_v63, %v4313_v63  ;;  %v5030_v12 = vsel %vm5028_vm13, %v5029_v27, %v5027_v53  ;;  %v17680_v63 = vld [vmem:[#allocation108_spill] sm:$0xff]  ;;  %v4671_v62 = vpop.permute.xlu1 %4670 }
 0x3af   : > { %vm5063_vm5 = vcmp.eq.f32.partialorder %v13185_v52, 0.0  ;;  %v5032_v11 = vmul.f32 %v8230_v1, %v13153_v38  ;;  %v4798_v4 = vmul.f32 %v4766_v15, %v4766_v15  ;;  %5472 = vperm.xlu1 %8074, %v589_v22   ;;  %v5242_v32 = vmul.f32 %v5030_v12, %v17679_v21  ;;  %v591_v1 = vld [vmem:[%s16586_s4 + $0xb8] sm:$0xff] }
 0x3b0   : > { %v5046_v31 = vmul.f32 %v8232_v8, %v13158_v29  ;;  %v5020_v44 = vsel %vm5019_vm14, %v13120_v5, %v5018_v61  ;;  %8241 = vrsqrt.f32 %v13241_v14  ;;  %v4605_v24 = vadd.f32 %v17680_v63, %v4345_v9  ;;  %v17681_v9 = vld [vmem:[#allocation85_spill] sm:$0xff]  ;;  %v17682_v21 = vld [vmem:[#allocation106_spill] sm:$0xff] }
 0x3b1   : > { %v4315_v27 = vsub.f32 %v4210_v3, %v17568_v36  ;;  %v5034_v22 = vsel %vm5033_vm15, %v13153_v38, %v5032_v11  ;;  %v13262_v15 = vadd.f32 %v4798_v4, %v12954_v10  ;;  %v4768_v61 = vsub.f32 %v4671_v62, %v17657_v13  ;;  %v4220_v4 = vpop.permute.xlu0 %4219 }
 0x3b2   : > { %v13266_v53 = vadd.f32 %v5242_v32, %v12707_v34  ;;  %v5048_v8 = vsel %vm5047_vm0, %v13158_v29, %v5046_v31  ;;  %v8234_v19 = vpop.eup %8233  ;;  %v13272_v12 = vadd.f32 %v17681_v9, %v4605_v24  ;;  %v13280_v10 = vsel %vm5021_vm2, %v5022_v6, %v5020_v44  ;;  %v17684_v29 = vld [vmem:[#allocation111_spill] sm:$0xff]  ;;  %v4679_v6 = vpop.permute.xlu1 %4678 }
 0x3b3   : > { %v4347_v3 = vmul.f32 %v4315_v27, %v4315_v27  ;;  %v5051_v11 = vsel %vm5049_vm1, %v5050_v50, %v5048_v8  ;;  %8243 = vrsqrt.f32 %v13233_v57  ;;  %v4800_v34 = vmul.f32 %v4768_v61, %v4768_v61  ;;  %5478 = vperm.xlu1 %8074, %v591_v1   ;;  %v8236_v63 = vpop.eup %8235  ;;  %v17686_v8 = vld [vmem:[#allocation89_spill] sm:$0xff] }
 0x3b4   : > { %v5245_v32 = vmul.f32 %v5051_v11, %v17682_v21  ;;  %v13286_v31 = vsel %vm5035_vm3, %v5036_v43, %v5034_v22  ;;  %8245 = vrsqrt.f32 %v13262_v15  ;;  %v4317_v5 = vsub.f32 %v4220_v4, %v17568_v36  ;;  %v17685_v43 = vld [vmem:[#allocation176_spill] sm:$0xff] }
 0x3b5   : > { %17683 = vst [vmem:[#allocation130_spill] sm:$0xff] %v13286_v31  ;;  %v4607_v50 = vadd.f32 %v17684_v29, %v4347_v3  ;;  %v5060_v44 = vmul.f32 %v8234_v19, %v13185_v52  ;;  %vm5040_vm6 = vcmp.eq.f32.partialorder %v13188_v39, inf  ;;  %v13294_v24 = vadd.f32 %v4800_v34, %v12996_v40  ;;  %v17687_v34 = vld [vmem:[#allocation112_spill] sm:$0xff]  ;;  %v17688_v29 = vld [vmem:[#allocation122_spill] sm:$0xff] }
 0x3b6   : > { %v4770_v27 = vsub.f32 %v4679_v6, %v17657_v13  ;;  %v13298_v38 = vadd.f32 0.2, %v13266_v53  ;;  %v13301_v62 = vadd.f32 %v5245_v32, %v17685_v43  ;;  %v8238_v1 = vpop.eup %8237  ;;  %8247 = vrsqrt.f32 %v13272_v12  ;;  %v4230_v3 = vpop.permute.xlu0 %4229 }
 0x3b7   : > { %v4349_v22 = vmul.f32 %v4317_v5, %v4317_v5  ;;  %v5062_v61 = vsel %vm5061_vm4, %v13185_v52, %v5060_v44  ;;  %vm5075_vm7 = vcmp.eq.f32.partialorder %v13213_v18, inf  ;;  %vm5042_vm8 = vcmp.eq.f32.partialorder %v13188_v39, 0.0  ;;  %v13309_v40 = vpop.eup %8239  ;;  %v4687_v32 = vpop.permute.xlu1 %4686 }
 0x3b8   : > { %v13312_v19 = vadd.f32 %v17686_v8, %v4607_v50  ;;  %v4802_v9 = vmul.f32 %v4770_v27, %v4770_v27  ;;  %v5065_v11 = vsel %vm5063_vm5, %v5064_v48, %v5062_v61  ;;  %vm5077_vm9 = vcmp.eq.f32.partialorder %v13213_v18, 0.0  ;;  %v17689_v27 = vld [vmem:[#allocation60_spill] sm:$0xff]  ;;  %v17690_v61 = vld [vmem:[#allocation162_spill] sm:$0xff] }
 0x3b9   : > { %8249 = vrsqrt.f32 %v13294_v24  ;;  %v4609_v4 = vadd.f32 %v17687_v34, %v4349_v22  ;;  %v4319_v21 = vsub.f32 %v4230_v3, %v17568_v36  ;;  %v5247_v5 = vmul.f32 %v5065_v11, %v17688_v29  ;;  %v17691_v34 = vld [vmem:[#allocation114_spill] sm:$0xff] }
 0x3ba   : > { %v13324_v50 = vadd.f32 %v4802_v9, %v13030_v2  ;;  %v4772_v6 = vsub.f32 %v4687_v32, %v17657_v13  ;;  %v13328_v44 = vadd.f32 0.2, %v13301_v62  ;;  %v5074_v52 = vmul.f32 %v8238_v1, %v13213_v18  ;;  %v8242_v48 = vpop.eup %8241  ;;  %v4240_v9 = vpop.permute.xlu0 %4239 }
 0x3bb   : > { %v13332_v43 = vadd.f32 %v17689_v27, %v4609_v4  ;;  %v4351_v22 = vmul.f32 %v4319_v21, %v4319_v21  ;;  %v13335_v8 = vadd.f32 %v5247_v5, %v17690_v61  ;;  %v5039_v3 = vmul.f32 %v8236_v63, %v13188_v39  ;;  %v4695_v32 = vpop.permute.xlu1 %4694 }
 0x3bc   : > { %8251 = vrsqrt.f32 %v13312_v19  ;;  %v4804_v2 = vmul.f32 %v4772_v6, %v4772_v6  ;;  %v5076_v11 = vsel %vm5075_vm7, %v13213_v18, %v5074_v52  ;;  %v5078_v1 = vand.u32 2147483648, %v13213_v18 }
 0x3bd   : > { %8253 = vrsqrt.f32 %v13324_v50  ;;  %v4611_v4 = vadd.f32 %v17691_v34, %v4351_v22  ;;  %v4321_v21 = vsub.f32 %v4240_v9, %v17568_v36  ;;  %v5088_v29 = vmul.f32 %v8242_v48, %v13241_v14  ;;  %v13348_v63 = vpop.eup %8243  ;;  %v17692_v48 = vld [vmem:[#allocation93_spill] sm:$0xff]  ;;  %v17693_v34 = vld [vmem:[#allocation163_spill] sm:$0xff] }
 0x3be   : > { %vm5054_vm10 = vcmp.eq.f32.partialorder %v13205_v60, inf  ;;  %v13351_v5 = vadd.f32 %v4804_v2, %v13051_v33  ;;  %v4774_v6 = vsub.f32 %v4695_v32, %v17657_v13  ;;  %v5079_v52 = vsel %vm5077_vm9, %v5078_v1, %v5076_v11  ;;  %v13359_v22 = vpop.eup %8245  ;;  %v17694_v33 = vld [vmem:[#allocation14_spill] sm:$0xff]  ;;  %v4250_v11 = vpop.permute.xlu0 %4249  ;;  %v17696_v32 = vld [vmem:[#allocation116_spill] sm:$0xff] }
 0x3bf   : > { %v5041_v27 = vsel %vm5040_vm6, %v13188_v39, %v5039_v3  ;;  %8255 = vrsqrt.f32 %v13332_v43  ;;  %v13363_v61 = vadd.f32 %v17692_v48, %v4611_v4  ;;  %v4353_v9 = vmul.f32 %v4321_v21, %v4321_v21  ;;  %v17695_v3 = vld [vmem:[#allocation110_spill] sm:$0xff]  ;;  %v4703_v31 = vpop.permute.xlu1 %4702 }
 0x3c0   : > { %vm5541_vm11 = vcmp.ne.s32.totalorder %v17694_v33, %v17693_v34  ;;  %v13368_v2 = vadd.f32 0.2, %v13335_v8  ;;  %8257 = vrsqrt.f32 %v13351_v5  ;;  %v4806_v18 = vmul.f32 %v4774_v6, %v4774_v6  ;;  %v8248_v21 = vpop.eup %8247 }
 0x3c1   : > { %vm16679_vm12 = vcmp.lt.s32.totalorder %v17693_v34, 200  ;;  %v5249_v1 = vmul.f32 %v5079_v52, %v17695_v3  ;;  %v13377_v4 = vsel %vm5042_vm8, %v5043_v35, %v5041_v27  ;;  %v4613_v48 = vadd.f32 %v17696_v32, %v4353_v9  ;;  %v17697_v9 = vld [vmem:[#allocation98_spill] sm:$0xff]  ;;  %v17699_v32 = vld [vmem:[#allocation192_spill] sm:$0xff] }
 0x3c2   : > { %v4323_v41 = vsub.f32 %v4250_v11, %v17568_v36  ;;  %vm5089_vm13 = vcmp.eq.f32.partialorder %v13241_v14, inf  ;;  %vm5091_vm14 = vcmp.eq.f32.partialorder %v13241_v14, 0.0  ;;  %v13384_v6 = vadd.f32 %v4806_v18, %v13061_v47  ;;  %v17698_v47 = vld [vmem:[#allocation184_spill] sm:$0xff]  ;;  %v4260_v18 = vpop.permute.xlu0 %4259 }
 0x3c3   : > { %v4776_v52 = vsub.f32 %v4703_v31, %v17657_v13  ;;  %v5090_v39 = vsel %vm5089_vm13, %v13241_v14, %v5088_v29  ;;  %v5092_v35 = vand.u32 2147483648, %v13241_v14  ;;  %v13389_v27 = vpop.eup %8249  ;;  %8259 = vrsqrt.f32 %v13363_v61  ;;  %v4711_v49 = vpop.permute.xlu1 %4710 }
 0x3c4   : > { %v13393_v11 = vadd.f32 %v17697_v9, %v4613_v48  ;;  %v4355_v3 = vmul.f32 %v4323_v41, %v4323_v41  ;;  %vm5544_vm15 = vcmp.ne.s32.totalorder %v17698_v47, %v17693_v34  ;;  %v5053_v31 = vmul.f32 %v13309_v40, %v13205_v60  ;;  %v17700_v9 = vld [vmem:[#allocation117_spill] sm:$0xff] }
 0x3c5   : > { %8261 = vrsqrt.f32 %v13384_v6  ;;  %v4808_v29 = vmul.f32 %v4776_v52, %v4776_v52  ;;  %v13407_v48 = vadd.f32 %v5249_v1, %v17699_v32  ;;  %v5093_v41 = vsel %vm5091_vm14, %v5092_v35, %v5090_v39  ;;  %v13420_v1 = vld [vmem:[%s13399_s18] ss:$0 sm:$0xff] }
 0x3c6   : > { %8263 = vrsqrt.f32 %v13393_v11  ;;  %v4615_v26 = vadd.f32 %v17700_v9, %v4355_v3  ;;  %v4325_v37 = vsub.f32 %v4260_v18, %v17568_v36  ;;  %v5251_v51 = vmul.f32 %v5093_v41, %v17701_v46  ;;  %v8252_v40 = vpop.eup %8251  ;;  %v17702_v36 = vld [vmem:[#allocation20_spill] sm:$0xff] }
 0x3c7   : > { %v13416_v17 = vadd.f32 %v4808_v29, %v13140_v28  ;;  %v4778_v52 = vsub.f32 %v4711_v49, %v17657_v13  ;;  %v5055_v14 = vsel %vm5054_vm10, %v13205_v60, %v5053_v31  ;;  %v5057_v39 = vand.u32 2147483648, %v13205_v60  ;;  %v13426_v35 = vpop.eup %8253  ;;  %v17703_v18 = vld [vmem:[#allocation16_spill] sm:$0xff]  ;;  %v5413_v31 = vpop.permute.xlu0 %5412 }
 0x3c8   : > { %v13429_v3 = vadd.f32 %v17702_v36, %v4615_v26  ;;  %v4357_v46 = vmul.f32 %v4325_v37, %v4325_v37  ;;  %vm5546_vm0 = vcmp.ne.s32.totalorder %v17703_v18, %v17693_v34  ;;  %v17704_v28 = vld [vmem:[#allocation156_spill] sm:$0xff]  ;;  %v5102_v49 = vmul.f32 %v8248_v21, %v13272_v12  ;;  %v17705_v37 = vld [vmem:[#allocation34_spill] sm:$0xff]  ;;  %v4719_v36 = vpop.permute.xlu1 %4718  ;;  %v17729_v18 = vld [vmem:[#allocation119_spill] sm:$0xff] }
 0x3c9   : > { %v13434_v29 = vadd.f32 %v5251_v51, %v17704_v28  ;;  %8265 = vrsqrt.f32 %v13416_v17  ;;  %v4810_v32 = vmul.f32 %v4778_v52, %v4778_v52  ;;  %v13439_v41 = vadd.f32 0.2, %v13407_v48  ;;  %v13442_v26 = vpop.eup %8255 }
 0x3ca   : > { %vm5056_vm1 = vcmp.eq.f32.partialorder %v13205_v60, 0.0  ;;  %v4617_v9 = vadd.f32 %v17705_v37, %v4357_v46  ;;  %vm5509_vm2 = vcmp.eq.s32.totalorder %v5413_v31, %v13420_v1  ;;  %vm5103_vm3 = vcmp.eq.f32.partialorder %v13272_v12, inf  ;;  %v13449_v21 = vpop.eup %8257 }
 0x3cb   : > { %v13446_v51 = vsel %vm5056_vm1, %v5057_v39, %v5055_v14  ;;  %8267 = vrsqrt.f32 %v13429_v3  ;;  %v13453_v52 = vadd.f32 %v4810_v32, %v13150_v23  ;;  %vm5573_vm4 = vmand %vm5509_vm2, %vm5541_vm11  ;;  %v4780_v60 = vsub.f32 %v4719_v36, %v17657_v13  ;;  %v17707_v39 = vld [vmem:[#allocation118_spill] sm:$0xff]  ;;  %v17711_v23 = vld [vmem:[#allocation63_spill] sm:$0xff] }
 0x3cc   : > { %v5104_v14 = vsel %vm5103_vm3, %v13272_v12, %v5102_v49  ;;  %v13463_v46 = vadd.f32 %v17707_v39, %v4617_v9  ;;  %vm13467_vm5 = vmand %vm5573_vm4, %vm16679_vm12  ;;  %v17708_v28 = vmov 0  ;;  %vm5548_vm6 = vcmp.ne.s32.totalorder %v17711_v23, %v17693_v34  ;;  %v5422_v9 = vpop.permute.xlu0 %5421  ;;  %v17716_v39 = vld [vmem:[#allocation120_spill] sm:$0xff]  ;;  %v17739_v23 = vld [vmem:[#allocation17_spill] sm:$0xff] }
 0x3cd   : > { %17706 = vst [vmem:[#allocation30_spill] sm:$0xff] %v13453_v52  ;;  %v17709_v28 = vsel %vm13467_vm5, 4294967295, %v17708_v28  ;;  %v13474_v33 = vadd.f32 0.2, %v13434_v29  ;;  %v5106_v32 = vand.u32 2147483648, %v13272_v12  ;;  %v5067_v13 = vmul.f32 %v13348_v63, %v13233_v57  ;;  %v13487_v36 = vpop.eup %8259 }
 0x3ce   : > { %17710 = vst [vmem:[#allocation31_spill] sm:$0xff] %v17709_v28  ;;  %vm16671_vm7 = vmmov 1   ;;  %v5733_v49 = vsel %vm13467_vm5, %v13298_v38, -1e+30  ;;  %v4812_v37 = vmul.f32 %v4780_v60, %v4780_v60  ;;  %vm5105_vm9 = vcmp.eq.f32.partialorder %v13272_v12, 0.0 }
 0x3cf   : > { %vm5637_vm8 = vmxor %vm5509_vm2, %vm16671_vm7  ;;  %vm5068_vm10 = vcmp.eq.f32.partialorder %v13233_v57, inf  ;;  %8269 = vrsqrt.f32 %v13453_v52  ;;  %v17712_v63 = vmov 0  ;;  %5797 = vst [vmem:[#allocation2 + $0x8] sm:$0xff] %v5733_v49  ;;  %vm5512_vm13 = vcmp.eq.s32.totalorder %v5422_v9, %v13420_v1  ;;  %v13498_v31 = vpop.eup %8261 }
 0x3d0   : > { %vm13492_vm11 = vmand %vm5637_vm8, %vm16679_vm12  ;;  %v5107_v38 = vsel %vm5105_vm9, %v5106_v32, %v5104_v14  ;;  %vm5070_vm14 = vcmp.eq.f32.partialorder %v13233_v57, 0.0  ;;  %8271 = vrsqrt.f32 %v13463_v46  ;;  %v13507_v60 = vadd.f32 %v4812_v37, %v13162_v45  ;;  %v4855_v14 = vpop.permute.xlu1 %4854  ;;  %v13515_v49 = vpop.eup %8263  ;;  %v17721_v37 = vld [vmem:[#allocation182_spill] sm:$0xff] }
 0x3d1   : > { %v17713_v63 = vsel %vm13492_vm11, 4294967295, %v17712_v63  ;;  %v13504_v12 = vsel %vm13492_vm11, %v13266_v53, 1e+30  ;;  %vm5576_vm1 = vmand %vm5512_vm13, %vm5544_vm15  ;;  %v5253_v32 = vmul.f32 %v5107_v38, %v17716_v39  ;;  %v17720_v53 = vld [vmem:[#allocation171_spill] sm:$0xff]  ;;  %vm5550_vm3 = vcmp.ne.s32.totalorder %v17721_v37, %v17693_v34 }
 0x3d2   : > { %17714 = vst [vmem:[#allocation131_spill] sm:$0xff] %v17713_v63  ;;  %17715 = vst [vmem:[#allocation71_spill] sm:$0xff] %v13504_v12  ;;  %v17717_v63 = vmov 0  ;;  %v4985_v45 = vmul.f32 %v17720_v53, %v4855_v14  ;;  %v5069_v47 = vsel %vm5068_vm10, %v13233_v57, %v5067_v13  ;;  %v5071_v28 = vand.u32 2147483648, %v13233_v57  ;;  %v5428_v14 = vpop.permute.xlu0 %5427  ;;  %v17722_v12 = vld [vmem:[#allocation40_spill] sm:$0xff] }
 0x3d3   : > { %vm13519_vm2 = vmand %vm5576_vm1, %vm16679_vm12  ;;  %v5116_v38 = vmul.f32 %v8252_v40, %v13312_v19  ;;  %v13538_v52 = vadd.f32 %v5253_v32, %v17722_v12  ;;  %vm5117_vm4 = vcmp.eq.f32.partialorder %v13312_v19, inf  ;;  %vm5119_vm8 = vcmp.eq.f32.partialorder %v13312_v19, 0.0  ;;  %v13552_v12 = vpop.eup %8265 }
 0x3d4   : > { %v17718_v63 = vsel %vm13519_vm2, 4294967295, %v17717_v63  ;;  %vm5640_vm15 = vmxor %vm5512_vm13, %vm16671_vm7  ;;  %v5736_v39 = vsel %vm13519_vm2, %v13328_v44, -1e+30  ;;  %v17723_v40 = vmov 0  ;;  %v5241_v13 = vmul.f32 %v13280_v10, %v4985_v45  ;;  %v4863_v10 = vpop.permute.xlu1 %4862 }
 0x3d5   : > { %17719 = vst [vmem:[#allocation132_spill] sm:$0xff] %v17718_v63  ;;  %vm13544_vm9 = vmand %vm5640_vm15, %vm16679_vm12  ;;  %vm5514_vm10 = vcmp.eq.s32.totalorder %v5428_v14, %v13420_v1  ;;  %v5118_v44 = vsel %vm5117_vm4, %v13312_v19, %v5116_v38  ;;  %v5120_v9 = vand.u32 2147483648, %v13312_v19  ;;  %8273 = vrsqrt.f32 %v13507_v60 }
 0x3d6   : > { %v17724_v40 = vsel %vm13544_vm9, 4294967295, %v17723_v40  ;;  %5800 = vst [vmem:[#allocation2 + $0x20] sm:$0xff] %v5736_v39  ;;  %v13558_v32 = vsel %vm13544_vm9, %v13301_v62, 1e+30  ;;  %vm5578_vm13 = vmand %vm5514_vm10, %vm5546_vm0  ;;  %v13567_v45 = vsel %vm5070_vm14, %v5071_v28, %v5069_v47  ;;  %v5081_v38 = vmul.f32 %v13359_v22, %v13262_v15  ;;  %v13588_v22 = vpop.eup %8267  ;;  %v5434_v28 = vpop.permute.xlu0 %5433  ;;  %v17730_v47 = vld [vmem:[#allocation124_spill] sm:$0xff] }
 0x3d7   : > { %17725 = vst [vmem:[#allocation33_spill] sm:$0xff] %v17724_v40  ;;  %v13572_v39 = vadd.f32 %v5241_v13, %v13022_v0  ;;  %vm13576_vm1 = vmand %vm5578_vm13, %vm16679_vm12  ;;  %v17726_v62 = vmov 0  ;;  %v13583_v40 = vadd.f32 0.2, %v13538_v52  ;;  %v5121_v57 = vsel %vm5119_vm8, %v5120_v9, %v5118_v44 }
 0x3d8   : > { %v17727_v62 = vsel %vm13576_vm1, 4294967295, %v17726_v62  ;;  %vm5082_vm14 = vcmp.eq.f32.partialorder %v13262_v15, inf  ;;  %vm5642_vm15 = vmxor %vm5514_vm10, %vm16671_vm7  ;;  %v5738_v0 = vsel %vm13576_vm1, %v13368_v2, -1e+30  ;;  %v5255_v13 = vmul.f32 %v5121_v57, %v17730_v47 }
 0x3d9   : > { %17728 = vst [vmem:[#allocation149_spill] sm:$0xff] %v17727_v62  ;;  %v5083_v63 = vsel %vm5082_vm14, %v13262_v15, %v5081_v38  ;;  %v5085_v19 = vand.u32 2147483648, %v13262_v15  ;;  %vm13601_vm4 = vmand %vm5642_vm15, %vm16679_vm12  ;;  %v17731_v44 = vmov 0  ;;  %v13606_v14 = vmul.f32 %v17720_v53, %v4863_v10  ;;  %v4867_v10 = vpop.permute.xlu1 %4866  ;;  %v17735_v38 = vld [vmem:[#allocation154_spill] sm:$0xff] }
 0x3da   : > { %v17732_v44 = vsel %vm13601_vm4, 4294967295, %v17731_v44  ;;  %5802 = vst [vmem:[#allocation2 + $0x30] sm:$0xff] %v5738_v0  ;;  %vm5516_vm8 = vcmp.eq.s32.totalorder %v5434_v28, %v13420_v1  ;;  %vm5084_vm10 = vcmp.eq.f32.partialorder %v13262_v15, 0.0  ;;  %v5130_v2 = vmul.f32 %v13442_v26, %v13332_v43  ;;  %v13628_v15 = vpop.eup %8269 }
 0x3db   : > { %17733 = vst [vmem:[#allocation133_spill] sm:$0xff] %v17732_v44  ;;  %v13615_v9 = vsel %vm13601_vm4, %v13335_v8, 1e+30  ;;  %vm5580_vm13 = vmand %vm5516_vm8, %vm5548_vm6  ;;  %v13623_v57 = vadd.f32 %v5255_v13, %v17735_v38  ;;  %v13625_v0 = vsel %vm5084_vm10, %v5085_v19, %v5083_v63  ;;  %vm5131_vm14 = vcmp.eq.f32.partialorder %v13332_v43, inf  ;;  %v13642_v13 = vpop.eup %8271 }
 0x3dc   : > { %17734 = vst [vmem:[#allocation24_spill] sm:$0xff] %v13615_v9  ;;  %vm13632_vm15 = vmand %vm5580_vm13, %vm16679_vm12  ;;  %v17736_v8 = vmov 0  ;;  %v4988_v26 = vmul.f32 %v17720_v53, %v4867_v10  ;;  %v5132_v47 = vsel %vm5131_vm14, %v13332_v43, %v5130_v2  ;;  %vm5133_vm10 = vcmp.eq.f32.partialorder %v13332_v43, 0.0  ;;  %v5440_v10 = vpop.permute.xlu0 %5439 }
 0x3dd   : > { %v17737_v8 = vsel %vm13632_vm15, 4294967295, %v17736_v8  ;;  %v5134_v63 = vand.u32 2147483648, %v13332_v43  ;;  %vm5644_vm13 = vmxor %vm5516_vm8, %vm16671_vm7  ;;  %v5740_v19 = vsel %vm13632_vm15, %v13439_v41, -1e+30  ;;  %v13651_v38 = vadd.f32 0.2, %v13623_v57  ;;  %v4875_v44 = vpop.permute.xlu1 %4874 }
 0x3de   : > { %17738 = vst [vmem:[#allocation185_spill] sm:$0xff] %v17737_v8  ;;  %v5095_v2 = vmul.f32 %v13389_v27, %v13294_v24  ;;  %vm5096_vm14 = vcmp.eq.f32.partialorder %v13294_v24, inf  ;;  %vm13658_vm6 = vmand %vm5644_vm13, %vm16679_vm12  ;;  %v17740_v43 = vmov 0  ;;  %v5244_v28 = vmul.f32 %v13377_v4, %v4988_v26 }
 0x3df   : > { %v17741_v43 = vsel %vm13658_vm6, 4294967295, %v17740_v43  ;;  %5804 = vst [vmem:[#allocation2 + $0x40] sm:$0xff] %v5740_v19  ;;  %vm5518_vm8 = vcmp.eq.s32.totalorder %v5440_v10, %v13420_v1  ;;  %v5135_v41 = vsel %vm5133_vm10, %v5134_v63, %v5132_v47  ;;  %v13668_v27 = vsel %vm13658_vm6, %v13407_v48, 1e+30  ;;  %v17744_v19 = vld [vmem:[#allocation129_spill] sm:$0xff]  ;;  %v17748_v63 = vld [vmem:[#allocation19_spill] sm:$0xff] }
 0x3e0   : > { %17742 = vst [vmem:[#allocation56_spill] sm:$0xff] %v17741_v43  ;;  %17743 = vst [vmem:[#allocation13_spill] sm:$0xff] %v13668_v27  ;;  %v5257_v8 = vmul.f32 %v5135_v41, %v17744_v19  ;;  %v5097_v4 = vsel %vm5096_vm14, %v13294_v24, %v5095_v2  ;;  %v5099_v26 = vand.u32 2147483648, %v13294_v24  ;;  %v13679_v47 = vadd.f32 %v5244_v28, %v12971_v42  ;;  %v13693_v2 = vpop.eup %8273  ;;  %v5446_v28 = vpop.permute.xlu0 %5445 }
 0x3e1   : > { %vm5582_vm13 = vmand %vm5518_vm8, %vm5550_vm3  ;;  %v17745_v48 = vmov 0  ;;  %v4990_v37 = vmul.f32 %v17720_v53, %v4875_v44  ;;  %v5144_v41 = vmul.f32 %v13487_v36, %v13363_v61  ;;  %vm5145_vm14 = vcmp.eq.f32.partialorder %v13363_v61, inf  ;;  %v17749_v44 = vld [vmem:[#allocation178_spill] sm:$0xff] }
 0x3e2   : > { %vm13683_vm10 = vmand %vm5582_vm13, %vm16679_vm12  ;;  %v13702_v19 = vadd.f32 %v5257_v8, %v17749_v44  ;;  %vm17750_vm13 = vcmp.eq.f32.partialorder %v13294_v24, 0.0  ;;  %vm5147_vm3 = vcmp.eq.f32.partialorder %v13363_v61, 0.0  ;;  %v17751_v36 = vmov 0  ;;  %v17762_v44 = vld [vmem:[#allocation152_spill] sm:$0xff] }
 0x3e3   : > { %v17746_v48 = vsel %vm13683_vm10, 4294967295, %v17745_v48  ;;  %vm5646_vm0 = vmxor %vm5518_vm8, %vm16671_vm7  ;;  %v5742_v42 = vsel %vm13683_vm10, %v13474_v33, -1e+30  ;;  %v13706_v43 = vsel %vm17750_vm13, %v5099_v26, %v5097_v4  ;;  %v5246_v10 = vmul.f32 %v13446_v51, %v4990_v37  ;;  %v4883_v4 = vpop.permute.xlu1 %4882 }
 0x3e4   : > { %17747 = vst [vmem:[#allocation186_spill] sm:$0xff] %v17746_v48  ;;  %vm13711_vm6 = vmand %vm5646_vm0, %vm16679_vm12  ;;  %vm16673_vm8 = vcmp.eq.s32.totalorder %v5446_v28, %v13420_v1  ;;  %v5146_v33 = vsel %vm5145_vm14, %v13363_v61, %v5144_v41  ;;  %v5148_v8 = vand.u32 2147483648, %v13363_v61  ;;  %vm17755_vm0 = vcmp.ne.s32.totalorder %v17729_v18, %v17693_v34  ;;  %v17759_v41 = vld [vmem:[#allocation121_spill] sm:$0xff] }
 0x3e5   : > { %v17752_v36 = vsel %vm13711_vm6, 4294967295, %v17751_v36  ;;  %5806 = vst [vmem:[#allocation2 + $0x50] sm:$0xff] %v5742_v42  ;;  %v13722_v24 = vsel %vm13711_vm6, %v13434_v29, 1e+30  ;;  %vm5584_vm13 = vmand %vm16673_vm8, %vm17755_vm0  ;;  %v13730_v51 = vadd.f32 0.2, %v13702_v19  ;;  %v5109_v26 = vmul.f32 %v13426_v35, %v13324_v50  ;;  %v5452_v35 = vpop.permute.xlu0 %5451 }
 0x3e6   : > { %17753 = vst [vmem:[#allocation27_spill] sm:$0xff] %v17752_v36  ;;  %17754 = vst [vmem:[#allocation190_spill] sm:$0xff] %v13722_v24  ;;  %vm5110_vm14 = vcmp.eq.f32.partialorder %v13324_v50, inf  ;;  %v13736_v37 = vadd.f32 %v5246_v10, %v12999_v25  ;;  %v17756_v29 = vmov 0  ;;  %v4992_v18 = vmul.f32 %v17720_v53, %v4883_v4 }
 0x3e7   : > { %vm13740_vm7 = vmand %vm5584_vm13, %vm16679_vm12  ;;  %v5149_v42 = vsel %vm5147_vm3, %v5148_v8, %v5146_v33  ;;  %vm5112_vm8 = vcmp.eq.f32.partialorder %v13324_v50, 0.0  ;;  %vm17760_vm6 = vmmov 1   ;;  %vm17761_vm4 = vcmp.eq.s32.totalorder %v5446_v28, %v13420_v1  ;;  %v4891_v8 = vpop.permute.xlu1 %4890 }
 0x3e8   : > { %v17757_v29 = vsel %vm13740_vm7, 4294967295, %v17756_v29  ;;  %vm5648_vm9 = vmxor %vm17761_vm4, %vm17760_vm6  ;;  %v5744_v25 = vsel %vm13740_vm7, %v13583_v40, -1e+30  ;;  %v5259_v10 = vmul.f32 %v5149_v42, %v17762_v44  ;;  %v5111_v4 = vsel %vm5110_vm14, %v13324_v50, %v5109_v26  ;;  %v17772_v42 = vld [vmem:[#allocation22_spill] sm:$0xff] }
 0x3e9   : > { %17758 = vst [vmem:[#allocation12_spill] sm:$0xff] %v17757_v29  ;;  %v5113_v36 = vand.u32 2147483648, %v13324_v50  ;;  %vm13761_vm3 = vmand %vm5648_vm9, %vm16679_vm12  ;;  %v17763_v61 = vmov 0  ;;  %v5248_v28 = vmul.f32 %v13567_v45, %v4992_v18  ;;  %vm5522_vm4 = vcmp.eq.s32.totalorder %v5452_v35, %v13420_v1  ;;  %v17768_v45 = vld [vmem:[#allocation174_spill] sm:$0xff] }
 0x3ea   : > { %v17764_v61 = vsel %vm13761_vm3, 4294967295, %v17763_v61  ;;  %5808 = vst [vmem:[#allocation2 + $0x60] sm:$0xff] %v5744_v25  ;;  %v5158_v40 = vmul.f32 %v13515_v49, %v13393_v11  ;;  %vm5159_vm13 = vcmp.eq.f32.partialorder %v13393_v11, inf  ;;  %v13773_v33 = vsel %vm13761_vm3, %v13538_v52, 1e+30  ;;  %v5458_v25 = vpop.permute.xlu0 %5457 }
 0x3eb   : > { %17765 = vst [vmem:[#allocation193_spill] sm:$0xff] %v17764_v61  ;;  %17766 = vst [vmem:[#allocation68_spill] sm:$0xff] %v13773_v33  ;;  %vm17767_vm9 = vcmp.ne.s32.totalorder %v17739_v23, %v17693_v34  ;;  %v13781_v26 = vadd.f32 %v5259_v10, %v17768_v45  ;;  %v13785_v49 = vsel %vm5112_vm8, %v5113_v36, %v5111_v4  ;;  %vm5161_vm0 = vcmp.eq.f32.partialorder %v13393_v11, 0.0 }
 0x3ec   : > { %vm5586_vm14 = vmand %vm5522_vm4, %vm17767_vm9  ;;  %v13789_v18 = vadd.f32 %v5248_v28, %v13025_v20  ;;  %v17769_v52 = vmov 0  ;;  %v4994_v23 = vmul.f32 %v17720_v53, %v4891_v8  ;;  %v5160_v50 = vsel %vm5159_vm13, %v13393_v11, %v5158_v40  ;;  %v4899_v28 = vpop.permute.xlu1 %4898 }
 0x3ed   : > { %vm13793_vm3 = vmand %vm5586_vm14, %vm16679_vm12  ;;  %v5162_v36 = vand.u32 2147483648, %v13393_v11  ;;  %v5718_v44 = vadd.f32 0.2, %v13781_v26  ;;  %v5123_v10 = vmul.f32 %v13449_v21, %v13351_v5  ;;  %vm5124_vm14 = vcmp.eq.f32.partialorder %v13351_v5, inf }
 0x3ee   : > { %v17770_v52 = vsel %vm13793_vm3, 4294967295, %v17769_v52  ;;  %vm5650_vm8 = vmxor %vm5522_vm4, %vm17760_vm6  ;;  %v5746_v20 = vsel %vm13793_vm3, %v13651_v38, -1e+30  ;;  %v17773_v4 = vmov 0  ;;  %v5250_v35 = vmul.f32 %v13625_v0, %v4994_v23  ;;  %v17778_v0 = vld [vmem:[#allocation134_spill] sm:$0xff] }
 0x3ef   : > { %17771 = vst [vmem:[#allocation18_spill] sm:$0xff] %v17770_v52  ;;  %vm13814_vm13 = vmand %vm5650_vm8, %vm16679_vm12  ;;  %vm5524_vm4 = vcmp.eq.s32.totalorder %v5458_v25, %v13420_v1  ;;  %v5163_v38 = vsel %vm5161_vm0, %v5162_v36, %v5160_v50  ;;  %vm17777_vm8 = vcmp.ne.s32.totalorder %v17748_v63, %v17693_v34  ;;  %v5125_v8 = vsel %vm5124_vm14, %v13351_v5, %v5123_v10  ;;  %v17783_v23 = vld [vmem:[#allocation150_spill] sm:$0xff]  ;;  %v5464_v36 = vpop.permute.xlu0 %5463 }
 0x3f0   : > { %v17774_v4 = vsel %vm13814_vm13, 4294967295, %v17773_v4  ;;  %5810 = vst [vmem:[#allocation2 + $0x70] sm:$0xff] %v5746_v20  ;;  %v13826_v21 = vsel %vm13814_vm13, %v13623_v57, 1e+30  ;;  %vm5588_vm12 = vmand %vm5524_vm4, %vm17777_vm8  ;;  %v5261_v40 = vmul.f32 %v5163_v38, %v17778_v0  ;;  %v5127_v11 = vand.u32 2147483648, %v13351_v5  ;;  %v17784_v20 = vld [vmem:[#allocation52_spill] sm:$0xff] }
 0x3f1   : > { %17775 = vst [vmem:[#allocation195_spill] sm:$0xff] %v17774_v4  ;;  %17776 = vst [vmem:[#allocation125_spill] sm:$0xff] %v13826_v21  ;;  %v13837_v45 = vadd.f32 %v5250_v35, %v13046_v16  ;;  %vm17779_vm0 = vcmp.lt.s32.totalorder %v17693_v34, 200  ;;  %v17780_v57 = vmov 0  ;;  %v4996_v63 = vmul.f32 %v17720_v53, %v4899_v28 }
 0x3f2   : > { %vm13841_vm9 = vmand %vm5588_vm12, %vm17779_vm0  ;;  %v5172_v50 = vmul.f32 %v13588_v22, %v13429_v3  ;;  %vm5173_vm14 = vcmp.eq.f32.partialorder %v13429_v3, inf  ;;  %v5293_v10 = vadd.f32 %v5261_v40, %v17784_v20  ;;  %vm17785_vm12 = vcmp.eq.f32.partialorder %v13351_v5, 0.0 }
 0x3f3   : > { %v17781_v57 = vsel %vm13841_vm9, 4294967295, %v17780_v57  ;;  %vm5652_vm13 = vmxor %vm5524_vm4, %vm17760_vm6  ;;  %v5748_v16 = vsel %vm13841_vm9, %v13730_v51, -1e+30  ;;  %v5128_v35 = vsel %vm17785_vm12, %v5127_v11, %v5125_v8  ;;  %v17787_v22 = vmov 0  ;;  %v5470_v11 = vpop.permute.xlu0 %5469 }
 0x3f4   : > { %17782 = vst [vmem:[#allocation38_spill] sm:$0xff] %v17781_v57  ;;  %vm17786_vm8 = vmmov %vm17779_vm0  ;;  %v5252_v25 = vmul.f32 %v13706_v43, %v4996_v63  ;;  %vm16683_vm4 = vcmp.eq.s32.totalorder %v5464_v36, %v13420_v1  ;;  %v5174_v51 = vsel %vm5173_vm14, %v13429_v3, %v5172_v50  ;;  %v5176_v38 = vand.u32 2147483648, %v13429_v3  ;;  %v4907_v43 = vpop.permute.xlu1 %4906  ;;  %v17799_v63 = vld [vmem:[#allocation140_spill] sm:$0xff] }
 0x3f5   : > { %vm13863_vm11 = vmand %vm5652_vm13, %vm17786_vm8  ;;  %5812 = vst [vmem:[#allocation2 + $0x80] sm:$0xff] %v5748_v16  ;;  %vm17791_vm13 = vcmp.ne.s32.totalorder %v17759_v41, %v17693_v34  ;;  %v5720_v28 = vadd.f32 0.2, %v5293_v10  ;;  %v5137_v0 = vmul.f32 %v13498_v31, %v13384_v6  ;;  %vm5138_vm14 = vcmp.eq.f32.partialorder %v13384_v6, inf  ;;  %v17797_v31 = vld [vmem:[#allocation23_spill] sm:$0xff] }
 0x3f6   : > { %v17788_v22 = vsel %vm13863_vm11, 4294967295, %v17787_v22  ;;  %v13875_v5 = vsel %vm13863_vm11, %v13702_v19, 1e+30  ;;  %vm5590_vm8 = vmand %vm16683_vm4, %vm17791_vm13  ;;  %v13887_v40 = vadd.f32 %v5252_v25, %v13069_v30  ;;  %v17793_v19 = vmov 0 }
 0x3f7   : > { %17789 = vst [vmem:[#allocation194_spill] sm:$0xff] %v17788_v22  ;;  %17790 = vst [vmem:[#allocation146_spill] sm:$0xff] %v13875_v5  ;;  %v4998_v41 = vmul.f32 %v17720_v53, %v4907_v43  ;;  %vm17796_vm13 = vcmp.eq.f32.partialorder %v13429_v3, 0.0  ;;  %vm5140_vm4 = vcmp.eq.f32.partialorder %v13384_v6, 0.0  ;;  %vm17798_vm12 = vcmp.eq.s32.totalorder %v5464_v36, %v13420_v1 }
 0x3f8   : > { %vm17792_vm9 = vmmov %vm17779_vm0  ;;  %v5177_v8 = vsel %vm17796_vm13, %v5176_v38, %v5174_v51  ;;  %v5139_v16 = vsel %vm5138_vm14, %v13384_v6, %v5137_v0  ;;  %v5141_v3 = vand.u32 2147483648, %v13384_v6  ;;  %v17801_v20 = vmov 0  ;;  %v4915_v51 = vpop.permute.xlu1 %4914  ;;  %v17806_v38 = vld [vmem:[#allocation160_spill] sm:$0xff] }
 0x3f9   : > { %vm13891_vm0 = vmand %vm5590_vm8, %vm17792_vm9  ;;  %v5263_v50 = vmul.f32 %v5177_v8, %v17799_v63  ;;  %v5254_v36 = vmul.f32 %v13785_v49, %v4998_v41  ;;  %vm5187_vm14 = vcmp.eq.f32.partialorder %v13463_v46, inf  ;;  %vm5189_vm11 = vcmp.eq.f32.partialorder %v13463_v46, 0.0  ;;  %v5476_v8 = vpop.permute.xlu0 %5475 }
 0x3fa   : > { %v17794_v19 = vsel %vm13891_vm0, 4294967295, %v17793_v19  ;;  %vm5654_vm3 = vmxor %vm17798_vm12, %vm17760_vm6  ;;  %v5750_v30 = vsel %vm13891_vm0, %v5718_v44, -1e+30  ;;  %vm5528_vm12 = vcmp.eq.s32.totalorder %v5470_v11, %v13420_v1  ;;  %v5186_v44 = vmul.f32 %v13642_v13, %v13463_v46 }
 0x3fb   : > { %17795 = vst [vmem:[#allocation139_spill] sm:$0xff] %v17794_v19  ;;  %vm17800_vm8 = vmmov %vm17792_vm9  ;;  %v5295_v43 = vadd.f32 %v5263_v50, %v17806_v38  ;;  %v5142_v49 = vsel %vm5140_vm4, %v5141_v3, %v5139_v16  ;;  %v13934_v13 = vadd.f32 %v5254_v36, %v13093_v55  ;;  %v5190_v41 = vand.u32 2147483648, %v13463_v46  ;;  %v17816_v16 = vld [vmem:[#allocation177_spill] sm:$0xff] }
 0x3fc   : > { %vm13912_vm13 = vmand %vm5654_vm3, %vm17800_vm8  ;;  %5814 = vst [vmem:[#allocation2 + $0x90] sm:$0xff] %v5750_v30  ;;  %vm17805_vm3 = vcmp.ne.s32.totalorder %v17772_v42, %v17693_v34  ;;  %v5000_v42 = vmul.f32 %v17720_v53, %v4915_v51  ;;  %v5188_v0 = vsel %vm5187_vm14, %v13463_v46, %v5186_v44  ;;  %v3983_v30 = vmul.f32 %v13175_v54, %v13080_v56 }
 0x3fd   : > { %v17802_v20 = vsel %vm13912_vm13, 4294967295, %v17801_v20  ;;  %v13924_v25 = vsel %vm13912_vm13, %v13781_v26, 1e+30  ;;  %vm5592_vm8 = vmand %vm5528_vm12, %vm17805_vm3  ;;  %v17807_v26 = vmov 0  ;;  %v5722_v55 = vadd.f32 0.2, %v5295_v43  ;;  %v5482_v38 = vpop.permute.xlu0 %5481 }
 0x3fe   : > { %17803 = vst [vmem:[#allocation35_spill] sm:$0xff] %v17802_v20  ;;  %17804 = vst [vmem:[#allocation155_spill] sm:$0xff] %v13924_v25  ;;  %v5151_v11 = vmul.f32 %v13552_v12, %v13416_v17  ;;  %v17811_v63 = vmov 0  ;;  %v5256_v50 = vmul.f32 %v5128_v35, %v5000_v42  ;;  %vm5152_vm14 = vcmp.eq.f32.partialorder %v13416_v17, inf  ;;  %v4923_v12 = vpop.permute.xlu1 %4922  ;;  %v17824_v42 = vld [vmem:[#allocation167_spill] sm:$0xff] }
 0x3ff   : > { %vm13938_vm0 = vmand %vm5592_vm8, %vm17792_vm9  ;;  %vm17815_vm8 = vcmp.ne.s32.totalorder %v17783_v23, %v17693_v34  ;;  %v5002_v23 = vmul.f32 %v17720_v53, %v4923_v12  ;;  %v17822_v44 = vand.u32 2147483648, %v13080_v56  ;;  %vm17834_vm13 = vcmp.eq.f32.partialorder %v13416_v17, 0.0 }
 0x400   : > { %v17808_v26 = vsel %vm13938_vm0, 4294967295, %v17807_v26  ;;  %vm5656_vm3 = vmxor %vm5528_vm12, %vm17760_vm6  ;;  %v5752_v6 = vsel %vm13938_vm0, %v5720_v28, -1e+30  ;;  %vm5530_vm12 = vcmp.eq.s32.totalorder %v5476_v8, %v13420_v1  ;;  %v5191_v28 = vsel %vm5189_vm11, %v5190_v41, %v5188_v0  ;;  %v17825_v41 = vld [vmem:[#allocation144_spill] sm:$0xff] }
 0x401   : > { %17809 = vst [vmem:[#allocation196_spill] sm:$0xff] %v17808_v26  ;;  %vm17810_vm4 = vmmov %vm17792_vm9  ;;  %v5265_v3 = vmul.f32 %v5191_v28, %v17816_v16  ;;  %v5153_v46 = vsel %vm5152_vm14, %v13416_v17, %v5151_v11  ;;  %v13975_v36 = vadd.f32 %v5256_v50, %v13124_v59  ;;  %vm17818_vm11 = vcmp.lt.s32.totalorder %v17693_v34, 200 }
 0x402   : > { %vm13954_vm9 = vmand %vm5656_vm3, %vm17810_vm4  ;;  %5816 = vst [vmem:[#allocation2 + $0xa0] sm:$0xff] %v5752_v6  ;;  %vm17817_vm4 = vcmp.eq.f32.partialorder %v13080_v56, inf  ;;  %v5155_v8 = vand.u32 2147483648, %v13416_v17  ;;  %v4931_v28 = vpop.permute.xlu1 %4930  ;;  %v17945_v20 = vmov 0 }
 0x403   : > { %v17812_v63 = vsel %vm13954_vm9, 4294967295, %v17811_v63  ;;  %v13964_v54 = vsel %vm13954_vm9, %v5293_v10, 1e+30  ;;  %vm5594_vm3 = vmand %vm5530_vm12, %vm17815_vm8  ;;  %v3985_v35 = vsel %vm17817_vm4, %v13080_v56, %v3983_v30  ;;  %v17819_v10 = vmov 0 }
 0x404   : > { %17813 = vst [vmem:[#allocation137_spill] sm:$0xff] %v17812_v63  ;;  %17814 = vst [vmem:[#allocation37_spill] sm:$0xff] %v13964_v54  ;;  %vm17823_vm8 = vcmp.eq.f32.partialorder %v13080_v56, 0.0  ;;  %v5297_v0 = vadd.f32 %v5265_v3, %v17824_v42  ;;  %v17827_v30 = vmov 0  ;;  %v5258_v56 = vmul.f32 %v5142_v49, %v5002_v23  ;;  %v17833_v49 = vld [vmem:[#allocation28_spill] sm:$0xff]  ;;  %v17835_v3 = vld [vmem:[#allocation127_spill] sm:$0xff] }
 0x405   : > { %vm13979_vm9 = vmand %vm5594_vm3, %vm17818_vm11  ;;  %v3988_v51 = vsel %vm17823_vm8, %v17822_v44, %v3985_v35  ;;  %vm17830_vm8 = vcmp.eq.f32.partialorder %v12796_v58, inf  ;;  %v5156_v16 = vsel %vm17834_vm13, %v5155_v8, %v5153_v46  ;;  %v17840_v23 = vld [vmem:[#allocation26_spill] sm:$0xff]  ;;  %v17841_v44 = vld [vmem:[#allocation29_spill] sm:$0xff] }
 0x406   : > { %v17820_v10 = vsel %vm13979_vm9, 4294967295, %v17819_v10  ;;  %vm5658_vm14 = vmxor %vm5530_vm12, %vm17760_vm6  ;;  %v5754_v59 = vsel %vm13979_vm9, %v5722_v55, -1e+30  ;;  %v4092_v6 = vmul.f32 %v3988_v51, %v17825_v41  ;;  %vm5532_vm12 = vcmp.eq.s32.totalorder %v5482_v38, %v13420_v1 }
 0x407   : > { %17821 = vst [vmem:[#allocation36_spill] sm:$0xff] %v17820_v10  ;;  %vm17826_vm3 = vmmov %vm17818_vm11  ;;  %v2831_v55 = vsel %vm17830_vm8, %v12796_v58, %v13182_v7  ;;  %v5724_v50 = vadd.f32 0.2, %v5297_v0  ;;  %v14018_v35 = vadd.f32 %v5258_v56, %v17835_v3  ;;  %vm17836_vm8 = vcmp.lt.s32.totalorder %v17693_v34, 200 }
 0x408   : > { %vm13997_vm11 = vmand %vm5658_vm14, %vm17826_vm3  ;;  %5818 = vst [vmem:[#allocation2 + $0xb0] sm:$0xff] %v5754_v59  ;;  %vm17832_vm14 = vcmp.ne.s32.totalorder %v17797_v31, %v17693_v34  ;;  %v4124_v12 = vadd.f32 %v4092_v6, %v17833_v49  ;;  %v17837_v7 = vmov 0  ;;  %v2833_v31 = vand.u32 2147483648, %v12796_v58  ;;  %v17847_v6 = vld [vmem:[#allocation30_spill] sm:$0xff] }
 0x409   : > { %v17828_v30 = vsel %vm13997_vm11, 4294967295, %v17827_v30  ;;  %v14009_v11 = vsel %vm13997_vm11, %v5295_v43, 1e+30  ;;  %vm5596_vm3 = vmand %vm5532_vm12, %vm17832_vm14  ;;  %v5004_v43 = vmul.f32 %v17720_v53, %v4931_v28  ;;  %v3997_v51 = vmul.f32 %v17841_v44, %v17840_v23  ;;  %v17849_v28 = vld [vmem:[#allocation57_spill] sm:$0xff] }
 0x40a   : > { %17829 = vst [vmem:[#allocation41_spill] sm:$0xff] %v17828_v30  ;;  %17831 = vst [vmem:[#allocation136_spill] sm:$0xff] %v14009_v11  ;;  %vm3998_vm13 = vcmp.eq.f32.partialorder %v17840_v23, inf  ;;  %vm4000_vm11 = vcmp.eq.f32.partialorder %v17840_v23, 0.0  ;;  %v4001_v46 = vand.u32 2147483648, %v17840_v23  ;;  %v17843_v59 = vmov 0 }
 0x40b   : > { %vm14022_vm4 = vmand %vm5596_vm3, %vm17836_vm8  ;;  %v5260_v38 = vmul.f32 %v5156_v16, %v5004_v43  ;;  %vm17846_vm9 = vcmp.eq.f32.partialorder %v12796_v58, 0.0  ;;  %v3999_v41 = vsel %vm3998_vm13, %v17840_v23, %v3997_v51  ;;  %v5165_v8 = vmul.f32 %v13628_v15, %v17847_v6  ;;  %v17850_v16 = vld [vmem:[#allocation153_spill] sm:$0xff]  ;;  %v17853_v51 = vld [vmem:[#allocation123_spill] sm:$0xff] }
 0x40c   : > { %v17838_v7 = vsel %vm14022_vm4, 4294967295, %v17837_v7  ;;  %vm5660_vm14 = vmxor %vm5532_vm12, %vm17760_vm6  ;;  %v5756_v17 = vsel %vm14022_vm4, %v5724_v50, -1e+30  ;;  %v2834_v42 = vsel %vm17846_vm9, %v2833_v31, %v2831_v55  ;;  %v4939_v50 = vpop.permute.xlu1 %4938  ;;  %v4002_v3 = vsel %vm4000_vm11, %v4001_v46, %v3999_v41  ;;  %v17851_v31 = vld [vmem:[#allocation109_spill] sm:$0xff]  ;;  %v17854_v46 = vld [vmem:[#allocation126_spill] sm:$0xff] }
 0x40d   : > { %17839 = vst [vmem:[#allocation198_spill] sm:$0xff] %v17838_v7  ;;  %vm17842_vm3 = vmmov %vm17836_vm8  ;;  %v2926_v49 = vmul.f32 %v2834_v42, %v17849_v28  ;;  %vm5166_vm12 = vcmp.eq.f32.partialorder %v17847_v6, inf  ;;  %v14053_v44 = vadd.f32 %v5260_v38, %v4124_v12  ;;  %v4094_v58 = vmul.f32 %v4002_v3, %v17850_v16  ;;  %v17852_v23 = vld [vmem:[#allocation173_spill] sm:$0xff]  ;;  %v17855_v38 = vld [vmem:[#allocation128_spill] sm:$0xff] }
 0x40e   : > { %vm14038_vm8 = vmand %vm5660_vm14, %vm17842_vm3  ;;  %5820 = vst [vmem:[#allocation2 + $0xc0] sm:$0xff] %v5756_v17  ;;  %v5006_v55 = vmul.f32 %v17720_v53, %v4939_v50  ;;  %v5167_v43 = vsel %vm5166_vm12, %v17847_v6, %v5165_v8  ;;  %vm5168_vm9 = vcmp.eq.f32.partialorder %v17847_v6, 0.0  ;;  %v2843_v17 = vmul.f32 %v17853_v51, %v17852_v23  ;;  %v17857_v51 = vld [vmem:[#allocation62_spill] sm:$0xff] }
 0x40f   : > { %v17844_v59 = vsel %vm14038_vm8, 4294967295, %v17843_v59  ;;  %v14049_v56 = vsel %vm14038_vm8, %v5297_v0, 1e+30  ;;  %v2958_v15 = vadd.f32 %v2926_v49, %v17851_v31  ;;  %v5169_v0 = vand.u32 2147483648, %v17847_v6  ;;  %v17856_v6 = vld [vmem:[#allocation130_spill] sm:$0xff] }
 0x410   : > { %17845 = vst [vmem:[#allocation172_spill] sm:$0xff] %v17844_v59  ;;  %17848 = vst [vmem:[#allocation42_spill] sm:$0xff] %v14049_v56  ;;  %vm2844_vm11 = vcmp.eq.f32.partialorder %v17852_v23, inf  ;;  %vm2846_vm14 = vcmp.eq.f32.partialorder %v17852_v23, 0.0  ;;  %v2847_v12 = vand.u32 2147483648, %v17852_v23  ;;  %v4011_v42 = vmul.f32 %v17855_v38, %v17854_v46  ;;  %v4947_v50 = vpop.permute.xlu1 %4946 }
 0x411   : > { %v4126_v41 = vadd.f32 %v4094_v58, %v2958_v15  ;;  %v5170_v8 = vsel %vm5168_vm9, %v5169_v0, %v5167_v43  ;;  %v2845_v28 = vsel %vm2844_vm11, %v17852_v23, %v2843_v17  ;;  %vm4012_vm13 = vcmp.eq.f32.partialorder %v17854_v46, inf  ;;  %v17858_v0 = vld [vmem:[#allocation189_spill] sm:$0xff]  ;;  %v17860_v17 = vld [vmem:[#allocation15_spill] sm:$0xff] }
 0x412   : > { %v5243_v49 = vmul.f32 %v17856_v6, %v13606_v14  ;;  %v5262_v3 = vmul.f32 %v5170_v8, %v5006_v55  ;;  %v2848_v16 = vsel %vm2846_vm14, %v2847_v12, %v2845_v28  ;;  %v4013_v31 = vsel %vm4012_vm13, %v17854_v46, %v4011_v42  ;;  %v17861_v8 = vld [vmem:[#allocation143_spill] sm:$0xff] }
 0x413   : > { %v2928_v59 = vmul.f32 %v2848_v16, %v17857_v51  ;;  %v4015_v30 = vand.u32 2147483648, %v17854_v46  ;;  %v5008_v38 = vmul.f32 %v17720_v53, %v4947_v50  ;;  %v5179_v58 = vmul.f32 %v13693_v2, %v13507_v60  ;;  %v17859_v53 = vld [vmem:[#allocation104_spill] sm:$0xff] }
 0x414   : > { %v14078_v43 = vadd.f32 %v5262_v3, %v4126_v41  ;;  %vm4014_vm3 = vcmp.eq.f32.partialorder %v17854_v46, 0.0  ;;  %vm5180_vm12 = vcmp.eq.f32.partialorder %v13507_v60, inf  ;;  %v5183_v14 = vand.u32 2147483648, %v13507_v60  ;;  %v5410_v42 = vpop.permute.xlu1 %5409 }
 0x415   : > { %v4016_v55 = vsel %vm4014_vm3, %v4015_v30, %v4013_v31  ;;  %v5181_v15 = vsel %vm5180_vm12, %v13507_v60, %v5179_v58  ;;  %vm5182_vm9 = vcmp.eq.f32.partialorder %v13507_v60, 0.0  ;;  %vm5540_vm11 = vcmp.ne.s32.totalorder %v17858_v0, %v17693_v34 }
 0x416   : > { %v2960_v23 = vadd.f32 %v2928_v59, %v17859_v53  ;;  %v4096_v2 = vmul.f32 %v4016_v55, %v17860_v17  ;;  %v5184_v12 = vsel %vm5182_vm9, %v5183_v14, %v5181_v15  ;;  %v5308_v46 = vadd.s32 16, %v17858_v0 }
 0x417   : > { %v5264_v41 = vmul.f32 %v5184_v12, %v5008_v38  ;;  %vm5508_vm14 = vcmp.eq.s32.totalorder %v5410_v42, %v13420_v1  ;;  %v5275_v30 = vadd.f32 %v5243_v49, %v17861_v8  ;;  %v5700_v60 = vadd.f32 0.2, %v13572_v39 }
 0x418   : > { %v4128_v50 = vadd.f32 %v4096_v2, %v2960_v23  ;;  %vm5572_vm13 = vmand %vm5508_vm14, %vm5540_vm11  ;;  %vm17862_vm3 = vcmp.lt.s32.totalorder %v17693_v34, 200  ;;  %v17863_v28 = vmov 0  ;;  %vm5542_vm9 = vcmp.ne.s32.totalorder %v5308_v46, %v17693_v34  ;;  %v5416_v3 = vpop.permute.xlu1 %5415 }
 0x419   : > { %vm14095_vm12 = vmand %vm5572_vm13, %vm17862_vm3  ;;  %v5309_v59 = vadd.s32 24, %v17858_v0  ;;  %v17867_v16 = vmov 0  ;;  %vm5510_vm13 = vcmp.eq.s32.totalorder %v5416_v3, %v13420_v1  ;;  %v5702_v51 = vadd.f32 0.2, %v5275_v30 }
 0x41a   : > { %v17864_v28 = vsel %vm14095_vm12, 4294967295, %v17863_v28  ;;  %v14101_v6 = vadd.f32 %v5264_v41, %v4128_v50  ;;  %vm5636_vm8 = vmxor %vm5508_vm14, %vm17760_vm6  ;;  %v5732_v49 = vsel %vm14095_vm12, %v5700_v60, -1e+30  ;;  %v17871_v38 = vmov 0 }
 0x41b   : > { %17865 = vst [vmem:[#allocation21_spill] sm:$0xff] %v17864_v28  ;;  %vm17866_vm11 = vmmov %vm17862_vm3  ;;  %v5311_v58 = vadd.s32 40, %v17858_v0  ;;  %v5703_v53 = vadd.f32 0.2, %v13679_v47  ;;  %v17880_v23 = vmov 0  ;;  %v5313_v17 = vadd.s32 56, %v17858_v0 }
 0x41c   : > { %vm14108_vm4 = vmand %vm5636_vm8, %vm17866_vm11  ;;  %5796 = vst [vmem:[#allocation2] sm:$0xff] %v5732_v49  ;;  %vm5543_vm8 = vcmp.ne.s32.totalorder %v5309_v59, %v17693_v34  ;;  %v5419_v55 = vpop.permute.xlu1 %5418  ;;  %v8530_v42 = vmov -1e+30   ;;  %v17884_v46 = vmov 0  ;;  %v5705_v8 = vadd.f32 0.2, %v13736_v37 }
 0x41d   : > { %v17868_v16 = vsel %vm14108_vm4, 4294967295, %v17867_v16  ;;  %v14116_v31 = vsel %vm14108_vm4, %v13572_v39, 1e+30  ;;  %vm5574_vm3 = vmand %vm5510_vm13, %vm5542_vm9  ;;  %v17875_v39 = vmov 0  ;;  %5821 = vst [vmem:[#allocation2 + $0xc8] sm:$0xff] %v8530_v42  ;;  %v5315_v50 = vadd.s32 72, %v17858_v0 }
 0x41e   : > { %17869 = vst [vmem:[#allocation45_spill] sm:$0xff] %v17868_v16  ;;  %vm17870_vm14 = vmmov %vm17866_vm11  ;;  %v17892_v59 = vmov 0  ;;  %v5707_v3 = vadd.f32 0.2, %v13789_v18  ;;  %v5717_v63 = vadd.f32 0.2, %v14018_v35 }
 0x41f   : > { %vm14120_vm0 = vmand %vm5574_vm3, %vm17870_vm14  ;;  %vm5511_vm3 = vcmp.eq.s32.totalorder %v5419_v55, %v13420_v1  ;;  %5822 = vst [vmem:[#allocation2 + $0xd0] sm:$0xff] %v8530_v42  ;;  %v17900_v55 = vmov 0  ;;  %v5719_v22 = vadd.f32 0.2, %v14053_v44 }
 0x420   : > { %v17872_v38 = vsel %vm14120_vm0, 4294967295, %v17871_v38  ;;  %vm5638_vm11 = vmxor %vm5510_vm13, %vm17760_vm6  ;;  %v5734_v14 = vsel %vm14120_vm0, %v5702_v51, -1e+30  ;;  %v5425_v12 = vpop.permute.xlu1 %5424  ;;  %5823 = vst [vmem:[#allocation2 + $0xd8] sm:$0xff] %v8530_v42  ;;  %v17896_v51 = vmov 0 }
 0x421   : > { %17873 = vst [vmem:[#allocation32_spill] sm:$0xff] %v17872_v38  ;;  %vm17874_vm4 = vmmov %vm17870_vm14 }
 0x422   : > { %vm14131_vm9 = vmand %vm5638_vm11, %vm17874_vm4  ;;  %5798 = vst [vmem:[#allocation2 + $0x10] sm:$0xff] %v5734_v14 }
 0x423   : > { %v17876_v39 = vsel %vm14131_vm9, 4294967295, %v17875_v39  ;;  %v14138_v15 = vsel %vm14131_vm9, %v5275_v30, 1e+30  ;;  %vm5575_vm14 = vmand %vm5511_vm3, %vm5543_vm8  ;;  %5824 = vst [vmem:[#allocation2 + $0xe0] sm:$0xff] %v8530_v42  ;;  %v17888_v30 = vmov 0 }
 0x424   : > { %17877 = vst [vmem:[#allocation113_spill] sm:$0xff] %v17876_v39  ;;  %17878 = vst [vmem:[#allocation141_spill] sm:$0xff] %v14138_v15  ;;  %v5431_v60 = vpop.permute.xlu1 %5430 }
 0x425   : > { %vm17879_vm13 = vmmov %vm17874_vm4  ;;  %vm5545_vm4 = vcmp.ne.s32.totalorder %v5311_v58, %v17693_v34  ;;  %5825 = vst [vmem:[#allocation2 + $0xe8] sm:$0xff] %v8530_v42  ;;  %v5317_v58 = vadd.s32 88, %v17858_v0 }
 0x426   : > { %vm14143_vm7 = vmand %vm5575_vm14, %vm17879_vm13  ;;  %5826 = vst [vmem:[#allocation2 + $0xf0] sm:$0xff] %v8530_v42 }
 0x427   : > { %v17881_v23 = vsel %vm14143_vm7, 4294967295, %v17880_v23  ;;  %vm5639_vm11 = vmxor %vm5511_vm3, %vm17760_vm6  ;;  %v5735_v2 = vsel %vm14143_vm7, %v5703_v53, -1e+30  ;;  %5827 = vst [vmem:[#allocation2 + $0xf8] sm:$0xff] %v8530_v42  ;;  %vm5513_vm3 = vcmp.eq.s32.totalorder %v5425_v12, %v13420_v1  ;;  %v5319_v12 = vadd.s32 104, %v17858_v0 }
 0x428   : > { %17882 = vst [vmem:[#allocation39_spill] sm:$0xff] %v17881_v23  ;;  %vm17883_vm8 = vmmov %vm17879_vm13 }
 0x429   : > { %vm14154_vm14 = vmand %vm5639_vm11, %vm17883_vm8  ;;  %5799 = vst [vmem:[#allocation2 + $0x18] sm:$0xff] %v5735_v2  ;;  %vm5547_vm11 = vcmp.ne.s32.totalorder %v5313_v17, %v17693_v34  ;;  %v5709_v17 = vadd.f32 0.2, %v13837_v45  ;;  %v17905_v2 = vmov 0 }
 0x42a   : > { %v17885_v46 = vsel %vm14154_vm14, 4294967295, %v17884_v46  ;;  %v14162_v41 = vsel %vm14154_vm14, %v13679_v47, 1e+30  ;;  %vm5577_vm13 = vmand %vm5513_vm3, %vm5545_vm4 }
 0x42b   : > { %17886 = vst [vmem:[#allocation25_spill] sm:$0xff] %v17885_v46  ;;  %vm17887_vm9 = vmmov %vm17883_vm8 }
 0x42c   : > { %vm14169_vm10 = vmand %vm5577_vm13, %vm17887_vm9 }
 0x42d   : > { %v17889_v30 = vsel %vm14169_vm10, 4294967295, %v17888_v30  ;;  %vm5641_vm8 = vmxor %vm5513_vm3, %vm17760_vm6  ;;  %v5737_v47 = vsel %vm14169_vm10, %v5705_v8, -1e+30  ;;  %v17909_v8 = vmov 0 }
 0x42e   : > { %17890 = vst [vmem:[#allocation46_spill] sm:$0xff] %v17889_v30  ;;  %vm17891_vm4 = vmmov %vm17887_vm9  ;;  %vm5515_vm9 = vcmp.eq.s32.totalorder %v5431_v60, %v13420_v1  ;;  %v17914_v60 = vmov 0 }
 0x42f   : > { %vm14180_vm14 = vmand %vm5641_vm8, %vm17891_vm4  ;;  %5801 = vst [vmem:[#allocation2 + $0x28] sm:$0xff] %v5737_v47  ;;  %vm5549_vm8 = vcmp.ne.s32.totalorder %v5315_v50, %v17693_v34  ;;  %v5711_v47 = vadd.f32 0.2, %v13887_v40 }
 0x430   : > { %v17893_v59 = vsel %vm14180_vm14, 4294967295, %v17892_v59  ;;  %v14188_v49 = vsel %vm14180_vm14, %v13736_v37, 1e+30  ;;  %vm5579_vm13 = vmand %vm5515_vm9, %vm5547_vm11  ;;  %v5437_v37 = vpop.permute.xlu1 %5436 }
 0x431   : > { %17894 = vst [vmem:[#allocation11_spill] sm:$0xff] %v17893_v59  ;;  %vm17895_vm3 = vmmov %vm17891_vm4 }
 0x432   : > { %vm14193_vm15 = vmand %vm5579_vm13, %vm17895_vm3  ;;  %vm5517_vm13 = vcmp.eq.s32.totalorder %v5437_v37, %v13420_v1 }
 0x433   : > { %v17897_v51 = vsel %vm14193_vm15, 4294967295, %v17896_v51  ;;  %vm5643_vm4 = vmxor %vm5515_vm9, %vm17760_vm6  ;;  %v5739_v14 = vsel %vm14193_vm15, %v5707_v3, -1e+30  ;;  %v5321_v3 = vadd.s32 120, %v17858_v0 }
 0x434   : > { %17898 = vst [vmem:[#allocation65_spill] sm:$0xff] %v17897_v51  ;;  %vm17899_vm11 = vmmov %vm17895_vm3 }
 0x435   : > { %vm14204_vm14 = vmand %vm5643_vm4, %vm17899_vm11  ;;  %5803 = vst [vmem:[#allocation2 + $0x38] sm:$0xff] %v5739_v14  ;;  %vm5551_vm4 = vcmp.ne.s32.totalorder %v5317_v58, %v17693_v34  ;;  %v17918_v14 = vmov 0 }
 0x436   : > { %v17901_v55 = vsel %vm14204_vm14, 4294967295, %v17900_v55  ;;  %v14212_v53 = vsel %vm14204_vm14, %v13789_v18, 1e+30  ;;  %vm5581_vm3 = vmand %vm5517_vm13, %vm5549_vm8  ;;  %v5443_v18 = vpop.permute.xlu1 %5442 }
 0x437   : > { %17902 = vst [vmem:[#allocation142_spill] sm:$0xff] %v17901_v55  ;;  %17903 = vst [vmem:[#allocation48_spill] sm:$0xff] %v14212_v53 }
 0x438   : > { %vm17904_vm9 = vmmov %vm17899_vm11 }
 0x439   : > { %vm14217_vm15 = vmand %vm5581_vm3, %vm17904_vm9  ;;  %vm5519_vm3 = vcmp.eq.s32.totalorder %v5443_v18, %v13420_v1 }
 0x43a   : > { %v17906_v2 = vsel %vm14217_vm15, 4294967295, %v17905_v2  ;;  %vm5645_vm11 = vmxor %vm5517_vm13, %vm17760_vm6  ;;  %v5741_v42 = vsel %vm14217_vm15, %v5709_v17, -1e+30  ;;  %v5713_v17 = vadd.f32 0.2, %v13934_v13 }
 0x43b   : > { %17907 = vst [vmem:[#allocation147_spill] sm:$0xff] %v17906_v2  ;;  %vm17908_vm8 = vmmov %vm17904_vm9 }
 0x43c   : > { %vm14228_vm14 = vmand %vm5645_vm11, %vm17908_vm8  ;;  %5805 = vst [vmem:[#allocation2 + $0x48] sm:$0xff] %v5741_v42  ;;  %vm5553_vm11 = vcmp.ne.s32.totalorder %v5319_v12, %v17693_v34  ;;  %v17923_v12 = vmov 0  ;;  %v5323_v42 = vadd.s32 136, %v17858_v0 }
 0x43d   : > { %v17910_v8 = vsel %vm14228_vm14, 4294967295, %v17909_v8  ;;  %v14236_v50 = vsel %vm14228_vm14, %v13837_v45, 1e+30  ;;  %vm5583_vm9 = vmand %vm5519_vm3, %vm5551_vm4  ;;  %v5449_v45 = vpop.permute.xlu1 %5448 }
 0x43e   : > { %17911 = vst [vmem:[#allocation175_spill] sm:$0xff] %v17910_v8  ;;  %17912 = vst [vmem:[#allocation43_spill] sm:$0xff] %v14236_v50 }
 0x43f   : > { %vm17913_vm13 = vmmov %vm17908_vm8 }
 0x440   : > { %vm14241_vm15 = vmand %vm5583_vm9, %vm17913_vm13  ;;  %vm5521_vm9 = vcmp.eq.s32.totalorder %v5449_v45, %v13420_v1  ;;  %v17932_v45 = vmov 0 }
 0x441   : > { %v17915_v60 = vsel %vm14241_vm15, 4294967295, %v17914_v60  ;;  %vm5647_vm8 = vmxor %vm5519_vm3, %vm17760_vm6  ;;  %v5743_v58 = vsel %vm14241_vm15, %v5711_v47, -1e+30  ;;  %v17927_v47 = vmov 0 }
 0x442   : > { %17916 = vst [vmem:[#allocation164_spill] sm:$0xff] %v17915_v60  ;;  %vm17917_vm4 = vmmov %vm17913_vm13 }
 0x443   : > { %vm14252_vm14 = vmand %vm5647_vm8, %vm17917_vm4  ;;  %5807 = vst [vmem:[#allocation2 + $0x58] sm:$0xff] %v5743_v58  ;;  %vm5555_vm8 = vcmp.ne.s32.totalorder %v5321_v3, %v17693_v34  ;;  %v5715_v58 = vadd.f32 0.2, %v13975_v36 }
 0x444   : > { %v17919_v14 = vsel %vm14252_vm14, 4294967295, %v17918_v14  ;;  %v14260_v37 = vsel %vm14252_vm14, %v13887_v40, 1e+30  ;;  %vm5585_vm13 = vmand %vm5521_vm9, %vm5553_vm11  ;;  %v5455_v40 = vpop.permute.xlu1 %5454 }
 0x445   : > { %17920 = vst [vmem:[#allocation50_spill] sm:$0xff] %v17919_v14  ;;  %17921 = vst [vmem:[#allocation72_spill] sm:$0xff] %v14260_v37 }
 0x446   : > { %vm17922_vm3 = vmmov %vm17917_vm4 }
 0x447   : > { %vm14265_vm15 = vmand %vm5585_vm13, %vm17922_vm3  ;;  %vm5523_vm13 = vcmp.eq.s32.totalorder %v5455_v40, %v13420_v1  ;;  %v17936_v40 = vmov 0 }
 0x448   : > { %v17924_v12 = vsel %vm14265_vm15, 4294967295, %v17923_v12  ;;  %vm5649_vm4 = vmxor %vm5521_vm9, %vm17760_vm6  ;;  %v5745_v18 = vsel %vm14265_vm15, %v5713_v17, -1e+30  ;;  %v5325_v17 = vadd.s32 152, %v17858_v0 }
 0x449   : > { %17925 = vst [vmem:[#allocation138_spill] sm:$0xff] %v17924_v12  ;;  %vm17926_vm11 = vmmov %vm17922_vm3 }
 0x44a   : > { %vm14276_vm14 = vmand %vm5649_vm4, %vm17926_vm11  ;;  %5809 = vst [vmem:[#allocation2 + $0x68] sm:$0xff] %v5745_v18  ;;  %vm5557_vm4 = vcmp.ne.s32.totalorder %v5323_v42, %v17693_v34 }
 0x44b   : > { %v17928_v47 = vsel %vm14276_vm14, 4294967295, %v17927_v47  ;;  %v14284_v3 = vsel %vm14276_vm14, %v13934_v13, 1e+30  ;;  %vm5587_vm3 = vmand %vm5523_vm13, %vm5555_vm8  ;;  %v5461_v13 = vpop.permute.xlu1 %5460 }
 0x44c   : > { %17929 = vst [vmem:[#allocation74_spill] sm:$0xff] %v17928_v47  ;;  %17930 = vst [vmem:[#allocation70_spill] sm:$0xff] %v14284_v3 }
 0x44d   : > { %vm17931_vm9 = vmmov %vm17926_vm11 }
 0x44e   : > { %vm14289_vm15 = vmand %vm5587_vm3, %vm17931_vm9  ;;  %vm5525_vm3 = vcmp.eq.s32.totalorder %v5461_v13, %v13420_v1 }
 0x44f   : > { %v17933_v45 = vsel %vm14289_vm15, 4294967295, %v17932_v45  ;;  %vm5651_vm11 = vmxor %vm5523_vm13, %vm17760_vm6  ;;  %v5747_v18 = vsel %vm14289_vm15, %v5715_v58, -1e+30  ;;  %v17941_v58 = vmov 0 }
 0x450   : > { %17934 = vst [vmem:[#allocation54_spill] sm:$0xff] %v17933_v45  ;;  %vm17935_vm8 = vmmov %vm17931_vm9 }
 0x451   : > { %vm14300_vm14 = vmand %vm5651_vm11, %vm17935_vm8  ;;  %5811 = vst [vmem:[#allocation2 + $0x78] sm:$0xff] %v5747_v18  ;;  %vm5559_vm11 = vcmp.ne.s32.totalorder %v5325_v17, %v17693_v34  ;;  %v5327_v18 = vadd.s32 168, %v17858_v0 }
 0x452   : > { %v17937_v40 = vsel %vm14300_vm14, 4294967295, %v17936_v40  ;;  %v14308_v42 = vsel %vm14300_vm14, %v13975_v36, 1e+30  ;;  %vm5589_vm9 = vmand %vm5525_vm3, %vm5557_vm4  ;;  %v5467_v36 = vpop.permute.xlu1 %5466 }
 0x453   : > { %17938 = vst [vmem:[#allocation148_spill] sm:$0xff] %v17937_v40  ;;  %17939 = vst [vmem:[#allocation80_spill] sm:$0xff] %v14308_v42 }
 0x454   : > { %vm17940_vm13 = vmmov %vm17935_vm8 }
 0x455   : > { %vm14313_vm15 = vmand %vm5589_vm9, %vm17940_vm13  ;;  %vm5527_vm9 = vcmp.eq.s32.totalorder %v5467_v36, %v13420_v1 }
 0x456   : > { %v17942_v58 = vsel %vm14313_vm15, 4294967295, %v17941_v58  ;;  %vm5653_vm8 = vmxor %vm5525_vm3, %vm17760_vm6  ;;  %v5749_v13 = vsel %vm14313_vm15, %v5717_v63, -1e+30  ;;  %v17950_v63 = vmov 0  ;;  %v5473_v36 = vpop.permute.xlu1 %5472 }
 0x457   : > { %17943 = vst [vmem:[#allocation83_spill] sm:$0xff] %v17942_v58  ;;  %vm17944_vm4 = vmmov %vm17940_vm13 }
 0x458   : > { %vm14324_vm14 = vmand %vm5653_vm8, %vm17944_vm4  ;;  %5813 = vst [vmem:[#allocation2 + $0x88] sm:$0xff] %v5749_v13  ;;  %vm5561_vm8 = vcmp.ne.s32.totalorder %v5327_v18, %v17693_v34  ;;  %v5329_v13 = vadd.s32 184, %v17858_v0  ;;  %v5721_v18 = vadd.f32 0.2, %v14078_v43 }
 0x459   : > { %v17946_v20 = vsel %vm14324_vm14, 4294967295, %v17945_v20  ;;  %v14332_v17 = vsel %vm14324_vm14, %v14018_v35, 1e+30  ;;  %vm5591_vm13 = vmand %vm5527_vm9, %vm5559_vm11 }
 0x45a   : > { %17947 = vst [vmem:[#allocation166_spill] sm:$0xff] %v17946_v20  ;;  %17948 = vst [vmem:[#allocation86_spill] sm:$0xff] %v14332_v17  ;;  %v17954_v20 = vmov 0 }
 0x45b   : > { %vm17949_vm3 = vmmov %vm17944_vm4 }
 0x45c   : > { %vm14337_vm15 = vmand %vm5591_vm13, %vm17949_vm3  ;;  %vm5529_vm13 = vcmp.eq.s32.totalorder %v5473_v36, %v13420_v1  ;;  %v8376_v36 = vld [vmem:[%s13399_s18] ss:$0 sm:$0xff] }
 0x45d   : > { %v17951_v63 = vsel %vm14337_vm15, 4294967295, %v17950_v63  ;;  %vm5655_vm4 = vmxor %vm5527_vm9, %vm17760_vm6  ;;  %v5751_v35 = vsel %vm14337_vm15, %v5719_v22, -1e+30  ;;  %v17958_v22 = vmov 0 }
 0x45e   : > { %17952 = vst [vmem:[#allocation135_spill] sm:$0xff] %v17951_v63  ;;  %vm17953_vm11 = vmmov %vm17949_vm3 }
 0x45f   : > { %vm14348_vm14 = vmand %vm5655_vm4, %vm17953_vm11  ;;  %5815 = vst [vmem:[#allocation2 + $0x98] sm:$0xff] %v5751_v35  ;;  %vm5563_vm4 = vcmp.ne.s32.totalorder %v5329_v13, %v17693_v34  ;;  %v17962_v35 = vmov 0 }
 0x460   : > { %v17955_v20 = vsel %vm14348_vm14, 4294967295, %v17954_v20  ;;  %v14356_v0 = vsel %vm14348_vm14, %v14053_v44, 1e+30  ;;  %vm5593_vm9 = vmand %vm5529_vm13, %vm5561_vm8  ;;  %v5479_v44 = vpop.permute.xlu1 %5478 }
 0x461   : > { %17956 = vst [vmem:[#allocation76_spill] sm:$0xff] %v17955_v20  ;;  %17957 = vst [vmem:[#allocation47_spill] sm:$0xff] %v14356_v0  ;;  %v17966_v20 = vmov 0 }
 0x462   : > { %vm14361_vm15 = vmand %vm5593_vm9, %vm17949_vm3  ;;  %vm5531_vm9 = vcmp.eq.s32.totalorder %v5479_v44, %v8376_v36  ;;  %v17970_v44 = vmov 0  ;;  %v14405_v36 = vmov 0  }
 0x463   : > { %v17959_v22 = vsel %vm14361_vm15, 4294967295, %v17958_v22  ;;  %vm5657_vm11 = vmxor %vm5529_vm13, %vm17760_vm6  ;;  %v5753_v1 = vsel %vm14361_vm15, %v5721_v18, -1e+30  ;;  %v5723_v18 = vadd.f32 0.2, %v14101_v6 }
 0x464   : > { %17960 = vst [vmem:[#allocation44_spill] sm:$0xff] %v17959_v22  ;;  %vm17961_vm8 = vmmov %vm17949_vm3 }
 0x465   : > { %vm14371_vm14 = vmand %vm5657_vm11, %vm17961_vm8  ;;  %5817 = vst [vmem:[#allocation2 + $0xa8] sm:$0xff] %v5753_v1 }
 0x466   : > { %v17963_v35 = vsel %vm14371_vm14, 4294967295, %v17962_v35  ;;  %v14379_v13 = vsel %vm14371_vm14, %v14078_v43, 1e+30  ;;  %vm5595_vm13 = vmand %vm5531_vm9, %vm5563_vm4 }
 0x467   : > { %17964 = vst [vmem:[#allocation49_spill] sm:$0xff] %v17963_v35  ;;  %17965 = vst [vmem:[#allocation51_spill] sm:$0xff] %v14379_v13  ;;  %v14407_v35 = vmov 0.0  }
 0x468   : > { %vm14384_vm15 = vmand %vm5595_vm13, %vm17949_vm3 }
 0x469   : > { %v17967_v20 = vsel %vm14384_vm15, 4294967295, %v17966_v20  ;;  %vm5659_vm11 = vmxor %vm5531_vm9, %vm17760_vm6  ;;  %v5755_v1 = vsel %vm14384_vm15, %v5723_v18, -1e+30 }
 0x46a   : > { %17968 = vst [vmem:[#allocation59_spill] sm:$0xff] %v17967_v20  ;;  %vm17969_vm8 = vmmov %vm17949_vm3 }
 0x46b   : > { %vm14393_vm7 = vmand %vm5659_vm11, %vm17969_vm8  ;;  %5819 = vst [vmem:[#allocation2 + $0xb8] sm:$0xff] %v5755_v1 }
 0x46c   : > { %v17971_v44 = vsel %vm14393_vm7, 4294967295, %v17970_v44  ;;  %v14400_v43 = vsel %vm14393_vm7, %v14101_v6, 1e+30 }
 0x46d   : > { %17972 = vst [vmem:[#allocation88_spill] sm:$0xff] %v17971_v44  ;;  %17973 = vst [vmem:[#allocation170_spill] sm:$0xff] %v14400_v43 }
 0x46e LB: >> { %v17974_v15 = vld [vmem:[#allocation141_spill] sm:$0xff]  ;;  %v17975_v9 = vld [vmem:[#allocation24_spill] sm:$0xff]  ;;  %v17978_v50 = vld [vmem:[#allocation43_spill] sm:$0xff]  ;;  %17992 = vst [vmem:[#allocation199_spill] sm:$0xff] %v8515_v36  ;;  %s7892_s24 = sshll.u32 %s8523_s21, 3  ;;  %v16765_v38 = vmov 0   ;;  %s8523_s21 = sphi %s14409_s21, %s5833_s21   ;;  %v8519_v35 = vphi %v14407_v35, %v18187_v35   ;;  %v8515_v36 = vphi %v14405_v36, %v18186_v36  }
 0x46f   : >> { %v17976_v53 = vld [vmem:[#allocation48_spill] sm:$0xff]  ;;  %v17977_v27 = vld [vmem:[#allocation13_spill] sm:$0xff]  ;;  %v17979_v24 = vld [vmem:[#allocation190_spill] sm:$0xff]  ;;  %17993 = vst [vmem:[#allocation200_spill] sm:$0xff] %v8519_v35  ;;  %s14421_s23 = scalar_lea.vmem [#allocation2], %s7892_s24  ;;  %s5833_s21 = sadd.s32 1, %s8523_s21  }
 0x470   : >> { %v17980_v37 = vld [vmem:[#allocation72_spill] sm:$0xff]  ;;  %v17982_v3 = vld [vmem:[#allocation70_spill] sm:$0xff]  ;;  %v17983_v21 = vld [vmem:[#allocation125_spill] sm:$0xff]  ;;  %p5830_p0 = scmp.ge.s32.totalorder %s5833_s21, 32  }
 0x471   : >> { %v17981_v33 = vld [vmem:[#allocation68_spill] sm:$0xff]  ;;  %v17985_v5 = vld [vmem:[#allocation146_spill] sm:$0xff]  ;;  %v17988_v25 = vld [vmem:[#allocation155_spill] sm:$0xff]  ;;  %s7670_s25 = sand.u32 (%p5830_p0), 1, %s8601_s9   ;;  %s16313_s26 = sshll.u32 (%p5830_p0), %s8601_s9, 4 }
 0x472   : >> { %v17984_v42 = vld [vmem:[#allocation80_spill] sm:$0xff]  ;;  %v17986_v17 = vld [vmem:[#allocation86_spill] sm:$0xff]  ;;  %v17989_v13 = vld [vmem:[#allocation51_spill] sm:$0xff]  ;;  %s16319_s18 = scalar_lea.hbm (%p5830_p0), %s16589_s7, %s16313_s26  ;;  %s7700_s21 = sshll.u32 (%p5830_p0), %s389_s19, 4  ;;  %s16341_s21 = int_to_ptr.vmem [resolvable:$true] %s7700_s21 }
 0x473   : >> { %v17987_v11 = vld [vmem:[#allocation136_spill] sm:$0xff]  ;;  %v17990_v0 = vld [vmem:[#allocation47_spill] sm:$0xff]  ;;  %v17991_v54 = vld [vmem:[#allocation37_spill] sm:$0xff]  ;;  %s16347_s24 = scalar_lea.hbm (%p5830_p0), %s16588_s6, %s16313_s26  ;;  %s8377_s13 = scalar_lea.vmem (%p5830_p0), %s16341_s21, 16 }
 0x474   : >> { %v14424_v34 = vld [vmem:[%s14421_s23] ss:$0 sm:$0xff]  ;;  %v17994_v18 = vld [vmem:[#allocation71_spill] sm:$0xff]  ;;  %p8378_p1 = scmp.ne.s32.totalorder (%p5830_p0), %s16341_s21, %s8377_s13  ;;  %s8532_s17 = smov (%p5830_p0), [#allocation6]  }
 0x475   : >> { %v5843_v6 = vsub.f32 %v14424_v34, %v14116_v31  ;;  %v5844_v1 = vsub.f32 %v14424_v34, %v17994_v18  ;;  %v5845_v44 = vsub.f32 %v14424_v34, %v17974_v15  ;;  %v5846_v40 = vsub.f32 %v14424_v34, %v14162_v41  ;;  %v17995_v43 = vld [vmem:[#allocation170_spill] sm:$0xff]  ;;  %s8381_s9 = sshll.u32 (%p5830_p0), %s8532_s17, 4  ;;  %s8382_s9 = int_to_ptr.vmem [resolvable:$false] %s8381_s9 }
 0x476   : >> { %v5847_v61 = vsub.f32 %v14424_v34, %v13558_v32  ;;  %v5848_v8 = vsub.f32 %v14424_v34, %v14188_v49  ;;  %v5849_v46 = vsub.f32 %v14424_v34, %v17975_v9  ;;  %v5850_v7 = vsub.f32 %v14424_v34, %v17976_v53  ;;  %v17996_v56 = vld [vmem:[#allocation42_spill] sm:$0xff]  ;;  %p8379_p2 = pnand (%p5830_p0), %p8378_p1, %p8619_p6  ;;  %p8384_p4 = scmp.lt.s32.totalorder (%p5830_p0), %s16341_s21, %s8382_s9 }
 0x477   : >> { %v5875_v4 = vmax.f32 %v5843_v6, 0.0  ;;  %v5876_v47 = vmax.f32 %v5844_v1, 0.0  ;;  %v5877_v14 = vmax.f32 %v5845_v44, 0.0  ;;  %v5878_v55 = vmax.f32 %v5846_v40, 0.0 }
 0x478   : >> { %v5879_v39 = vmax.f32 %v5847_v61, 0.0  ;;  %v5880_v20 = vmax.f32 %v5848_v8, 0.0  ;;  %v5851_v22 = vsub.f32 %v14424_v34, %v17977_v27  ;;  %v5881_v26 = vmax.f32 %v5849_v46, 0.0  ;;  %p8380_p3 = pneg (%p5830_p0), %p8379_p2 }
 0x479   : >> { %v5907_v59 = vadd.f32 %v5876_v47, %v5875_v4  ;;  %v5852_v19 = vsub.f32 %v14424_v34, %v17978_v50  ;;  %v5853_v4 = vsub.f32 %v14424_v34, %v17979_v24  ;;  %v5854_v47 = vsub.f32 %v14424_v34, %v17980_v37 }
 0x47a   : >> { %v14468_v58 = vsub.f32 %v14424_v34, %v17985_v5  ;;  %v14472_v57 = vsub.f32 %v14424_v34, %v17986_v17  ;;  %v14476_v45 = vsub.f32 %v14424_v34, %v17988_v25  ;;  %v14480_v52 = vsub.f32 %v14424_v34, %v17990_v0 }
 0x47b   : >> { %v5908_v16 = vadd.f32 %v5907_v59, %v5877_v14  ;;  %v14452_v59 = vsub.f32 %v14424_v34, %v17981_v33  ;;  %v14464_v14 = vsub.f32 %v14424_v34, %v17984_v42  ;;  %v14488_v29 = vsub.f32 %v14424_v34, %v17989_v13 }
 0x47c   : >> { %v14492_v60 = vsub.f32 %v14424_v34, %v17987_v11  ;;  %v14496_v48 = vsub.f32 %v14424_v34, %v17995_v43  ;;  %v14500_v2 = vsub.f32 %v14424_v34, %v17996_v56  ;;  %v5884_v51 = vmax.f32 %v5852_v19, 0.0 }
 0x47d   : >> { %v5909_v10 = vadd.f32 %v5908_v16, %v5878_v55  ;;  %v14456_v16 = vsub.f32 %v14424_v34, %v17982_v3  ;;  %v5885_v23 = vmax.f32 %v5853_v4, 0.0  ;;  %vm5945_vm6 = vcmp.gt.f32.partialorder %v5843_v6, 0.0 }
 0x47e   : >> { %vm5946_vm4 = vcmp.gt.f32.partialorder %v5844_v1, 0.0  ;;  %vm5947_vm9 = vcmp.gt.f32.partialorder %v5845_v44, 0.0  ;;  %vm5948_vm13 = vcmp.gt.f32.partialorder %v5846_v40, 0.0  ;;  %vm5949_vm3 = vcmp.gt.f32.partialorder %v5847_v61, 0.0 }
 0x47f   : >> { %v5910_v63 = vadd.f32 %v5909_v10, %v5879_v39  ;;  %v14460_v10 = vsub.f32 %v14424_v34, %v17983_v21  ;;  %v5882_v39 = vmax.f32 %v5850_v7, 0.0  ;;  %vm5950_vm11 = vcmp.gt.f32.partialorder %v5848_v8, 0.0 }
 0x480   : >> { %vm5951_vm8 = vcmp.gt.f32.partialorder %v5849_v46, 0.0  ;;  %vm5952_vm7 = vcmp.gt.f32.partialorder %v5850_v7, 0.0  ;;  %v5887_v30 = vmax.f32 %v14452_v59, 0.0  ;;  %v5977_v28 = vsel %vm5945_vm6, 1, %v16765_v38 }
 0x481   : >> { %v5911_v55 = vadd.f32 %v5910_v63, %v5880_v20  ;;  %v14484_v20 = vsub.f32 %v14424_v34, %v17991_v54  ;;  %v5883_v63 = vmax.f32 %v5851_v22, 0.0  ;;  %v5978_v36 = vsel %vm5946_vm4, 1, %v16765_v38 }
 0x482   : >> { %v5981_v44 = vsel %vm5949_vm3, 1, %v16765_v38  ;;  %v5980_v61 = vsel %vm5948_vm13, 1, %v16765_v38  ;;  %v5983_v7 = vsel %vm5951_vm8, 1, %v16765_v38  ;;  %v5984_v46 = vsel %vm5952_vm7, 1, %v16765_v38 }
 0x483   : >> { %v5912_v12 = vadd.f32 %v5911_v55, %v5881_v26  ;;  %v5886_v55 = vmax.f32 %v5854_v47, 0.0  ;;  %vm5954_vm14 = vcmp.gt.f32.partialorder %v5852_v19, 0.0  ;;  %vm5955_vm15 = vcmp.gt.f32.partialorder %v5853_v4, 0.0 }
 0x484   : >> { %vm5956_vm1 = vcmp.gt.f32.partialorder %v5854_v47, 0.0  ;;  %vm5957_vm6 = vcmp.gt.f32.partialorder %v14452_v59, 0.0  ;;  %vm17997_vm4 = vcmp.gt.f32.partialorder %v5851_v22, 0.0  ;;  %v6009_v6 = vadd.s32 %v5981_v44, %v5977_v28 }
 0x485   : >> { %v5913_v62 = vadd.f32 %v5912_v12, %v5882_v39  ;;  %v5979_v12 = vsel %vm5947_vm9, 1, %v16765_v38  ;;  %v5985_v40 = vsel %vm17997_vm4, 1, %v16765_v38  ;;  %v5889_v56 = vmax.f32 %v14460_v10, 0.0 }
 0x486   : >> { %v5986_v43 = vsel %vm5954_vm14, 1, %v16765_v38  ;;  %v5987_v19 = vsel %vm5955_vm15, 1, %v16765_v38  ;;  %vm5958_vm7 = vcmp.gt.f32.partialorder %v14456_v16, 0.0  ;;  %vm5959_vm9 = vcmp.gt.f32.partialorder %v14460_v10, 0.0 }
 0x487   : >> { %v5914_v26 = vadd.f32 %v5913_v62, %v5883_v63  ;;  %v5982_v62 = vsel %vm5950_vm11, 1, %v16765_v38  ;;  %v6011_v63 = vadd.s32 %v5983_v7, %v5979_v12  ;;  %vm5960_vm13 = vcmp.gt.f32.partialorder %v14464_v14, 0.0 }
 0x488   : >> { %v6010_v39 = vadd.s32 %v5982_v62, %v5978_v36  ;;  %v5890_v28 = vmax.f32 %v14464_v14, 0.0  ;;  %v5891_v22 = vmax.f32 %v14468_v58, 0.0  ;;  %v5989_v36 = vsel %vm5957_vm6, 1, %v16765_v38 }
 0x489   : >> { %v5915_v35 = vadd.f32 %v5914_v26, %v5884_v51  ;;  %v5888_v51 = vmax.f32 %v14456_v16, 0.0  ;;  %v6012_v26 = vadd.s32 %v5984_v46, %v5980_v61  ;;  %v6013_v4 = vadd.s32 %v6009_v6, %v5985_v40 }
 0x48a   : >> { %v6015_v12 = vadd.s32 %v6011_v63, %v5987_v19  ;;  %v5991_v16 = vsel %vm5959_vm9, 1, %v16765_v38  ;;  %v5992_v10 = vsel %vm5960_vm13, 1, %v16765_v38  ;;  %vm5962_vm15 = vcmp.gt.f32.partialorder %v14472_v57, 0.0 }
 0x48b   : >> { %v5916_v8 = vadd.f32 %v5915_v35, %v5885_v23  ;;  %v5988_v23 = vsel %vm5956_vm1, 1, %v16765_v38  ;;  %vm5961_vm1 = vcmp.gt.f32.partialorder %v14468_v58, 0.0  ;;  %vm5963_vm14 = vcmp.gt.f32.partialorder %v14476_v45, 0.0 }
 0x48c   : >> { %v6016_v44 = vadd.s32 %v6012_v26, %v5988_v23  ;;  %vm5964_vm3 = vcmp.gt.f32.partialorder %v14480_v52, 0.0  ;;  %v5892_v59 = vmax.f32 %v14472_v57, 0.0  ;;  %vm5965_vm11 = vcmp.gt.f32.partialorder %v14484_v20, 0.0 }
 0x48d   : >> { %v5917_v1 = vadd.f32 %v5916_v8, %v5886_v55  ;;  %v6014_v55 = vadd.s32 %v6010_v39, %v5986_v43  ;;  %v7894_v43 = vadd.f32 -1e+30, %v14424_v34  ;;  %v6017_v61 = vadd.s32 %v6013_v4, %v5989_v36 }
 0x48e   : >> { %v6019_v46 = vadd.s32 %v6015_v12, %v5991_v16  ;;  %v6020_v8 = vadd.s32 %v6016_v44, %v5992_v10  ;;  %v5994_v40 = vsel %vm5962_vm15, 1, %v16765_v38  ;;  %v5995_v6 = vsel %vm5963_vm14, 1, %v16765_v38 }
 0x48f   : >> { %v5918_v35 = vadd.f32 %v5917_v1, %v5887_v30  ;;  %v5990_v30 = vsel %vm5958_vm7, 1, %v16765_v38  ;;  %v5996_v34 = vsel %vm5964_vm3, 1, %v16765_v38  ;;  %vm5966_vm8 = vcmp.gt.f32.partialorder %v14488_v29, 0.0 }
 0x490   : >> { %v6018_v7 = vadd.s32 %v6014_v55, %v5990_v30  ;;  %vm5967_vm6 = vcmp.gt.f32.partialorder %v14492_v60, 0.0  ;;  %vm5968_vm4 = vcmp.gt.f32.partialorder %v14496_v48, 0.0  ;;  %v5893_v1 = vmax.f32 %v14476_v45, 0.0 }
 0x491   : >> { %v5919_v47 = vadd.f32 %v5918_v35, %v5888_v51  ;;  %v14538_v51 = vld [vmem:[%s14421_s23 + $0x1] ss:$0 sm:$0xff]  ;;  %v5997_v58 = vsel %vm5965_vm11, 1, %v16765_v38  ;;  %v6023_v23 = vadd.s32 %v6019_v46, %v5995_v6  ;;  %v6024_v35 = vadd.s32 %v6020_v8, %v5996_v34 }
 0x492   : >> { %v14555_v39 = vsub.f32 %v14538_v51, %v14116_v31  ;;  %v14559_v63 = vsub.f32 %v14538_v51, %v17994_v18  ;;  %v6022_v19 = vadd.s32 %v6018_v7, %v5994_v40  ;;  %v5999_v45 = vsel %vm5967_vm6, 1, %v16765_v38 }
 0x493   : >> { %v5920_v14 = vadd.f32 %v5919_v47, %v5889_v56  ;;  %v5993_v56 = vsel %vm5961_vm1, 1, %v16765_v38  ;;  %v14566_v36 = vsub.f32 %v14538_v51, %v17974_v15  ;;  %v5894_v4 = vmax.f32 %v14480_v52, 0.0 }
 0x494   : >> { %v6021_v26 = vadd.s32 %v6017_v61, %v5993_v56  ;;  %vm5969_vm7 = vcmp.gt.f32.partialorder %v14500_v2, 0.0  ;;  %vm5970_vm9 = vcmp.gt.f32.partialorder %v7894_v43, 0.0  ;;  %v5895_v55 = vmax.f32 %v14484_v20, 0.0 }
 0x495   : >> { %v5921_v62 = vadd.f32 %v5920_v14, %v5890_v28  ;;  %v5998_v28 = vsel %vm5966_vm8, 1, %v16765_v38  ;;  %v14573_v12 = vsub.f32 %v14538_v51, %v14162_v41  ;;  %v6086_v44 = vmax.f32 %v14555_v39, 0.0 }
 0x496   : >> { %v6087_v30 = vmax.f32 %v14559_v63, 0.0  ;;  %v6025_v16 = vadd.s32 %v6021_v26, %v5997_v58  ;;  %v6026_v10 = vadd.s32 %v6022_v19, %v5998_v28  ;;  %v6027_v14 = vadd.s32 %v6023_v23, %v5999_v45 }
 0x497   : >> { %v5922_v57 = vadd.f32 %v5921_v62, %v5891_v22  ;;  %v6000_v22 = vsel %vm5968_vm4, 1, %v16765_v38  ;;  %v6001_v52 = vsel %vm5969_vm7, 1, %v16765_v38  ;;  %v14581_v62 = vsub.f32 %v14538_v51, %v13558_v32 }
 0x498   : >> { %v6028_v61 = vadd.s32 %v6024_v35, %v6000_v22  ;;  %v6088_v20 = vmax.f32 %v14566_v36, 0.0  ;;  %v5896_v7 = vmax.f32 %v14488_v29, 0.0  ;;  %v14590_v6 = vsub.f32 %v14538_v51, %v14188_v49 }
 0x499   : >> { %v5923_v47 = vadd.f32 %v5922_v57, %v5892_v59  ;;  %v6002_v59 = vsel %vm5970_vm9, 1, %v16765_v38  ;;  %v6089_v34 = vmax.f32 %v14573_v12, 0.0  ;;  %v6118_v57 = vadd.f32 %v6087_v30, %v6086_v44 }
 0x49a   : >> { %v6029_v58 = vadd.s32 %v6025_v16, %v6001_v52  ;;  %v6030_v26 = vadd.s32 %v6026_v10, %v6002_v59  ;;  %v6031_v19 = vadd.s32 %v6027_v14, %v6002_v59  ;;  %v6032_v23 = vadd.s32 %v6028_v61, %v6002_v59 }
 0x49b   : >> { %v5924_v56 = vadd.f32 %v5923_v47, %v5893_v1  ;;  %v14593_v35 = vmax.f32 %v7894_v43, 0.0  ;;  %v6060_v29 = vsub.f32 %v14538_v51, %v17975_v9  ;;  %v6090_v1 = vmax.f32 %v14581_v62, 0.0 }
 0x49c   : >> { %v6119_v28 = vadd.f32 %v6118_v57, %v6088_v20  ;;  %v6061_v22 = vsub.f32 %v14538_v51, %v17976_v53  ;;  %v14602_v47 = vsub.f32 %v14538_v51, %v17977_v27  ;;  %v14606_v44 = vsub.f32 %v14538_v51, %v17978_v50 }
 0x49d   : >> { %v5925_v45 = vadd.f32 %v5924_v56, %v5894_v4  ;;  %v14610_v43 = vsub.f32 %v14538_v51, %v17979_v24  ;;  %v14614_v30 = vsub.f32 %v14538_v51, %v17980_v37  ;;  %v6091_v4 = vmax.f32 %v14590_v6, 0.0 }
 0x49e   : >> { %v6120_v16 = vadd.f32 %v6119_v28, %v6089_v34  ;;  %v6033_v10 = vadd.s32 %v6029_v58, %v6002_v59  ;;  %v6034_v14 = vadd.s32 %v6030_v26, %v6002_v59  ;;  %v6035_v61 = vadd.s32 %v6031_v19, %v6002_v59 }
 0x49f   : >> { %v6036_v52 = vadd.s32 %v6032_v23, %v6002_v59  ;;  %v14619_v20 = vsub.f32 %v14538_v51, %v17981_v33  ;;  %v14623_v56 = vsub.f32 %v14538_v51, %v17982_v3  ;;  %v6092_v57 = vmax.f32 %v6060_v29, 0.0 }
 0x4a0   : >> { %v6121_v40 = vadd.f32 %v6120_v16, %v6090_v1  ;;  %v5926_v8 = vadd.f32 %v5925_v45, %v5895_v55  ;;  %v14627_v38 = vsub.f32 %v14538_v51, %v17983_v21  ;;  %v14631_v34 = vsub.f32 %v14538_v51, %v17984_v42 }
 0x4a1   : >> { %v14635_v59 = vsub.f32 %v14538_v51, %v17985_v5  ;;  %v14639_v58 = vsub.f32 %v14538_v51, %v17986_v17  ;;  %v14643_v26 = vsub.f32 %v14538_v51, %v17988_v25  ;;  %v6093_v55 = vmax.f32 %v6061_v22, 0.0 }
 0x4a2   : >> { %v6122_v19 = vadd.f32 %v6121_v40, %v6091_v4  ;;  %v14645_v23 = vadd.s32 %v6034_v14, %v6033_v10  ;;  %v14647_v1 = vadd.s32 %v6036_v52, %v6035_v61  ;;  %v14651_v28 = vsub.f32 %v14538_v51, %v17990_v0  ;;  %v17998_v14 = vld [vmem:[#allocation170_spill] sm:$0xff] }
 0x4a3   : >> { %v14655_v45 = vsub.f32 %v14538_v51, %v17991_v54  ;;  %v14659_v16 = vsub.f32 %v14538_v51, %v17989_v13  ;;  %v14663_v46 = vsub.f32 %v14538_v51, %v17987_v11  ;;  %v6094_v40 = vmax.f32 %v14602_v47, 0.0 }
 0x4a4   : >> { %v6123_v4 = vadd.f32 %v6122_v19, %v6092_v57  ;;  %v5927_v10 = vadd.f32 %v5926_v8, %v5896_v7  ;;  %v14668_v61 = vsub.f32 %v14538_v51, %v17998_v14  ;;  %v6095_v52 = vmax.f32 %v14606_v44, 0.0 }
 0x4a5   : >> { %v6096_v54 = vmax.f32 %v14610_v43, 0.0  ;;  %v6097_v0 = vmax.f32 %v14614_v30, 0.0  ;;  %v6098_v13 = vmax.f32 %v14619_v20, 0.0  ;;  %vm6156_vm13 = vcmp.gt.f32.partialorder %v14555_v39, 0.0 }
 0x4a6   : >> { %v6124_v25 = vadd.f32 %v6123_v4, %v6093_v55  ;;  %vm6157_vm1 = vcmp.gt.f32.partialorder %v14559_v63, 0.0  ;;  %vm6158_vm15 = vcmp.gt.f32.partialorder %v14566_v36, 0.0  ;;  %vm6159_vm14 = vcmp.gt.f32.partialorder %v14573_v12, 0.0 }
 0x4a7   : >> { %vm6160_vm3 = vcmp.gt.f32.partialorder %v14581_v62, 0.0  ;;  %vm6161_vm11 = vcmp.gt.f32.partialorder %v14590_v6, 0.0  ;;  %vm6162_vm8 = vcmp.gt.f32.partialorder %v6060_v29, 0.0  ;;  %vm6163_vm6 = vcmp.gt.f32.partialorder %v6061_v22, 0.0 }
 0x4a8   : >> { %v6125_v7 = vadd.f32 %v6124_v25, %v6094_v40  ;;  %v17999_v8 = vmax.f32 %v14492_v60, 0.0  ;;  %v6099_v55 = vmax.f32 %v14623_v56, 0.0  ;;  %vm6164_vm4 = vcmp.gt.f32.partialorder %v14602_v47, 0.0 }
 0x4a9   : >> { %v18000_v39 = vmov 0   ;;  %vm6165_vm7 = vcmp.gt.f32.partialorder %v14606_v44, 0.0  ;;  %vm6166_vm9 = vcmp.gt.f32.partialorder %v14610_v43, 0.0  ;;  %v18001_v40 = vmax.f32 %v14496_v48, 0.0 }
 0x4aa   : >> { %v5928_v57 = vadd.f32 %v5927_v10, %v17999_v8  ;;  %v6188_v63 = vsel %vm6156_vm13, 1, %v18000_v39  ;;  %v6126_v19 = vadd.f32 %v6125_v7, %v6095_v52  ;;  %v6189_v36 = vsel %vm6157_vm1, 1, %v18000_v39 }
 0x4ab   : >> { %v6190_v12 = vsel %vm6158_vm15, 1, %v18000_v39  ;;  %v6192_v25 = vsel %vm6160_vm3, 1, %v18000_v39  ;;  %v6191_v62 = vsel %vm6159_vm14, 1, %v18000_v39  ;;  %v6193_v6 = vsel %vm6161_vm11, 1, %v18000_v39 }
 0x4ac   : >> { %v6194_v60 = vsel %vm6162_vm8, 1, %v18000_v39  ;;  %v6195_v29 = vsel %vm6163_vm6, 1, %v18000_v39  ;;  %v6127_v22 = vadd.f32 %v6126_v19, %v6096_v54  ;;  %vm6167_vm13 = vcmp.gt.f32.partialorder %v14614_v30, 0.0 }
 0x4ad   : >> { %v5929_v4 = vadd.f32 %v5928_v57, %v18001_v40  ;;  %v6100_v10 = vmax.f32 %v14627_v38, 0.0  ;;  %v6196_v52 = vsel %vm6164_vm4, 1, %v18000_v39  ;;  %v6220_v7 = vadd.s32 %v6192_v25, %v6188_v63 }
 0x4ae   : >> { %v6128_v8 = vadd.f32 %v6127_v22, %v6097_v0  ;;  %v6221_v14 = vadd.s32 %v6193_v6, %v6189_v36  ;;  %v6222_v11 = vadd.s32 %v6194_v60, %v6190_v12  ;;  %v6223_v54 = vadd.s32 %v6195_v29, %v6191_v62 }
 0x4af   : >> { %vm6168_vm1 = vcmp.gt.f32.partialorder %v14619_v20, 0.0  ;;  %v6197_v44 = vsel %vm6165_vm7, 1, %v18000_v39  ;;  %v6198_v43 = vsel %vm6166_vm9, 1, %v18000_v39  ;;  %v6199_v48 = vsel %vm6167_vm13, 1, %v18000_v39 }
 0x4b0   : >> { %v6129_v30 = vadd.f32 %v6128_v8, %v6098_v13  ;;  %vm6169_vm15 = vcmp.gt.f32.partialorder %v14623_v56, 0.0  ;;  %vm6170_vm14 = vcmp.gt.f32.partialorder %v14627_v38, 0.0  ;;  %vm6171_vm3 = vcmp.gt.f32.partialorder %v14631_v34, 0.0 }
 0x4b1   : >> { %v18002_v0 = vmax.f32 %v14500_v2, 0.0  ;;  %v6101_v57 = vmax.f32 %v14631_v34, 0.0  ;;  %vm6172_vm11 = vcmp.gt.f32.partialorder %v14635_v59, 0.0  ;;  %v6224_v63 = vadd.s32 %v6220_v7, %v6196_v52 }
 0x4b2   : >> { %v6130_v19 = vadd.f32 %v6129_v30, %v6099_v55  ;;  %v6225_v36 = vadd.s32 %v6221_v14, %v6197_v44  ;;  %v6226_v12 = vadd.s32 %v6222_v11, %v6198_v43  ;;  %v6227_v25 = vadd.s32 %v6223_v54, %v6199_v48 }
 0x4b3   : >> { %v5930_v47 = vadd.f32 %v5929_v4, %v18002_v0  ;;  %v6200_v13 = vsel %vm6168_vm1, 1, %v18000_v39  ;;  %v6201_v38 = vsel %vm6169_vm15, 1, %v18000_v39  ;;  %v6202_v56 = vsel %vm6170_vm14, 1, %v18000_v39 }
 0x4b4   : >> { %v6203_v2 = vsel %vm6171_vm3, 1, %v18000_v39  ;;  %v6131_v62 = vadd.f32 %v6130_v19, %v6100_v10  ;;  %vm6173_vm8 = vcmp.gt.f32.partialorder %v14639_v58, 0.0  ;;  %vm6174_vm6 = vcmp.gt.f32.partialorder %v14643_v26, 0.0 }
 0x4b5   : >> { %vm6175_vm4 = vcmp.gt.f32.partialorder %v14651_v28, 0.0  ;;  %v6039_v11 = vadd.s32 %v14647_v1, %v14645_v23  ;;  %v6102_v34 = vmax.f32 %v14635_v59, 0.0  ;;  %vm6176_vm7 = vcmp.gt.f32.partialorder %v14655_v45, 0.0  ;;  %v18003_v59 = vld [vmem:[#allocation42_spill] sm:$0xff] }
 0x4b6   : >> { %v6204_v20 = vsel %vm6172_vm11, 1, %v18000_v39  ;;  %v6228_v14 = vadd.s32 %v6224_v63, %v6200_v13  ;;  %v6229_v55 = vadd.s32 %v6225_v36, %v6201_v38  ;;  %v6230_v6 = vadd.s32 %v6226_v12, %v6202_v56  ;;  %v14750_v12 = vld [vmem:[%s14421_s23 + $0x2] ss:$0 sm:$0xff] }
 0x4b7   : >> { %v6231_v60 = vadd.s32 %v6227_v25, %v6203_v2  ;;  %v6132_v29 = vadd.f32 %v6131_v62, %v6101_v57  ;;  %v6205_v22 = vsel %vm6173_vm8, 1, %v18000_v39  ;;  %v6206_v40 = vsel %vm6174_vm6, 1, %v18000_v39 }
 0x4b8   : >> { %v6207_v4 = vsel %vm6175_vm4, 1, %v18000_v39  ;;  %v5931_v23 = vadd.f32 %v5930_v47, %v14593_v35  ;;  %vm6177_vm9 = vcmp.gt.f32.partialorder %v14659_v16, 0.0  ;;  %vm6178_vm13 = vcmp.gt.f32.partialorder %v14663_v46, 0.0 }
 0x4b9   : >> { %vm6179_vm1 = vcmp.gt.f32.partialorder %v14668_v61, 0.0  ;;  %v14737_v1 = vsub.f32 %v14538_v51, %v18003_v59  ;;  %v7904_v10 = vadd.f32 -1e+30, %v14538_v51  ;;  %v6103_v52 = vmax.f32 %v14639_v58, 0.0 }
 0x4ba   : >> { %v6208_v7 = vsel %vm6176_vm7, 1, %v18000_v39  ;;  %v6232_v8 = vadd.s32 %v6228_v14, %v6204_v20  ;;  %v6233_v54 = vadd.s32 %v6229_v55, %v6205_v22  ;;  %v6234_v44 = vadd.s32 %v6230_v6, %v6206_v40 }
 0x4bb   : >> { %v6235_v43 = vadd.s32 %v6231_v60, %v6207_v4  ;;  %v6133_v48 = vadd.f32 %v6132_v29, %v6102_v34  ;;  %v6209_v30 = vsel %vm6177_vm9, 1, %v18000_v39  ;;  %v6210_v0 = vsel %vm6178_vm13, 1, %v18000_v39 }
 0x4bc   : >> { %v6211_v47 = vsel %vm6179_vm1, 1, %v18000_v39  ;;  %v5932_v51 = vadd.f32 %v5931_v23, %v14593_v35  ;;  %v6040_v57 = vrot.slane %v6039_v11, 4  ;;  %vm6180_vm15 = vcmp.gt.f32.partialorder %v14737_v1, 0.0 }
 0x4bd   : >> { %vm6181_vm14 = vcmp.gt.f32.partialorder %v7904_v10, 0.0  ;;  %v6236_v58 = vadd.s32 %v6232_v8, %v6208_v7  ;;  %v6237_v63 = vadd.s32 %v6233_v54, %v6209_v30  ;;  %v6238_v19 = vadd.s32 %v6234_v44, %v6210_v0  ;;  %v18008_v30 = vld [vmem:[#allocation136_spill] sm:$0xff] }
 0x4be   : >> { %v6239_v36 = vadd.s32 %v6235_v43, %v6211_v47  ;;  %v6104_v25 = vmax.f32 %v14643_v26, 0.0  ;;  %v6134_v13 = vadd.f32 %v6133_v48, %v6103_v52  ;;  %v6212_v38 = vsel %vm6180_vm15, 1, %v18000_v39 }
 0x4bf   : >> { %v6213_v56 = vsel %vm6181_vm14, 1, %v18000_v39  ;;  %v5933_v2 = vadd.f32 %v5932_v51, %v14593_v35  ;;  %v6041_v62 = vadd.s32 %v6040_v57, %v6039_v11  ;;  %v14758_v34 = vsub.f32 %v14750_v12, %v14116_v31 }
 0x4c0   : >> { %v14762_v20 = vsub.f32 %v14750_v12, %v17994_v18  ;;  %v6240_v14 = vadd.s32 %v6236_v58, %v6212_v38  ;;  %v6241_v55 = vadd.s32 %v6237_v63, %v6213_v56  ;;  %v6242_v6 = vadd.s32 %v6238_v19, %v6213_v56 }
 0x4c1   : >> { %v6243_v26 = vadd.s32 %v6239_v36, %v6213_v56  ;;  %v6105_v60 = vmax.f32 %v14651_v28, 0.0  ;;  %v6135_v29 = vadd.f32 %v6134_v13, %v6104_v25  ;;  %v14767_v22 = vsub.f32 %v14750_v12, %v17974_v15 }
 0x4c2   : >> { %v5934_v11 = vadd.f32 %v5933_v2, %v14593_v35  ;;  %v6042_v40 = vrot.slane %v6041_v62, 2  ;;  %v6106_v4 = vmax.f32 %v14655_v45, 0.0  ;;  %v6107_v23 = vmax.f32 %v14659_v16, 0.0 }
 0x4c3   : >> { %v6108_v52 = vmax.f32 %v14663_v46, 0.0  ;;  %v14775_v7 = vsub.f32 %v14750_v12, %v14162_v41  ;;  %v6297_v28 = vmax.f32 %v14758_v34, 0.0  ;;  %v6298_v8 = vmax.f32 %v14762_v20, 0.0 }
 0x4c4   : >> { %v6244_v54 = vadd.s32 %v6240_v14, %v6213_v56  ;;  %v6245_v44 = vadd.s32 %v6241_v55, %v6213_v56  ;;  %v6246_v43 = vadd.s32 %v6242_v6, %v6213_v56  ;;  %v6247_v48 = vadd.s32 %v6243_v26, %v6213_v56 }
 0x4c5   : >> { %v6136_v0 = vadd.f32 %v6135_v29, %v6105_v60  ;;  %v14782_v45 = vsub.f32 %v14750_v12, %v13558_v32  ;;  %v6299_v46 = vmax.f32 %v14767_v22, 0.0  ;;  %v14786_v16 = vadd.f32 %v5934_v11, %v14593_v35 }
 0x4c6   : >> { %v14788_v47 = vadd.s32 %v6042_v40, %v6041_v62  ;;  %v14791_v57 = vmax.f32 %v7904_v10, 0.0  ;;  %v14795_v58 = vsub.f32 %v14750_v12, %v14188_v49  ;;  %v14799_v63 = vsub.f32 %v14750_v12, %v17975_v9 }
 0x4c7   : >> { %v6300_v19 = vmax.f32 %v14775_v7, 0.0  ;;  %v6329_v36 = vadd.f32 %v6298_v8, %v6297_v28  ;;  %v6248_v25 = vadd.s32 %v6245_v44, %v6244_v54  ;;  %v6249_v13 = vadd.s32 %v6247_v48, %v6246_v43  ;;  %v18004_v44 = vld [vmem:[#allocation155_spill] sm:$0xff] }
 0x4c8   : >> { %v6272_v38 = vsub.f32 %v14750_v12, %v17976_v53  ;;  %v14806_v10 = vsub.f32 %v14750_v12, %v17977_v27  ;;  %v6137_v56 = vadd.f32 %v6136_v0, %v6106_v4  ;;  %v14810_v2 = vsub.f32 %v14750_v12, %v17978_v50  ;;  %v18005_v0 = vld [vmem:[#allocation47_spill] sm:$0xff] }
 0x4c9   : >> { %v6301_v62 = vmax.f32 %v14782_v45, 0.0  ;;  %v6330_v14 = vadd.f32 %v6329_v36, %v6299_v46  ;;  %v14815_v55 = vsub.f32 %v14750_v12, %v17979_v24  ;;  %v14819_v6 = vsub.f32 %v14750_v12, %v17980_v37 }
 0x4ca   : >> { %v14823_v26 = vsub.f32 %v14750_v12, %v17981_v33  ;;  %v14827_v60 = vsub.f32 %v14750_v12, %v17982_v3  ;;  %v14831_v29 = vsub.f32 %v14750_v12, %v17983_v21  ;;  %v14835_v11 = vsub.f32 %v14750_v12, %v17984_v42 }
 0x4cb   : >> { %v6302_v40 = vmax.f32 %v14795_v58, 0.0  ;;  %v6331_v4 = vadd.f32 %v6330_v14, %v6300_v19  ;;  %v14838_v28 = vadd.s32 %v6249_v13, %v6248_v25  ;;  %v14842_v8 = vsub.f32 %v14750_v12, %v17985_v5  ;;  %v18006_v25 = vld [vmem:[#allocation37_spill] sm:$0xff]  ;;  %v18007_v14 = vld [vmem:[#allocation51_spill] sm:$0xff] }
 0x4cc   : >> { %v14846_v54 = vsub.f32 %v14750_v12, %v17986_v17  ;;  %v14850_v43 = vsub.f32 %v14750_v12, %v18004_v44  ;;  %v6138_v48 = vadd.f32 %v6137_v56, %v6107_v23  ;;  %v14854_v46 = vsub.f32 %v14750_v12, %v18005_v0  ;;  %v18009_v23 = vld [vmem:[#allocation170_spill] sm:$0xff] }
 0x4cd   : >> { %v6303_v19 = vmax.f32 %v14799_v63, 0.0  ;;  %v6332_v36 = vadd.f32 %v6331_v4, %v6301_v62  ;;  %v14859_v13 = vsub.f32 %v14750_v12, %v18006_v25  ;;  %v14863_v51 = vsub.f32 %v14750_v12, %v18007_v14 }
 0x4ce   : >> { %v14867_v44 = vsub.f32 %v14750_v12, %v18008_v30  ;;  %v14871_v56 = vsub.f32 %v14750_v12, %v18009_v23  ;;  %v14875_v0 = vsub.f32 %v14750_v12, %v18003_v59  ;;  %v14878_v62 = vadd.f32 -1e+30, %v14750_v12 }
 0x4cf   : >> { %v6304_v4 = vmax.f32 %v6272_v38, 0.0  ;;  %v6333_v25 = vadd.f32 %v6332_v36, %v6302_v40  ;;  %v6251_v14 = vrot.slane %v14838_v28, 4  ;;  %v6305_v17 = vmax.f32 %v14806_v10, 0.0 }
 0x4d0   : >> { %v6306_v30 = vmax.f32 %v14810_v2, 0.0  ;;  %v6307_v5 = vmax.f32 %v14815_v55, 0.0  ;;  %v6139_v42 = vadd.f32 %v6138_v48, %v6108_v52  ;;  %v6308_v23 = vmax.f32 %v14819_v6, 0.0 }
 0x4d1   : >> { %v6309_v21 = vmax.f32 %v14823_v26, 0.0  ;;  %v6334_v59 = vadd.f32 %v6333_v25, %v6303_v19  ;;  %v6310_v3 = vmax.f32 %v14827_v60, 0.0  ;;  %vm6367_vm3 = vcmp.gt.f32.partialorder %v14758_v34, 0.0 }
 0x4d2   : >> { %vm6368_vm11 = vcmp.gt.f32.partialorder %v14762_v20, 0.0  ;;  %vm6369_vm8 = vcmp.gt.f32.partialorder %v14767_v22, 0.0  ;;  %vm6371_vm6 = vcmp.gt.f32.partialorder %v14782_v45, 0.0  ;;  %vm6372_vm4 = vcmp.gt.f32.partialorder %v14795_v58, 0.0 }
 0x4d3   : >> { %v6335_v12 = vadd.f32 %v6334_v59, %v6304_v4  ;;  %vm6373_vm7 = vcmp.gt.f32.partialorder %v14799_v63, 0.0  ;;  %vm6370_vm9 = vcmp.gt.f32.partialorder %v14775_v7, 0.0  ;;  %vm6374_vm13 = vcmp.gt.f32.partialorder %v6272_v38, 0.0 }
 0x4d4   : >> { %vm6376_vm15 = vcmp.gt.f32.partialorder %v14810_v2, 0.0  ;;  %vm6377_vm14 = vcmp.gt.f32.partialorder %v14815_v55, 0.0  ;;  %v6399_v34 = vsel %vm6367_vm3, 1, %v18000_v39  ;;  %v6400_v59 = vsel %vm6368_vm11, 1, %v18000_v39 }
 0x4d5   : >> { %v6336_v52 = vadd.f32 %v6335_v12, %v6305_v17  ;;  %v6401_v20 = vsel %vm6369_vm8, 1, %v18000_v39  ;;  %v6403_v22 = vsel %vm6371_vm6, 1, %v18000_v39  ;;  %v6404_v45 = vsel %vm6372_vm4, 1, %v18000_v39 }
 0x4d6   : >> { %v6405_v7 = vsel %vm6373_vm7, 1, %v18000_v39  ;;  %vm6378_vm1 = vcmp.gt.f32.partialorder %v14819_v6, 0.0  ;;  %v6402_v63 = vsel %vm6370_vm9, 1, %v18000_v39  ;;  %v6406_v17 = vsel %vm6374_vm13, 1, %v18000_v39 }
 0x4d7   : >> { %v6337_v58 = vadd.f32 %v6336_v52, %v6306_v30  ;;  %v6311_v38 = vmax.f32 %v14831_v29, 0.0  ;;  %vm6379_vm3 = vcmp.gt.f32.partialorder %v14823_v26, 0.0  ;;  %vm18010_vm11 = vcmp.gt.f32.partialorder %v14806_v10, 0.0 }
 0x4d8   : >> { %v6407_v40 = vsel %vm18010_vm11, 1, %v18000_v39  ;;  %v6408_v48 = vsel %vm6376_vm15, 1, %v18000_v39  ;;  %v6431_v30 = vadd.s32 %v6403_v22, %v6399_v34  ;;  %v6432_v36 = vadd.s32 %v6404_v45, %v6400_v59 }
 0x4d9   : >> { %v6338_v19 = vadd.f32 %v6337_v58, %v6307_v5  ;;  %v6433_v6 = vadd.s32 %v6405_v7, %v6401_v20  ;;  %vm6380_vm8 = vcmp.gt.f32.partialorder %v14827_v60, 0.0  ;;  %v6409_v25 = vsel %vm6377_vm14, 1, %v18000_v39 }
 0x4da   : >> { %v6410_v4 = vsel %vm6378_vm1, 1, %v18000_v39  ;;  %v6434_v12 = vadd.s32 %v6406_v17, %v6402_v63  ;;  %v6312_v10 = vmax.f32 %v14835_v11, 0.0  ;;  %vm6381_vm6 = vcmp.gt.f32.partialorder %v14831_v29, 0.0 }
 0x4db   : >> { %v6339_v52 = vadd.f32 %v6338_v19, %v6308_v23  ;;  %vm6382_vm4 = vcmp.gt.f32.partialorder %v14835_v11, 0.0  ;;  %vm6383_vm7 = vcmp.gt.f32.partialorder %v14842_v8, 0.0  ;;  %v6411_v5 = vsel %vm6379_vm3, 1, %v18000_v39 }
 0x4dc   : >> { %v6435_v2 = vadd.s32 %v6431_v30, %v6407_v40  ;;  %v6436_v60 = vadd.s32 %v6432_v36, %v6408_v48  ;;  %v6412_v34 = vsel %vm6380_vm8, 1, %v18000_v39  ;;  %v6437_v59 = vadd.s32 %v6433_v6, %v6409_v25 }
 0x4dd   : >> { %v6340_v55 = vadd.f32 %v6339_v52, %v6309_v21  ;;  %v6438_v20 = vadd.s32 %v6434_v12, %v6410_v4  ;;  %v6313_v22 = vmax.f32 %v14842_v8, 0.0  ;;  %vm6384_vm9 = vcmp.gt.f32.partialorder %v14846_v54, 0.0 }
 0x4de   : >> { %v6413_v29 = vsel %vm6381_vm6, 1, %v18000_v39  ;;  %v6414_v11 = vsel %vm6382_vm4, 1, %v18000_v39  ;;  %v18011_v23 = vmax.f32 %v14668_v61, 0.0  ;;  %vm6385_vm13 = vcmp.gt.f32.partialorder %v14850_v43, 0.0 }
 0x4df   : >> { %v6341_v26 = vadd.f32 %v6340_v55, %v6310_v3  ;;  %vm6386_vm1 = vcmp.gt.f32.partialorder %v14854_v46, 0.0  ;;  %vm6387_vm15 = vcmp.gt.f32.partialorder %v14859_v13, 0.0  ;;  %v6415_v21 = vsel %vm6383_vm7, 1, %v18000_v39 }
 0x4e0   : >> { %v6140_v45 = vadd.f32 %v6139_v42, %v18011_v23  ;;  %v6439_v7 = vadd.s32 %v6435_v2, %v6411_v5  ;;  %v6440_v58 = vadd.s32 %v6436_v60, %v6412_v34  ;;  %v6416_v17 = vsel %vm6384_vm9, 1, %v18000_v39 }
 0x4e1   : >> { %v6342_v63 = vadd.f32 %v6341_v26, %v6311_v38  ;;  %v6441_v40 = vadd.s32 %v6437_v59, %v6413_v29  ;;  %v6442_v48 = vadd.s32 %v6438_v20, %v6414_v11  ;;  %v6314_v42 = vmax.f32 %v14846_v54, 0.0 }
 0x4e2   : >> { %vm6388_vm14 = vcmp.gt.f32.partialorder %v14863_v51, 0.0  ;;  %v6417_v3 = vsel %vm6385_vm13, 1, %v18000_v39  ;;  %v6418_v61 = vsel %vm6386_vm1, 1, %v18000_v39  ;;  %v18012_v19 = vmax.f32 %v14737_v1, 0.0 }
 0x4e3   : >> { %v6343_v8 = vadd.f32 %v6342_v63, %v6312_v10  ;;  %vm6389_vm3 = vcmp.gt.f32.partialorder %v14867_v44, 0.0  ;;  %vm6390_vm11 = vcmp.gt.f32.partialorder %v14871_v56, 0.0  ;;  %vm6391_vm8 = vcmp.gt.f32.partialorder %v14875_v0, 0.0 }
 0x4e4   : >> { %v6141_v30 = vadd.f32 %v6140_v45, %v18012_v19  ;;  %v6419_v54 = vsel %vm6387_vm15, 1, %v18000_v39  ;;  %v6443_v38 = vadd.s32 %v6439_v7, %v6415_v21  ;;  %v6444_v36 = vadd.s32 %v6440_v58, %v6416_v17 }
 0x4e5   : >> { %v6344_v6 = vadd.f32 %v6343_v8, %v6313_v22  ;;  %v6420_v25 = vsel %vm6388_vm14, 1, %v18000_v39  ;;  %v6445_v4 = vadd.s32 %v6441_v40, %v6417_v3  ;;  %v6446_v1 = vadd.s32 %v6442_v48, %v6418_v61  ;;  %v18021_v61 = vld [vmem:[#allocation51_spill] sm:$0xff] }
 0x4e6   : >> { %v5936_v12 = vadd.f32 %v14786_v16, %v14593_v35  ;;  %vm6392_vm6 = vcmp.gt.f32.partialorder %v14878_v62, 0.0  ;;  %v6421_v10 = vsel %vm6389_vm3, 1, %v18000_v39  ;;  %v6422_v52 = vsel %vm6390_vm11, 1, %v18000_v39  ;;  %v14967_v16 = vld [vmem:[%s14421_s23 + $0x3] ss:$0 sm:$0xff] }
 0x4e7   : >> { %v14961_v5 = vadd.s32 %v6251_v14, %v14838_v28  ;;  %v6315_v2 = vmax.f32 %v14850_v43, 0.0  ;;  %v6142_v60 = vadd.f32 %v6141_v30, %v14791_v57  ;;  %v6423_v55 = vsel %vm6391_vm8, 1, %v18000_v39  ;;  %v18020_v43 = vld [vmem:[#allocation37_spill] sm:$0xff] }
 0x4e8   : >> { %v6447_v34 = vadd.s32 %v6443_v38, %v6419_v54  ;;  %v6448_v59 = vadd.s32 %v6444_v36, %v6420_v25  ;;  %v6345_v20 = vadd.f32 %v6344_v6, %v6314_v42  ;;  %v6424_v22 = vsel %vm6392_vm6, 1, %v18000_v39 }
 0x4e9   : >> { %v6449_v29 = vadd.s32 %v6445_v4, %v6421_v10  ;;  %v6450_v11 = vadd.s32 %v6446_v1, %v6422_v52  ;;  %v14971_v23 = vadd.f32 %v5936_v12, %v14593_v35  ;;  %v6316_v14 = vmax.f32 %v14854_v46, 0.0 }
 0x4ea   : >> { %v14978_v45 = vsub.f32 %v14967_v16, %v14116_v31  ;;  %v14982_v26 = vsub.f32 %v14967_v16, %v17994_v18  ;;  %v6143_v21 = vadd.f32 %v6142_v60, %v14791_v57  ;;  %v6317_v7 = vmax.f32 %v14859_v13, 0.0 }
 0x4eb   : >> { %v6451_v35 = vadd.s32 %v6447_v34, %v6423_v55  ;;  %v6452_v58 = vadd.s32 %v6448_v59, %v6424_v22  ;;  %v6346_v63 = vadd.f32 %v6345_v20, %v6315_v2  ;;  %v6453_v17 = vadd.s32 %v6449_v29, %v6424_v22 }
 0x4ec   : >> { %v6454_v40 = vadd.s32 %v6450_v11, %v6424_v22  ;;  %v14988_v46 = vsub.f32 %v14967_v16, %v17974_v15  ;;  %v6318_v48 = vmax.f32 %v14863_v51, 0.0  ;;  %v6319_v42 = vmax.f32 %v14867_v44, 0.0 }
 0x4ed   : >> { %v14995_v19 = vmax.f32 %v14878_v62, 0.0  ;;  %v14999_v13 = vsub.f32 %v14967_v16, %v14162_v41  ;;  %v6508_v30 = vmax.f32 %v14978_v45, 0.0  ;;  %v6509_v8 = vmax.f32 %v14982_v26, 0.0 }
 0x4ee   : >> { %v15004_v54 = vadd.f32 %v6143_v21, %v14791_v57  ;;  %v6455_v51 = vadd.s32 %v6451_v35, %v6424_v22  ;;  %v6456_v44 = vadd.s32 %v6452_v58, %v6424_v22  ;;  %v15008_v38 = vsub.f32 %v14967_v16, %v13558_v32  ;;  %v18014_v58 = vld [vmem:[#allocation125_spill] sm:$0xff] }
 0x4ef   : >> { %v6347_v36 = vadd.f32 %v6346_v63, %v6316_v14  ;;  %v6457_v62 = vadd.s32 %v6453_v17, %v6424_v22  ;;  %v6458_v6 = vadd.s32 %v6454_v40, %v6424_v22  ;;  %v6510_v25 = vmax.f32 %v14988_v46, 0.0  ;;  %v18013_v22 = vld [vmem:[#allocation70_spill] sm:$0xff]  ;;  %v18015_v17 = vld [vmem:[#allocation80_spill] sm:$0xff] }
 0x4f0   : >> { %v15013_v4 = vsub.f32 %v14967_v16, %v14188_v49  ;;  %v15017_v1 = vsub.f32 %v14967_v16, %v17975_v9  ;;  %v15021_v12 = vsub.f32 %v14967_v16, %v17976_v53  ;;  %v15025_v10 = vsub.f32 %v14967_v16, %v17977_v27 }
 0x4f1   : >> { %v15029_v52 = vsub.f32 %v14967_v16, %v17978_v50  ;;  %v15033_v2 = vsub.f32 %v14967_v16, %v17979_v24  ;;  %v6511_v60 = vmax.f32 %v14999_v13, 0.0  ;;  %v6540_v55 = vadd.f32 %v6509_v8, %v6508_v30  ;;  %v18016_v30 = vld [vmem:[#allocation146_spill] sm:$0xff] }
 0x4f2   : >> { %v6459_v34 = vadd.s32 %v6456_v44, %v6455_v51  ;;  %v15038_v59 = vsub.f32 %v14967_v16, %v17980_v37  ;;  %v15042_v20 = vsub.f32 %v14967_v16, %v17981_v33  ;;  %v15046_v29 = vsub.f32 %v14967_v16, %v18013_v22  ;;  %v18017_v51 = vld [vmem:[#allocation86_spill] sm:$0xff] }
 0x4f3   : >> { %v6348_v11 = vadd.f32 %v6347_v36, %v6317_v7  ;;  %v6460_v14 = vadd.s32 %v6458_v6, %v6457_v62  ;;  %v6512_v21 = vmax.f32 %v15008_v38, 0.0  ;;  %v6541_v35 = vadd.f32 %v6540_v55, %v6510_v25  ;;  %v18018_v7 = vld [vmem:[#allocation155_spill] sm:$0xff] }
 0x4f4   : >> { %v15051_v63 = vsub.f32 %v14967_v16, %v18014_v58  ;;  %v15055_v40 = vsub.f32 %v14967_v16, %v18015_v17  ;;  %v15059_v8 = vsub.f32 %v14967_v16, %v18016_v30  ;;  %v15063_v44 = vsub.f32 %v14967_v16, %v18017_v51  ;;  %v18019_v62 = vld [vmem:[#allocation47_spill] sm:$0xff]  ;;  %v18022_v51 = vld [vmem:[#allocation136_spill] sm:$0xff] }
 0x4f5   : >> { %v15067_v36 = vsub.f32 %v14967_v16, %v18018_v7  ;;  %v15071_v6 = vsub.f32 %v14967_v16, %v18019_v62  ;;  %v6513_v25 = vmax.f32 %v15013_v4, 0.0  ;;  %v6542_v55 = vadd.f32 %v6541_v35, %v6511_v60  ;;  %v18023_v7 = vld [vmem:[#allocation170_spill] sm:$0xff] }
 0x4f6   : >> { %v15076_v28 = vsub.f32 %v14967_v16, %v18020_v43  ;;  %v15080_v3 = vsub.f32 %v14967_v16, %v18021_v61  ;;  %v15084_v30 = vsub.f32 %v14967_v16, %v18022_v51  ;;  %v15088_v17 = vsub.f32 %v14967_v16, %v18023_v7  ;;  %v18024_v43 = vld [vmem:[#allocation42_spill] sm:$0xff] }
 0x4f7   : >> { %v6349_v62 = vadd.f32 %v6348_v11, %v6318_v48  ;;  %v15090_v58 = vadd.s32 %v6460_v14, %v6459_v34  ;;  %v6514_v60 = vmax.f32 %v15017_v1, 0.0  ;;  %v6543_v35 = vadd.f32 %v6542_v55, %v6512_v21 }
 0x4f8   : >> { %v15095_v22 = vsub.f32 %v14967_v16, %v18024_v43  ;;  %v15098_v61 = vadd.f32 -1e+30, %v14967_v16  ;;  %v6515_v51 = vmax.f32 %v15021_v12, 0.0  ;;  %v6516_v33 = vmax.f32 %v15025_v10, 0.0 }
 0x4f9   : >> { %v6517_v7 = vmax.f32 %v15029_v52, 0.0  ;;  %v6518_v48 = vmax.f32 %v15033_v2, 0.0  ;;  %v6519_v34 = vmax.f32 %v15038_v59, 0.0  ;;  %v6544_v11 = vadd.f32 %v6543_v35, %v6513_v25 }
 0x4fa   : >> { %v6520_v14 = vmax.f32 %v15042_v20, 0.0  ;;  %v6521_v21 = vmax.f32 %v15046_v29, 0.0  ;;  %v6350_v43 = vadd.f32 %v6349_v62, %v6319_v42  ;;  %vm6578_vm4 = vcmp.gt.f32.partialorder %v14978_v45, 0.0 }
 0x4fb   : >> { %v6545_v37 = vadd.f32 %v6544_v11, %v6514_v60  ;;  %vm6581_vm13 = vcmp.gt.f32.partialorder %v14999_v13, 0.0  ;;  %vm6584_vm14 = vcmp.gt.f32.partialorder %v15017_v1, 0.0  ;;  %vm6585_vm3 = vcmp.gt.f32.partialorder %v15021_v12, 0.0 }
 0x4fc   : >> { %vm6587_vm8 = vcmp.gt.f32.partialorder %v15029_v52, 0.0  ;;  %vm6589_vm7 = vcmp.gt.f32.partialorder %v15038_v59, 0.0  ;;  %vm6590_vm9 = vcmp.gt.f32.partialorder %v15042_v20, 0.0  ;;  %vm6592_vm15 = vcmp.gt.f32.partialorder %v15051_v63, 0.0 }
 0x4fd   : >> { %v6546_v25 = vadd.f32 %v6545_v37, %v6515_v51  ;;  %v6610_v37 = vsel %vm6578_vm4, 1, %v18000_v39  ;;  %vm18025_vm11 = vcmp.gt.f32.partialorder %v14982_v26, 0.0  ;;  %vm18026_vm6 = vcmp.gt.f32.partialorder %v14988_v46, 0.0 }
 0x4fe   : >> { %v6611_v51 = vsel %vm18025_vm11, 1, %v18000_v39  ;;  %v6612_v62 = vsel %vm18026_vm6, 1, %v18000_v39  ;;  %vm18027_vm1 = vcmp.gt.f32.partialorder %v15008_v38, 0.0  ;;  %vm18028_vm4 = vcmp.gt.f32.partialorder %v15013_v4, 0.0 }
 0x4ff   : >> { %v6547_v42 = vadd.f32 %v6546_v25, %v6516_v33  ;;  %v6613_v33 = vsel %vm6581_vm13, 1, %v18000_v39  ;;  %v6614_v60 = vsel %vm18027_vm1, 1, %v18000_v39  ;;  %v6615_v45 = vsel %vm18028_vm4, 1, %v18000_v39 }
 0x500   : >> { %v6616_v26 = vsel %vm6584_vm14, 1, %v18000_v39  ;;  %v6617_v46 = vsel %vm6585_vm3, 1, %v18000_v39  ;;  %vm6593_vm11 = vcmp.gt.f32.partialorder %v15055_v40, 0.0  ;;  %vm6594_vm13 = vcmp.gt.f32.partialorder %v15059_v8, 0.0 }
 0x501   : >> { %v6548_v35 = vadd.f32 %v6547_v42, %v6517_v7  ;;  %vm18029_vm1 = vcmp.gt.f32.partialorder %v15025_v10, 0.0  ;;  %v6619_v38 = vsel %vm6587_vm8, 1, %v18000_v39  ;;  %vm18030_vm14 = vcmp.gt.f32.partialorder %v15033_v2, 0.0 }
 0x502   : >> { %v6618_v13 = vsel %vm18029_vm1, 1, %v18000_v39  ;;  %v6620_v1 = vsel %vm18030_vm14, 1, %v18000_v39  ;;  %v6621_v12 = vsel %vm6589_vm7, 1, %v18000_v39  ;;  %v6622_v7 = vsel %vm6590_vm9, 1, %v18000_v39 }
 0x503   : >> { %v6549_v4 = vadd.f32 %v6548_v35, %v6518_v48  ;;  %v6642_v11 = vadd.s32 %v6614_v60, %v6610_v37  ;;  %v6643_v10 = vadd.s32 %v6615_v45, %v6611_v51  ;;  %v6644_v25 = vadd.s32 %v6616_v26, %v6612_v62 }
 0x504   : >> { %v6645_v42 = vadd.s32 %v6617_v46, %v6613_v33  ;;  %vm18031_vm3 = vcmp.gt.f32.partialorder %v15046_v29, 0.0  ;;  %v6624_v2 = vsel %vm6592_vm15, 1, %v18000_v39  ;;  %v6625_v59 = vsel %vm6593_vm11, 1, %v18000_v39 }
 0x505   : >> { %v6550_v16 = vadd.f32 %v6549_v4, %v6519_v34  ;;  %v6623_v52 = vsel %vm18031_vm3, 1, %v18000_v39  ;;  %v6646_v48 = vadd.s32 %v6642_v11, %v6618_v13  ;;  %v6647_v35 = vadd.s32 %v6643_v10, %v6619_v38 }
 0x506   : >> { %v6648_v55 = vadd.s32 %v6644_v25, %v6620_v1  ;;  %v6649_v20 = vadd.s32 %v6645_v42, %v6621_v12  ;;  %vm6595_vm7 = vcmp.gt.f32.partialorder %v15063_v44, 0.0  ;;  %vm6596_vm9 = vcmp.gt.f32.partialorder %v15067_v36, 0.0 }
 0x507   : >> { %v6551_v24 = vadd.f32 %v6550_v16, %v6520_v14  ;;  %vm6597_vm8 = vcmp.gt.f32.partialorder %v15071_v6, 0.0  ;;  %v6524_v29 = vmax.f32 %v15059_v8, 0.0  ;;  %vm6598_vm6 = vcmp.gt.f32.partialorder %v15076_v28, 0.0 }
 0x508   : >> { %v6626_v34 = vsel %vm6594_vm13, 1, %v18000_v39  ;;  %v6650_v37 = vadd.s32 %v6646_v48, %v6622_v7  ;;  %v6651_v62 = vadd.s32 %v6647_v35, %v6623_v52  ;;  %v6652_v33 = vadd.s32 %v6648_v55, %v6624_v2 }
 0x509   : >> { %v6552_v51 = vadd.f32 %v6551_v24, %v6521_v21  ;;  %v6653_v60 = vadd.s32 %v6649_v20, %v6625_v59  ;;  %v18032_v14 = vmax.f32 %v14871_v56, 0.0  ;;  %v6627_v45 = vsel %vm6595_vm7, 1, %v18000_v39 }
 0x50a   : >> { %v6628_v26 = vsel %vm6596_vm9, 1, %v18000_v39  ;;  %v6629_v46 = vsel %vm6597_vm8, 1, %v18000_v39  ;;  %v18033_v13 = vmax.f32 %v15051_v63, 0.0  ;;  %vm6599_vm15 = vcmp.gt.f32.partialorder %v15080_v3, 0.0 }
 0x50b   : >> { %v6351_v16 = vadd.f32 %v6350_v43, %v18032_v14  ;;  %vm6600_vm4 = vcmp.gt.f32.partialorder %v15084_v30, 0.0  ;;  %vm6601_vm11 = vcmp.gt.f32.partialorder %v15088_v17, 0.0  ;;  %v6462_v24 = vrot.slane %v15090_v58, 4 }
 0x50c   : >> { %v6553_v38 = vadd.f32 %v6552_v51, %v18033_v13  ;;  %v6525_v56 = vmax.f32 %v15063_v44, 0.0  ;;  %v6630_v43 = vsel %vm6598_vm6, 1, %v18000_v39  ;;  %v6654_v8 = vadd.s32 %v6650_v37, %v6626_v34 }
 0x50d   : >> { %v18034_v21 = vmax.f32 %v15055_v40, 0.0  ;;  %v6655_v63 = vadd.s32 %v6651_v62, %v6627_v45  ;;  %v6656_v4 = vadd.s32 %v6652_v33, %v6628_v26  ;;  %v6657_v1 = vadd.s32 %v6653_v60, %v6629_v46  ;;  %v15222_v33 = vld [vmem:[%s14421_s23 + $0x4] ss:$0 sm:$0xff] }
 0x50e   : >> { %v6145_v12 = vadd.f32 %v15004_v54, %v14791_v57  ;;  %v6631_v7 = vsel %vm6599_vm15, 1, %v18000_v39  ;;  %v6632_v11 = vsel %vm6600_vm4, 1, %v18000_v39  ;;  %v6633_v44 = vsel %vm6601_vm11, 1, %v18000_v39 }
 0x50f   : >> { %v6554_v55 = vadd.f32 %v6553_v38, %v18034_v21  ;;  %v18035_v10 = vmax.f32 %v14875_v0, 0.0  ;;  %vm6602_vm13 = vcmp.gt.f32.partialorder %v15095_v22, 0.0  ;;  %vm6603_vm1 = vcmp.gt.f32.partialorder %v15098_v61, 0.0  ;;  %v18038_v38 = vld [vmem:[#allocation199_spill] sm:$0xff] }
 0x510   : >> { %v6463_v40 = vadd.s32 %v6462_v24, %v15090_v58  ;;  %v6526_v52 = vmax.f32 %v15067_v36, 0.0  ;;  %v6658_v54 = vadd.s32 %v6654_v8, %v6630_v43  ;;  %v6659_v59 = vadd.s32 %v6655_v63, %v6631_v7 }
 0x511   : >> { %v6352_v25 = vadd.f32 %v6351_v16, %v18035_v10  ;;  %v6555_v42 = vadd.f32 %v6554_v55, %v6524_v29  ;;  %v6660_v48 = vadd.s32 %v6656_v4, %v6632_v11  ;;  %v6661_v35 = vadd.s32 %v6657_v1, %v6633_v44 }
 0x512   : >> { %v5938_v20 = vrot.slane %v14971_v23, 4  ;;  %v18036_v0 = vrot.slane %v14788_v47, 1  ;;  %v6634_v34 = vsel %vm6602_vm13, 1, %v18000_v39  ;;  %v6635_v37 = vsel %vm6603_vm1, 1, %v18000_v39 }
 0x513   : >> { %v6556_v2 = vadd.f32 %v6555_v42, %v6525_v56  ;;  %v6146_v51 = vadd.f32 %v6145_v12, %v14791_v57  ;;  %v18037_v58 = vrot.slane %v14961_v5, 2  ;;  %v6353_v62 = vadd.f32 %v6352_v25, %v14995_v19 }
 0x514   : >> { %v6045_v29 = vadd.s32 %v18036_v0, %v14788_v47  ;;  %v6464_v60 = vrot.slane %v6463_v40, 2  ;;  %v6527_v14 = vmax.f32 %v15071_v6, 0.0  ;;  %v6662_v47 = vadd.s32 %v6658_v54, %v6634_v34 }
 0x515   : >> { %v15218_v36 = vadd.s32 %v18037_v58, %v14961_v5  ;;  %v6557_v16 = vadd.f32 %v6556_v2, %v6526_v52  ;;  %v6663_v45 = vadd.s32 %v6659_v59, %v6635_v37  ;;  %v6664_v26 = vadd.s32 %v6660_v48, %v6635_v37  ;;  %v18040_v58 = vld [vmem:[#allocation72_spill] sm:$0xff] }
 0x516   : >> { %v6665_v46 = vadd.s32 %v6661_v35, %v6635_v37  ;;  %v15226_v13 = vadd.f32 %v5938_v20, %v14971_v23  ;;  %v15229_v24 = vadd.s32 %v18038_v38, %v6045_v29  ;;  %v15233_v5 = vsub.f32 %v15222_v33, %v14116_v31 }
 0x517   : >> { %v15237_v56 = vsub.f32 %v15222_v33, %v17994_v18  ;;  %v15240_v6 = vadd.f32 %v6146_v51, %v14791_v57  ;;  %v6354_v8 = vadd.f32 %v6353_v62, %v14995_v19  ;;  %v6528_v23 = vmax.f32 %v15076_v28, 0.0 }
 0x518   : >> { %v15245_v21 = vadd.s32 %v6464_v60, %v6463_v40  ;;  %v6529_v55 = vmax.f32 %v15080_v3, 0.0  ;;  %v6558_v63 = vadd.f32 %v6557_v16, %v6527_v14  ;;  %v15250_v4 = vsub.f32 %v15222_v33, %v17974_v15  ;;  %v18041_v60 = vld [vmem:[#allocation68_spill] sm:$0xff]  ;;  %v18042_v16 = vld [vmem:[#allocation70_spill] sm:$0xff]  ;;  %v18050_v40 = vld [vmem:[#allocation51_spill] sm:$0xff] }
 0x519   : >> { %v6666_v1 = vadd.s32 %v6662_v47, %v6635_v37  ;;  %v6667_v12 = vadd.s32 %v6663_v45, %v6635_v37  ;;  %v6668_v7 = vadd.s32 %v6664_v26, %v6635_v37  ;;  %v6669_v11 = vadd.s32 %v6665_v46, %v6635_v37  ;;  %v18039_v37 = vld [vmem:[#allocation190_spill] sm:$0xff]  ;;  %v18043_v26 = vld [vmem:[#allocation125_spill] sm:$0xff] }
 0x51a   : >> { %v6530_v44 = vmax.f32 %v15084_v30, 0.0  ;;  %v15255_v10 = vsub.f32 %v15222_v33, %v14162_v41  ;;  %v6719_v28 = vmax.f32 %v15233_v5, 0.0  ;;  %v6720_v25 = vmax.f32 %v15237_v56, 0.0 }
 0x51b   : >> { %v15260_v3 = vadd.f32 %v6354_v8, %v14995_v19  ;;  %v6531_v42 = vmax.f32 %v15088_v17, 0.0  ;;  %v15265_v52 = vmax.f32 %v15098_v61, 0.0  ;;  %v6559_v54 = vadd.f32 %v6558_v63, %v6528_v23  ;;  %v18044_v63 = vld [vmem:[#allocation80_spill] sm:$0xff] }
 0x51c   : >> { %v15269_v30 = vsub.f32 %v15222_v33, %v13558_v32  ;;  %v15273_v2 = vsub.f32 %v15222_v33, %v14188_v49  ;;  %v6721_v59 = vmax.f32 %v15250_v4, 0.0  ;;  %v6670_v48 = vadd.s32 %v6667_v12, %v6666_v1  ;;  %v18045_v12 = vld [vmem:[#allocation146_spill] sm:$0xff] }
 0x51d   : >> { %v6671_v35 = vadd.s32 %v6669_v11, %v6668_v7  ;;  %v15278_v17 = vsub.f32 %v15222_v33, %v17975_v9  ;;  %v15282_v61 = vsub.f32 %v15222_v33, %v17976_v53  ;;  %v15286_v20 = vsub.f32 %v15222_v33, %v17977_v27  ;;  %v18046_v11 = vld [vmem:[#allocation86_spill] sm:$0xff] }
 0x51e   : >> { %v15290_v0 = vsub.f32 %v15222_v33, %v17978_v50  ;;  %v6722_v29 = vmax.f32 %v15255_v10, 0.0  ;;  %v6751_v34 = vadd.f32 %v6720_v25, %v6719_v28  ;;  %v15295_v51 = vsub.f32 %v15222_v33, %v18039_v37  ;;  %v18047_v28 = vld [vmem:[#allocation155_spill] sm:$0xff] }
 0x51f   : >> { %v15299_v62 = vsub.f32 %v15222_v33, %v18040_v58  ;;  %v15303_v14 = vsub.f32 %v15222_v33, %v18041_v60  ;;  %v15307_v47 = vsub.f32 %v15222_v33, %v18042_v16  ;;  %v6560_v45 = vadd.f32 %v6559_v54, %v6529_v55  ;;  %v18048_v54 = vld [vmem:[#allocation47_spill] sm:$0xff]  ;;  %v18053_v16 = vld [vmem:[#allocation42_spill] sm:$0xff] }
 0x520   : >> { %v15311_v46 = vsub.f32 %v15222_v33, %v18043_v26  ;;  %v6723_v38 = vmax.f32 %v15269_v30, 0.0  ;;  %v6752_v8 = vadd.f32 %v6751_v34, %v6721_v59  ;;  %v15314_v23 = vadd.s32 %v6671_v35, %v6670_v48  ;;  %v18049_v34 = vld [vmem:[#allocation37_spill] sm:$0xff] }
 0x521   : >> { %v15318_v1 = vsub.f32 %v15222_v33, %v18044_v63  ;;  %v15322_v7 = vsub.f32 %v15222_v33, %v18045_v12  ;;  %v15326_v55 = vsub.f32 %v15222_v33, %v18046_v11  ;;  %v15330_v25 = vsub.f32 %v15222_v33, %v18047_v28  ;;  %v18051_v11 = vld [vmem:[#allocation136_spill] sm:$0xff]  ;;  %v18052_v28 = vld [vmem:[#allocation170_spill] sm:$0xff] }
 0x522   : >> { %v15334_v59 = vsub.f32 %v15222_v33, %v18048_v54  ;;  %v6724_v48 = vmax.f32 %v15273_v2, 0.0  ;;  %v6753_v35 = vadd.f32 %v6752_v8, %v6722_v29  ;;  %v15339_v43 = vsub.f32 %v15222_v33, %v18049_v34 }
 0x523   : >> { %v15343_v12 = vsub.f32 %v15222_v33, %v18050_v40  ;;  %v15347_v63 = vsub.f32 %v15222_v33, %v18051_v11  ;;  %v15351_v26 = vsub.f32 %v15222_v33, %v18052_v28  ;;  %v6561_v54 = vadd.f32 %v6560_v45, %v6530_v44 }
 0x524   : >> { %v15355_v29 = vsub.f32 %v15222_v33, %v18053_v16  ;;  %v6725_v8 = vmax.f32 %v15278_v17, 0.0  ;;  %v6754_v34 = vadd.f32 %v6753_v35, %v6723_v38  ;;  %v15360_v40 = vadd.f32 -1e+30, %v15222_v33 }
 0x525   : >> { %v6726_v11 = vmax.f32 %v15282_v61, 0.0  ;;  %v6727_v58 = vmax.f32 %v15286_v20, 0.0  ;;  %v6728_v28 = vmax.f32 %v15290_v0, 0.0  ;;  %v6729_v44 = vmax.f32 %v15295_v51, 0.0 }
 0x526   : >> { %v6730_v45 = vmax.f32 %v15299_v62, 0.0  ;;  %v6755_v16 = vadd.f32 %v6754_v34, %v6724_v48  ;;  %v6731_v37 = vmax.f32 %v15303_v14, 0.0  ;;  %v6732_v38 = vmax.f32 %v15307_v47, 0.0 }
 0x527   : >> { %v6733_v35 = vmax.f32 %v15311_v46, 0.0  ;;  %v6562_v60 = vadd.f32 %v6561_v54, %v6531_v42  ;;  %vm6789_vm14 = vcmp.gt.f32.partialorder %v15233_v5, 0.0  ;;  %vm6796_vm4 = vcmp.gt.f32.partialorder %v15282_v61, 0.0 }
 0x528   : >> { %v6756_v50 = vadd.f32 %v6755_v16, %v6725_v8  ;;  %vm6797_vm11 = vcmp.gt.f32.partialorder %v15286_v20, 0.0  ;;  %vm6798_vm13 = vcmp.gt.f32.partialorder %v15290_v0, 0.0  ;;  %vm6800_vm3 = vcmp.gt.f32.partialorder %v15299_v62, 0.0 }
 0x529   : >> { %vm6802_vm9 = vcmp.gt.f32.partialorder %v15307_v47, 0.0  ;;  %vm18054_vm1 = vcmp.gt.f32.partialorder %v15237_v56, 0.0  ;;  %vm18055_vm7 = vcmp.gt.f32.partialorder %v15250_v4, 0.0  ;;  %vm18056_vm6 = vcmp.gt.f32.partialorder %v15269_v30, 0.0 }
 0x52a   : >> { %v6757_v48 = vadd.f32 %v6756_v50, %v6726_v11  ;;  %v6821_v50 = vsel %vm6789_vm14, 1, %v18000_v39  ;;  %v6822_v16 = vsel %vm18054_vm1, 1, %v18000_v39  ;;  %v6825_v54 = vsel %vm18056_vm6, 1, %v18000_v39 }
 0x52b   : >> { %vm18057_vm15 = vcmp.gt.f32.partialorder %v15273_v2, 0.0  ;;  %vm18058_vm14 = vcmp.gt.f32.partialorder %v15278_v17, 0.0  ;;  %vm6806_vm8 = vcmp.gt.f32.partialorder %v15326_v55, 0.0  ;;  %vm18059_vm1 = vcmp.gt.f32.partialorder %v15255_v10, 0.0 }
 0x52c   : >> { %v6758_v42 = vadd.f32 %v6757_v48, %v6727_v58  ;;  %v6823_v58 = vsel %vm18055_vm7, 1, %v18000_v39  ;;  %v6826_v34 = vsel %vm18057_vm15, 1, %v18000_v39  ;;  %v6827_v5 = vsel %vm18058_vm14, 1, %v18000_v39 }
 0x52d   : >> { %v6824_v56 = vsel %vm18059_vm1, 1, %v18000_v39  ;;  %v6828_v4 = vsel %vm6796_vm4, 1, %v18000_v39  ;;  %v6829_v30 = vsel %vm6797_vm11, 1, %v18000_v39  ;;  %v6830_v17 = vsel %vm6798_vm13, 1, %v18000_v39 }
 0x52e   : >> { %v6759_v11 = vadd.f32 %v6758_v42, %v6728_v28  ;;  %vm18060_vm7 = vcmp.gt.f32.partialorder %v15295_v51, 0.0  ;;  %v6832_v10 = vsel %vm6800_vm3, 1, %v18000_v39  ;;  %vm18061_vm6 = vcmp.gt.f32.partialorder %v15303_v14, 0.0 }
 0x52f   : >> { %v6831_v28 = vsel %vm18060_vm7, 1, %v18000_v39  ;;  %v6833_v61 = vsel %vm18061_vm6, 1, %v18000_v39  ;;  %v6853_v8 = vadd.s32 %v6825_v54, %v6821_v50  ;;  %v6854_v20 = vadd.s32 %v6826_v34, %v6822_v16 }
 0x530   : >> { %v6760_v2 = vadd.f32 %v6759_v11, %v6729_v44  ;;  %v6855_v48 = vadd.s32 %v6827_v5, %v6823_v58  ;;  %v6834_v0 = vsel %vm6802_vm9, 1, %v18000_v39  ;;  %vm18062_vm15 = vcmp.gt.f32.partialorder %v15311_v46, 0.0 }
 0x531   : >> { %v6835_v51 = vsel %vm18062_vm15, 1, %v18000_v39  ;;  %v6856_v42 = vadd.s32 %v6828_v4, %v6824_v56  ;;  %vm18063_vm3 = vcmp.gt.f32.partialorder %v15318_v1, 0.0  ;;  %v6857_v11 = vadd.s32 %v6853_v8, %v6829_v30 }
 0x532   : >> { %v6761_v44 = vadd.f32 %v6760_v2, %v6730_v45  ;;  %v6836_v62 = vsel %vm18063_vm3, 1, %v18000_v39  ;;  %v6858_v14 = vadd.s32 %v6854_v20, %v6830_v17  ;;  %v6859_v33 = vadd.s32 %v6855_v48, %v6831_v28 }
 0x533   : >> { %vm6807_vm4 = vcmp.gt.f32.partialorder %v15330_v25, 0.0  ;;  %vm6808_vm11 = vcmp.gt.f32.partialorder %v15334_v59, 0.0  ;;  %v6860_v45 = vadd.s32 %v6856_v42, %v6832_v10  ;;  %v6735_v47 = vmax.f32 %v15322_v7, 0.0 }
 0x534   : >> { %v6762_v50 = vadd.f32 %v6761_v44, %v6731_v37  ;;  %vm6809_vm9 = vcmp.gt.f32.partialorder %v15339_v43, 0.0  ;;  %vm18064_vm13 = vcmp.gt.f32.partialorder %v15322_v7, 0.0  ;;  %v6861_v58 = vadd.s32 %v6857_v11, %v6833_v61 }
 0x535   : >> { %v6837_v16 = vsel %vm18064_vm13, 1, %v18000_v39  ;;  %v6862_v34 = vadd.s32 %v6858_v14, %v6834_v0  ;;  %v6863_v5 = vadd.s32 %v6859_v33, %v6835_v51  ;;  %v6864_v56 = vadd.s32 %v6860_v45, %v6836_v62 }
 0x536   : >> { %v6763_v54 = vadd.f32 %v6762_v50, %v6732_v38  ;;  %v18065_v37 = vmax.f32 %v15095_v22, 0.0  ;;  %v6838_v30 = vsel %vm6806_vm8, 1, %v18000_v39  ;;  %v6839_v2 = vsel %vm6807_vm4, 1, %v18000_v39 }
 0x537   : >> { %v6840_v17 = vsel %vm6808_vm11, 1, %v18000_v39  ;;  %vm6810_vm14 = vcmp.gt.f32.partialorder %v15343_v12, 0.0  ;;  %vm6811_vm1 = vcmp.gt.f32.partialorder %v15347_v63, 0.0  ;;  %vm6812_vm7 = vcmp.gt.f32.partialorder %v15351_v26, 0.0 }
 0x538   : >> { %v6563_v4 = vadd.f32 %v6562_v60, %v18065_v37  ;;  %v6764_v7 = vadd.f32 %v6763_v54, %v6733_v35  ;;  %v6736_v22 = vmax.f32 %v15326_v55, 0.0  ;;  %vm6813_vm6 = vcmp.gt.f32.partialorder %v15355_v29, 0.0 }
 0x539   : >> { %v6841_v60 = vsel %vm6809_vm9, 1, %v18000_v39  ;;  %v6865_v38 = vadd.s32 %v6861_v58, %v6837_v16  ;;  %v18066_v33 = vmax.f32 %v15318_v1, 0.0  ;;  %v6866_v46 = vadd.s32 %v6862_v34, %v6838_v30 }
 0x53a   : >> { %v6867_v35 = vadd.s32 %v6863_v5, %v6839_v2  ;;  %v6868_v10 = vadd.s32 %v6864_v56, %v6840_v17  ;;  %v6356_v61 = vadd.f32 %v15260_v3, %v14995_v19  ;;  %v6842_v8 = vsel %vm6810_vm14, 1, %v18000_v39  ;;  %v15491_v56 = vld [vmem:[%s14421_s23 + $0x5] ss:$0 sm:$0xff] }
 0x53b   : >> { %v6765_v28 = vadd.f32 %v6764_v7, %v18066_v33  ;;  %v6843_v55 = vsel %vm6811_vm1, 1, %v18000_v39  ;;  %v6844_v20 = vsel %vm6812_vm7, 1, %v18000_v39  ;;  %v6564_v48 = vadd.f32 %v6563_v4, %v15265_v52 }
 0x53c   : >> { %v6737_v44 = vmax.f32 %v15330_v25, 0.0  ;;  %vm6814_vm8 = vcmp.gt.f32.partialorder %v15360_v40, 0.0  ;;  %v18067_v1 = vrot.slane %v15314_v23, 4  ;;  %v6738_v3 = vmax.f32 %v15334_v59, 0.0 }
 0x53d   : >> { %v6766_v0 = vadd.f32 %v6765_v28, %v6735_v47  ;;  %v6845_v42 = vsel %vm6813_vm6, 1, %v18000_v39  ;;  %v6869_v62 = vadd.s32 %v6865_v38, %v6841_v60  ;;  %v6870_v14 = vadd.s32 %v6866_v46, %v6842_v8 }
 0x53e   : >> { %v6674_v51 = vadd.s32 %v18067_v1, %v15314_v23  ;;  %v6871_v50 = vadd.s32 %v6867_v35, %v6843_v55  ;;  %v6872_v45 = vadd.s32 %v6868_v10, %v6844_v20  ;;  %v5940_v25 = vrot.slane %v15226_v13, 2 }
 0x53f   : >> { %v6767_v11 = vadd.f32 %v6766_v0, %v6736_v22  ;;  %v15481_v47 = vadd.f32 %v15240_v6, %v14791_v57  ;;  %v18068_v23 = vrot.slane %v15218_v36, 1  ;;  %v6846_v59 = vsel %vm6814_vm8, 1, %v18000_v39 }
 0x540   : >> { %v6357_v58 = vadd.f32 %v6356_v61, %v14995_v19  ;;  %v6466_v54 = vrot.slane %v15245_v21, 1  ;;  %v6565_v34 = vadd.f32 %v6564_v48, %v15265_v52  ;;  %v6675_v37 = vrot.slane %v6674_v51, 2 }
 0x541   : >> { %v6256_v16 = vadd.s32 %v18068_v23, %v15218_v36  ;;  %v6768_v5 = vadd.f32 %v6767_v11, %v6737_v44  ;;  %v6739_v4 = vmax.f32 %v15339_v43, 0.0  ;;  %v6873_v57 = vadd.s32 %v6869_v62, %v6845_v42  ;;  %v18082_v43 = vld [vmem:[#allocation51_spill] sm:$0xff] }
 0x542   : >> { %v6874_v30 = vadd.s32 %v6870_v14, %v6846_v59  ;;  %v6875_v2 = vadd.s32 %v6871_v50, %v6846_v59  ;;  %v6876_v17 = vadd.s32 %v6872_v45, %v6846_v59  ;;  %v15495_v36 = vadd.f32 %v5940_v25, %v15226_v13  ;;  %v18070_v50 = vld [vmem:[#allocation43_spill] sm:$0xff] }
 0x543   : >> { %v6769_v6 = vadd.f32 %v6768_v5, %v6738_v3  ;;  %v15498_v7 = vadd.s32 %v6256_v16, %v15229_v24  ;;  %v15502_v22 = vsub.f32 %v15491_v56, %v14116_v31  ;;  %v15506_v60 = vsub.f32 %v15491_v56, %v17994_v18  ;;  %v18071_v16 = vld [vmem:[#allocation190_spill] sm:$0xff] }
 0x544   : >> { %18069 = vst [vmem:[#allocation199_spill] sm:$0xff] %v15495_v36  ;;  %v15510_v38 = vadd.f32 %v6357_v58, %v14995_v19  ;;  %v15513_v33 = vadd.s32 %v6466_v54, %v15245_v21  ;;  %v6566_v13 = vadd.f32 %v6565_v34, %v15265_v52  ;;  %v15516_v24 = vadd.s32 %v6675_v37, %v6674_v51  ;;  %v18072_v58 = vld [vmem:[#allocation72_spill] sm:$0xff]  ;;  %v18074_v37 = vld [vmem:[#allocation70_spill] sm:$0xff] }
 0x545   : >> { %v6740_v28 = vmax.f32 %v15343_v12, 0.0  ;;  %v6770_v46 = vadd.f32 %v6769_v6, %v6739_v4  ;;  %v15521_v35 = vsub.f32 %v15491_v56, %v17974_v15  ;;  %v6877_v10 = vadd.s32 %v6873_v57, %v6846_v59  ;;  %v18073_v34 = vld [vmem:[#allocation68_spill] sm:$0xff]  ;;  %v18075_v6 = vld [vmem:[#allocation125_spill] sm:$0xff] }
 0x546   : >> { %v6878_v61 = vadd.s32 %v6874_v30, %v6846_v59  ;;  %v6879_v8 = vadd.s32 %v6875_v2, %v6846_v59  ;;  %v6880_v55 = vadd.s32 %v6876_v17, %v6846_v59  ;;  %v6741_v20 = vmax.f32 %v15347_v63, 0.0 }
 0x547   : >> { %v15526_v21 = vsub.f32 %v15491_v56, %v14162_v41  ;;  %v6930_v48 = vmax.f32 %v15502_v22, 0.0  ;;  %v6931_v44 = vmax.f32 %v15506_v60, 0.0  ;;  %v15531_v12 = vadd.f32 %v6566_v13, %v15265_v52 }
 0x548   : >> { %v6742_v0 = vmax.f32 %v15351_v26, 0.0  ;;  %v6743_v1 = vmax.f32 %v15355_v29, 0.0  ;;  %v15536_v51 = vmax.f32 %v15360_v40, 0.0  ;;  %v6771_v3 = vadd.f32 %v6770_v46, %v6740_v28  ;;  %v18076_v28 = vld [vmem:[#allocation80_spill] sm:$0xff] }
 0x549   : >> { %v15540_v63 = vsub.f32 %v15491_v56, %v13558_v32  ;;  %v15544_v42 = vsub.f32 %v15491_v56, %v14188_v49  ;;  %v6932_v62 = vmax.f32 %v15521_v35, 0.0  ;;  %v6881_v11 = vadd.s32 %v6878_v61, %v6877_v10  ;;  %v18077_v10 = vld [vmem:[#allocation146_spill] sm:$0xff] }
 0x54a   : >> { %v6882_v14 = vadd.s32 %v6880_v55, %v6879_v8  ;;  %v15549_v26 = vsub.f32 %v15491_v56, %v17975_v9  ;;  %v15553_v40 = vsub.f32 %v15491_v56, %v17976_v53  ;;  %v15557_v29 = vsub.f32 %v15491_v56, %v17977_v27  ;;  %v18078_v8 = vld [vmem:[#allocation86_spill] sm:$0xff] }
 0x54b   : >> { %v15561_v45 = vsub.f32 %v15491_v56, %v18070_v50  ;;  %v6933_v25 = vmax.f32 %v15526_v21, 0.0  ;;  %v6962_v23 = vadd.f32 %v6931_v44, %v6930_v48  ;;  %v15566_v59 = vsub.f32 %v15491_v56, %v18071_v16  ;;  %v18080_v44 = vld [vmem:[#allocation47_spill] sm:$0xff] }
 0x54c   : >> { %v15570_v54 = vsub.f32 %v15491_v56, %v18072_v58  ;;  %v15574_v5 = vsub.f32 %v15491_v56, %v18073_v34  ;;  %v15578_v4 = vsub.f32 %v15491_v56, %v18074_v37  ;;  %v6772_v57 = vadd.f32 %v6771_v3, %v6741_v20  ;;  %v18079_v20 = vld [vmem:[#allocation155_spill] sm:$0xff] }
 0x54d   : >> { %v15582_v30 = vsub.f32 %v15491_v56, %v18075_v6  ;;  %v6934_v2 = vmax.f32 %v15540_v63, 0.0  ;;  %v6963_v17 = vadd.f32 %v6962_v23, %v6932_v62  ;;  %v15585_v13 = vadd.s32 %v6882_v14, %v6881_v11  ;;  %v18081_v14 = vld [vmem:[#allocation37_spill] sm:$0xff]  ;;  %v18085_v6 = vld [vmem:[#allocation42_spill] sm:$0xff] }
 0x54e   : >> { %v15589_v46 = vsub.f32 %v15491_v56, %v18076_v28  ;;  %v15593_v61 = vsub.f32 %v15491_v56, %v18077_v10  ;;  %v15597_v55 = vsub.f32 %v15491_v56, %v18078_v8  ;;  %v15601_v48 = vsub.f32 %v15491_v56, %v18079_v20  ;;  %v18083_v8 = vld [vmem:[#allocation136_spill] sm:$0xff]  ;;  %v18084_v20 = vld [vmem:[#allocation170_spill] sm:$0xff] }
 0x54f   : >> { %v15605_v3 = vsub.f32 %v15491_v56, %v18080_v44  ;;  %v6935_v62 = vmax.f32 %v15544_v42, 0.0  ;;  %v6964_v11 = vadd.f32 %v6963_v17, %v6933_v25  ;;  %v15610_v23 = vsub.f32 %v15491_v56, %v18081_v14 }
 0x550   : >> { %v15614_v36 = vsub.f32 %v15491_v56, %v18082_v43  ;;  %v15618_v10 = vsub.f32 %v15491_v56, %v18083_v8  ;;  %v15622_v28 = vsub.f32 %v15491_v56, %v18084_v20  ;;  %v6773_v44 = vadd.f32 %v6772_v57, %v6742_v0 }
 0x551   : >> { %v15626_v25 = vsub.f32 %v15491_v56, %v18085_v6  ;;  %v6936_v17 = vmax.f32 %v15549_v26, 0.0  ;;  %v6965_v14 = vadd.f32 %v6964_v11, %v6934_v2  ;;  %v15631_v43 = vadd.f32 -1e+30, %v15491_v56 }
 0x552   : >> { %v6937_v8 = vmax.f32 %v15553_v40, 0.0  ;;  %v6938_v34 = vmax.f32 %v15557_v29, 0.0  ;;  %v6939_v20 = vmax.f32 %v15561_v45, 0.0  ;;  %v6940_v0 = vmax.f32 %v15566_v59, 0.0 }
 0x553   : >> { %v6941_v57 = vmax.f32 %v15570_v54, 0.0  ;;  %v6966_v6 = vadd.f32 %v6965_v14, %v6935_v62  ;;  %v6942_v58 = vmax.f32 %v15574_v5, 0.0  ;;  %v6943_v2 = vmax.f32 %v15578_v4, 0.0 }
 0x554   : >> { %v6944_v11 = vmax.f32 %v15582_v30, 0.0  ;;  %v6774_v37 = vadd.f32 %v6773_v44, %v6743_v1  ;;  %vm7000_vm15 = vcmp.gt.f32.partialorder %v15502_v22, 0.0  ;;  %vm7007_vm1 = vcmp.gt.f32.partialorder %v15553_v40, 0.0 }
 0x555   : >> { %v6967_v16 = vadd.f32 %v6966_v6, %v6936_v17  ;;  %vm7008_vm7 = vcmp.gt.f32.partialorder %v15557_v29, 0.0  ;;  %vm7009_vm6 = vcmp.gt.f32.partialorder %v15561_v45, 0.0  ;;  %vm7011_vm3 = vcmp.gt.f32.partialorder %v15570_v54, 0.0 }
 0x556   : >> { %vm7013_vm11 = vcmp.gt.f32.partialorder %v15578_v4, 0.0  ;;  %vm18086_vm8 = vcmp.gt.f32.partialorder %v15506_v60, 0.0  ;;  %vm18087_vm4 = vcmp.gt.f32.partialorder %v15521_v35, 0.0  ;;  %vm18088_vm13 = vcmp.gt.f32.partialorder %v15540_v63, 0.0 }
 0x557   : >> { %v6968_v62 = vadd.f32 %v6967_v16, %v6937_v8  ;;  %v7032_v16 = vsel %vm7000_vm15, 1, %v18000_v39  ;;  %v7033_v6 = vsel %vm18086_vm8, 1, %v18000_v39  ;;  %v7036_v44 = vsel %vm18088_vm13, 1, %v18000_v39 }
 0x558   : >> { %vm18089_vm14 = vcmp.gt.f32.partialorder %v15544_v42, 0.0  ;;  %vm18090_vm15 = vcmp.gt.f32.partialorder %v15549_v26, 0.0  ;;  %vm7017_vm9 = vcmp.gt.f32.partialorder %v15597_v55, 0.0  ;;  %vm18091_vm8 = vcmp.gt.f32.partialorder %v15526_v21, 0.0 }
 0x559   : >> { %v6969_v1 = vadd.f32 %v6968_v62, %v6938_v34  ;;  %v7034_v34 = vsel %vm18087_vm4, 1, %v18000_v39  ;;  %v7037_v14 = vsel %vm18089_vm14, 1, %v18000_v39  ;;  %v7038_v22 = vsel %vm18090_vm15, 1, %v18000_v39 }
 0x55a   : >> { %v7035_v60 = vsel %vm18091_vm8, 1, %v18000_v39  ;;  %v7039_v35 = vsel %vm7007_vm1, 1, %v18000_v39  ;;  %v7040_v63 = vsel %vm7008_vm7, 1, %v18000_v39  ;;  %v7041_v26 = vsel %vm7009_vm6, 1, %v18000_v39 }
 0x55b   : >> { %v6970_v8 = vadd.f32 %v6969_v1, %v6939_v20  ;;  %vm18092_vm4 = vcmp.gt.f32.partialorder %v15566_v59, 0.0  ;;  %v7043_v21 = vsel %vm7011_vm3, 1, %v18000_v39  ;;  %vm18093_vm13 = vcmp.gt.f32.partialorder %v15574_v5, 0.0 }
 0x55c   : >> { %v7042_v20 = vsel %vm18092_vm4, 1, %v18000_v39  ;;  %v7044_v40 = vsel %vm18093_vm13, 1, %v18000_v39  ;;  %v7064_v17 = vadd.s32 %v7036_v44, %v7032_v16  ;;  %v7065_v29 = vadd.s32 %v7037_v14, %v7033_v6 }
 0x55d   : >> { %v6971_v42 = vadd.f32 %v6970_v8, %v6940_v0  ;;  %v7066_v62 = vadd.s32 %v7038_v22, %v7034_v34  ;;  %v7045_v45 = vsel %vm7013_vm11, 1, %v18000_v39  ;;  %vm18094_vm14 = vcmp.gt.f32.partialorder %v15582_v30, 0.0 }
 0x55e   : >> { %v7046_v59 = vsel %vm18094_vm14, 1, %v18000_v39  ;;  %v7067_v1 = vadd.s32 %v7039_v35, %v7035_v60  ;;  %vm18095_vm3 = vcmp.gt.f32.partialorder %v15589_v46, 0.0  ;;  %v7068_v8 = vadd.s32 %v7064_v17, %v7040_v63 }
 0x55f   : >> { %v6972_v0 = vadd.f32 %v6971_v42, %v6941_v57  ;;  %v7047_v54 = vsel %vm18095_vm3, 1, %v18000_v39  ;;  %v7069_v5 = vadd.s32 %v7065_v29, %v7041_v26  ;;  %v7070_v56 = vadd.s32 %v7066_v62, %v7042_v20 }
 0x560   : >> { %vm7018_vm1 = vcmp.gt.f32.partialorder %v15601_v48, 0.0  ;;  %vm7019_vm7 = vcmp.gt.f32.partialorder %v15605_v3, 0.0  ;;  %v7071_v57 = vadd.s32 %v7067_v1, %v7043_v21  ;;  %v6946_v4 = vmax.f32 %v15593_v61, 0.0 }
 0x561   : >> { %v6973_v16 = vadd.f32 %v6972_v0, %v6942_v58  ;;  %vm7020_vm11 = vcmp.gt.f32.partialorder %v15610_v23, 0.0  ;;  %vm18096_vm6 = vcmp.gt.f32.partialorder %v15593_v61, 0.0  ;;  %v7072_v34 = vadd.s32 %v7068_v8, %v7044_v40 }
 0x562   : >> { %v7048_v6 = vsel %vm18096_vm6, 1, %v18000_v39  ;;  %v7073_v14 = vadd.s32 %v7069_v5, %v7045_v45  ;;  %v7074_v22 = vadd.s32 %v7070_v56, %v7046_v59  ;;  %v7075_v60 = vadd.s32 %v7071_v57, %v7047_v54 }
 0x563   : >> { %v6974_v44 = vadd.f32 %v6973_v16, %v6943_v2  ;;  %v6775_v58 = vadd.f32 %v6774_v37, %v15536_v51  ;;  %v7049_v35 = vsel %vm7017_vm9, 1, %v18000_v39  ;;  %v7050_v63 = vsel %vm7018_vm1, 1, %v18000_v39 }
 0x564   : >> { %v7051_v42 = vsel %vm7019_vm7, 1, %v18000_v39  ;;  %vm7021_vm15 = vcmp.gt.f32.partialorder %v15614_v36, 0.0  ;;  %vm7022_vm8 = vcmp.gt.f32.partialorder %v15618_v10, 0.0  ;;  %vm7023_vm4 = vcmp.gt.f32.partialorder %v15622_v28, 0.0 }
 0x565   : >> { %v6975_v26 = vadd.f32 %v6974_v44, %v6944_v11  ;;  %v6947_v61 = vmax.f32 %v15597_v55, 0.0  ;;  %vm7024_vm13 = vcmp.gt.f32.partialorder %v15626_v25, 0.0  ;;  %v7052_v37 = vsel %vm7020_vm11, 1, %v18000_v39 }
 0x566   : >> { %v7076_v2 = vadd.s32 %v7072_v34, %v7048_v6  ;;  %v18097_v56 = vmax.f32 %v15589_v46, 0.0  ;;  %v7077_v30 = vadd.s32 %v7073_v14, %v7049_v35  ;;  %v7078_v11 = vadd.s32 %v7074_v22, %v7050_v63 }
 0x567   : >> { %v7079_v21 = vadd.s32 %v7075_v60, %v7051_v42  ;;  %v6568_v40 = vadd.f32 %v15531_v12, %v15265_v52  ;;  %v7053_v17 = vsel %vm7021_vm15, 1, %v18000_v39  ;;  %v7054_v55 = vsel %vm7022_vm8, 1, %v18000_v39  ;;  %v7953_v60 = vld [vmem:[%s14421_s23 + $0x6] ss:$0 sm:$0xff] }
 0x568   : >> { %v6976_v20 = vadd.f32 %v6975_v26, %v18097_v56  ;;  %v7055_v29 = vsel %vm7023_vm4, 1, %v18000_v39  ;;  %v6776_v62 = vadd.f32 %v6775_v58, %v15536_v51  ;;  %v6948_v0 = vmax.f32 %v15601_v48, 0.0 }
 0x569   : >> { %vm7025_vm9 = vcmp.gt.f32.partialorder %v15631_v43, 0.0  ;;  %v18098_v46 = vrot.slane %v15585_v13, 4  ;;  %v6949_v12 = vmax.f32 %v15605_v3, 0.0  ;;  %v7056_v1 = vsel %vm7024_vm13, 1, %v18000_v39 }
 0x56a   : >> { %v6977_v45 = vadd.f32 %v6976_v20, %v6946_v4  ;;  %v7080_v54 = vadd.s32 %v7076_v2, %v7052_v37  ;;  %v7081_v5 = vadd.s32 %v7077_v30, %v7053_v17  ;;  %v7082_v16 = vadd.s32 %v7078_v11, %v7054_v55 }
 0x56b   : >> { %v15744_v59 = vadd.s32 %v18098_v46, %v15585_v13  ;;  %v7083_v48 = vadd.s32 %v7079_v21, %v7055_v29  ;;  %v18099_v57 = vrot.slane %v15481_v47, 4  ;;  %v15757_v13 = vadd.f32 %v15510_v38, %v14995_v19  ;;  %v18100_v46 = vld [vmem:[#allocation190_spill] sm:$0xff] }
 0x56c   : >> { %v6978_v8 = vadd.f32 %v6977_v45, %v6947_v61  ;;  %v15761_v3 = vadd.s32 %v15513_v33, %v15498_v7  ;;  %v7057_v6 = vsel %vm7025_vm9, 1, %v18000_v39  ;;  %v6777_v44 = vadd.f32 %v6776_v62, %v15536_v51  ;;  %v18107_v19 = vld [vmem:[#allocation86_spill] sm:$0xff] }
 0x56d   : >> { %v15753_v4 = vadd.f32 %v18099_v57, %v15481_v47  ;;  %v6950_v14 = vmax.f32 %v15610_v23, 0.0  ;;  %v15769_v47 = vadd.f32 %v6568_v40, %v15265_v52  ;;  %v6951_v38 = vmax.f32 %v15614_v36, 0.0 }
 0x56e   : >> { %v6979_v22 = vadd.f32 %v6978_v8, %v6948_v0  ;;  %v7084_v58 = vadd.s32 %v7080_v54, %v7056_v1  ;;  %v7085_v33 = vadd.s32 %v7081_v5, %v7057_v6  ;;  %v7086_v35 = vadd.s32 %v7082_v16, %v7057_v6  ;;  %v18101_v1 = vld [vmem:[#allocation72_spill] sm:$0xff]  ;;  %v18103_v16 = vld [vmem:[#allocation70_spill] sm:$0xff] }
 0x56f   : >> { %v7087_v63 = vadd.s32 %v7083_v48, %v7057_v6  ;;  %v6952_v42 = vmax.f32 %v15618_v10, 0.0  ;;  %v6953_v26 = vmax.f32 %v15622_v28, 0.0  ;;  %v15776_v23 = vsub.f32 %v7953_v60, %v14116_v31  ;;  %v18102_v8 = vld [vmem:[#allocation68_spill] sm:$0xff] }
 0x570   : >> { %v6980_v7 = vadd.f32 %v6979_v22, %v6949_v12  ;;  %v15779_v61 = vsub.f32 %v7953_v60, %v17994_v18  ;;  %v15782_v37 = vadd.f32 %v6777_v44, %v15536_v51  ;;  %v6954_v36 = vmax.f32 %v15626_v25, 0.0 }
 0x571   : >> { %v15786_v2 = vmax.f32 %v15631_v43, 0.0  ;;  %v15789_v20 = vsub.f32 %v7953_v60, %v17974_v15  ;;  %v15792_v28 = vsub.f32 %v7953_v60, %v14162_v41  ;;  %v15795_v10 = vsub.f32 %v7953_v60, %v13558_v32 }
 0x572   : >> { %v6981_v56 = vadd.f32 %v6980_v7, %v6950_v14  ;;  %v15798_v30 = vsub.f32 %v7953_v60, %v14188_v49  ;;  %v7088_v11 = vadd.s32 %v7084_v58, %v7057_v6  ;;  %v7089_v21 = vadd.s32 %v7085_v33, %v7057_v6  ;;  %v18104_v14 = vld [vmem:[#allocation125_spill] sm:$0xff]  ;;  %v18106_v33 = vld [vmem:[#allocation146_spill] sm:$0xff] }
 0x573   : >> { %v7090_v40 = vadd.s32 %v7086_v35, %v7057_v6  ;;  %v7091_v25 = vadd.s32 %v7087_v63, %v7057_v6  ;;  %v15801_v43 = vsub.f32 %v7953_v60, %v17975_v9  ;;  %v7141_v55 = vmax.f32 %v15776_v23, 0.0 }
 0x574   : >> { %v6982_v17 = vadd.f32 %v6981_v56, %v6951_v38  ;;  %v7142_v29 = vmax.f32 %v15779_v61, 0.0  ;;  %v15806_v62 = vsub.f32 %v7953_v60, %v17976_v53  ;;  %v15809_v0 = vsub.f32 %v7953_v60, %v17977_v27  ;;  %v18105_v38 = vld [vmem:[#allocation80_spill] sm:$0xff] }
 0x575   : >> { %v15812_v45 = vsub.f32 %v7953_v60, %v18070_v50  ;;  %v15815_v12 = vsub.f32 %v7953_v60, %v18100_v46  ;;  %v15818_v54 = vsub.f32 %v7953_v60, %v18101_v1  ;;  %v15821_v5 = vsub.f32 %v7953_v60, %v18102_v8  ;;  %v18114_v1 = vld [vmem:[#allocation42_spill] sm:$0xff] }
 0x576   : >> { %v15824_v48 = vsub.f32 %v7953_v60, %v18103_v16  ;;  %v7143_v57 = vmax.f32 %v15789_v20, 0.0  ;;  %v7092_v6 = vadd.s32 %v7089_v21, %v7088_v11  ;;  %v7093_v44 = vadd.s32 %v7091_v25, %v7090_v40  ;;  %v18108_v16 = vld [vmem:[#allocation155_spill] sm:$0xff]  ;;  %v18110_v40 = vld [vmem:[#allocation37_spill] sm:$0xff] }
 0x577   : >> { %v15828_v22 = vsub.f32 %v7953_v60, %v18104_v14  ;;  %v15831_v58 = vsub.f32 %v7953_v60, %v18105_v38  ;;  %v6983_v7 = vadd.f32 %v6982_v17, %v6952_v42  ;;  %v15834_v35 = vsub.f32 %v7953_v60, %v18106_v33  ;;  %v18109_v11 = vld [vmem:[#allocation47_spill] sm:$0xff]  ;;  %v18112_v17 = vld [vmem:[#allocation136_spill] sm:$0xff]  ;;  %v18113_v14 = vld [vmem:[#allocation170_spill] sm:$0xff] }
 0x578   : >> { %v7144_v63 = vmax.f32 %v15792_v28, 0.0  ;;  %v7173_v56 = vadd.f32 %v7142_v29, %v7141_v55  ;;  %v15838_v34 = vsub.f32 %v7953_v60, %v18107_v19  ;;  %v15841_v8 = vsub.f32 %v7953_v60, %v18108_v16  ;;  %v18111_v38 = vld [vmem:[#allocation51_spill] sm:$0xff] }
 0x579   : >> { %v15844_v21 = vsub.f32 %v7953_v60, %v18109_v11  ;;  %v15847_v25 = vsub.f32 %v7953_v60, %v18110_v40  ;;  %v15850_v42 = vsub.f32 %v7953_v60, %v18111_v38  ;;  %v15853_v33 = vsub.f32 %v7953_v60, %v18112_v17 }
 0x57a   : >> { %v7145_v55 = vmax.f32 %v15795_v10, 0.0  ;;  %v7174_v29 = vadd.f32 %v7173_v56, %v7143_v57  ;;  %v15856_v19 = vadd.s32 %v7093_v44, %v7092_v6  ;;  %v15859_v16 = vsub.f32 %v7953_v60, %v18113_v14 }
 0x57b   : >> { %v15862_v11 = vsub.f32 %v7953_v60, %v18114_v1  ;;  %v15864_v46 = vadd.f32 -1e+30, %v7953_v60  ;;  %v6984_v40 = vadd.f32 %v6983_v7, %v6953_v26  ;;  %v7146_v38 = vmax.f32 %v15798_v30, 0.0 }
 0x57c   : >> { %v7147_v50 = vmax.f32 %v15801_v43, 0.0  ;;  %v7175_v17 = vadd.f32 %v7174_v29, %v7144_v63  ;;  %v7148_v27 = vmax.f32 %v15806_v62, 0.0  ;;  %v7149_v57 = vmax.f32 %v15809_v0, 0.0 }
 0x57d   : >> { %v7150_v6 = vmax.f32 %v15812_v45, 0.0  ;;  %v7151_v44 = vmax.f32 %v15815_v12, 0.0  ;;  %v7152_v56 = vmax.f32 %v15818_v54, 0.0  ;;  %v7153_v1 = vmax.f32 %v15821_v5, 0.0 }
 0x57e   : >> { %v7154_v60 = vmax.f32 %v15824_v48, 0.0  ;;  %v7176_v26 = vadd.f32 %v7175_v17, %v7145_v55  ;;  %vm7211_vm14 = vcmp.gt.f32.partialorder %v15776_v23, 0.0  ;;  %v15879_v29 = vadd.f32 %v6984_v40, %v6954_v36 }
 0x57f   : >> { %vm7226_vm15 = vcmp.gt.f32.partialorder %v15831_v58, 0.0  ;;  %vm7227_vm11 = vcmp.gt.f32.partialorder %v15834_v35, 0.0  ;;  %vm7228_vm8 = vcmp.gt.f32.partialorder %v15838_v34, 0.0  ;;  %vm7230_vm13 = vcmp.gt.f32.partialorder %v15844_v21, 0.0 }
 0x580   : >> { %v7177_v53 = vadd.f32 %v7176_v26, %v7146_v38  ;;  %vm7233_vm7 = vcmp.gt.f32.partialorder %v15853_v33, 0.0  ;;  %vm18115_vm4 = vcmp.gt.f32.partialorder %v15779_v61, 0.0  ;;  %vm18116_vm9 = vcmp.gt.f32.partialorder %v15789_v20, 0.0 }
 0x581   : >> { %v7245_v38 = vsel %vm18116_vm9, 1, %v18000_v39  ;;  %vm18117_vm1 = vcmp.gt.f32.partialorder %v15792_v28, 0.0  ;;  %vm18118_vm6 = vcmp.gt.f32.partialorder %v15795_v10, 0.0  ;;  %vm18121_vm9 = vcmp.gt.f32.partialorder %v15806_v62, 0.0 }
 0x582   : >> { %v7178_v17 = vadd.f32 %v7177_v53, %v7147_v50  ;;  %v7244_v50 = vsel %vm18115_vm4, 1, %v18000_v39  ;;  %v7246_v40 = vsel %vm18117_vm1, 1, %v18000_v39  ;;  %v7247_v23 = vsel %vm18118_vm6, 1, %v18000_v39 }
 0x583   : >> { %vm18120_vm4 = vcmp.gt.f32.partialorder %v15801_v43, 0.0  ;;  %v7250_v28 = vsel %vm18121_vm9, 1, %v18000_v39  ;;  %vm18122_vm1 = vcmp.gt.f32.partialorder %v15809_v0, 0.0  ;;  %vm18123_vm3 = vcmp.gt.f32.partialorder %v15812_v45, 0.0 }
 0x584   : >> { %v7179_v36 = vadd.f32 %v7178_v17, %v7148_v27  ;;  %v7243_v27 = vsel %vm7211_vm14, 1, %v18000_v39  ;;  %vm18119_vm14 = vcmp.gt.f32.partialorder %v15798_v30, 0.0  ;;  %v7249_v20 = vsel %vm18120_vm4, 1, %v18000_v39 }
 0x585   : >> { %v7248_v61 = vsel %vm18119_vm14, 1, %v18000_v39  ;;  %v7252_v10 = vsel %vm18123_vm3, 1, %v18000_v39  ;;  %vm18124_vm6 = vcmp.gt.f32.partialorder %v15815_v12, 0.0  ;;  %vm18125_vm14 = vcmp.gt.f32.partialorder %v15818_v54, 0.0 }
 0x586   : >> { %v7180_v53 = vadd.f32 %v7179_v36, %v7149_v57  ;;  %v7251_v57 = vsel %vm18122_vm1, 1, %v18000_v39  ;;  %v7253_v30 = vsel %vm18124_vm6, 1, %v18000_v39  ;;  %v7254_v43 = vsel %vm18125_vm14, 1, %v18000_v39 }
 0x587   : >> { %vm18126_vm4 = vcmp.gt.f32.partialorder %v15821_v5, 0.0  ;;  %vm18127_vm9 = vcmp.gt.f32.partialorder %v15824_v48, 0.0  ;;  %vm18128_vm3 = vcmp.gt.f32.partialorder %v15828_v22, 0.0  ;;  %v7275_v26 = vadd.s32 %v7247_v23, %v7243_v27 }
 0x588   : >> { %v7181_v55 = vadd.f32 %v7180_v53, %v7150_v6  ;;  %v7255_v62 = vsel %vm18126_vm4, 1, %v18000_v39  ;;  %v7256_v0 = vsel %vm18127_vm9, 1, %v18000_v39  ;;  %v7257_v45 = vsel %vm18128_vm3, 1, %v18000_v39 }
 0x589   : >> { %v7276_v12 = vadd.s32 %v7248_v61, %v7244_v50  ;;  %v7277_v17 = vadd.s32 %v7249_v20, %v7245_v38  ;;  %v7258_v54 = vsel %vm7226_vm15, 1, %v18000_v39  ;;  %v7259_v36 = vsel %vm7227_vm11, 1, %v18000_v39 }
 0x58a   : >> { %v7182_v6 = vadd.f32 %v7181_v55, %v7151_v44  ;;  %v7278_v53 = vadd.s32 %v7250_v28, %v7246_v40  ;;  %v7260_v55 = vsel %vm7228_vm8, 1, %v18000_v39  ;;  %v7279_v63 = vadd.s32 %v7275_v26, %v7251_v57 }
 0x58b   : >> { %v7280_v14 = vadd.s32 %v7276_v12, %v7252_v10  ;;  %v7281_v7 = vadd.s32 %v7277_v17, %v7253_v30  ;;  %vm18129_vm1 = vcmp.gt.f32.partialorder %v15841_v8, 0.0  ;;  %v7262_v50 = vsel %vm7230_vm13, 1, %v18000_v39 }
 0x58c   : >> { %v7183_v44 = vadd.f32 %v7182_v6, %v7152_v56  ;;  %v7261_v56 = vsel %vm18129_vm1, 1, %v18000_v39  ;;  %v7282_v38 = vadd.s32 %v7278_v53, %v7254_v43  ;;  %vm18130_vm11 = vcmp.gt.f32.partialorder %v15847_v25, 0.0 }
 0x58d   : >> { %v7263_v40 = vsel %vm18130_vm11, 1, %v18000_v39  ;;  %v7283_v23 = vadd.s32 %v7279_v63, %v7255_v62  ;;  %v7284_v61 = vadd.s32 %v7280_v14, %v7256_v0  ;;  %v7285_v20 = vadd.s32 %v7281_v7, %v7257_v45 }
 0x58e   : >> { %v7184_v27 = vadd.f32 %v7183_v44, %v7153_v1  ;;  %vm18131_vm15 = vcmp.gt.f32.partialorder %v15850_v42, 0.0  ;;  %v7265_v28 = vsel %vm7233_vm7, 1, %v18000_v39  ;;  %v7286_v57 = vadd.s32 %v7282_v38, %v7258_v54 }
 0x58f   : >> { %v7264_v1 = vsel %vm18131_vm15, 1, %v18000_v39  ;;  %vm18132_vm8 = vcmp.gt.f32.partialorder %v15859_v16, 0.0  ;;  %v7287_v30 = vadd.s32 %v7283_v23, %v7259_v36  ;;  %v7288_v63 = vadd.s32 %v7284_v61, %v7260_v55 }
 0x590   : >> { %v7185_v5 = vadd.f32 %v7184_v27, %v7154_v60  ;;  %v7266_v10 = vsel %vm18132_vm8, 1, %v18000_v39  ;;  %v7289_v14 = vadd.s32 %v7285_v20, %v7261_v56  ;;  %v6986_v48 = vadd.f32 %v15879_v29, %v15786_v2 }
 0x591   : >> { %v18133_v60 = vmax.f32 %v15828_v22, 0.0  ;;  %vm18134_vm13 = vcmp.gt.f32.partialorder %v15862_v11, 0.0  ;;  %v7290_v43 = vadd.s32 %v7286_v57, %v7262_v50  ;;  %vm18135_vm7 = vcmp.gt.f32.partialorder %v15864_v46, 0.0 }
 0x592   : >> { %v7267_v6 = vsel %vm18134_vm13, 1, %v18000_v39  ;;  %v7268_v62 = vsel %vm18135_vm7, 1, %v18000_v39  ;;  %v7291_v0 = vadd.s32 %v7287_v30, %v7263_v40  ;;  %v7292_v45 = vadd.s32 %v7288_v63, %v7264_v1  ;;  %v7963_v63 = vld [vmem:[%s14421_s23 + $0x7] ss:$0 sm:$0xff]  ;;  %s16360_s23 = scalar_lea.sflag (%p5830_p0), [#allocation7], %s7670_s25 }
 0x593   : >> { %v7186_v7 = vadd.f32 %v7185_v5, %v18133_v60  ;;  %v7293_v26 = vadd.s32 %v7289_v14, %v7265_v28  ;;  %v7095_v12 = vrot.slane %v15856_v19, 4  ;;  %v7158_v17 = vmax.f32 %v15838_v34, 0.0 }
 0x594   : >> { %v18136_v29 = vmax.f32 %v15831_v58, 0.0  ;;  %v7294_v44 = vadd.s32 %v7290_v43, %v7266_v10  ;;  %v6360_v54 = vrot.slane %v15757_v13, 4  ;;  %v18137_v36 = vrot.slane %v15516_v24, 1 }
 0x595   : >> { %v7159_v55 = vmax.f32 %v15841_v8, 0.0  ;;  %v7295_v27 = vadd.s32 %v7291_v0, %v7267_v6  ;;  %v18138_v56 = vmax.f32 %v15834_v35, 0.0  ;;  %v7296_v38 = vadd.s32 %v7292_v45, %v7268_v62 }
 0x596   : >> { %v7187_v22 = vadd.f32 %v7186_v7, %v18136_v29  ;;  %v6678_v53 = vadd.s32 %v18137_v36, %v15516_v24  ;;  %v7297_v40 = vadd.s32 %v7293_v26, %v7268_v62  ;;  %v7298_v23 = vadd.s32 %v7294_v44, %v7268_v62 }
 0x597   : >> { %v16005_v34 = vadd.f32 %v15769_v47, %v15265_v52  ;;  %v6779_v58 = vadd.f32 %v15782_v37, %v15536_v51  ;;  %v18139_v24 = vrot.slane %v15744_v59, 2  ;;  %v6987_v8 = vadd.f32 %v6986_v48, %v15786_v2 }
 0x598   : >> { %v7188_v50 = vadd.f32 %v7187_v22, %v18138_v56  ;;  %v16017_v20 = vadd.s32 %v7095_v12, %v15856_v19  ;;  %v7160_v5 = vmax.f32 %v15844_v21, 0.0  ;;  %v16021_v47 = vadd.f32 %v6360_v54, %v15757_v13  ;;  %v18140_v22 = vld [vmem:[#allocation48_spill] sm:$0xff]  ;;  %v18141_v54 = vld [vmem:[#allocation13_spill] sm:$0xff]  ;;  %v18157_v19 = vld [vmem:[#allocation42_spill] sm:$0xff] }
 0x599   : >> { %v16012_v61 = vadd.s32 %v18139_v24, %v15744_v59  ;;  %v16024_v37 = vadd.s32 %v6678_v53, %v15761_v3  ;;  %v7161_v1 = vmax.f32 %v15847_v25, 0.0  ;;  %v7299_v59 = vadd.s32 %v7295_v27, %v7268_v62  ;;  %v18142_v53 = vld [vmem:[#allocation43_spill] sm:$0xff] }
 0x59a   : >> { %v7189_v52 = vadd.f32 %v7188_v50, %v7158_v17  ;;  %v7300_v57 = vadd.s32 %v7296_v38, %v7268_v62  ;;  %v7301_v10 = vadd.s32 %v7297_v40, %v7268_v62  ;;  %v7302_v30 = vadd.s32 %v7298_v23, %v7268_v62  ;;  %v18143_v40 = vld [vmem:[#allocation190_spill] sm:$0xff] }
 0x59b   : >> { %v16030_v14 = vadd.f32 %v6779_v58, %v15536_v51  ;;  %v6988_v13 = vadd.f32 %v6987_v8, %v15786_v2  ;;  %v7162_v48 = vmax.f32 %v15850_v42, 0.0  ;;  %v7163_v25 = vmax.f32 %v15853_v33, 0.0  ;;  %v18144_v58 = vld [vmem:[#allocation72_spill] sm:$0xff] }
 0x59c   : >> { %v7190_v28 = vadd.f32 %v7189_v52, %v7159_v55  ;;  %v7164_v7 = vmax.f32 %v15859_v16, 0.0  ;;  %v7165_v6 = vmax.f32 %v15862_v11, 0.0  ;;  %v16040_v43 = vsub.f32 %v7963_v63, %v14116_v31  ;;  %v18145_v8 = vld [vmem:[#allocation68_spill] sm:$0xff]  ;;  %v18146_v52 = vld [vmem:[#allocation70_spill] sm:$0xff] }
 0x59d   : >> { %v16043_v62 = vsub.f32 %v7963_v63, %v17994_v18  ;;  %v16046_v0 = vmax.f32 %v15864_v46, 0.0  ;;  %v7303_v26 = vadd.s32 %v7300_v57, %v7299_v59  ;;  %v7304_v12 = vadd.s32 %v7302_v30, %v7301_v10  ;;  %v18147_v59 = vld [vmem:[#allocation125_spill] sm:$0xff]  ;;  %v18148_v30 = vld [vmem:[#allocation80_spill] sm:$0xff] }
 0x59e   : >> { %v7191_v60 = vadd.f32 %v7190_v28, %v7160_v5  ;;  %v16049_v42 = vadd.f32 %v6988_v13, %v15786_v2  ;;  %v16052_v33 = vsub.f32 %v7963_v63, %v17974_v15  ;;  %v16055_v16 = vsub.f32 %v7963_v63, %v14162_v41 }
 0x59f   : >> { %v16058_v11 = vsub.f32 %v7963_v63, %v13558_v32  ;;  %v16061_v29 = vsub.f32 %v7963_v63, %v14188_v49  ;;  %v16064_v46 = vsub.f32 %v7963_v63, %v17975_v9  ;;  %v16067_v44 = vsub.f32 %v7963_v63, %v18140_v22 }
 0x5a0   : >> { %v7192_v45 = vadd.f32 %v7191_v60, %v7161_v1  ;;  %v16070_v36 = vsub.f32 %v7963_v63, %v18141_v54  ;;  %v16073_v55 = vsub.f32 %v7963_v63, %v18142_v53  ;;  %v7352_v27 = vmax.f32 %v16040_v43, 0.0  ;;  %v18150_v60 = vld [vmem:[#allocation86_spill] sm:$0xff] }
 0x5a1   : >> { %v7353_v56 = vmax.f32 %v16043_v62, 0.0  ;;  %v7305_v38 = vadd.s32 %v7304_v12, %v7303_v26  ;;  %v16078_v23 = vsub.f32 %v7963_v63, %v18143_v40  ;;  %v16081_v24 = vsub.f32 %v7963_v63, %v18144_v58  ;;  %v18151_v26 = vld [vmem:[#allocation155_spill] sm:$0xff] }
 0x5a2   : >> { %v7193_v17 = vadd.f32 %v7192_v45, %v7162_v48  ;;  %v16084_v5 = vsub.f32 %v7963_v63, %v18145_v8  ;;  %v16087_v1 = vsub.f32 %v7963_v63, %v18146_v52  ;;  %v16090_v28 = vsub.f32 %v7963_v63, %v18147_v59  ;;  %v18149_v48 = vld [vmem:[#allocation146_spill] sm:$0xff]  ;;  %v18154_v8 = vld [vmem:[#allocation51_spill] sm:$0xff]  ;;  %v18155_v59 = vld [vmem:[#allocation136_spill] sm:$0xff] }
 0x5a3   : >> { %v7354_v57 = vmax.f32 %v16052_v33, 0.0  ;;  %v16094_v13 = vsub.f32 %v7963_v63, %v18148_v30  ;;  %v16100_v45 = vsub.f32 %v7963_v63, %v18150_v60  ;;  %v16103_v12 = vsub.f32 %v7963_v63, %v18151_v26 }
 0x5a4   : >> { %v7194_v50 = vadd.f32 %v7193_v17, %v7163_v25  ;;  %v16097_v25 = vsub.f32 %v7963_v63, %v18149_v48  ;;  %v18152_v17 = vld [vmem:[#allocation47_spill] sm:$0xff]  ;;  %v7355_v54 = vmax.f32 %v16055_v16, 0.0  ;;  %v7384_v53 = vadd.f32 %v7353_v56, %v7352_v27  ;;  %v18156_v48 = vld [vmem:[#allocation170_spill] sm:$0xff] }
 0x5a5   : >> { %v16106_v22 = vsub.f32 %v7963_v63, %v18152_v17  ;;  %v16113_v52 = vsub.f32 %v7963_v63, %v18154_v8  ;;  %v16116_v30 = vsub.f32 %v7963_v63, %v18155_v59  ;;  %v16119_v60 = vsub.f32 %v7963_v63, %v18156_v48 }
 0x5a6   : >> { %v7195_v10 = vadd.f32 %v7194_v50, %v7164_v7  ;;  %v7306_v7 = vrot.slane %v7305_v38, 4  ;;  %v18153_v50 = vld [vmem:[#allocation37_spill] sm:$0xff]  ;;  %v7356_v26 = vmax.f32 %v16058_v11, 0.0  ;;  %v7385_v17 = vadd.f32 %v7384_v53, %v7354_v57 }
 0x5a7   : >> { %v16110_v58 = vsub.f32 %v7963_v63, %v18153_v50  ;;  %v16123_v35 = vsub.f32 %v7963_v63, %v18157_v19  ;;  %v7357_v27 = vmax.f32 %v16061_v29, 0.0  ;;  %v7358_v56 = vmax.f32 %v16064_v46, 0.0 }
 0x5a8   : >> { %v7196_v40 = vadd.f32 %v7195_v10, %v7165_v6  ;;  %v16125_v6 = vadd.f32 -1e+30, %v7963_v63  ;;  %v7359_v50 = vmax.f32 %v16067_v44, 0.0  ;;  %v7360_v8 = vmax.f32 %v16070_v36, 0.0 }
 0x5a9   : >> { %v7386_v59 = vadd.f32 %v7385_v17, %v7355_v54  ;;  %v16132_v48 = vadd.s32 %v7306_v7, %v7305_v38  ;;  %v7361_v57 = vmax.f32 %v16073_v55, 0.0  ;;  %v7362_v19 = vmax.f32 %v16078_v23, 0.0 }
 0x5aa   : >> { %v7197_v10 = vadd.f32 %v7196_v40, %v16046_v0  ;;  %v7363_v63 = vmax.f32 %v16081_v24, 0.0  ;;  %v7364_v53 = vmax.f32 %v16084_v5, 0.0  ;;  %v7365_v21 = vmax.f32 %v16087_v1, 0.0 }
 0x5ab   : >> { %v7366_v3 = vmax.f32 %v16090_v28, 0.0  ;;  %v7387_v40 = vadd.f32 %v7386_v59, %v7356_v26  ;;  %vm7422_vm6 = vcmp.gt.f32.partialorder %v16040_v43, 0.0  ;;  %vm7438_vm8 = vcmp.gt.f32.partialorder %v16097_v25, 0.0 }
 0x5ac   : >> { %v7198_v38 = vadd.f32 %v7197_v10, %v16046_v0  ;;  %vm7439_vm13 = vcmp.gt.f32.partialorder %v16100_v45, 0.0  ;;  %vm7440_vm7 = vcmp.gt.f32.partialorder %v16103_v12, 0.0  ;;  %vm7443_vm9 = vcmp.gt.f32.partialorder %v16113_v52, 0.0 }
 0x5ad   : >> { %v7388_v54 = vadd.f32 %v7387_v40, %v7357_v27  ;;  %vm7445_vm11 = vcmp.gt.f32.partialorder %v16119_v60, 0.0  ;;  %vm18158_vm14 = vcmp.gt.f32.partialorder %v16043_v62, 0.0  ;;  %vm18159_vm4 = vcmp.gt.f32.partialorder %v16052_v33, 0.0 }
 0x5ae   : >> { %v16159_v26 = vadd.f32 %v7198_v38, %v16046_v0  ;;  %v7455_v10 = vsel %vm18158_vm14, 1, %v18000_v39  ;;  %vm18160_vm3 = vcmp.gt.f32.partialorder %v16055_v16, 0.0  ;;  %vm18161_vm15 = vcmp.gt.f32.partialorder %v16058_v11, 0.0 }
 0x5af   : >> { %v7389_v7 = vadd.f32 %v7388_v54, %v7358_v56  ;;  %v7454_v56 = vsel %vm7422_vm6, 1, %v18000_v39  ;;  %v7458_v40 = vsel %vm18161_vm15, 1, %v18000_v39  ;;  %vm18162_vm6 = vcmp.gt.f32.partialorder %v16061_v29, 0.0 }
 0x5b0   : >> { %v7459_v43 = vsel %vm18162_vm6, 1, %v18000_v39  ;;  %vm18163_vm14 = vcmp.gt.f32.partialorder %v16064_v46, 0.0  ;;  %vm18166_vm1 = vcmp.gt.f32.partialorder %v16073_v55, 0.0  ;;  %vm18167_vm15 = vcmp.gt.f32.partialorder %v16078_v23, 0.0 }
 0x5b1   : >> { %v7390_v17 = vadd.f32 %v7389_v7, %v7359_v50  ;;  %v7456_v50 = vsel %vm18159_vm4, 1, %v18000_v39  ;;  %v7460_v62 = vsel %vm18163_vm14, 1, %v18000_v39  ;;  %vm18164_vm4 = vcmp.gt.f32.partialorder %v16067_v44, 0.0 }
 0x5b2   : >> { %v7461_v33 = vsel %vm18164_vm4, 1, %v18000_v39  ;;  %v7463_v11 = vsel %vm18166_vm1, 1, %v18000_v39  ;;  %v7464_v29 = vsel %vm18167_vm15, 1, %v18000_v39  ;;  %vm18168_vm6 = vcmp.gt.f32.partialorder %v16081_v24, 0.0 }
 0x5b3   : >> { %v7391_v27 = vadd.f32 %v7390_v17, %v7360_v8  ;;  %v7457_v8 = vsel %vm18160_vm3, 1, %v18000_v39  ;;  %vm18165_vm3 = vcmp.gt.f32.partialorder %v16070_v36, 0.0  ;;  %v7465_v46 = vsel %vm18168_vm6, 1, %v18000_v39 }
 0x5b4   : >> { %v7462_v16 = vsel %vm18165_vm3, 1, %v18000_v39  ;;  %vm18169_vm14 = vcmp.gt.f32.partialorder %v16084_v5, 0.0  ;;  %vm18170_vm4 = vcmp.gt.f32.partialorder %v16087_v1, 0.0  ;;  %vm18171_vm1 = vcmp.gt.f32.partialorder %v16090_v28, 0.0 }
 0x5b5   : >> { %v7392_v59 = vadd.f32 %v7391_v27, %v7361_v57  ;;  %v7466_v44 = vsel %vm18169_vm14, 1, %v18000_v39  ;;  %v7467_v36 = vsel %vm18170_vm4, 1, %v18000_v39  ;;  %v7468_v55 = vsel %vm18171_vm1, 1, %v18000_v39 }
 0x5b6   : >> { %v7486_v38 = vadd.s32 %v7458_v40, %v7454_v56  ;;  %v7487_v23 = vadd.s32 %v7459_v43, %v7455_v10  ;;  %v7488_v54 = vadd.s32 %v7460_v62, %v7456_v50  ;;  %vm18172_vm3 = vcmp.gt.f32.partialorder %v16094_v13, 0.0 }
 0x5b7   : >> { %v7393_v57 = vadd.f32 %v7392_v59, %v7362_v19  ;;  %v7469_v24 = vsel %vm18172_vm3, 1, %v18000_v39  ;;  %v7470_v7 = vsel %vm7438_vm8, 1, %v18000_v39  ;;  %v7489_v17 = vadd.s32 %v7461_v33, %v7457_v8 }
 0x5b8   : >> { %v7471_v27 = vsel %vm7439_vm13, 1, %v18000_v39  ;;  %v7490_v59 = vadd.s32 %v7486_v38, %v7462_v16  ;;  %v7491_v15 = vadd.s32 %v7487_v23, %v7463_v11  ;;  %v7492_v9 = vadd.s32 %v7488_v54, %v7464_v29 }
 0x5b9   : >> { %v7394_v19 = vadd.f32 %v7393_v57, %v7363_v63  ;;  %v7472_v63 = vsel %vm7440_vm7, 1, %v18000_v39  ;;  %vm18173_vm15 = vcmp.gt.f32.partialorder %v16106_v22, 0.0  ;;  %v7493_v50 = vadd.s32 %v7489_v17, %v7465_v46 }
 0x5ba   : >> { %v7473_v10 = vsel %vm18173_vm15, 1, %v18000_v39  ;;  %vm18174_vm8 = vcmp.gt.f32.partialorder %v16110_v58, 0.0  ;;  %v7494_v40 = vadd.s32 %v7490_v59, %v7466_v44  ;;  %v7495_v43 = vadd.s32 %v7491_v15, %v7467_v36 }
 0x5bb   : >> { %v7395_v56 = vadd.f32 %v7394_v19, %v7364_v53  ;;  %v7474_v8 = vsel %vm18174_vm8, 1, %v18000_v39  ;;  %v7496_v62 = vadd.s32 %v7492_v9, %v7468_v55  ;;  %v7475_v53 = vsel %vm7443_vm9, 1, %v18000_v39 }
 0x5bc   : >> { %vm18175_vm13 = vcmp.gt.f32.partialorder %v16116_v30, 0.0  ;;  %v7497_v16 = vadd.s32 %v7493_v50, %v7469_v24  ;;  %v7477_v11 = vsel %vm7445_vm11, 1, %v18000_v39  ;;  %v7498_v29 = vadd.s32 %v7494_v40, %v7470_v7 }
 0x5bd   : >> { %v7396_v5 = vadd.f32 %v7395_v56, %v7365_v21  ;;  %v7476_v33 = vsel %vm18175_vm13, 1, %v18000_v39  ;;  %v7499_v57 = vadd.s32 %v7495_v43, %v7471_v27  ;;  %v7500_v15 = vadd.s32 %v7496_v62, %v7472_v63 }
 0x5be   : >> { %vm18176_vm7 = vcmp.gt.f32.partialorder %v16123_v35, 0.0  ;;  %vm18177_vm9 = vcmp.gt.f32.partialorder %v16125_v6, 0.0  ;;  %v7501_v46 = vadd.s32 %v7497_v16, %v7473_v10  ;;  %v18178_v44 = vrot.slane %v16017_v20, 2 }
 0x5bf   : >> { %v7397_v9 = vadd.f32 %v7396_v5, %v7366_v3  ;;  %v7478_v21 = vsel %vm18176_vm7, 1, %v18000_v39  ;;  %v7479_v1 = vsel %vm18177_vm9, 1, %v18000_v39  ;;  %v7502_v55 = vadd.s32 %v7498_v29, %v7474_v8  ;;  %v18182_v29 = vld [vmem:[#allocation199_spill] sm:$0xff] }
 0x5c0   : >> { %v7098_v36 = vadd.s32 %v18178_v44, %v16017_v20  ;;  %v7503_v38 = vadd.s32 %v7499_v57, %v7475_v53  ;;  %v7504_v23 = vadd.s32 %v7500_v15, %v7476_v33  ;;  %v6990_v28 = vadd.f32 %v16049_v42, %v15786_v2 }
 0x5c1   : >> { %v7369_v3 = vmax.f32 %v16100_v45, 0.0  ;;  %v18179_v54 = vmax.f32 %v16094_v13, 0.0  ;;  %v7505_v24 = vadd.s32 %v7501_v46, %v7477_v11  ;;  %v7308_v7 = vrot.slane %v16132_v48, 2 }
 0x5c2   : >> { %v7506_v39 = vadd.s32 %v7502_v55, %v7478_v21  ;;  %v7507_v17 = vadd.s32 %v7503_v38, %v7479_v1  ;;  %v7508_v27 = vadd.s32 %v7504_v23, %v7479_v1  ;;  %v7200_v20 = vadd.f32 %v16159_v26, %v16046_v0 }
 0x5c3   : >> { %v7398_v19 = vadd.f32 %v7397_v9, %v18179_v54  ;;  %v7370_v59 = vmax.f32 %v16103_v12, 0.0  ;;  %v18180_v56 = vmax.f32 %v16097_v25, 0.0  ;;  %v7509_v42 = vadd.s32 %v7505_v24, %v7479_v1 }
 0x5c4   : >> { %v18181_v45 = vrot.slane %v16012_v61, 1  ;;  %v7510_v10 = vadd.s32 %v7506_v39, %v7479_v1  ;;  %v7511_v50 = vadd.s32 %v7507_v17, %v7479_v1  ;;  %v7512_v8 = vadd.s32 %v7508_v27, %v7479_v1 }
 0x5c5   : >> { %v7399_v63 = vadd.f32 %v7398_v19, %v18180_v56  ;;  %v6781_v40 = vadd.f32 %v16030_v14, %v15536_v51  ;;  %v7371_v43 = vmax.f32 %v16106_v22, 0.0  ;;  %v7513_v26 = vadd.s32 %v7509_v42, %v7479_v1  ;;  %v18185_v56 = vld [vmem:[#allocation200_spill] sm:$0xff] }
 0x5c6   : >> { %v6889_v13 = vadd.s32 %v18181_v45, %v16012_v61  ;;  %v6991_v12 = vadd.f32 %v6990_v28, %v15786_v2  ;;  %v7099_v5 = vrot.slane %v7098_v36, 1  ;;  %v7372_v25 = vmax.f32 %v16110_v58, 0.0 }
 0x5c7   : >> { %v7400_v62 = vadd.f32 %v7399_v63, %v7369_v3  ;;  %v7514_v53 = vadd.s32 %v7511_v50, %v7510_v10  ;;  %v7201_v33 = vadd.f32 %v7200_v20, %v16046_v0  ;;  %v7309_v61 = vadd.s32 %v7308_v7, %v16132_v48 }
 0x5c8   : >> { %v7515_v11 = vadd.s32 %v7513_v26, %v7512_v8  ;;  %v5942_v57 = vrot.slane %v18182_v29, 1  ;;  %v18183_v51 = vrot.slane %v15753_v4, 2  ;;  %v6362_v22 = vrot.slane %v16021_v47, 2 }
 0x5c9   : >> { %v7401_v16 = vadd.f32 %v7400_v62, %v7370_v59  ;;  %v18184_v15 = vrot.slane %v16005_v34, 4  ;;  %v6890_v58 = vadd.s32 %v6889_v13, %v16024_v37  ;;  %v7373_v21 = vmax.f32 %v16113_v52, 0.0 }
 0x5ca   : >> { %v6152_v14 = vadd.f32 %v18183_v51, %v15753_v4  ;;  %v7516_v48 = vadd.s32 %v7515_v11, %v7514_v53  ;;  %v6782_v46 = vrot.slane %v6781_v40, 4  ;;  %v6992_v44 = vadd.f32 %v6991_v12, %v15786_v2 }
 0x5cb   : >> { %v6572_v9 = vadd.f32 %v18184_v15, %v16005_v34  ;;  %v7402_v1 = vadd.f32 %v7401_v16, %v7371_v43  ;;  %v7100_v55 = vadd.s32 %v7099_v5, %v7098_v36  ;;  %v7374_v38 = vmax.f32 %v16116_v30, 0.0 }
 0x5cc   : >> { %v7202_v4 = vadd.f32 %v7201_v33, %v16046_v0  ;;  %v7310_v23 = vrot.slane %v7309_v61, 1  ;;  %v7517_v3 = vrot.slane %v7516_v48, 4  ;;  %v5943_v54 = vadd.f32 %v5942_v57, %v18182_v29 }
 0x5cd   : >> { %v7403_v28 = vadd.f32 %v7402_v1, %v7372_v25  ;;  %v6153_v34 = vrot.slane %v6152_v14, 1  ;;  %v6363_v37 = vadd.f32 %v6362_v22, %v16021_v47  ;;  %v6573_v19 = vrot.slane %v6572_v9, 2 }
 0x5ce   : >> { %v7375_v52 = vmax.f32 %v16119_v60, 0.0  ;;  %v7518_v7 = vadd.s32 %v7517_v3, %v7516_v48  ;;  %v6783_v39 = vadd.f32 %v6782_v46, %v6781_v40  ;;  %v6993_v2 = vrot.slane %v6992_v44, 4 }
 0x5cf   : >> { %v7404_v24 = vadd.f32 %v7403_v28, %v7373_v21  ;;  %v7101_v36 = vadd.s32 %v7100_v55, %v6890_v58  ;;  %v7376_v30 = vmax.f32 %v16123_v35, 0.0  ;;  %v7203_v17 = vadd.f32 %v7202_v4, %v16046_v0 }
 0x5d0   : >> { %v7311_v27 = vadd.s32 %v7310_v23, %v7309_v61  ;;  %v7519_v59 = vrot.slane %v7518_v7, 2  ;;  %v5944_v63 = vadd.f32 %v18185_v56, %v5943_v54  ;;  %v6154_v42 = vadd.f32 %v6153_v34, %v6152_v14  ;;  %v18196_v56 = vld [vmem:[#allocation39_spill] sm:$0xff] (%p5830_p0) }
 0x5d1   : >> { %v7405_v20 = vadd.f32 %v7404_v24, %v7374_v38  ;;  %v7377_v47 = vmax.f32 %v16125_v6, 0.0  ;;  %v6364_v60 = vrot.slane %v6363_v37, 1  ;;  %v6574_v10 = vadd.f32 %v6573_v19, %v6572_v9 }
 0x5d2   : >> { %v7520_v13 = vadd.s32 %v7519_v59, %v7518_v7  ;;  %v6784_v50 = vrot.slane %v6783_v39, 2  ;;  %v6994_v8 = vadd.f32 %v6993_v2, %v6992_v44  ;;  %v7204_v40 = vrot.slane %v7203_v17, 4 }
 0x5d3   : >> { %v7406_v45 = vadd.f32 %v7405_v20, %v7375_v52  ;;  %v7312_v43 = vadd.s32 %v7311_v27, %v7101_v36  ;;  %v6155_v12 = vadd.f32 %v6154_v42, %v5944_v63  ;;  %v6365_v5 = vadd.f32 %v6364_v60, %v6363_v37  ;;  %v18194_v20 = vld [vmem:[#allocation149_spill] sm:$0xff] (%p5830_p0) }
 0x5d4   : >> { %v7521_v35 = vrot.slane %v7520_v13, 1  ;;  %v6575_v25 = vrot.slane %v6574_v10, 1  ;;  %v6785_v53 = vadd.f32 %v6784_v50, %v6783_v39  ;;  %v6995_v33 = vrot.slane %v6994_v8, 2  ;;  %v18198_v42 = vld [vmem:[#allocation65_spill] sm:$0xff] (%p5830_p0) }
 0x5d5   : >> { %v7407_v62 = vadd.f32 %v7406_v45, %v7376_v30  ;;  %v7205_v61 = vadd.f32 %v7204_v40, %v7203_v17  ;;  %v6366_v29 = vadd.f32 %v6365_v5, %v6155_v12  ;;  %v18188_v39 = vmov (%p5830_p0), 0   ;;  %v18200_v45 = vld [vmem:[#allocation185_spill] sm:$0xff] (%p5830_p0) }
 0x5d6   : >> { %v7522_v0 = vadd.s32 %v7521_v35, %v7520_v13  ;;  %v6576_v57 = vadd.f32 %v6575_v25, %v6574_v10  ;;  %v6786_v51 = vrot.slane %v6785_v53, 1  ;;  %v6996_v14 = vadd.f32 %v6995_v33, %v6994_v8 }
 0x5d7   : >> { %v7408_v26 = vadd.f32 %v7407_v62, %v7377_v47  ;;  %v7206_v22 = vrot.slane %v7205_v61, 2  ;;  %v7524_v31 = vsel (%p5830_p0), %vm14095_vm12, 1, %v18188_v39  ;;  %v7525_v49 = vsel (%p5830_p0), %vm13467_vm5, 1, %v18188_v39 }
 0x5d8   : >> { %v7523_v6 = vadd.s32 %v7522_v0, %v7312_v43   ;;  %v6577_v58 = vadd.f32 %v6576_v57, %v6366_v29  ;;  %v6787_v21 = vadd.f32 %v6786_v51, %v6785_v53  ;;  %v6997_v1 = vrot.slane %v6996_v14, 1 }
 0x5d9   : >> { %v7409_v16 = vadd.f32 %v7408_v26, %v7377_v47  ;;  %v7207_v48 = vadd.f32 %v7206_v22, %v7205_v61  ;;  %v7526_v2 = vsel (%p5830_p0), %vm14120_vm0, 1, %v18188_v39  ;;  %v7528_v30 = vsel (%p5830_p0), %vm13519_vm2, 1, %v18188_v39 }
 0x5da   : >> { %v6788_v55 = vadd.f32 %v6787_v21, %v6577_v58  ;;  %v6998_v38 = vadd.f32 %v6997_v1, %v6996_v14  ;;  %v18186_v36 = vmov %v7523_v6  ;;  %7663 = vst [vmem:[%s389_s19] sm:$0x1] (%p5830_p0), %v7523_v6  ;;  %v7529_v27 = vsel (%p5830_p0), %vm14169_vm10, 1, %v18188_v39  ;;  %s8383_s19 = scalar_lea.vmem (%p5830_p0), %s8382_s9, 32 }
 0x5db   : >> { %v7410_v11 = vadd.f32 %v7409_v16, %v7377_v47  ;;  %v7208_v4 = vrot.slane %v7207_v48, 1  ;;  %vm18195_vm12 = vnez (%p5830_p0), %v18194_v20  ;;  %vm18197_vm5 = vnez (%p5830_p0), %v18196_v56  ;;  %p8385_p5 = scmp.lt.s32.totalorder (%p5830_p0), %s8383_s19, %s8377_s13 }
 0x5dc   : >> { %v6999_v3 = vadd.f32 %v6998_v38, %v6788_v55  ;;  %v7530_v59 = vsel (%p5830_p0), %vm18195_vm12, 1, %v18188_v39  ;;  %v7527_v63 = vsel (%p5830_p0), %vm18197_vm5, 1, %v18188_v39  ;;  %vm18199_vm2 = vnez (%p5830_p0), %v18198_v42 }
 0x5dd   : >> { %v7411_v15 = vadd.f32 %v7410_v11, %v7377_v47  ;;  %v7209_v54 = vadd.f32 %v7208_v4, %v7207_v48  ;;  %vm18201_vm10 = vnez (%p5830_p0), %v18200_v45  ;;  %p8386_p7 = por (%p5830_p0), %p8385_p5, %p8384_p4 }
 0x5de   : > { %v16358_v13 = vsel (%p5830_p0), %vm18201_vm10, 1, %v18188_v39 }
 0x5df   : >> { %v7412_v9 = vadd.f32 %v7411_v15, %v7377_v47  ;;  %v7210_v19 = vadd.f32 %v7209_v54, %v6999_v3  ;;  %p8387_p10 = pnand (%p5830_p0), %p8386_p7, %p8380_p3 }
 0x5e1   : >> { %v7413_v46 = vadd.f32 %v7412_v9, %v7377_v47 }
 0x5e3   : >> { %v7414_v44 = vadd.f32 %v7413_v46, %v7377_v47  ;;  %v7531_v47 = vsel (%p5830_p0), %vm18199_vm2, 1, %v18188_v39 }
 0x5e5   : >> { %v7415_v23 = vrot.slane %v7414_v44, 4 }
 0x5e7   : >> { %v7416_v28 = vadd.f32 %v7415_v23, %v7414_v44 }
 0x5e9   : >> { %v7417_v34 = vrot.slane %v7416_v28, 2 }
 0x5eb   : >> { %v7418_v37 = vadd.f32 %v7417_v34, %v7416_v28 }
 0x5ed   : >> { %v7419_v52 = vrot.slane %v7418_v37, 1  ;;  %5832 = sbr.rel (!%p5830_p0) target bundleno = 1134 (0x46e), region = 178 }
 0x5ef   : >> { %v7420_v24 = vadd.f32 %v7419_v52, %v7418_v37 }
 0x5f1   : >> { %v7421_v7 = vadd.f32 %v7420_v24, %v7210_v19  }
 0x5f3   : >> { %v18187_v35 = vmov %v7421_v7  ;;  %7662 = vst [vmem:[%s16803_s22] sm:$0x1] (%p5830_p0), %v7421_v7 }
 0x5f4   : > { %8390 = shalt.err (!%p8387_p10)
}
 0x5f5   : > { %s8391_s25 = scalar_lea.hbm %s16319_s18, 16  ;;  %s8395_s17 = scalar_lea.hbm %s16589_s7, 32 }
 0x5f6   : > { %p8392_p11 = scmp.ne.s32.totalorder %s16319_s18, %s8391_s25  ;;  %p8396_p0 = scmp.lt.u32.totalorder %s16319_s18, %s16589_s7 }
 0x5f7   : > { %p8397_p1 = scmp.lt.u32.totalorder %s8395_s17, %s8391_s25  ;;  %p8399_p3 = scmp.lt.u32.totalorder %s8391_s25, %s16319_s18 }
 0x5f8   : > { %p8393_p12 = pnand %p8392_p11, %p8619_p6 }
 0x5f9   : > { %p8398_p2 = por %p8397_p1, %p8396_p0 }
 0x5fa   : > { %p8394_p13 = pneg %p8393_p12 }
 0x5fb   : > { %p8400_p4 = por %p8399_p3, %p8398_p2 }
 0x5fd   : > { %p8401_p5 = pnand %p8400_p4, %p8394_p13 }
 0x5ff   : > { %8404 = shalt.err (!%p8401_p5)
}
 0x600   : > { %7977 = dma.vmem_to_hbm [thread:$0]  (%p8619_p6), %s16341_s21, 16, %s16319_s18, %s16360_s23   ;;  %v18202_v60 = vld [vmem:[#allocation147_spill] sm:$0xff]  ;;  %v18204_v50 = vld [vmem:[#allocation186_spill] sm:$0xff]  ;;  %v18206_v40 = vld [vmem:[#allocation164_spill] sm:$0xff]  ;;  %v7556_v12 = vadd.s32 %v7528_v30, %v7524_v31  ;;  %v7557_v5 = vadd.s32 %v7529_v27, %v7525_v49  ;;  %v7558_v25 = vadd.s32 %v7530_v59, %v7526_v2  ;;  %v7559_v29 = vadd.s32 %v7531_v47, %v7527_v63 }
 0x601   : > { %vm18203_vm0 = vnez %v18202_v60  ;;  %vm18205_vm11 = vnez %v18204_v50  ;;  %vm18207_vm6 = vnez %v18206_v40  ;;  %v18208_v62 = vld [vmem:[#allocation12_spill] sm:$0xff]  ;;  %s18210_s10 = scalar_lea.vmem [#allocation4], %s9813_s20  ;;  %v18211_v26 = vld [vmem:[#allocation138_spill] sm:$0xff]  ;;  %s7667_s12 = scalar_lea.sflag [#allocation5], %s9813_s20 }
 0x602   : > { %v7533_v10 = vsel %vm18203_vm0, 1, %v18188_v39  ;;  %v7534_v8 = vsel %vm18205_vm11, 1, %v18188_v39  ;;  %v7535_v43 = vsel %vm18207_vm6, 1, %v18188_v39  ;;  %vm18209_vm14 = vnez %v18208_v62  ;;  %s7687_s22 = sshll.u32 %s18210_s10, 4  ;;  %v18213_v53 = vld [vmem:[#allocation18_spill] sm:$0xff]  ;;  %s8533_s21 = smov [#allocation4]   ;;  %s16401_s22 = int_to_ptr.vmem [resolvable:$true] %s7687_s22 }
 0x603   : > { %v7536_v35 = vsel %vm18209_vm14, 1, %v18188_v39  ;;  %vm18212_vm4 = vnez %v18211_v26  ;;  %vm18214_vm1 = vnez %v18213_v53  ;;  %v18215_v61 = vld [vmem:[#allocation54_spill] sm:$0xff]  ;;  %s8405_s18 = scalar_lea.vmem %s16401_s22, 16  ;;  %s8409_s13 = sshll.u32 %s8533_s21, 4  ;;  %s8410_s13 = int_to_ptr.vmem [resolvable:$false] %s8409_s13 }
 0x604   : > { %v7537_v0 = vsel %vm18212_vm4, 1, %v18188_v39  ;;  %v7538_v33 = vsel %vm18214_vm1, 1, %v18188_v39  ;;  %vm18216_vm3 = vnez %v18215_v61  ;;  %v18217_v6 = vld [vmem:[#allocation38_spill] sm:$0xff]  ;;  %p8406_p7 = scmp.ne.s32.totalorder %s16401_s22, %s8405_s18  ;;  %s8411_s19 = scalar_lea.vmem %s8410_s13, 32 }
 0x605   : > { %v7539_v16 = vsel %vm18216_vm3, 1, %v18188_v39  ;;  %vm18218_vm15 = vnez %v18217_v6  ;;  %p8412_p12 = scmp.lt.s32.totalorder %s16401_s22, %s8410_s13  ;;  %p8413_p13 = scmp.lt.s32.totalorder %s8411_s19, %s8405_s18 }
 0x606   : > { %v7540_v11 = vsel %vm18218_vm15, 1, %v18188_v39  ;;  %p8407_p10 = pnand %p8406_p7, %p8619_p6 }
 0x607   : > { %p8414_p0 = por %p8413_p13, %p8412_p12 }
 0x608   : > { %p8408_p11 = pneg %p8407_p10 }
 0x60a   : > { %p8415_p1 = pnand %p8414_p0, %p8408_p11 }
 0x60c   : > { %8418 = shalt.err (!%p8415_p1)
}
 0x60d   : > { %s8419_s25 = scalar_lea.hbm %s16347_s24, 16  ;;  %s8423_s10 = scalar_lea.hbm %s16588_s6, 32 }
 0x60e   : > { %p8420_p2 = scmp.ne.s32.totalorder %s16347_s24, %s8419_s25  ;;  %p8424_p5 = scmp.lt.u32.totalorder %s16347_s24, %s16588_s6 }
 0x60f   : > { %p8425_p7 = scmp.lt.u32.totalorder %s8423_s10, %s8419_s25  ;;  %p8427_p11 = scmp.lt.u32.totalorder %s8419_s25, %s16347_s24 }
 0x610   : > { %p8421_p3 = pnand %p8420_p2, %p8619_p6 }
 0x611   : > { %p8426_p10 = por %p8425_p7, %p8424_p5 }
 0x612   : > { %p8422_p4 = pneg %p8421_p3 }
 0x613   : > { %p8428_p12 = por %p8427_p11, %p8426_p10 }
 0x615   : > { %p8429_p13 = pnand %p8428_p12, %p8422_p4 }
 0x617   : > { %8432 = shalt.err (!%p8429_p13)
}
 0x618   : > { %7976 = dma.vmem_to_hbm [thread:$0]  (%p8619_p6), %s16401_s22, 16, %s16347_s24, %s7667_s12   ;;  %v18219_v57 = vld [vmem:[#allocation83_spill] sm:$0xff]  ;;  %v7560_v14 = vadd.s32 %v7556_v12, %v16358_v13  ;;  %v7561_v22 = vadd.s32 %v7557_v5, %v7533_v10  ;;  %v7562_v15 = vadd.s32 %v7558_v25, %v7534_v8  ;;  %v18225_v48 = vld [vmem:[#allocation196_spill] sm:$0xff]  ;;  %v7563_v44 = vadd.s32 %v7559_v29, %v7535_v43  ;;  %v18233_v19 = vld [vmem:[#allocation198_spill] sm:$0xff] }
 0x619   : > { %vm18220_vm8 = vnez %v18219_v57  ;;  %v18221_v9 = vld [vmem:[#allocation139_spill] sm:$0xff]  ;;  %vm18226_vm9 = vnez %v18225_v48  ;;  %v18227_v55 = vld [vmem:[#allocation44_spill] sm:$0xff]  ;;  %vm18234_vm10 = vnez %v18233_v19  ;;  %v18235_v41 = vld [vmem:[#allocation45_spill] sm:$0xff]  ;;  %s18285_s24 = scalar_lea.vmem [#allocation8], %s9813_s20  ;;  %s16540_s19 = scalar_lea.hbm %s16590_s8, %s16313_s26 }
 0x61a   : > { %v7541_v51 = vsel %vm18220_vm8, 1, %v18188_v39  ;;  %vm18222_vm13 = vnez %v18221_v9  ;;  %v18223_v21 = vld [vmem:[#allocation135_spill] sm:$0xff]  ;;  %v7544_v46 = vsel %vm18226_vm9, 1, %v18188_v39  ;;  %vm18228_vm12 = vnez %v18227_v55  ;;  %v18229_v3 = vld [vmem:[#allocation36_spill] sm:$0xff]  ;;  %v18239_v30 = vld [vmem:[#allocation113_spill] sm:$0xff]  ;;  %s7713_s22 = sshll.u32 %s18285_s24, 4  ;;  %s18286_s25 = smov %s18285_s24  ;;  %s7714_s22 = int_to_ptr.vmem [resolvable:$true] %s7713_s22 }
 0x61b   : > { %v7542_v58 = vsel %vm18222_vm13, 1, %v18188_v39  ;;  %vm18224_vm7 = vnez %v18223_v21  ;;  %v7545_v38 = vsel %vm18228_vm12, 1, %v18188_v39  ;;  %v7564_v4 = vadd.s32 %v7560_v14, %v7536_v35  ;;  %v18231_v34 = vld [vmem:[#allocation59_spill] sm:$0xff]  ;;  %v18241_v27 = vld [vmem:[#allocation25_spill] sm:$0xff]  ;;  %v18249_v8 = vld [vmem:[#allocation142_spill] sm:$0xff]  ;;  %s8433_s17 = scalar_lea.vmem %s7714_s22, 16 }
 0x61c   : > { %v7543_v1 = vsel %vm18224_vm7, 1, %v18188_v39  ;;  %v7565_v23 = vadd.s32 %v7561_v22, %v7537_v0  ;;  %v7566_v28 = vadd.s32 %v7562_v15, %v7538_v33  ;;  %vm18230_vm5 = vnez %v18229_v3  ;;  %v18237_v2 = vld [vmem:[#allocation131_spill] sm:$0xff]  ;;  %v18243_v42 = vld [vmem:[#allocation33_spill] sm:$0xff]  ;;  %v18251_v62 = vld [vmem:[#allocation56_spill] sm:$0xff]  ;;  %p8434_p0 = scmp.ne.s32.totalorder %s7714_s22, %s8433_s17  ;;  %s8534_s9 = smov [#allocation8]  }
 0x61d   : > { %v7546_v54 = vsel %vm18230_vm5, 1, %v18188_v39  ;;  %vm18232_vm2 = vnez %v18231_v34  ;;  %v7548_v52 = vsel %vm18234_vm10, 1, %v18188_v39  ;;  %v7567_v24 = vadd.s32 %v7563_v44, %v7539_v16  ;;  %v18245_v13 = vld [vmem:[#allocation11_spill] sm:$0xff]  ;;  %v18247_v10 = vld [vmem:[#allocation133_spill] sm:$0xff]  ;;  %v18257_v53 = vld [vmem:[#allocation50_spill] sm:$0xff]  ;;  %s8437_s10 = sshll.u32 %s8534_s9, 4  ;;  %s8438_s10 = int_to_ptr.vmem [resolvable:$false] %s8437_s10 }
 0x61e   : > { %v7547_v37 = vsel %vm18232_vm2, 1, %v18188_v39  ;;  %v7568_v7 = vadd.s32 %v7564_v4, %v7540_v11  ;;  %v7569_v32 = vadd.s32 %v7565_v23, %v7541_v51  ;;  %v7570_v31 = vadd.s32 %v7566_v28, %v7542_v58  ;;  %v18253_v26 = vld [vmem:[#allocation175_spill] sm:$0xff]  ;;  %v18259_v61 = vld [vmem:[#allocation193_spill] sm:$0xff]  ;;  %v18261_v6 = vld [vmem:[#allocation74_spill] sm:$0xff]  ;;  %p8435_p1 = pnand %p8434_p0, %p8619_p6  ;;  %s8439_s21 = scalar_lea.vmem %s8438_s10, 32 }
 0x61f   : > { %vm18236_vm0 = vnez %v18235_v41  ;;  %v7571_v18 = vadd.s32 %v7567_v24, %v7543_v1  ;;  %vm18238_vm11 = vnez %v18237_v2  ;;  %vm18240_vm6 = vnez %v18239_v30  ;;  %v18255_v12 = vld [vmem:[#allocation27_spill] sm:$0xff]  ;;  %v18265_v9 = vld [vmem:[#allocation148_spill] sm:$0xff]  ;;  %v18267_v21 = vld [vmem:[#allocation194_spill] sm:$0xff]  ;;  %p8440_p3 = scmp.lt.s32.totalorder %s7714_s22, %s8438_s10  ;;  %p8441_p4 = scmp.lt.s32.totalorder %s8439_s21, %s8433_s17 }
 0x620   : > { %v7593_v49 = vsel %vm18236_vm0, 1, %v18188_v39  ;;  %v7594_v36 = vsel %vm18238_vm11, 1, %v18188_v39  ;;  %v7595_v17 = vsel %vm18240_vm6, 1, %v18188_v39  ;;  %vm18242_vm14 = vnez %v18241_v27  ;;  %v18263_v22 = vld [vmem:[#allocation195_spill] sm:$0xff]  ;;  %v18269_v4 = vld [vmem:[#allocation166_spill] sm:$0xff]  ;;  %v18277_v41 = vld [vmem:[#allocation49_spill] sm:$0xff]  ;;  %p8436_p2 = pneg %p8435_p1 }
 0x621   : > { %v7596_v20 = vsel %vm18242_vm14, 1, %v18188_v39  ;;  %v7572_v59 = vadd.s32 %v7568_v7, %v7544_v46  ;;  %v7573_v56 = vadd.s32 %v7569_v32, %v7545_v38  ;;  %v7574_v63 = vadd.s32 %v7570_v31, %v7546_v54  ;;  %v18271_v28 = vld [vmem:[#allocation35_spill] sm:$0xff]  ;;  %v18273_v54 = vld [vmem:[#allocation76_spill] sm:$0xff]  ;;  %v18275_v32 = vld [vmem:[#allocation137_spill] sm:$0xff]  ;;  %p8442_p5 = por %p8441_p4, %p8440_p3 }
 0x622   : > { %vm18244_vm4 = vnez %v18243_v42  ;;  %v7575_v45 = vadd.s32 %v7571_v18, %v7547_v37  ;;  %vm18246_vm1 = vnez %v18245_v13  ;;  %vm18248_vm3 = vnez %v18247_v10  ;;  %v18279_v18 = vld [vmem:[#allocation41_spill] sm:$0xff]  ;;  %v18281_v30 = vld [vmem:[#allocation88_spill] sm:$0xff] }
 0x623   : > { %v7597_v47 = vsel %vm18244_vm4, 1, %v18188_v39  ;;  %v7598_v60 = vsel %vm18246_vm1, 1, %v18188_v39  ;;  %v7599_v50 = vsel %vm18248_vm3, 1, %v18188_v39  ;;  %vm18250_vm15 = vnez %v18249_v8  ;;  %p8443_p7 = pnand %p8442_p5, %p8436_p2 }
 0x624   : > { %v7600_v40 = vsel %vm18250_vm15, 1, %v18188_v39  ;;  %v7576_v43 = vadd.s32 %v7572_v59, %v7548_v52  ;;  %vm18252_vm8 = vnez %v18251_v62  ;;  %vm18254_vm13 = vnez %v18253_v26 }
 0x625   : > { %v7601_v35 = vsel %vm18252_vm8, 1, %v18188_v39  ;;  %v7602_v0 = vsel %vm18254_vm13, 1, %v18188_v39  ;;  %vm18256_vm7 = vnez %v18255_v12  ;;  %v7585_v25 = vadd.s32 %v7575_v45, %v7574_v63 }
 0x626   : > { %v7603_v5 = vsel %vm18256_vm7, 1, %v18188_v39  ;;  %vm18258_vm9 = vnez %v18257_v53  ;;  %vm18260_vm12 = vnez %v18259_v61  ;;  %vm18262_vm5 = vnez %v18261_v6 }
 0x627   : > { %v7604_v33 = vsel %vm18258_vm9, 1, %v18188_v39  ;;  %v7605_v16 = vsel %vm18260_vm12, 1, %v18188_v39  ;;  %v7606_v11 = vsel %vm18262_vm5, 1, %v18188_v39  ;;  %v7584_v29 = vadd.s32 %v7576_v43, %v7573_v56  ;;  %v18283_v56 = vld [vmem:[#allocation172_spill] sm:$0xff] }
 0x628   : > { %v7625_v57 = vadd.s32 %v7597_v47, %v7593_v49  ;;  %v7626_v51 = vadd.s32 %v7598_v60, %v7594_v36  ;;  %v7627_v14 = vadd.s32 %v7599_v50, %v7595_v17  ;;  %vm18264_vm2 = vnez %v18263_v22 }
 0x629   : > { %v7607_v15 = vsel %vm18264_vm2, 1, %v18188_v39  ;;  %vm18266_vm10 = vnez %v18265_v9  ;;  %vm18268_vm0 = vnez %v18267_v21  ;;  %v7628_v48 = vadd.s32 %v7600_v40, %v7596_v20 }
 0x62a   : > { %v7608_v58 = vsel %vm18266_vm10, 1, %v18188_v39  ;;  %v7609_v1 = vsel %vm18268_vm0, 1, %v18188_v39  ;;  %v7586_v46 = vadd.s32 %v7585_v25, %v7584_v29  ;;  %v7629_v44 = vadd.s32 %v7625_v57, %v7601_v35 }
 0x62b   : > { %v7630_v55 = vadd.s32 %v7626_v51, %v7602_v0  ;;  %v7631_v38 = vadd.s32 %v7627_v14, %v7603_v5  ;;  %vm18270_vm11 = vnez %v18269_v4  ;;  %vm18272_vm6 = vnez %v18271_v28 }
 0x62c   : > { %v7610_v23 = vsel %vm18270_vm11, 1, %v18188_v39  ;;  %v7611_v3 = vsel %vm18272_vm6, 1, %v18188_v39  ;;  %vm18274_vm14 = vnez %v18273_v54  ;;  %v7632_v37 = vadd.s32 %v7628_v48, %v7604_v33 }
 0x62d   : > { %v7612_v34 = vsel %vm18274_vm14, 1, %v18188_v39  ;;  %v7587_v19 = vrot.slane %v7586_v46, 4  ;;  %v7633_v52 = vadd.s32 %v7629_v44, %v7605_v16  ;;  %v7634_v24 = vadd.s32 %v7630_v55, %v7606_v11 }
 0x62e   : > { %v7635_v7 = vadd.s32 %v7631_v38, %v7607_v15  ;;  %vm18276_vm4 = vnez %v18275_v32  ;;  %vm18278_vm1 = vnez %v18277_v41  ;;  %vm18280_vm3 = vnez %v18279_v18 }
 0x62f   : > { %v7613_v31 = vsel %vm18276_vm4, 1, %v18188_v39  ;;  %v7614_v49 = vsel %vm18278_vm1, 1, %v18188_v39  ;;  %v7615_v2 = vsel %vm18280_vm3, 1, %v18188_v39  ;;  %v7636_v36 = vadd.s32 %v7632_v37, %v7608_v58 }
 0x630   : > { %vm18282_vm15 = vnez %v18281_v30  ;;  %v7637_v27 = vadd.s32 %v7633_v52, %v7609_v1  ;;  %v7638_v20 = vadd.s32 %v7634_v24, %v7610_v23  ;;  %v7639_v59 = vadd.s32 %v7635_v7, %v7611_v3 }
 0x631   : > { %v7616_v17 = vsel %vm18282_vm15, 1, %v18188_v39  ;;  %vm18284_vm8 = vnez %v18283_v56  ;;  %v7640_v42 = vadd.s32 %v7636_v36, %v7612_v34  ;;  %v7588_v47 = vadd.s32 %v7587_v19, %v7586_v46 }
 0x632   : > { %v7617_v63 = vsel %vm18284_vm8, 1, %v18188_v39  ;;  %v7641_v45 = vadd.s32 %v7637_v27, %v7613_v31  ;;  %v7642_v13 = vadd.s32 %v7638_v20, %v7614_v49  ;;  %v7643_v60 = vadd.s32 %v7639_v59, %v7615_v2 }
 0x633   : > { %v7644_v10 = vadd.s32 %v7640_v42, %v7616_v17  ;;  %v7589_v40 = vrot.slane %v7588_v47, 2 }
 0x634   : > { %v7645_v50 = vadd.s32 %v7641_v45, %v7617_v63 }
 0x635   : > { %v7654_v8 = vadd.s32 %v7644_v10, %v7643_v60  ;;  %v7590_v35 = vadd.s32 %v7589_v40, %v7588_v47 }
 0x636   : > { %v7653_v43 = vadd.s32 %v7645_v50, %v7642_v13 }
 0x637   : > { %v7591_v12 = vrot.slane %v7590_v35, 1 }
 0x638   : > { %v7655_v62 = vadd.s32 %v7654_v8, %v7653_v43 }
 0x639   : > { %v7592_v25 = vadd.s32 %v7591_v12, %v7590_v35 }
 0x63a   : > { %v7656_v26 = vrot.slane %v7655_v62, 4 }
 0x63c   : > { %v7657_v0 = vadd.s32 %v7656_v26, %v7655_v62 }
 0x63e   : > { %v7658_v39 = vrot.slane %v7657_v0, 2 }
 0x640   : > { %v7659_v5 = vadd.s32 %v7658_v39, %v7657_v0 }
 0x642   : > { %v7660_v53 = vrot.slane %v7659_v5, 1 }
 0x644   : > { %v7661_v33 = vadd.s32 %v7660_v53, %v7659_v5 }
 0x646   : > { %v7664_v61 = vmul.u32 %v7661_v33, %v7592_v25 }
 0x648   : > { %7665 = vst [vmem:[%s18286_s25] sm:$0x1] %v7664_v61 }
 0x649   : > { %8446 = shalt.err (!%p8443_p7)
}
 0x64a   : > { %s8447_s20 = scalar_lea.hbm %s16540_s19, 16  ;;  %s8451_s24 = scalar_lea.hbm %s16590_s8, 32 }
 0x64b   : > { %p8448_p10 = scmp.ne.s32.totalorder %s16540_s19, %s8447_s20  ;;  %p8452_p13 = scmp.lt.u32.totalorder %s16540_s19, %s16590_s8 }
 0x64c   : > { %p8453_p0 = scmp.lt.u32.totalorder %s8451_s24, %s8447_s20  ;;  %p8455_p2 = scmp.lt.u32.totalorder %s8447_s20, %s16540_s19 }
 0x64d   : > { %p8449_p11 = pnand %p8448_p10, %p8619_p6 }
 0x64e   : > { %p8454_p1 = por %p8453_p0, %p8452_p13 }
 0x64f   : > { %p8450_p12 = pneg %p8449_p11 }
 0x650   : > { %p8456_p3 = por %p8455_p2, %p8454_p1 }
 0x652   : > { %p8457_p4 = pnand %p8456_p3, %p8450_p12 }
 0x654   : > { %8460 = shalt.err (!%p8457_p4)
}
 0x655   : > { %7978 = dma.vmem_to_hbm [thread:$0]  (%p8619_p6), %s7714_s22, 16, %s16540_s19, %s16360_s23  }
 0x656 PF: > { %s7725_s25 = sand.u32 1, %s8499_s27   ;;  %p7983_p5 = pnand %p7884_p9, %p8625_p8 }
 0x657   : > { %s7726_s17 = scalar_lea.sflag [#allocation5], %s7725_s25 }
 0x658   : > { %8490 = dma.done.wait (!%p7983_p5), %s7726_s17, 16  }
 0x659   : > { %8492 = vsyncadd (!%p7983_p5), %s7726_s17, 4294967280  ;;  %s18287_s9 = sadd.s32 4294967294, %s8511_s30  }
 0x65a   : > { %s7733_s10 = sand.u32 1, %s18287_s9  }
 0x65b   : > { %s7734_s21 = scalar_lea.sflag [#allocation7], %s7733_s10 }
 0x65c   : > { %8494 = dma.done.wait (!%p7983_p5), %s7734_s21, 32  }
 0x65d   : > { %8496 = vsyncadd (!%p7983_p5), %s7734_s21, 4294967264  ;;  %p22_p6 = scmp.ge.s32.totalorder %s8605_s11, 4   ;;  %s18288_s27 = smov %s8503_s28 }
 0x65e   : > { %s18289_s28 = smov %s8507_s29  ;;  %s18290_s29 = smov %s8617_s14 }
 0x65f   : > { %s18291_s30 = smov %s8605_s11  ;;  %24 = sbr.rel (!%p22_p6) target bundleno = 5 (0x5), region = 189 }
 0x666   :  { %7746 = vsyncpa [#allocation5], 1 }
 0x667   :  { %7748 = vsyncpa [#allocation5 + $0x1], 1 }
 0x668   :  { %7749 = vsyncpa [#allocation7], 1 }
 0x669   :  { %7751 = vsyncpa [#allocation7 + $0x1], 1 }

</bundles_post_ra>
